<compile_context>
chip_gen: v7x
topology: tpu7x:2x2x1
jax: 0.10.0
libtpu: 0.0.40
codegen_flags: <defaults>
</compile_context>

<pallas_src>
import functools

import jax
import jax.numpy as jnp
import numpy as np
from jax.experimental import pallas as pl
from jax.experimental.pallas import tpu as pltpu

H = 128      # LSTM hidden size
NL = 3       # number of LSTM layers
OUT = 2      # trajectory output dim
YPAD = 128   # lane-dense padded output width
KPAD = 8     # layer-0 input contraction dim, zero-padded from input_size
UNROLL_T = 32


def _lstm_mlp_kernel(x_ref, wih0_ref, whh0_ref, wfused_ref, b_ref,
                     h_init_ref, c_init_ref,
                     w1_ref, b1_ref, w2_ref, b2_ref, w3_ref, b3_ref,
                     y_ref, hn_ref, cn_ref,
                     gx0_ref, hist_ref, *, T, B):
    """Whole forward pass: 3-layer LSTM recurrence + batched MLP head.

    x_ref      : (T*B, KPAD)  time-major input rows, zero-padded to KPAD cols
    wih0_ref   : (KPAD, 4H)   layer-0 input weight^T (zero-padded rows)
    whh0_ref   : (H, 4H)      layer-0 recurrent weight^T
    wfused_ref : (2, 2H, 4H)  layers 1..2 stacked [Wih^T ; Whh^T]  (K = 256)
    b_ref      : (NL, 4H)     summed biases (b_ih + b_hh)
    h_init_ref : (NL, B, H)   initial hidden state
    c_init_ref : (NL, B, H)   initial cell state
    w*/b*_ref  :              MLP head weights (final layer padded to YPAD)
    y_ref      : (T*B, YPAD)  output rows (lane-dense, padded)
    hn_ref     : (NL, B, H)   h_n output
    cn_ref     : (NL, B, H)   c_n output
    gx0_ref    : (T*B, 4H)    scratch: layer-0 input gates, whole sequence
    hist_ref   : (T*B, H)     scratch: top-layer hidden state per timestep
    """
    # ---- layer-0 input projection for the whole sequence (one matmul),
    #      bias folded in; never leaves VMEM.
    gx0_ref[...] = (
        jnp.dot(x_ref[...], wih0_ref[...], preferred_element_type=jnp.float32)
        + jnp.broadcast_to(b_ref[0:1, :], (T * B, 4 * H)))

    # hoist loop-invariant loads / broadcasts out of the time loop
    whh0 = whh0_ref[...]
    wf1 = wfused_ref[0]
    wf2 = wfused_ref[1]
    b1b = jnp.broadcast_to(b_ref[1:2, :], (B, 4 * H))
    b2b = jnp.broadcast_to(b_ref[2:3, :], (B, 4 * H))

    def cell(gates, c_prev):
        i = jax.nn.sigmoid(gates[:, 0 * H:1 * H])
        f = jax.nn.sigmoid(gates[:, 1 * H:2 * H])
        g = jnp.tanh(gates[:, 2 * H:3 * H])
        o = jax.nn.sigmoid(gates[:, 3 * H:4 * H])
        c_new = f * c_prev + i * g
        h_new = o * jnp.tanh(c_new)
        return h_new, c_new

    def step(t, state):
        h0p, c0p, h1p, c1p, h2p, c2p = state
        rows = pl.ds(t * B, B)
        # layer 0: input contribution precomputed for the whole sequence
        g0 = gx0_ref[rows, :] + jnp.dot(h0p, whh0,
                                        preferred_element_type=jnp.float32)
        h0n, c0n = cell(g0, c0p)
        # layer 1: fused K=256 matmul over [h_below ; h_self_prev]
        g1 = jnp.dot(jnp.concatenate([h0n, h1p], axis=-1), wf1,
                     preferred_element_type=jnp.float32) + b1b
        h1n, c1n = cell(g1, c1p)
        # layer 2: fused K=256 matmul
        g2 = jnp.dot(jnp.concatenate([h1n, h2p], axis=-1), wf2,
                     preferred_element_type=jnp.float32) + b2b
        h2n, c2n = cell(g2, c2p)
        hist_ref[rows, :] = h2n      # consumed by the batched head below
        return (h0n, c0n, h1n, c1n, h2n, c2n)

    state = (h_init_ref[0], c_init_ref[0],
             h_init_ref[1], c_init_ref[1],
             h_init_ref[2], c_init_ref[2])
    if T <= UNROLL_T:
        for t in range(T):           # fully unrolled: static row offsets
            state = step(t, state)
    else:
        state = jax.lax.fori_loop(0, T, step, state)

    h0n, c0n, h1n, c1n, h2n, c2n = state
    hn_ref[0] = h0n
    hn_ref[1] = h1n
    hn_ref[2] = h2n
    cn_ref[0] = c0n
    cn_ref[1] = c1n
    cn_ref[2] = c2n

    # ---- deferred, batched MLP head over all T*B rows (lane-dense output)
    z = jnp.maximum(
        jnp.dot(hist_ref[...], w1_ref[...], preferred_element_type=jnp.float32)
        + b1_ref[...], 0.0)
    z = jnp.maximum(
        jnp.dot(z, w2_ref[...], preferred_element_type=jnp.float32)
        + b2_ref[...], 0.0)
    y_ref[...] = (jnp.dot(z, w3_ref[...], preferred_element_type=jnp.float32)
                  + b3_ref[...])


def _vmem():
    return pl.BlockSpec(memory_space=pltpu.MemorySpace.VMEM)


def trajectory_generator_forward(x, params, hidden=None):
    """x: (B, T, input_size) float32 (batch_first). Returns (y, (h_n, c_n))."""
    (wih0_T, whh0_T, wfused, b_sum, w1_T, b1, w2_T, b2, w3p_T, b3p) = params
    B, T, I = x.shape

    if hidden is None:
        h_init = jnp.zeros((NL, B, H), jnp.float32)
        c_init = jnp.zeros((NL, B, H), jnp.float32)
    else:
        h_init, c_init = hidden

    # time-major rows; contraction dim zero-padded to KPAD (sublane aligned)
    x_tm = jnp.transpose(x, (1, 0, 2)).reshape(T * B, I)
    x_pad = jnp.zeros((T * B, KPAD), jnp.float32).at[:, :I].set(x_tm)
    wih0_pad = jnp.zeros((KPAD, 4 * H), jnp.float32).at[:I, :].set(wih0_T)

    kernel = functools.partial(_lstm_mlp_kernel, T=T, B=B)
    y_pad, h_n, c_n = pl.pallas_call(
        kernel,
        out_shape=(
            jax.ShapeDtypeStruct((T * B, YPAD), jnp.float32),   # padded output
            jax.ShapeDtypeStruct((NL, B, H), jnp.float32),      # h_n
            jax.ShapeDtypeStruct((NL, B, H), jnp.float32),      # c_n
        ),
        in_specs=[_vmem() for _ in range(13)],
        out_specs=(_vmem(), _vmem(), _vmem()),
        scratch_shapes=[
            pltpu.VMEM((T * B, 4 * H), jnp.float32),   # layer-0 input gates
            pltpu.VMEM((T * B, H), jnp.float32),       # lstm_out history
        ],
    )(x_pad, wih0_pad, whh0_T, wfused, b_sum, h_init, c_init,
      w1_T, b1, w2_T, b2, w3p_T, b3p)

    y = jnp.transpose(y_pad.reshape(T, B, YPAD)[:, :, :OUT], (1, 0, 2))  # (B,T,2)
    return y, (h_n, c_n)


def init_params(key, input_size=2):
    """Deterministic synthetic parameters matching nn.LSTM / nn.Linear shapes
    (stored pre-transposed so the kernel computes `act @ W^T` directly)."""
    ks = jax.random.split(key, 16)
    s = 0.1
    # LSTM weights
    wih0_T = s * jax.random.normal(ks[0], (input_size, 4 * H), jnp.float32)
    wih12_T = s * jax.random.normal(ks[1], (NL - 1, H, 4 * H), jnp.float32)
    whh_T = s * jax.random.normal(ks[2], (NL, H, 4 * H), jnp.float32)
    b_ih = s * jax.random.normal(ks[3], (NL, 4 * H), jnp.float32)
    b_hh = s * jax.random.normal(ks[4], (NL, 4 * H), jnp.float32)
    b_sum = b_ih + b_hh                     # PyTorch adds both biases; pre-summed
    whh0_T = whh_T[0]
    # fused [Wih^T ; Whh^T] for layers 1..2 -> (2, 2H, 4H), K = 256
    wfused = jnp.concatenate([wih12_T, whh_T[1:]], axis=1)
    # MLP head; final layer zero-padded to 128 output lanes (sliced in wrapper)
    w1_T = s * jax.random.normal(ks[5], (H, 64), jnp.float32)
    b1 = s * jax.random.normal(ks[6], (1, 64), jnp.float32)
    w2_T = s * jax.random.normal(ks[7], (64, 32), jnp.float32)
    b2 = s * jax.random.normal(ks[8], (1, 32), jnp.float32)
    w3_T = s * jax.random.normal(ks[9], (32, OUT), jnp.float32)
    b3 = s * jax.random.normal(ks[10], (1, OUT), jnp.float32)
    w3p_T = jnp.zeros((32, YPAD), jnp.float32).at[:, :OUT].set(w3_T)
    b3p = jnp.zeros((1, YPAD), jnp.float32).at[:, :OUT].set(b3)
    return (wih0_T, whh0_T, wfused, b_sum, w1_T, b1, w2_T, b2, w3p_T, b3p)


def reference_forward(x, params, hidden=None):
    """Pure-JAX reference (mirrors PyTorch LSTM + MLP semantics)."""
    (wih0_T, whh0_T, wfused, b_sum, w1_T, b1, w2_T, b2, w3p_T, b3p) = params
    wih_l = [wih0_T, wfused[0, :H], wfused[1, :H]]
    whh_l = [whh0_T, wfused[0, H:], wfused[1, H:]]
    w3_T, b3 = w3p_T[:, :OUT], b3p[:, :OUT]
    hp = jax.lax.Precision.HIGHEST
    B, T, _ = x.shape
    if hidden is None:
        h = [jnp.zeros((B, H), jnp.float32) for _ in range(NL)]
        c = [jnp.zeros((B, H), jnp.float32) for _ in range(NL)]
    else:
        h = [hidden[0][l] for l in range(NL)]
        c = [hidden[1][l] for l in range(NL)]
    ys = []
    for t in range(T):
        inp = x[:, t, :]
        for l in range(NL):
            gates = (jnp.dot(inp, wih_l[l], precision=hp)
                     + jnp.dot(h[l], whh_l[l], precision=hp) + b_sum[l])
            i = jax.nn.sigmoid(gates[:, :H])
            f = jax.nn.sigmoid(gates[:, H:2 * H])
            g = jnp.tanh(gates[:, 2 * H:3 * H])
            o = jax.nn.sigmoid(gates[:, 3 * H:])
            c[l] = f * c[l] + i * g
            h[l] = o * jnp.tanh(c[l])
            inp = h[l]
        z = jax.nn.relu(jnp.dot(inp, w1_T, precision=hp) + b1)
        z = jax.nn.relu(jnp.dot(z, w2_T, precision=hp) + b2)
        ys.append(jnp.dot(z, w3_T, precision=hp) + b3)
    return jnp.stack(ys, axis=1), (jnp.stack(h), jnp.stack(c))


if __name__ == "__main__":
    key = jax.random.PRNGKey(0)
    k_x, k_p, k_h, k_c = jax.random.split(key, 4)

    B, T, I = 2, 8, 2
    x = jax.random.normal(k_x, (B, T, I), jnp.float32)
    params = init_params(k_p, input_size=I)

    # ---- hidden=None path (default)
    fwd = jax.jit(trajectory_generator_forward)
    y, (h_n, c_n) = fwd(x, params)
    jax.block_until_ready((y, h_n, c_n))

    assert y.shape == (B, T, OUT)
    assert h_n.shape == (NL, B, H) and c_n.shape == (NL, B, H)

    y_ref, (hn_ref, cn_ref) = reference_forward(x, params)
    np.testing.assert_allclose(np.asarray(y), np.asarray(y_ref), atol=1e-2, rtol=1e-2)
    np.testing.assert_allclose(np.asarray(h_n), np.asarray(hn_ref), atol=1e-2, rtol=1e-2)
    np.testing.assert_allclose(np.asarray(c_n), np.asarray(cn_ref), atol=1e-2, rtol=1e-2)

    # ---- user-provided initial hidden state path
    h0 = 0.1 * jax.random.normal(k_h, (NL, B, H), jnp.float32)
    c0 = 0.1 * jax.random.normal(k_c, (NL, B, H), jnp.float32)
    y2, (h_n2, c_n2) = jax.jit(trajectory_generator_forward)(x, params, (h0, c0))
    jax.block_until_ready((y2, h_n2, c_n2))
    y2_ref, (hn2_ref, cn2_ref) = reference_forward(x, params, (h0, c0))
    np.testing.assert_allclose(np.asarray(y2), np.asarray(y2_ref), atol=1e-2, rtol=1e-2)
    np.testing.assert_allclose(np.asarray(h_n2), np.asarray(hn2_ref), atol=1e-2, rtol=1e-2)
    np.testing.assert_allclose(np.asarray(c_n2), np.asarray(cn2_ref), atol=1e-2, rtol=1e-2)

    print("KERNEL_OK")
</pallas_src>

<mosaic_0001>
module attributes {stable_mosaic.version = 11 : i64} {
  func.func @_lstm_mlp_kernel(%arg0: memref<16x8xf32, #tpu.memory_space<vmem>>, %arg1: memref<8x512xf32, #tpu.memory_space<vmem>>, %arg2: memref<128x512xf32, #tpu.memory_space<vmem>>, %arg3: memref<2x256x512xf32, #tpu.memory_space<vmem>>, %arg4: memref<3x512xf32, #tpu.memory_space<vmem>>, %arg5: memref<3x2x128xf32, #tpu.memory_space<vmem>>, %arg6: memref<3x2x128xf32, #tpu.memory_space<vmem>>, %arg7: memref<128x64xf32, #tpu.memory_space<vmem>>, %arg8: memref<1x64xf32, #tpu.memory_space<vmem>>, %arg9: memref<64x32xf32, #tpu.memory_space<vmem>>, %arg10: memref<1x32xf32, #tpu.memory_space<vmem>>, %arg11: memref<32x128xf32, #tpu.memory_space<vmem>>, %arg12: memref<1x128xf32, #tpu.memory_space<vmem>>, %arg13: memref<16x128xf32, #tpu.memory_space<vmem>>, %arg14: memref<3x2x128xf32, #tpu.memory_space<vmem>>, %arg15: memref<3x2x128xf32, #tpu.memory_space<vmem>>, %arg16: memref<16x512xf32, #tpu.memory_space<vmem>>, %arg17: memref<16x128xf32, #tpu.memory_space<vmem>>) attributes {dimension_semantics = [], scalar_prefetch = 0 : i64, scratch_operands = 2 : i64, tpu.core_type = #tpu.core_type<tc>} {
    %c0 = arith.constant 0 : index
    %c0_0 = arith.constant 0 : index
    %0 = vector.load %arg0[%c0, %c0_0] : memref<16x8xf32, #tpu.memory_space<vmem>>, vector<16x8xf32>
    %c0_1 = arith.constant 0 : index
    %c0_2 = arith.constant 0 : index
    %1 = vector.load %arg1[%c0_1, %c0_2] : memref<8x512xf32, #tpu.memory_space<vmem>>, vector<8x512xf32>
    %cst = arith.constant dense<0.000000e+00> : vector<16x512xf32>
    %2 = tpu.matmul %0, %1, %cst {dimension_numbers = #tpu.dot_dimension_numbers<[1], [0], [0], [1], [0, 0, 1, 1], [], []>} : vector<16x8xf32>, vector<8x512xf32>, vector<16x512xf32> -> vector<16x512xf32>
    %c0_3 = arith.constant 0 : index
    %c0_4 = arith.constant 0 : index
    %3 = vector.load %arg4[%c0_3, %c0_4] : memref<3x512xf32, #tpu.memory_space<vmem>>, vector<1x512xf32>
    %4 = vector.shape_cast %3 : vector<1x512xf32> to vector<1x512xf32>
    %5 = vector.broadcast %4 : vector<1x512xf32> to vector<16x512xf32>
    %6 = arith.addf %2, %5 : vector<16x512xf32>
    %c0_5 = arith.constant 0 : index
    %c0_6 = arith.constant 0 : index
    %7 = vector.load %arg16[%c0_5, %c0_6] : memref<16x512xf32, #tpu.memory_space<vmem>>, vector<16x512xf32>
    tpu.vector_store %arg16[%c0_5, %c0_6], %6 {strides = array<i32>} : memref<16x512xf32, #tpu.memory_space<vmem>>, vector<16x512xf32>,
    %c0_7 = arith.constant 0 : index
    %c0_8 = arith.constant 0 : index
    %8 = vector.load %arg2[%c0_7, %c0_8] : memref<128x512xf32, #tpu.memory_space<vmem>>, vector<128x512xf32>
    %c0_9 = arith.constant 0 : index
    %c0_10 = arith.constant 0 : index
    %c0_11 = arith.constant 0 : index
    %9 = vector.load %arg3[%c0_9, %c0_10, %c0_11] : memref<2x256x512xf32, #tpu.memory_space<vmem>>, vector<1x256x512xf32>
    %10 = vector.shape_cast %9 : vector<1x256x512xf32> to vector<256x512xf32>
    %c1 = arith.constant 1 : index
    %c0_12 = arith.constant 0 : index
    %c0_13 = arith.constant 0 : index
    %11 = vector.load %arg3[%c1, %c0_12, %c0_13] : memref<2x256x512xf32, #tpu.memory_space<vmem>>, vector<1x256x512xf32>
    %12 = vector.shape_cast %11 : vector<1x256x512xf32> to vector<256x512xf32>
    %c1_14 = arith.constant 1 : index
    %c0_15 = arith.constant 0 : index
    %13 = vector.load %arg4[%c1_14, %c0_15] : memref<3x512xf32, #tpu.memory_space<vmem>>, vector<1x512xf32>
    %14 = vector.shape_cast %13 : vector<1x512xf32> to vector<1x512xf32>
    %15 = vector.broadcast %14 : vector<1x512xf32> to vector<2x512xf32>
    %c2 = arith.constant 2 : index
    %c0_16 = arith.constant 0 : index
    %16 = vector.load %arg4[%c2, %c0_16] : memref<3x512xf32, #tpu.memory_space<vmem>>, vector<1x512xf32>
    %17 = vector.shape_cast %16 : vector<1x512xf32> to vector<1x512xf32>
    %18 = vector.broadcast %17 : vector<1x512xf32> to vector<2x512xf32>
    %c0_17 = arith.constant 0 : index
    %c0_18 = arith.constant 0 : index
    %c0_19 = arith.constant 0 : index
    %19 = vector.load %arg5[%c0_17, %c0_18, %c0_19] : memref<3x2x128xf32, #tpu.memory_space<vmem>>, vector<1x2x128xf32>
    %20 = vector.shape_cast %19 : vector<1x2x128xf32> to vector<2x128xf32>
    %c0_20 = arith.constant 0 : index
    %c0_21 = arith.constant 0 : index
    %c0_22 = arith.constant 0 : index
    %21 = vector.load %arg6[%c0_20, %c0_21, %c0_22] : memref<3x2x128xf32, #tpu.memory_space<vmem>>, vector<1x2x128xf32>
    %22 = vector.shape_cast %21 : vector<1x2x128xf32> to vector<2x128xf32>
    %c1_23 = arith.constant 1 : index
    %c0_24 = arith.constant 0 : index
    %c0_25 = arith.constant 0 : index
    %23 = vector.load %arg5[%c1_23, %c0_24, %c0_25] : memref<3x2x128xf32, #tpu.memory_space<vmem>>, vector<1x2x128xf32>
    %24 = vector.shape_cast %23 : vector<1x2x128xf32> to vector<2x128xf32>
    %c1_26 = arith.constant 1 : index
    %c0_27 = arith.constant 0 : index
    %c0_28 = arith.constant 0 : index
    %25 = vector.load %arg6[%c1_26, %c0_27, %c0_28] : memref<3x2x128xf32, #tpu.memory_space<vmem>>, vector<1x2x128xf32>
    %26 = vector.shape_cast %25 : vector<1x2x128xf32> to vector<2x128xf32>
    %c2_29 = arith.constant 2 : index
    %c0_30 = arith.constant 0 : index
    %c0_31 = arith.constant 0 : index
    %27 = vector.load %arg5[%c2_29, %c0_30, %c0_31] : memref<3x2x128xf32, #tpu.memory_space<vmem>>, vector<1x2x128xf32>
    %28 = vector.shape_cast %27 : vector<1x2x128xf32> to vector<2x128xf32>
    %c2_32 = arith.constant 2 : index
    %c0_33 = arith.constant 0 : index
    %c0_34 = arith.constant 0 : index
    %29 = vector.load %arg6[%c2_32, %c0_33, %c0_34] : memref<3x2x128xf32, #tpu.memory_space<vmem>>, vector<1x2x128xf32>
    %30 = vector.shape_cast %29 : vector<1x2x128xf32> to vector<2x128xf32>
    %c0_35 = arith.constant 0 : index
    %c0_36 = arith.constant 0 : index
    %31 = vector.load %arg16[%c0_35, %c0_36] : memref<16x512xf32, #tpu.memory_space<vmem>>, vector<2x512xf32>
    %cst_37 = arith.constant dense<0.000000e+00> : vector<2x512xf32>
    %32 = tpu.matmul %20, %8, %cst_37 {dimension_numbers = #tpu.dot_dimension_numbers<[1], [0], [0], [1], [0, 0, 1, 1], [], []>} : vector<2x128xf32>, vector<128x512xf32>, vector<2x512xf32> -> vector<2x512xf32>
    %33 = arith.addf %31, %32 : vector<2x512xf32>
    %34 = vector.extract_strided_slice %33 {offsets = [0, 0], sizes = [2, 128], strides = [1, 1]} : vector<2x512xf32> to vector<2x128xf32>
    %35 = arith.negf %34 : vector<2x128xf32>
    %36 = math.exp %35 : vector<2x128xf32>
    %cst_38 = arith.constant 1.000000e+00 : f32
    %37 = vector.broadcast %cst_38 : f32 to vector<2x128xf32>
    %38 = arith.addf %37, %36 : vector<2x128xf32>
    %39 = arith.divf %37, %38 : vector<2x128xf32>
    %40 = vector.extract_strided_slice %33 {offsets = [0, 128], sizes = [2, 128], strides = [1, 1]} : vector<2x512xf32> to vector<2x128xf32>
    %41 = arith.negf %40 : vector<2x128xf32>
    %42 = math.exp %41 : vector<2x128xf32>
    %cst_39 = arith.constant 1.000000e+00 : f32
    %43 = vector.broadcast %cst_39 : f32 to vector<2x128xf32>
    %44 = arith.addf %43, %42 : vector<2x128xf32>
    %45 = arith.divf %43, %44 : vector<2x128xf32>
    %46 = vector.extract_strided_slice %33 {offsets = [0, 256], sizes = [2, 128], strides = [1, 1]} : vector<2x512xf32> to vector<2x128xf32>
    %47 = math.tanh %46 : vector<2x128xf32>
    %48 = vector.extract_strided_slice %33 {offsets = [0, 384], sizes = [2, 128], strides = [1, 1]} : vector<2x512xf32> to vector<2x128xf32>
    %49 = arith.negf %48 : vector<2x128xf32>
    %50 = math.exp %49 : vector<2x128xf32>
    %cst_40 = arith.constant 1.000000e+00 : f32
    %51 = vector.broadcast %cst_40 : f32 to vector<2x128xf32>
    %52 = arith.addf %51, %50 : vector<2x128xf32>
    %53 = arith.divf %51, %52 : vector<2x128xf32>
    %54 = arith.mulf %45, %22 : vector<2x128xf32>
    %55 = arith.mulf %39, %47 : vector<2x128xf32>
    %56 = arith.addf %54, %55 : vector<2x128xf32>
    %57 = math.tanh %56 : vector<2x128xf32>
    %58 = arith.mulf %53, %57 : vector<2x128xf32>
    %59 = tpu.concatenate %58, %24 in 1 : vector<2x128xf32>, vector<2x128xf32> -> vector<2x256xf32>
    %cst_41 = arith.constant dense<0.000000e+00> : vector<2x512xf32>
    %60 = tpu.matmul %59, %10, %cst_41 {dimension_numbers = #tpu.dot_dimension_numbers<[1], [0], [0], [1], [0, 0, 1, 1], [], []>} : vector<2x256xf32>, vector<256x512xf32>, vector<2x512xf32> -> vector<2x512xf32>
    %61 = arith.addf %60, %15 : vector<2x512xf32>
    %62 = vector.extract_strided_slice %61 {offsets = [0, 0], sizes = [2, 128], strides = [1, 1]} : vector<2x512xf32> to vector<2x128xf32>
    %63 = arith.negf %62 : vector<2x128xf32>
    %64 = math.exp %63 : vector<2x128xf32>
    %cst_42 = arith.constant 1.000000e+00 : f32
    %65 = vector.broadcast %cst_42 : f32 to vector<2x128xf32>
    %66 = arith.addf %65, %64 : vector<2x128xf32>
    %67 = arith.divf %65, %66 : vector<2x128xf32>
    %68 = vector.extract_strided_slice %61 {offsets = [0, 128], sizes = [2, 128], strides = [1, 1]} : vector<2x512xf32> to vector<2x128xf32>
    %69 = arith.negf %68 : vector<2x128xf32>
    %70 = math.exp %69 : vector<2x128xf32>
    %cst_43 = arith.constant 1.000000e+00 : f32
    %71 = vector.broadcast %cst_43 : f32 to vector<2x128xf32>
    %72 = arith.addf %71, %70 : vector<2x128xf32>
    %73 = arith.divf %71, %72 : vector<2x128xf32>
    %74 = vector.extract_strided_slice %61 {offsets = [0, 256], sizes = [2, 128], strides = [1, 1]} : vector<2x512xf32> to vector<2x128xf32>
    %75 = math.tanh %74 : vector<2x128xf32>
    %76 = vector.extract_strided_slice %61 {offsets = [0, 384], sizes = [2, 128], strides = [1, 1]} : vector<2x512xf32> to vector<2x128xf32>
    %77 = arith.negf %76 : vector<2x128xf32>
    %78 = math.exp %77 : vector<2x128xf32>
    %cst_44 = arith.constant 1.000000e+00 : f32
    %79 = vector.broadcast %cst_44 : f32 to vector<2x128xf32>
    %80 = arith.addf %79, %78 : vector<2x128xf32>
    %81 = arith.divf %79, %80 : vector<2x128xf32>
    %82 = arith.mulf %73, %26 : vector<2x128xf32>
    %83 = arith.mulf %67, %75 : vector<2x128xf32>
    %84 = arith.addf %82, %83 : vector<2x128xf32>
    %85 = math.tanh %84 : vector<2x128xf32>
    %86 = arith.mulf %81, %85 : vector<2x128xf32>
    %87 = tpu.concatenate %86, %28 in 1 : vector<2x128xf32>, vector<2x128xf32> -> vector<2x256xf32>
    %cst_45 = arith.constant dense<0.000000e+00> : vector<2x512xf32>
    %88 = tpu.matmul %87, %12, %cst_45 {dimension_numbers = #tpu.dot_dimension_numbers<[1], [0], [0], [1], [0, 0, 1, 1], [], []>} : vector<2x256xf32>, vector<256x512xf32>, vector<2x512xf32> -> vector<2x512xf32>
    %89 = arith.addf %88, %18 : vector<2x512xf32>
    %90 = vector.extract_strided_slice %89 {offsets = [0, 0], sizes = [2, 128], strides = [1, 1]} : vector<2x512xf32> to vector<2x128xf32>
    %91 = arith.negf %90 : vector<2x128xf32>
    %92 = math.exp %91 : vector<2x128xf32>
    %cst_46 = arith.constant 1.000000e+00 : f32
    %93 = vector.broadcast %cst_46 : f32 to vector<2x128xf32>
    %94 = arith.addf %93, %92 : vector<2x128xf32>
    %95 = arith.divf %93, %94 : vector<2x128xf32>
    %96 = vector.extract_strided_slice %89 {offsets = [0, 128], sizes = [2, 128], strides = [1, 1]} : vector<2x512xf32> to vector<2x128xf32>
    %97 = arith.negf %96 : vector<2x128xf32>
    %98 = math.exp %97 : vector<2x128xf32>
    %cst_47 = arith.constant 1.000000e+00 : f32
    %99 = vector.broadcast %cst_47 : f32 to vector<2x128xf32>
    %100 = arith.addf %99, %98 : vector<2x128xf32>
    %101 = arith.divf %99, %100 : vector<2x128xf32>
    %102 = vector.extract_strided_slice %89 {offsets = [0, 256], sizes = [2, 128], strides = [1, 1]} : vector<2x512xf32> to vector<2x128xf32>
    %103 = math.tanh %102 : vector<2x128xf32>
    %104 = vector.extract_strided_slice %89 {offsets = [0, 384], sizes = [2, 128], strides = [1, 1]} : vector<2x512xf32> to vector<2x128xf32>
    %105 = arith.negf %104 : vector<2x128xf32>
    %106 = math.exp %105 : vector<2x128xf32>
    %cst_48 = arith.constant 1.000000e+00 : f32
    %107 = vector.broadcast %cst_48 : f32 to vector<2x128xf32>
    %108 = arith.addf %107, %106 : vector<2x128xf32>
    %109 = arith.divf %107, %108 : vector<2x128xf32>
    %110 = arith.mulf %101, %30 : vector<2x128xf32>
    %111 = arith.mulf %95, %103 : vector<2x128xf32>
    %112 = arith.addf %110, %111 : vector<2x128xf32>
    %113 = math.tanh %112 : vector<2x128xf32>
    %114 = arith.mulf %109, %113 : vector<2x128xf32>
    %c0_49 = arith.constant 0 : index
    %c0_50 = arith.constant 0 : index
    %115 = vector.load %arg17[%c0_49, %c0_50] : memref<16x128xf32, #tpu.memory_space<vmem>>, vector<2x128xf32>
    tpu.vector_store %arg17[%c0_49, %c0_50], %114 {strides = array<i32>} : memref<16x128xf32, #tpu.memory_space<vmem>>, vector<2x128xf32>,
    %c2_51 = arith.constant 2 : index
    %c0_52 = arith.constant 0 : index
    %116 = vector.load %arg16[%c2_51, %c0_52] : memref<16x512xf32, #tpu.memory_space<vmem>>, vector<2x512xf32>
    %cst_53 = arith.constant dense<0.000000e+00> : vector<2x512xf32>
    %117 = tpu.matmul %58, %8, %cst_53 {dimension_numbers = #tpu.dot_dimension_numbers<[1], [0], [0], [1], [0, 0, 1, 1], [], []>} : vector<2x128xf32>, vector<128x512xf32>, vector<2x512xf32> -> vector<2x512xf32>
    %118 = arith.addf %116, %117 : vector<2x512xf32>
    %119 = vector.extract_strided_slice %118 {offsets = [0, 0], sizes = [2, 128], strides = [1, 1]} : vector<2x512xf32> to vector<2x128xf32>
    %120 = arith.negf %119 : vector<2x128xf32>
    %121 = math.exp %120 : vector<2x128xf32>
    %cst_54 = arith.constant 1.000000e+00 : f32
    %122 = vector.broadcast %cst_54 : f32 to vector<2x128xf32>
    %123 = arith.addf %122, %121 : vector<2x128xf32>
    %124 = arith.divf %122, %123 : vector<2x128xf32>
    %125 = vector.extract_strided_slice %118 {offsets = [0, 128], sizes = [2, 128], strides = [1, 1]} : vector<2x512xf32> to vector<2x128xf32>
    %126 = arith.negf %125 : vector<2x128xf32>
    %127 = math.exp %126 : vector<2x128xf32>
    %cst_55 = arith.constant 1.000000e+00 : f32
    %128 = vector.broadcast %cst_55 : f32 to vector<2x128xf32>
    %129 = arith.addf %128, %127 : vector<2x128xf32>
    %130 = arith.divf %128, %129 : vector<2x128xf32>
    %131 = vector.extract_strided_slice %118 {offsets = [0, 256], sizes = [2, 128], strides = [1, 1]} : vector<2x512xf32> to vector<2x128xf32>
    %132 = math.tanh %131 : vector<2x128xf32>
    %133 = vector.extract_strided_slice %118 {offsets = [0, 384], sizes = [2, 128], strides = [1, 1]} : vector<2x512xf32> to vector<2x128xf32>
    %134 = arith.negf %133 : vector<2x128xf32>
    %135 = math.exp %134 : vector<2x128xf32>
    %cst_56 = arith.constant 1.000000e+00 : f32
    %136 = vector.broadcast %cst_56 : f32 to vector<2x128xf32>
    %137 = arith.addf %136, %135 : vector<2x128xf32>
    %138 = arith.divf %136, %137 : vector<2x128xf32>
    %139 = arith.mulf %130, %56 : vector<2x128xf32>
    %140 = arith.mulf %124, %132 : vector<2x128xf32>
    %141 = arith.addf %139, %140 : vector<2x128xf32>
    %142 = math.tanh %141 : vector<2x128xf32>
    %143 = arith.mulf %138, %142 : vector<2x128xf32>
    %144 = tpu.concatenate %143, %86 in 1 : vector<2x128xf32>, vector<2x128xf32> -> vector<2x256xf32>
    %cst_57 = arith.constant dense<0.000000e+00> : vector<2x512xf32>
    %145 = tpu.matmul %144, %10, %cst_57 {dimension_numbers = #tpu.dot_dimension_numbers<[1], [0], [0], [1], [0, 0, 1, 1], [], []>} : vector<2x256xf32>, vector<256x512xf32>, vector<2x512xf32> -> vector<2x512xf32>
    %146 = arith.addf %145, %15 : vector<2x512xf32>
    %147 = vector.extract_strided_slice %146 {offsets = [0, 0], sizes = [2, 128], strides = [1, 1]} : vector<2x512xf32> to vector<2x128xf32>
    %148 = arith.negf %147 : vector<2x128xf32>
    %149 = math.exp %148 : vector<2x128xf32>
    %cst_58 = arith.constant 1.000000e+00 : f32
    %150 = vector.broadcast %cst_58 : f32 to vector<2x128xf32>
    %151 = arith.addf %150, %149 : vector<2x128xf32>
    %152 = arith.divf %150, %151 : vector<2x128xf32>
    %153 = vector.extract_strided_slice %146 {offsets = [0, 128], sizes = [2, 128], strides = [1, 1]} : vector<2x512xf32> to vector<2x128xf32>
    %154 = arith.negf %153 : vector<2x128xf32>
    %155 = math.exp %154 : vector<2x128xf32>
    %cst_59 = arith.constant 1.000000e+00 : f32
    %156 = vector.broadcast %cst_59 : f32 to vector<2x128xf32>
    %157 = arith.addf %156, %155 : vector<2x128xf32>
    %158 = arith.divf %156, %157 : vector<2x128xf32>
    %159 = vector.extract_strided_slice %146 {offsets = [0, 256], sizes = [2, 128], strides = [1, 1]} : vector<2x512xf32> to vector<2x128xf32>
    %160 = math.tanh %159 : vector<2x128xf32>
    %161 = vector.extract_strided_slice %146 {offsets = [0, 384], sizes = [2, 128], strides = [1, 1]} : vector<2x512xf32> to vector<2x128xf32>
    %162 = arith.negf %161 : vector<2x128xf32>
    %163 = math.exp %162 : vector<2x128xf32>
    %cst_60 = arith.constant 1.000000e+00 : f32
    %164 = vector.broadcast %cst_60 : f32 to vector<2x128xf32>
    %165 = arith.addf %164, %163 : vector<2x128xf32>
    %166 = arith.divf %164, %165 : vector<2x128xf32>
    %167 = arith.mulf %158, %84 : vector<2x128xf32>
    %168 = arith.mulf %152, %160 : vector<2x128xf32>
    %169 = arith.addf %167, %168 : vector<2x128xf32>
    %170 = math.tanh %169 : vector<2x128xf32>
    %171 = arith.mulf %166, %170 : vector<2x128xf32>
    %172 = tpu.concatenate %171, %114 in 1 : vector<2x128xf32>, vector<2x128xf32> -> vector<2x256xf32>
    %cst_61 = arith.constant dense<0.000000e+00> : vector<2x512xf32>
    %173 = tpu.matmul %172, %12, %cst_61 {dimension_numbers = #tpu.dot_dimension_numbers<[1], [0], [0], [1], [0, 0, 1, 1], [], []>} : vector<2x256xf32>, vector<256x512xf32>, vector<2x512xf32> -> vector<2x512xf32>
    %174 = arith.addf %173, %18 : vector<2x512xf32>
    %175 = vector.extract_strided_slice %174 {offsets = [0, 0], sizes = [2, 128], strides = [1, 1]} : vector<2x512xf32> to vector<2x128xf32>
    %176 = arith.negf %175 : vector<2x128xf32>
    %177 = math.exp %176 : vector<2x128xf32>
    %cst_62 = arith.constant 1.000000e+00 : f32
    %178 = vector.broadcast %cst_62 : f32 to vector<2x128xf32>
    %179 = arith.addf %178, %177 : vector<2x128xf32>
    %180 = arith.divf %178, %179 : vector<2x128xf32>
    %181 = vector.extract_strided_slice %174 {offsets = [0, 128], sizes = [2, 128], strides = [1, 1]} : vector<2x512xf32> to vector<2x128xf32>
    %182 = arith.negf %181 : vector<2x128xf32>
    %183 = math.exp %182 : vector<2x128xf32>
    %cst_63 = arith.constant 1.000000e+00 : f32
    %184 = vector.broadcast %cst_63 : f32 to vector<2x128xf32>
    %185 = arith.addf %184, %183 : vector<2x128xf32>
    %186 = arith.divf %184, %185 : vector<2x128xf32>
    %187 = vector.extract_strided_slice %174 {offsets = [0, 256], sizes = [2, 128], strides = [1, 1]} : vector<2x512xf32> to vector<2x128xf32>
    %188 = math.tanh %187 : vector<2x128xf32>
    %189 = vector.extract_strided_slice %174 {offsets = [0, 384], sizes = [2, 128], strides = [1, 1]} : vector<2x512xf32> to vector<2x128xf32>
    %190 = arith.negf %189 : vector<2x128xf32>
    %191 = math.exp %190 : vector<2x128xf32>
    %cst_64 = arith.constant 1.000000e+00 : f32
    %192 = vector.broadcast %cst_64 : f32 to vector<2x128xf32>
    %193 = arith.addf %192, %191 : vector<2x128xf32>
    %194 = arith.divf %192, %193 : vector<2x128xf32>
    %195 = arith.mulf %186, %112 : vector<2x128xf32>
    %196 = arith.mulf %180, %188 : vector<2x128xf32>
    %197 = arith.addf %195, %196 : vector<2x128xf32>
    %198 = math.tanh %197 : vector<2x128xf32>
    %199 = arith.mulf %194, %198 : vector<2x128xf32>
    %c2_65 = arith.constant 2 : index
    %c0_66 = arith.constant 0 : index
    %200 = vector.load %arg17[%c2_65, %c0_66] : memref<16x128xf32, #tpu.memory_space<vmem>>, vector<2x128xf32>
    tpu.vector_store %arg17[%c2_65, %c0_66], %199 {strides = array<i32>} : memref<16x128xf32, #tpu.memory_space<vmem>>, vector<2x128xf32>,
    %c4 = arith.constant 4 : index
    %c0_67 = arith.constant 0 : index
    %201 = vector.load %arg16[%c4, %c0_67] : memref<16x512xf32, #tpu.memory_space<vmem>>, vector<2x512xf32>
    %cst_68 = arith.constant dense<0.000000e+00> : vector<2x512xf32>
    %202 = tpu.matmul %143, %8, %cst_68 {dimension_numbers = #tpu.dot_dimension_numbers<[1], [0], [0], [1], [0, 0, 1, 1], [], []>} : vector<2x128xf32>, vector<128x512xf32>, vector<2x512xf32> -> vector<2x512xf32>
    %203 = arith.addf %201, %202 : vector<2x512xf32>
    %204 = vector.extract_strided_slice %203 {offsets = [0, 0], sizes = [2, 128], strides = [1, 1]} : vector<2x512xf32> to vector<2x128xf32>
    %205 = arith.negf %204 : vector<2x128xf32>
    %206 = math.exp %205 : vector<2x128xf32>
    %cst_69 = arith.constant 1.000000e+00 : f32
    %207 = vector.broadcast %cst_69 : f32 to vector<2x128xf32>
    %208 = arith.addf %207, %206 : vector<2x128xf32>
    %209 = arith.divf %207, %208 : vector<2x128xf32>
    %210 = vector.extract_strided_slice %203 {offsets = [0, 128], sizes = [2, 128], strides = [1, 1]} : vector<2x512xf32> to vector<2x128xf32>
    %211 = arith.negf %210 : vector<2x128xf32>
    %212 = math.exp %211 : vector<2x128xf32>
    %cst_70 = arith.constant 1.000000e+00 : f32
    %213 = vector.broadcast %cst_70 : f32 to vector<2x128xf32>
    %214 = arith.addf %213, %212 : vector<2x128xf32>
    %215 = arith.divf %213, %214 : vector<2x128xf32>
    %216 = vector.extract_strided_slice %203 {offsets = [0, 256], sizes = [2, 128], strides = [1, 1]} : vector<2x512xf32> to vector<2x128xf32>
    %217 = math.tanh %216 : vector<2x128xf32>
    %218 = vector.extract_strided_slice %203 {offsets = [0, 384], sizes = [2, 128], strides = [1, 1]} : vector<2x512xf32> to vector<2x128xf32>
    %219 = arith.negf %218 : vector<2x128xf32>
    %220 = math.exp %219 : vector<2x128xf32>
    %cst_71 = arith.constant 1.000000e+00 : f32
    %221 = vector.broadcast %cst_71 : f32 to vector<2x128xf32>
    %222 = arith.addf %221, %220 : vector<2x128xf32>
    %223 = arith.divf %221, %222 : vector<2x128xf32>
    %224 = arith.mulf %215, %141 : vector<2x128xf32>
    %225 = arith.mulf %209, %217 : vector<2x128xf32>
    %226 = arith.addf %224, %225 : vector<2x128xf32>
    %227 = math.tanh %226 : vector<2x128xf32>
    %228 = arith.mulf %223, %227 : vector<2x128xf32>
    %229 = tpu.concatenate %228, %171 in 1 : vector<2x128xf32>, vector<2x128xf32> -> vector<2x256xf32>
    %cst_72 = arith.constant dense<0.000000e+00> : vector<2x512xf32>
    %230 = tpu.matmul %229, %10, %cst_72 {dimension_numbers = #tpu.dot_dimension_numbers<[1], [0], [0], [1], [0, 0, 1, 1], [], []>} : vector<2x256xf32>, vector<256x512xf32>, vector<2x512xf32> -> vector<2x512xf32>
    %231 = arith.addf %230, %15 : vector<2x512xf32>
    %232 = vector.extract_strided_slice %231 {offsets = [0, 0], sizes = [2, 128], strides = [1, 1]} : vector<2x512xf32> to vector<2x128xf32>
    %233 = arith.negf %232 : vector<2x128xf32>
    %234 = math.exp %233 : vector<2x128xf32>
    %cst_73 = arith.constant 1.000000e+00 : f32
    %235 = vector.broadcast %cst_73 : f32 to vector<2x128xf32>
    %236 = arith.addf %235, %234 : vector<2x128xf32>
    %237 = arith.divf %235, %236 : vector<2x128xf32>
    %238 = vector.extract_strided_slice %231 {offsets = [0, 128], sizes = [2, 128], strides = [1, 1]} : vector<2x512xf32> to vector<2x128xf32>
    %239 = arith.negf %238 : vector<2x128xf32>
    %240 = math.exp %239 : vector<2x128xf32>
    %cst_74 = arith.constant 1.000000e+00 : f32
    %241 = vector.broadcast %cst_74 : f32 to vector<2x128xf32>
    %242 = arith.addf %241, %240 : vector<2x128xf32>
    %243 = arith.divf %241, %242 : vector<2x128xf32>
    %244 = vector.extract_strided_slice %231 {offsets = [0, 256], sizes = [2, 128], strides = [1, 1]} : vector<2x512xf32> to vector<2x128xf32>
    %245 = math.tanh %244 : vector<2x128xf32>
    %246 = vector.extract_strided_slice %231 {offsets = [0, 384], sizes = [2, 128], strides = [1, 1]} : vector<2x512xf32> to vector<2x128xf32>
    %247 = arith.negf %246 : vector<2x128xf32>
    %248 = math.exp %247 : vector<2x128xf32>
    %cst_75 = arith.constant 1.000000e+00 : f32
    %249 = vector.broadcast %cst_75 : f32 to vector<2x128xf32>
    %250 = arith.addf %249, %248 : vector<2x128xf32>
    %251 = arith.divf %249, %250 : vector<2x128xf32>
    %252 = arith.mulf %243, %169 : vector<2x128xf32>
    %253 = arith.mulf %237, %245 : vector<2x128xf32>
    %254 = arith.addf %252, %253 : vector<2x128xf32>
    %255 = math.tanh %254 : vector<2x128xf32>
    %256 = arith.mulf %251, %255 : vector<2x128xf32>
    %257 = tpu.concatenate %256, %199 in 1 : vector<2x128xf32>, vector<2x128xf32> -> vector<2x256xf32>
    %cst_76 = arith.constant dense<0.000000e+00> : vector<2x512xf32>
    %258 = tpu.matmul %257, %12, %cst_76 {dimension_numbers = #tpu.dot_dimension_numbers<[1], [0], [0], [1], [0, 0, 1, 1], [], []>} : vector<2x256xf32>, vector<256x512xf32>, vector<2x512xf32> -> vector<2x512xf32>
    %259 = arith.addf %258, %18 : vector<2x512xf32>
    %260 = vector.extract_strided_slice %259 {offsets = [0, 0], sizes = [2, 128], strides = [1, 1]} : vector<2x512xf32> to vector<2x128xf32>
    %261 = arith.negf %260 : vector<2x128xf32>
    %262 = math.exp %261 : vector<2x128xf32>
    %cst_77 = arith.constant 1.000000e+00 : f32
    %263 = vector.broadcast %cst_77 : f32 to vector<2x128xf32>
    %264 = arith.addf %263, %262 : vector<2x128xf32>
    %265 = arith.divf %263, %264 : vector<2x128xf32>
    %266 = vector.extract_strided_slice %259 {offsets = [0, 128], sizes = [2, 128], strides = [1, 1]} : vector<2x512xf32> to vector<2x128xf32>
    %267 = arith.negf %266 : vector<2x128xf32>
    %268 = math.exp %267 : vector<2x128xf32>
    %cst_78 = arith.constant 1.000000e+00 : f32
    %269 = vector.broadcast %cst_78 : f32 to vector<2x128xf32>
    %270 = arith.addf %269, %268 : vector<2x128xf32>
    %271 = arith.divf %269, %270 : vector<2x128xf32>
    %272 = vector.extract_strided_slice %259 {offsets = [0, 256], sizes = [2, 128], strides = [1, 1]} : vector<2x512xf32> to vector<2x128xf32>
    %273 = math.tanh %272 : vector<2x128xf32>
    %274 = vector.extract_strided_slice %259 {offsets = [0, 384], sizes = [2, 128], strides = [1, 1]} : vector<2x512xf32> to vector<2x128xf32>
    %275 = arith.negf %274 : vector<2x128xf32>
    %276 = math.exp %275 : vector<2x128xf32>
    %cst_79 = arith.constant 1.000000e+00 : f32
    %277 = vector.broadcast %cst_79 : f32 to vector<2x128xf32>
    %278 = arith.addf %277, %276 : vector<2x128xf32>
    %279 = arith.divf %277, %278 : vector<2x128xf32>
    %280 = arith.mulf %271, %197 : vector<2x128xf32>
    %281 = arith.mulf %265, %273 : vector<2x128xf32>
    %282 = arith.addf %280, %281 : vector<2x128xf32>
    %283 = math.tanh %282 : vector<2x128xf32>
    %284 = arith.mulf %279, %283 : vector<2x128xf32>
    %c4_80 = arith.constant 4 : index
    %c0_81 = arith.constant 0 : index
    %285 = vector.load %arg17[%c4_80, %c0_81] : memref<16x128xf32, #tpu.memory_space<vmem>>, vector<2x128xf32>
    tpu.vector_store %arg17[%c4_80, %c0_81], %284 {strides = array<i32>} : memref<16x128xf32, #tpu.memory_space<vmem>>, vector<2x128xf32>,
    %c6 = arith.constant 6 : index
    %c0_82 = arith.constant 0 : index
    %286 = vector.load %arg16[%c6, %c0_82] : memref<16x512xf32, #tpu.memory_space<vmem>>, vector<2x512xf32>
    %cst_83 = arith.constant dense<0.000000e+00> : vector<2x512xf32>
    %287 = tpu.matmul %228, %8, %cst_83 {dimension_numbers = #tpu.dot_dimension_numbers<[1], [0], [0], [1], [0, 0, 1, 1], [], []>} : vector<2x128xf32>, vector<128x512xf32>, vector<2x512xf32> -> vector<2x512xf32>
    %288 = arith.addf %286, %287 : vector<2x512xf32>
    %289 = vector.extract_strided_slice %288 {offsets = [0, 0], sizes = [2, 128], strides = [1, 1]} : vector<2x512xf32> to vector<2x128xf32>
    %290 = arith.negf %289 : vector<2x128xf32>
    %291 = math.exp %290 : vector<2x128xf32>
    %cst_84 = arith.constant 1.000000e+00 : f32
    %292 = vector.broadcast %cst_84 : f32 to vector<2x128xf32>
    %293 = arith.addf %292, %291 : vector<2x128xf32>
    %294 = arith.divf %292, %293 : vector<2x128xf32>
    %295 = vector.extract_strided_slice %288 {offsets = [0, 128], sizes = [2, 128], strides = [1, 1]} : vector<2x512xf32> to vector<2x128xf32>
    %296 = arith.negf %295 : vector<2x128xf32>
    %297 = math.exp %296 : vector<2x128xf32>
    %cst_85 = arith.constant 1.000000e+00 : f32
    %298 = vector.broadcast %cst_85 : f32 to vector<2x128xf32>
    %299 = arith.addf %298, %297 : vector<2x128xf32>
    %300 = arith.divf %298, %299 : vector<2x128xf32>
    %301 = vector.extract_strided_slice %288 {offsets = [0, 256], sizes = [2, 128], strides = [1, 1]} : vector<2x512xf32> to vector<2x128xf32>
    %302 = math.tanh %301 : vector<2x128xf32>
    %303 = vector.extract_strided_slice %288 {offsets = [0, 384], sizes = [2, 128], strides = [1, 1]} : vector<2x512xf32> to vector<2x128xf32>
    %304 = arith.negf %303 : vector<2x128xf32>
    %305 = math.exp %304 : vector<2x128xf32>
    %cst_86 = arith.constant 1.000000e+00 : f32
    %306 = vector.broadcast %cst_86 : f32 to vector<2x128xf32>
    %307 = arith.addf %306, %305 : vector<2x128xf32>
    %308 = arith.divf %306, %307 : vector<2x128xf32>
    %309 = arith.mulf %300, %226 : vector<2x128xf32>
    %310 = arith.mulf %294, %302 : vector<2x128xf32>
    %311 = arith.addf %309, %310 : vector<2x128xf32>
    %312 = math.tanh %311 : vector<2x128xf32>
    %313 = arith.mulf %308, %312 : vector<2x128xf32>
    %314 = tpu.concatenate %313, %256 in 1 : vector<2x128xf32>, vector<2x128xf32> -> vector<2x256xf32>
    %cst_87 = arith.constant dense<0.000000e+00> : vector<2x512xf32>
    %315 = tpu.matmul %314, %10, %cst_87 {dimension_numbers = #tpu.dot_dimension_numbers<[1], [0], [0], [1], [0, 0, 1, 1], [], []>} : vector<2x256xf32>, vector<256x512xf32>, vector<2x512xf32> -> vector<2x512xf32>
    %316 = arith.addf %315, %15 : vector<2x512xf32>
    %317 = vector.extract_strided_slice %316 {offsets = [0, 0], sizes = [2, 128], strides = [1, 1]} : vector<2x512xf32> to vector<2x128xf32>
    %318 = arith.negf %317 : vector<2x128xf32>
    %319 = math.exp %318 : vector<2x128xf32>
    %cst_88 = arith.constant 1.000000e+00 : f32
    %320 = vector.broadcast %cst_88 : f32 to vector<2x128xf32>
    %321 = arith.addf %320, %319 : vector<2x128xf32>
    %322 = arith.divf %320, %321 : vector<2x128xf32>
    %323 = vector.extract_strided_slice %316 {offsets = [0, 128], sizes = [2, 128], strides = [1, 1]} : vector<2x512xf32> to vector<2x128xf32>
    %324 = arith.negf %323 : vector<2x128xf32>
    %325 = math.exp %324 : vector<2x128xf32>
    %cst_89 = arith.constant 1.000000e+00 : f32
    %326 = vector.broadcast %cst_89 : f32 to vector<2x128xf32>
    %327 = arith.addf %326, %325 : vector<2x128xf32>
    %328 = arith.divf %326, %327 : vector<2x128xf32>
    %329 = vector.extract_strided_slice %316 {offsets = [0, 256], sizes = [2, 128], strides = [1, 1]} : vector<2x512xf32> to vector<2x128xf32>
    %330 = math.tanh %329 : vector<2x128xf32>
    %331 = vector.extract_strided_slice %316 {offsets = [0, 384], sizes = [2, 128], strides = [1, 1]} : vector<2x512xf32> to vector<2x128xf32>
    %332 = arith.negf %331 : vector<2x128xf32>
    %333 = math.exp %332 : vector<2x128xf32>
    %cst_90 = arith.constant 1.000000e+00 : f32
    %334 = vector.broadcast %cst_90 : f32 to vector<2x128xf32>
    %335 = arith.addf %334, %333 : vector<2x128xf32>
    %336 = arith.divf %334, %335 : vector<2x128xf32>
    %337 = arith.mulf %328, %254 : vector<2x128xf32>
    %338 = arith.mulf %322, %330 : vector<2x128xf32>
    %339 = arith.addf %337, %338 : vector<2x128xf32>
    %340 = math.tanh %339 : vector<2x128xf32>
    %341 = arith.mulf %336, %340 : vector<2x128xf32>
    %342 = tpu.concatenate %341, %284 in 1 : vector<2x128xf32>, vector<2x128xf32> -> vector<2x256xf32>
    %cst_91 = arith.constant dense<0.000000e+00> : vector<2x512xf32>
    %343 = tpu.matmul %342, %12, %cst_91 {dimension_numbers = #tpu.dot_dimension_numbers<[1], [0], [0], [1], [0, 0, 1, 1], [], []>} : vector<2x256xf32>, vector<256x512xf32>, vector<2x512xf32> -> vector<2x512xf32>
    %344 = arith.addf %343, %18 : vector<2x512xf32>
    %345 = vector.extract_strided_slice %344 {offsets = [0, 0], sizes = [2, 128], strides = [1, 1]} : vector<2x512xf32> to vector<2x128xf32>
    %346 = arith.negf %345 : vector<2x128xf32>
    %347 = math.exp %346 : vector<2x128xf32>
    %cst_92 = arith.constant 1.000000e+00 : f32
    %348 = vector.broadcast %cst_92 : f32 to vector<2x128xf32>
    %349 = arith.addf %348, %347 : vector<2x128xf32>
    %350 = arith.divf %348, %349 : vector<2x128xf32>
    %351 = vector.extract_strided_slice %344 {offsets = [0, 128], sizes = [2, 128], strides = [1, 1]} : vector<2x512xf32> to vector<2x128xf32>
    %352 = arith.negf %351 : vector<2x128xf32>
    %353 = math.exp %352 : vector<2x128xf32>
    %cst_93 = arith.constant 1.000000e+00 : f32
    %354 = vector.broadcast %cst_93 : f32 to vector<2x128xf32>
    %355 = arith.addf %354, %353 : vector<2x128xf32>
    %356 = arith.divf %354, %355 : vector<2x128xf32>
    %357 = vector.extract_strided_slice %344 {offsets = [0, 256], sizes = [2, 128], strides = [1, 1]} : vector<2x512xf32> to vector<2x128xf32>
    %358 = math.tanh %357 : vector<2x128xf32>
    %359 = vector.extract_strided_slice %344 {offsets = [0, 384], sizes = [2, 128], strides = [1, 1]} : vector<2x512xf32> to vector<2x128xf32>
    %360 = arith.negf %359 : vector<2x128xf32>
    %361 = math.exp %360 : vector<2x128xf32>
    %cst_94 = arith.constant 1.000000e+00 : f32
    %362 = vector.broadcast %cst_94 : f32 to vector<2x128xf32>
    %363 = arith.addf %362, %361 : vector<2x128xf32>
    %364 = arith.divf %362, %363 : vector<2x128xf32>
    %365 = arith.mulf %356, %282 : vector<2x128xf32>
    %366 = arith.mulf %350, %358 : vector<2x128xf32>
    %367 = arith.addf %365, %366 : vector<2x128xf32>
    %368 = math.tanh %367 : vector<2x128xf32>
    %369 = arith.mulf %364, %368 : vector<2x128xf32>
    %c6_95 = arith.constant 6 : index
    %c0_96 = arith.constant 0 : index
    %370 = vector.load %arg17[%c6_95, %c0_96] : memref<16x128xf32, #tpu.memory_space<vmem>>, vector<2x128xf32>
    tpu.vector_store %arg17[%c6_95, %c0_96], %369 {strides = array<i32>} : memref<16x128xf32, #tpu.memory_space<vmem>>, vector<2x128xf32>,
    %c8 = arith.constant 8 : index
    %c0_97 = arith.constant 0 : index
    %371 = vector.load %arg16[%c8, %c0_97] : memref<16x512xf32, #tpu.memory_space<vmem>>, vector<2x512xf32>
    %cst_98 = arith.constant dense<0.000000e+00> : vector<2x512xf32>
    %372 = tpu.matmul %313, %8, %cst_98 {dimension_numbers = #tpu.dot_dimension_numbers<[1], [0], [0], [1], [0, 0, 1, 1], [], []>} : vector<2x128xf32>, vector<128x512xf32>, vector<2x512xf32> -> vector<2x512xf32>
    %373 = arith.addf %371, %372 : vector<2x512xf32>
    %374 = vector.extract_strided_slice %373 {offsets = [0, 0], sizes = [2, 128], strides = [1, 1]} : vector<2x512xf32> to vector<2x128xf32>
    %375 = arith.negf %374 : vector<2x128xf32>
    %376 = math.exp %375 : vector<2x128xf32>
    %cst_99 = arith.constant 1.000000e+00 : f32
    %377 = vector.broadcast %cst_99 : f32 to vector<2x128xf32>
    %378 = arith.addf %377, %376 : vector<2x128xf32>
    %379 = arith.divf %377, %378 : vector<2x128xf32>
    %380 = vector.extract_strided_slice %373 {offsets = [0, 128], sizes = [2, 128], strides = [1, 1]} : vector<2x512xf32> to vector<2x128xf32>
    %381 = arith.negf %380 : vector<2x128xf32>
    %382 = math.exp %381 : vector<2x128xf32>
    %cst_100 = arith.constant 1.000000e+00 : f32
    %383 = vector.broadcast %cst_100 : f32 to vector<2x128xf32>
    %384 = arith.addf %383, %382 : vector<2x128xf32>
    %385 = arith.divf %383, %384 : vector<2x128xf32>
    %386 = vector.extract_strided_slice %373 {offsets = [0, 256], sizes = [2, 128], strides = [1, 1]} : vector<2x512xf32> to vector<2x128xf32>
    %387 = math.tanh %386 : vector<2x128xf32>
    %388 = vector.extract_strided_slice %373 {offsets = [0, 384], sizes = [2, 128], strides = [1, 1]} : vector<2x512xf32> to vector<2x128xf32>
    %389 = arith.negf %388 : vector<2x128xf32>
    %390 = math.exp %389 : vector<2x128xf32>
    %cst_101 = arith.constant 1.000000e+00 : f32
    %391 = vector.broadcast %cst_101 : f32 to vector<2x128xf32>
    %392 = arith.addf %391, %390 : vector<2x128xf32>
    %393 = arith.divf %391, %392 : vector<2x128xf32>
    %394 = arith.mulf %385, %311 : vector<2x128xf32>
    %395 = arith.mulf %379, %387 : vector<2x128xf32>
    %396 = arith.addf %394, %395 : vector<2x128xf32>
    %397 = math.tanh %396 : vector<2x128xf32>
    %398 = arith.mulf %393, %397 : vector<2x128xf32>
    %399 = tpu.concatenate %398, %341 in 1 : vector<2x128xf32>, vector<2x128xf32> -> vector<2x256xf32>
    %cst_102 = arith.constant dense<0.000000e+00> : vector<2x512xf32>
    %400 = tpu.matmul %399, %10, %cst_102 {dimension_numbers = #tpu.dot_dimension_numbers<[1], [0], [0], [1], [0, 0, 1, 1], [], []>} : vector<2x256xf32>, vector<256x512xf32>, vector<2x512xf32> -> vector<2x512xf32>
    %401 = arith.addf %400, %15 : vector<2x512xf32>
    %402 = vector.extract_strided_slice %401 {offsets = [0, 0], sizes = [2, 128], strides = [1, 1]} : vector<2x512xf32> to vector<2x128xf32>
    %403 = arith.negf %402 : vector<2x128xf32>
    %404 = math.exp %403 : vector<2x128xf32>
    %cst_103 = arith.constant 1.000000e+00 : f32
    %405 = vector.broadcast %cst_103 : f32 to vector<2x128xf32>
    %406 = arith.addf %405, %404 : vector<2x128xf32>
    %407 = arith.divf %405, %406 : vector<2x128xf32>
    %408 = vector.extract_strided_slice %401 {offsets = [0, 128], sizes = [2, 128], strides = [1, 1]} : vector<2x512xf32> to vector<2x128xf32>
    %409 = arith.negf %408 : vector<2x128xf32>
    %410 = math.exp %409 : vector<2x128xf32>
    %cst_104 = arith.constant 1.000000e+00 : f32
    %411 = vector.broadcast %cst_104 : f32 to vector<2x128xf32>
    %412 = arith.addf %411, %410 : vector<2x128xf32>
    %413 = arith.divf %411, %412 : vector<2x128xf32>
    %414 = vector.extract_strided_slice %401 {offsets = [0, 256], sizes = [2, 128], strides = [1, 1]} : vector<2x512xf32> to vector<2x128xf32>
    %415 = math.tanh %414 : vector<2x128xf32>
    %416 = vector.extract_strided_slice %401 {offsets = [0, 384], sizes = [2, 128], strides = [1, 1]} : vector<2x512xf32> to vector<2x128xf32>
    %417 = arith.negf %416 : vector<2x128xf32>
    %418 = math.exp %417 : vector<2x128xf32>
    %cst_105 = arith.constant 1.000000e+00 : f32
    %419 = vector.broadcast %cst_105 : f32 to vector<2x128xf32>
    %420 = arith.addf %419, %418 : vector<2x128xf32>
    %421 = arith.divf %419, %420 : vector<2x128xf32>
    %422 = arith.mulf %413, %339 : vector<2x128xf32>
    %423 = arith.mulf %407, %415 : vector<2x128xf32>
    %424 = arith.addf %422, %423 : vector<2x128xf32>
    %425 = math.tanh %424 : vector<2x128xf32>
    %426 = arith.mulf %421, %425 : vector<2x128xf32>
    %427 = tpu.concatenate %426, %369 in 1 : vector<2x128xf32>, vector<2x128xf32> -> vector<2x256xf32>
    %cst_106 = arith.constant dense<0.000000e+00> : vector<2x512xf32>
    %428 = tpu.matmul %427, %12, %cst_106 {dimension_numbers = #tpu.dot_dimension_numbers<[1], [0], [0], [1], [0, 0, 1, 1], [], []>} : vector<2x256xf32>, vector<256x512xf32>, vector<2x512xf32> -> vector<2x512xf32>
    %429 = arith.addf %428, %18 : vector<2x512xf32>
    %430 = vector.extract_strided_slice %429 {offsets = [0, 0], sizes = [2, 128], strides = [1, 1]} : vector<2x512xf32> to vector<2x128xf32>
    %431 = arith.negf %430 : vector<2x128xf32>
    %432 = math.exp %431 : vector<2x128xf32>
    %cst_107 = arith.constant 1.000000e+00 : f32
    %433 = vector.broadcast %cst_107 : f32 to vector<2x128xf32>
    %434 = arith.addf %433, %432 : vector<2x128xf32>
    %435 = arith.divf %433, %434 : vector<2x128xf32>
    %436 = vector.extract_strided_slice %429 {offsets = [0, 128], sizes = [2, 128], strides = [1, 1]} : vector<2x512xf32> to vector<2x128xf32>
    %437 = arith.negf %436 : vector<2x128xf32>
    %438 = math.exp %437 : vector<2x128xf32>
    %cst_108 = arith.constant 1.000000e+00 : f32
    %439 = vector.broadcast %cst_108 : f32 to vector<2x128xf32>
    %440 = arith.addf %439, %438 : vector<2x128xf32>
    %441 = arith.divf %439, %440 : vector<2x128xf32>
    %442 = vector.extract_strided_slice %429 {offsets = [0, 256], sizes = [2, 128], strides = [1, 1]} : vector<2x512xf32> to vector<2x128xf32>
    %443 = math.tanh %442 : vector<2x128xf32>
    %444 = vector.extract_strided_slice %429 {offsets = [0, 384], sizes = [2, 128], strides = [1, 1]} : vector<2x512xf32> to vector<2x128xf32>
    %445 = arith.negf %444 : vector<2x128xf32>
    %446 = math.exp %445 : vector<2x128xf32>
    %cst_109 = arith.constant 1.000000e+00 : f32
    %447 = vector.broadcast %cst_109 : f32 to vector<2x128xf32>
    %448 = arith.addf %447, %446 : vector<2x128xf32>
    %449 = arith.divf %447, %448 : vector<2x128xf32>
    %450 = arith.mulf %441, %367 : vector<2x128xf32>
    %451 = arith.mulf %435, %443 : vector<2x128xf32>
    %452 = arith.addf %450, %451 : vector<2x128xf32>
    %453 = math.tanh %452 : vector<2x128xf32>
    %454 = arith.mulf %449, %453 : vector<2x128xf32>
    %c8_110 = arith.constant 8 : index
    %c0_111 = arith.constant 0 : index
    %455 = vector.load %arg17[%c8_110, %c0_111] : memref<16x128xf32, #tpu.memory_space<vmem>>, vector<2x128xf32>
    tpu.vector_store %arg17[%c8_110, %c0_111], %454 {strides = array<i32>} : memref<16x128xf32, #tpu.memory_space<vmem>>, vector<2x128xf32>,
    %c10 = arith.constant 10 : index
    %c0_112 = arith.constant 0 : index
    %456 = vector.load %arg16[%c10, %c0_112] : memref<16x512xf32, #tpu.memory_space<vmem>>, vector<2x512xf32>
    %cst_113 = arith.constant dense<0.000000e+00> : vector<2x512xf32>
    %457 = tpu.matmul %398, %8, %cst_113 {dimension_numbers = #tpu.dot_dimension_numbers<[1], [0], [0], [1], [0, 0, 1, 1], [], []>} : vector<2x128xf32>, vector<128x512xf32>, vector<2x512xf32> -> vector<2x512xf32>
    %458 = arith.addf %456, %457 : vector<2x512xf32>
    %459 = vector.extract_strided_slice %458 {offsets = [0, 0], sizes = [2, 128], strides = [1, 1]} : vector<2x512xf32> to vector<2x128xf32>
    %460 = arith.negf %459 : vector<2x128xf32>
    %461 = math.exp %460 : vector<2x128xf32>
    %cst_114 = arith.constant 1.000000e+00 : f32
    %462 = vector.broadcast %cst_114 : f32 to vector<2x128xf32>
    %463 = arith.addf %462, %461 : vector<2x128xf32>
    %464 = arith.divf %462, %463 : vector<2x128xf32>
    %465 = vector.extract_strided_slice %458 {offsets = [0, 128], sizes = [2, 128], strides = [1, 1]} : vector<2x512xf32> to vector<2x128xf32>
    %466 = arith.negf %465 : vector<2x128xf32>
    %467 = math.exp %466 : vector<2x128xf32>
    %cst_115 = arith.constant 1.000000e+00 : f32
    %468 = vector.broadcast %cst_115 : f32 to vector<2x128xf32>
    %469 = arith.addf %468, %467 : vector<2x128xf32>
    %470 = arith.divf %468, %469 : vector<2x128xf32>
    %471 = vector.extract_strided_slice %458 {offsets = [0, 256], sizes = [2, 128], strides = [1, 1]} : vector<2x512xf32> to vector<2x128xf32>
    %472 = math.tanh %471 : vector<2x128xf32>
    %473 = vector.extract_strided_slice %458 {offsets = [0, 384], sizes = [2, 128], strides = [1, 1]} : vector<2x512xf32> to vector<2x128xf32>
    %474 = arith.negf %473 : vector<2x128xf32>
    %475 = math.exp %474 : vector<2x128xf32>
    %cst_116 = arith.constant 1.000000e+00 : f32
    %476 = vector.broadcast %cst_116 : f32 to vector<2x128xf32>
    %477 = arith.addf %476, %475 : vector<2x128xf32>
    %478 = arith.divf %476, %477 : vector<2x128xf32>
    %479 = arith.mulf %470, %396 : vector<2x128xf32>
    %480 = arith.mulf %464, %472 : vector<2x128xf32>
    %481 = arith.addf %479, %480 : vector<2x128xf32>
    %482 = math.tanh %481 : vector<2x128xf32>
    %483 = arith.mulf %478, %482 : vector<2x128xf32>
    %484 = tpu.concatenate %483, %426 in 1 : vector<2x128xf32>, vector<2x128xf32> -> vector<2x256xf32>
    %cst_117 = arith.constant dense<0.000000e+00> : vector<2x512xf32>
    %485 = tpu.matmul %484, %10, %cst_117 {dimension_numbers = #tpu.dot_dimension_numbers<[1], [0], [0], [1], [0, 0, 1, 1], [], []>} : vector<2x256xf32>, vector<256x512xf32>, vector<2x512xf32> -> vector<2x512xf32>
    %486 = arith.addf %485, %15 : vector<2x512xf32>
    %487 = vector.extract_strided_slice %486 {offsets = [0, 0], sizes = [2, 128], strides = [1, 1]} : vector<2x512xf32> to vector<2x128xf32>
    %488 = arith.negf %487 : vector<2x128xf32>
    %489 = math.exp %488 : vector<2x128xf32>
    %cst_118 = arith.constant 1.000000e+00 : f32
    %490 = vector.broadcast %cst_118 : f32 to vector<2x128xf32>
    %491 = arith.addf %490, %489 : vector<2x128xf32>
    %492 = arith.divf %490, %491 : vector<2x128xf32>
    %493 = vector.extract_strided_slice %486 {offsets = [0, 128], sizes = [2, 128], strides = [1, 1]} : vector<2x512xf32> to vector<2x128xf32>
    %494 = arith.negf %493 : vector<2x128xf32>
    %495 = math.exp %494 : vector<2x128xf32>
    %cst_119 = arith.constant 1.000000e+00 : f32
    %496 = vector.broadcast %cst_119 : f32 to vector<2x128xf32>
    %497 = arith.addf %496, %495 : vector<2x128xf32>
    %498 = arith.divf %496, %497 : vector<2x128xf32>
    %499 = vector.extract_strided_slice %486 {offsets = [0, 256], sizes = [2, 128], strides = [1, 1]} : vector<2x512xf32> to vector<2x128xf32>
    %500 = math.tanh %499 : vector<2x128xf32>
    %501 = vector.extract_strided_slice %486 {offsets = [0, 384], sizes = [2, 128], strides = [1, 1]} : vector<2x512xf32> to vector<2x128xf32>
    %502 = arith.negf %501 : vector<2x128xf32>
    %503 = math.exp %502 : vector<2x128xf32>
    %cst_120 = arith.constant 1.000000e+00 : f32
    %504 = vector.broadcast %cst_120 : f32 to vector<2x128xf32>
    %505 = arith.addf %504, %503 : vector<2x128xf32>
    %506 = arith.divf %504, %505 : vector<2x128xf32>
    %507 = arith.mulf %498, %424 : vector<2x128xf32>
    %508 = arith.mulf %492, %500 : vector<2x128xf32>
    %509 = arith.addf %507, %508 : vector<2x128xf32>
    %510 = math.tanh %509 : vector<2x128xf32>
    %511 = arith.mulf %506, %510 : vector<2x128xf32>
    %512 = tpu.concatenate %511, %454 in 1 : vector<2x128xf32>, vector<2x128xf32> -> vector<2x256xf32>
    %cst_121 = arith.constant dense<0.000000e+00> : vector<2x512xf32>
    %513 = tpu.matmul %512, %12, %cst_121 {dimension_numbers = #tpu.dot_dimension_numbers<[1], [0], [0], [1], [0, 0, 1, 1], [], []>} : vector<2x256xf32>, vector<256x512xf32>, vector<2x512xf32> -> vector<2x512xf32>
    %514 = arith.addf %513, %18 : vector<2x512xf32>
    %515 = vector.extract_strided_slice %514 {offsets = [0, 0], sizes = [2, 128], strides = [1, 1]} : vector<2x512xf32> to vector<2x128xf32>
    %516 = arith.negf %515 : vector<2x128xf32>
    %517 = math.exp %516 : vector<2x128xf32>
    %cst_122 = arith.constant 1.000000e+00 : f32
    %518 = vector.broadcast %cst_122 : f32 to vector<2x128xf32>
    %519 = arith.addf %518, %517 : vector<2x128xf32>
    %520 = arith.divf %518, %519 : vector<2x128xf32>
    %521 = vector.extract_strided_slice %514 {offsets = [0, 128], sizes = [2, 128], strides = [1, 1]} : vector<2x512xf32> to vector<2x128xf32>
    %522 = arith.negf %521 : vector<2x128xf32>
    %523 = math.exp %522 : vector<2x128xf32>
    %cst_123 = arith.constant 1.000000e+00 : f32
    %524 = vector.broadcast %cst_123 : f32 to vector<2x128xf32>
    %525 = arith.addf %524, %523 : vector<2x128xf32>
    %526 = arith.divf %524, %525 : vector<2x128xf32>
    %527 = vector.extract_strided_slice %514 {offsets = [0, 256], sizes = [2, 128], strides = [1, 1]} : vector<2x512xf32> to vector<2x128xf32>
    %528 = math.tanh %527 : vector<2x128xf32>
    %529 = vector.extract_strided_slice %514 {offsets = [0, 384], sizes = [2, 128], strides = [1, 1]} : vector<2x512xf32> to vector<2x128xf32>
    %530 = arith.negf %529 : vector<2x128xf32>
    %531 = math.exp %530 : vector<2x128xf32>
    %cst_124 = arith.constant 1.000000e+00 : f32
    %532 = vector.broadcast %cst_124 : f32 to vector<2x128xf32>
    %533 = arith.addf %532, %531 : vector<2x128xf32>
    %534 = arith.divf %532, %533 : vector<2x128xf32>
    %535 = arith.mulf %526, %452 : vector<2x128xf32>
    %536 = arith.mulf %520, %528 : vector<2x128xf32>
    %537 = arith.addf %535, %536 : vector<2x128xf32>
    %538 = math.tanh %537 : vector<2x128xf32>
    %539 = arith.mulf %534, %538 : vector<2x128xf32>
    %c10_125 = arith.constant 10 : index
    %c0_126 = arith.constant 0 : index
    %540 = vector.load %arg17[%c10_125, %c0_126] : memref<16x128xf32, #tpu.memory_space<vmem>>, vector<2x128xf32>
    tpu.vector_store %arg17[%c10_125, %c0_126], %539 {strides = array<i32>} : memref<16x128xf32, #tpu.memory_space<vmem>>, vector<2x128xf32>,
    %c12 = arith.constant 12 : index
    %c0_127 = arith.constant 0 : index
    %541 = vector.load %arg16[%c12, %c0_127] : memref<16x512xf32, #tpu.memory_space<vmem>>, vector<2x512xf32>
    %cst_128 = arith.constant dense<0.000000e+00> : vector<2x512xf32>
    %542 = tpu.matmul %483, %8, %cst_128 {dimension_numbers = #tpu.dot_dimension_numbers<[1], [0], [0], [1], [0, 0, 1, 1], [], []>} : vector<2x128xf32>, vector<128x512xf32>, vector<2x512xf32> -> vector<2x512xf32>
    %543 = arith.addf %541, %542 : vector<2x512xf32>
    %544 = vector.extract_strided_slice %543 {offsets = [0, 0], sizes = [2, 128], strides = [1, 1]} : vector<2x512xf32> to vector<2x128xf32>
    %545 = arith.negf %544 : vector<2x128xf32>
    %546 = math.exp %545 : vector<2x128xf32>
    %cst_129 = arith.constant 1.000000e+00 : f32
    %547 = vector.broadcast %cst_129 : f32 to vector<2x128xf32>
    %548 = arith.addf %547, %546 : vector<2x128xf32>
    %549 = arith.divf %547, %548 : vector<2x128xf32>
    %550 = vector.extract_strided_slice %543 {offsets = [0, 128], sizes = [2, 128], strides = [1, 1]} : vector<2x512xf32> to vector<2x128xf32>
    %551 = arith.negf %550 : vector<2x128xf32>
    %552 = math.exp %551 : vector<2x128xf32>
    %cst_130 = arith.constant 1.000000e+00 : f32
    %553 = vector.broadcast %cst_130 : f32 to vector<2x128xf32>
    %554 = arith.addf %553, %552 : vector<2x128xf32>
    %555 = arith.divf %553, %554 : vector<2x128xf32>
    %556 = vector.extract_strided_slice %543 {offsets = [0, 256], sizes = [2, 128], strides = [1, 1]} : vector<2x512xf32> to vector<2x128xf32>
    %557 = math.tanh %556 : vector<2x128xf32>
    %558 = vector.extract_strided_slice %543 {offsets = [0, 384], sizes = [2, 128], strides = [1, 1]} : vector<2x512xf32> to vector<2x128xf32>
    %559 = arith.negf %558 : vector<2x128xf32>
    %560 = math.exp %559 : vector<2x128xf32>
    %cst_131 = arith.constant 1.000000e+00 : f32
    %561 = vector.broadcast %cst_131 : f32 to vector<2x128xf32>
    %562 = arith.addf %561, %560 : vector<2x128xf32>
    %563 = arith.divf %561, %562 : vector<2x128xf32>
    %564 = arith.mulf %555, %481 : vector<2x128xf32>
    %565 = arith.mulf %549, %557 : vector<2x128xf32>
    %566 = arith.addf %564, %565 : vector<2x128xf32>
    %567 = math.tanh %566 : vector<2x128xf32>
    %568 = arith.mulf %563, %567 : vector<2x128xf32>
    %569 = tpu.concatenate %568, %511 in 1 : vector<2x128xf32>, vector<2x128xf32> -> vector<2x256xf32>
    %cst_132 = arith.constant dense<0.000000e+00> : vector<2x512xf32>
    %570 = tpu.matmul %569, %10, %cst_132 {dimension_numbers = #tpu.dot_dimension_numbers<[1], [0], [0], [1], [0, 0, 1, 1], [], []>} : vector<2x256xf32>, vector<256x512xf32>, vector<2x512xf32> -> vector<2x512xf32>
    %571 = arith.addf %570, %15 : vector<2x512xf32>
    %572 = vector.extract_strided_slice %571 {offsets = [0, 0], sizes = [2, 128], strides = [1, 1]} : vector<2x512xf32> to vector<2x128xf32>
    %573 = arith.negf %572 : vector<2x128xf32>
    %574 = math.exp %573 : vector<2x128xf32>
    %cst_133 = arith.constant 1.000000e+00 : f32
    %575 = vector.broadcast %cst_133 : f32 to vector<2x128xf32>
    %576 = arith.addf %575, %574 : vector<2x128xf32>
    %577 = arith.divf %575, %576 : vector<2x128xf32>
    %578 = vector.extract_strided_slice %571 {offsets = [0, 128], sizes = [2, 128], strides = [1, 1]} : vector<2x512xf32> to vector<2x128xf32>
    %579 = arith.negf %578 : vector<2x128xf32>
    %580 = math.exp %579 : vector<2x128xf32>
    %cst_134 = arith.constant 1.000000e+00 : f32
    %581 = vector.broadcast %cst_134 : f32 to vector<2x128xf32>
    %582 = arith.addf %581, %580 : vector<2x128xf32>
    %583 = arith.divf %581, %582 : vector<2x128xf32>
    %584 = vector.extract_strided_slice %571 {offsets = [0, 256], sizes = [2, 128], strides = [1, 1]} : vector<2x512xf32> to vector<2x128xf32>
    %585 = math.tanh %584 : vector<2x128xf32>
    %586 = vector.extract_strided_slice %571 {offsets = [0, 384], sizes = [2, 128], strides = [1, 1]} : vector<2x512xf32> to vector<2x128xf32>
    %587 = arith.negf %586 : vector<2x128xf32>
    %588 = math.exp %587 : vector<2x128xf32>
    %cst_135 = arith.constant 1.000000e+00 : f32
    %589 = vector.broadcast %cst_135 : f32 to vector<2x128xf32>
    %590 = arith.addf %589, %588 : vector<2x128xf32>
    %591 = arith.divf %589, %590 : vector<2x128xf32>
    %592 = arith.mulf %583, %509 : vector<2x128xf32>
    %593 = arith.mulf %577, %585 : vector<2x128xf32>
    %594 = arith.addf %592, %593 : vector<2x128xf32>
    %595 = math.tanh %594 : vector<2x128xf32>
    %596 = arith.mulf %591, %595 : vector<2x128xf32>
    %597 = tpu.concatenate %596, %539 in 1 : vector<2x128xf32>, vector<2x128xf32> -> vector<2x256xf32>
    %cst_136 = arith.constant dense<0.000000e+00> : vector<2x512xf32>
    %598 = tpu.matmul %597, %12, %cst_136 {dimension_numbers = #tpu.dot_dimension_numbers<[1], [0], [0], [1], [0, 0, 1, 1], [], []>} : vector<2x256xf32>, vector<256x512xf32>, vector<2x512xf32> -> vector<2x512xf32>
    %599 = arith.addf %598, %18 : vector<2x512xf32>
    %600 = vector.extract_strided_slice %599 {offsets = [0, 0], sizes = [2, 128], strides = [1, 1]} : vector<2x512xf32> to vector<2x128xf32>
    %601 = arith.negf %600 : vector<2x128xf32>
    %602 = math.exp %601 : vector<2x128xf32>
    %cst_137 = arith.constant 1.000000e+00 : f32
    %603 = vector.broadcast %cst_137 : f32 to vector<2x128xf32>
    %604 = arith.addf %603, %602 : vector<2x128xf32>
    %605 = arith.divf %603, %604 : vector<2x128xf32>
    %606 = vector.extract_strided_slice %599 {offsets = [0, 128], sizes = [2, 128], strides = [1, 1]} : vector<2x512xf32> to vector<2x128xf32>
    %607 = arith.negf %606 : vector<2x128xf32>
    %608 = math.exp %607 : vector<2x128xf32>
    %cst_138 = arith.constant 1.000000e+00 : f32
    %609 = vector.broadcast %cst_138 : f32 to vector<2x128xf32>
    %610 = arith.addf %609, %608 : vector<2x128xf32>
    %611 = arith.divf %609, %610 : vector<2x128xf32>
    %612 = vector.extract_strided_slice %599 {offsets = [0, 256], sizes = [2, 128], strides = [1, 1]} : vector<2x512xf32> to vector<2x128xf32>
    %613 = math.tanh %612 : vector<2x128xf32>
    %614 = vector.extract_strided_slice %599 {offsets = [0, 384], sizes = [2, 128], strides = [1, 1]} : vector<2x512xf32> to vector<2x128xf32>
    %615 = arith.negf %614 : vector<2x128xf32>
    %616 = math.exp %615 : vector<2x128xf32>
    %cst_139 = arith.constant 1.000000e+00 : f32
    %617 = vector.broadcast %cst_139 : f32 to vector<2x128xf32>
    %618 = arith.addf %617, %616 : vector<2x128xf32>
    %619 = arith.divf %617, %618 : vector<2x128xf32>
    %620 = arith.mulf %611, %537 : vector<2x128xf32>
    %621 = arith.mulf %605, %613 : vector<2x128xf32>
    %622 = arith.addf %620, %621 : vector<2x128xf32>
    %623 = math.tanh %622 : vector<2x128xf32>
    %624 = arith.mulf %619, %623 : vector<2x128xf32>
    %c12_140 = arith.constant 12 : index
    %c0_141 = arith.constant 0 : index
    %625 = vector.load %arg17[%c12_140, %c0_141] : memref<16x128xf32, #tpu.memory_space<vmem>>, vector<2x128xf32>
    tpu.vector_store %arg17[%c12_140, %c0_141], %624 {strides = array<i32>} : memref<16x128xf32, #tpu.memory_space<vmem>>, vector<2x128xf32>,
    %c14 = arith.constant 14 : index
    %c0_142 = arith.constant 0 : index
    %626 = vector.load %arg16[%c14, %c0_142] : memref<16x512xf32, #tpu.memory_space<vmem>>, vector<2x512xf32>
    %cst_143 = arith.constant dense<0.000000e+00> : vector<2x512xf32>
    %627 = tpu.matmul %568, %8, %cst_143 {dimension_numbers = #tpu.dot_dimension_numbers<[1], [0], [0], [1], [0, 0, 1, 1], [], []>} : vector<2x128xf32>, vector<128x512xf32>, vector<2x512xf32> -> vector<2x512xf32>
    %628 = arith.addf %626, %627 : vector<2x512xf32>
    %629 = vector.extract_strided_slice %628 {offsets = [0, 0], sizes = [2, 128], strides = [1, 1]} : vector<2x512xf32> to vector<2x128xf32>
    %630 = arith.negf %629 : vector<2x128xf32>
    %631 = math.exp %630 : vector<2x128xf32>
    %cst_144 = arith.constant 1.000000e+00 : f32
    %632 = vector.broadcast %cst_144 : f32 to vector<2x128xf32>
    %633 = arith.addf %632, %631 : vector<2x128xf32>
    %634 = arith.divf %632, %633 : vector<2x128xf32>
    %635 = vector.extract_strided_slice %628 {offsets = [0, 128], sizes = [2, 128], strides = [1, 1]} : vector<2x512xf32> to vector<2x128xf32>
    %636 = arith.negf %635 : vector<2x128xf32>
    %637 = math.exp %636 : vector<2x128xf32>
    %cst_145 = arith.constant 1.000000e+00 : f32
    %638 = vector.broadcast %cst_145 : f32 to vector<2x128xf32>
    %639 = arith.addf %638, %637 : vector<2x128xf32>
    %640 = arith.divf %638, %639 : vector<2x128xf32>
    %641 = vector.extract_strided_slice %628 {offsets = [0, 256], sizes = [2, 128], strides = [1, 1]} : vector<2x512xf32> to vector<2x128xf32>
    %642 = math.tanh %641 : vector<2x128xf32>
    %643 = vector.extract_strided_slice %628 {offsets = [0, 384], sizes = [2, 128], strides = [1, 1]} : vector<2x512xf32> to vector<2x128xf32>
    %644 = arith.negf %643 : vector<2x128xf32>
    %645 = math.exp %644 : vector<2x128xf32>
    %cst_146 = arith.constant 1.000000e+00 : f32
    %646 = vector.broadcast %cst_146 : f32 to vector<2x128xf32>
    %647 = arith.addf %646, %645 : vector<2x128xf32>
    %648 = arith.divf %646, %647 : vector<2x128xf32>
    %649 = arith.mulf %640, %566 : vector<2x128xf32>
    %650 = arith.mulf %634, %642 : vector<2x128xf32>
    %651 = arith.addf %649, %650 : vector<2x128xf32>
    %652 = math.tanh %651 : vector<2x128xf32>
    %653 = arith.mulf %648, %652 : vector<2x128xf32>
    %654 = tpu.concatenate %653, %596 in 1 : vector<2x128xf32>, vector<2x128xf32> -> vector<2x256xf32>
    %cst_147 = arith.constant dense<0.000000e+00> : vector<2x512xf32>
    %655 = tpu.matmul %654, %10, %cst_147 {dimension_numbers = #tpu.dot_dimension_numbers<[1], [0], [0], [1], [0, 0, 1, 1], [], []>} : vector<2x256xf32>, vector<256x512xf32>, vector<2x512xf32> -> vector<2x512xf32>
    %656 = arith.addf %655, %15 : vector<2x512xf32>
    %657 = vector.extract_strided_slice %656 {offsets = [0, 0], sizes = [2, 128], strides = [1, 1]} : vector<2x512xf32> to vector<2x128xf32>
    %658 = arith.negf %657 : vector<2x128xf32>
    %659 = math.exp %658 : vector<2x128xf32>
    %cst_148 = arith.constant 1.000000e+00 : f32
    %660 = vector.broadcast %cst_148 : f32 to vector<2x128xf32>
    %661 = arith.addf %660, %659 : vector<2x128xf32>
    %662 = arith.divf %660, %661 : vector<2x128xf32>
    %663 = vector.extract_strided_slice %656 {offsets = [0, 128], sizes = [2, 128], strides = [1, 1]} : vector<2x512xf32> to vector<2x128xf32>
    %664 = arith.negf %663 : vector<2x128xf32>
    %665 = math.exp %664 : vector<2x128xf32>
    %cst_149 = arith.constant 1.000000e+00 : f32
    %666 = vector.broadcast %cst_149 : f32 to vector<2x128xf32>
    %667 = arith.addf %666, %665 : vector<2x128xf32>
    %668 = arith.divf %666, %667 : vector<2x128xf32>
    %669 = vector.extract_strided_slice %656 {offsets = [0, 256], sizes = [2, 128], strides = [1, 1]} : vector<2x512xf32> to vector<2x128xf32>
    %670 = math.tanh %669 : vector<2x128xf32>
    %671 = vector.extract_strided_slice %656 {offsets = [0, 384], sizes = [2, 128], strides = [1, 1]} : vector<2x512xf32> to vector<2x128xf32>
    %672 = arith.negf %671 : vector<2x128xf32>
    %673 = math.exp %672 : vector<2x128xf32>
    %cst_150 = arith.constant 1.000000e+00 : f32
    %674 = vector.broadcast %cst_150 : f32 to vector<2x128xf32>
    %675 = arith.addf %674, %673 : vector<2x128xf32>
    %676 = arith.divf %674, %675 : vector<2x128xf32>
    %677 = arith.mulf %668, %594 : vector<2x128xf32>
    %678 = arith.mulf %662, %670 : vector<2x128xf32>
    %679 = arith.addf %677, %678 : vector<2x128xf32>
    %680 = math.tanh %679 : vector<2x128xf32>
    %681 = arith.mulf %676, %680 : vector<2x128xf32>
    %682 = tpu.concatenate %681, %624 in 1 : vector<2x128xf32>, vector<2x128xf32> -> vector<2x256xf32>
    %cst_151 = arith.constant dense<0.000000e+00> : vector<2x512xf32>
    %683 = tpu.matmul %682, %12, %cst_151 {dimension_numbers = #tpu.dot_dimension_numbers<[1], [0], [0], [1], [0, 0, 1, 1], [], []>} : vector<2x256xf32>, vector<256x512xf32>, vector<2x512xf32> -> vector<2x512xf32>
    %684 = arith.addf %683, %18 : vector<2x512xf32>
    %685 = vector.extract_strided_slice %684 {offsets = [0, 0], sizes = [2, 128], strides = [1, 1]} : vector<2x512xf32> to vector<2x128xf32>
    %686 = arith.negf %685 : vector<2x128xf32>
    %687 = math.exp %686 : vector<2x128xf32>
    %cst_152 = arith.constant 1.000000e+00 : f32
    %688 = vector.broadcast %cst_152 : f32 to vector<2x128xf32>
    %689 = arith.addf %688, %687 : vector<2x128xf32>
    %690 = arith.divf %688, %689 : vector<2x128xf32>
    %691 = vector.extract_strided_slice %684 {offsets = [0, 128], sizes = [2, 128], strides = [1, 1]} : vector<2x512xf32> to vector<2x128xf32>
    %692 = arith.negf %691 : vector<2x128xf32>
    %693 = math.exp %692 : vector<2x128xf32>
    %cst_153 = arith.constant 1.000000e+00 : f32
    %694 = vector.broadcast %cst_153 : f32 to vector<2x128xf32>
    %695 = arith.addf %694, %693 : vector<2x128xf32>
    %696 = arith.divf %694, %695 : vector<2x128xf32>
    %697 = vector.extract_strided_slice %684 {offsets = [0, 256], sizes = [2, 128], strides = [1, 1]} : vector<2x512xf32> to vector<2x128xf32>
    %698 = math.tanh %697 : vector<2x128xf32>
    %699 = vector.extract_strided_slice %684 {offsets = [0, 384], sizes = [2, 128], strides = [1, 1]} : vector<2x512xf32> to vector<2x128xf32>
    %700 = arith.negf %699 : vector<2x128xf32>
    %701 = math.exp %700 : vector<2x128xf32>
    %cst_154 = arith.constant 1.000000e+00 : f32
    %702 = vector.broadcast %cst_154 : f32 to vector<2x128xf32>
    %703 = arith.addf %702, %701 : vector<2x128xf32>
    %704 = arith.divf %702, %703 : vector<2x128xf32>
    %705 = arith.mulf %696, %622 : vector<2x128xf32>
    %706 = arith.mulf %690, %698 : vector<2x128xf32>
    %707 = arith.addf %705, %706 : vector<2x128xf32>
    %708 = math.tanh %707 : vector<2x128xf32>
    %709 = arith.mulf %704, %708 : vector<2x128xf32>
    %c14_155 = arith.constant 14 : index
    %c0_156 = arith.constant 0 : index
    %710 = vector.load %arg17[%c14_155, %c0_156] : memref<16x128xf32, #tpu.memory_space<vmem>>, vector<2x128xf32>
    tpu.vector_store %arg17[%c14_155, %c0_156], %709 {strides = array<i32>} : memref<16x128xf32, #tpu.memory_space<vmem>>, vector<2x128xf32>,
    %c0_157 = arith.constant 0 : index
    %c0_158 = arith.constant 0 : index
    %c0_159 = arith.constant 0 : index
    %711 = vector.load %arg14[%c0_157, %c0_158, %c0_159] : memref<3x2x128xf32, #tpu.memory_space<vmem>>, vector<1x2x128xf32>
    %712 = vector.shape_cast %711 : vector<1x2x128xf32> to vector<2x128xf32>
    %713 = vector.shape_cast %653 : vector<2x128xf32> to vector<1x2x128xf32>
    tpu.vector_store %arg14[%c0_157, %c0_158, %c0_159], %713 {strides = array<i32>} : memref<3x2x128xf32, #tpu.memory_space<vmem>>, vector<1x2x128xf32>,
    %c1_160 = arith.constant 1 : index
    %c0_161 = arith.constant 0 : index
    %c0_162 = arith.constant 0 : index
    %714 = vector.load %arg14[%c1_160, %c0_161, %c0_162] : memref<3x2x128xf32, #tpu.memory_space<vmem>>, vector<1x2x128xf32>
    %715 = vector.shape_cast %714 : vector<1x2x128xf32> to vector<2x128xf32>
    %716 = vector.shape_cast %681 : vector<2x128xf32> to vector<1x2x128xf32>
    tpu.vector_store %arg14[%c1_160, %c0_161, %c0_162], %716 {strides = array<i32>} : memref<3x2x128xf32, #tpu.memory_space<vmem>>, vector<1x2x128xf32>,
    %c2_163 = arith.constant 2 : index
    %c0_164 = arith.constant 0 : index
    %c0_165 = arith.constant 0 : index
    %717 = vector.load %arg14[%c2_163, %c0_164, %c0_165] : memref<3x2x128xf32, #tpu.memory_space<vmem>>, vector<1x2x128xf32>
    %718 = vector.shape_cast %717 : vector<1x2x128xf32> to vector<2x128xf32>
    %719 = vector.shape_cast %709 : vector<2x128xf32> to vector<1x2x128xf32>
    tpu.vector_store %arg14[%c2_163, %c0_164, %c0_165], %719 {strides = array<i32>} : memref<3x2x128xf32, #tpu.memory_space<vmem>>, vector<1x2x128xf32>,
    %c0_166 = arith.constant 0 : index
    %c0_167 = arith.constant 0 : index
    %c0_168 = arith.constant 0 : index
    %720 = vector.load %arg15[%c0_166, %c0_167, %c0_168] : memref<3x2x128xf32, #tpu.memory_space<vmem>>, vector<1x2x128xf32>
    %721 = vector.shape_cast %720 : vector<1x2x128xf32> to vector<2x128xf32>
    %722 = vector.shape_cast %651 : vector<2x128xf32> to vector<1x2x128xf32>
    tpu.vector_store %arg15[%c0_166, %c0_167, %c0_168], %722 {strides = array<i32>} : memref<3x2x128xf32, #tpu.memory_space<vmem>>, vector<1x2x128xf32>,
    %c1_169 = arith.constant 1 : index
    %c0_170 = arith.constant 0 : index
    %c0_171 = arith.constant 0 : index
    %723 = vector.load %arg15[%c1_169, %c0_170, %c0_171] : memref<3x2x128xf32, #tpu.memory_space<vmem>>, vector<1x2x128xf32>
    %724 = vector.shape_cast %723 : vector<1x2x128xf32> to vector<2x128xf32>
    %725 = vector.shape_cast %679 : vector<2x128xf32> to vector<1x2x128xf32>
    tpu.vector_store %arg15[%c1_169, %c0_170, %c0_171], %725 {strides = array<i32>} : memref<3x2x128xf32, #tpu.memory_space<vmem>>, vector<1x2x128xf32>,
    %c2_172 = arith.constant 2 : index
    %c0_173 = arith.constant 0 : index
    %c0_174 = arith.constant 0 : index
    %726 = vector.load %arg15[%c2_172, %c0_173, %c0_174] : memref<3x2x128xf32, #tpu.memory_space<vmem>>, vector<1x2x128xf32>
    %727 = vector.shape_cast %726 : vector<1x2x128xf32> to vector<2x128xf32>
    %728 = vector.shape_cast %707 : vector<2x128xf32> to vector<1x2x128xf32>
    tpu.vector_store %arg15[%c2_172, %c0_173, %c0_174], %728 {strides = array<i32>} : memref<3x2x128xf32, #tpu.memory_space<vmem>>, vector<1x2x128xf32>,
    %c0_175 = arith.constant 0 : index
    %c0_176 = arith.constant 0 : index
    %729 = vector.load %arg17[%c0_175, %c0_176] : memref<16x128xf32, #tpu.memory_space<vmem>>, vector<16x128xf32>
    %c0_177 = arith.constant 0 : index
    %c0_178 = arith.constant 0 : index
    %730 = vector.load %arg7[%c0_177, %c0_178] : memref<128x64xf32, #tpu.memory_space<vmem>>, vector<128x64xf32>
    %cst_179 = arith.constant dense<0.000000e+00> : vector<16x64xf32>
    %731 = tpu.matmul %729, %730, %cst_179 {dimension_numbers = #tpu.dot_dimension_numbers<[1], [0], [0], [1], [0, 0, 1, 1], [], []>} : vector<16x128xf32>, vector<128x64xf32>, vector<16x64xf32> -> vector<16x64xf32>
    %c0_180 = arith.constant 0 : index
    %c0_181 = arith.constant 0 : index
    %732 = vector.load %arg8[%c0_180, %c0_181] : memref<1x64xf32, #tpu.memory_space<vmem>>, vector<1x64xf32>
    %733 = vector.broadcast %732 : vector<1x64xf32> to vector<16x64xf32>
    %734 = arith.addf %731, %733 : vector<16x64xf32>
    %cst_182 = arith.constant 0.000000e+00 : f32
    %735 = vector.broadcast %cst_182 : f32 to vector<16x64xf32>
    %736 = arith.maximumf %734, %735 : vector<16x64xf32>
    %c0_183 = arith.constant 0 : index
    %c0_184 = arith.constant 0 : index
    %737 = vector.load %arg9[%c0_183, %c0_184] : memref<64x32xf32, #tpu.memory_space<vmem>>, vector<64x32xf32>
    %cst_185 = arith.constant dense<0.000000e+00> : vector<16x32xf32>
    %738 = tpu.matmul %736, %737, %cst_185 {dimension_numbers = #tpu.dot_dimension_numbers<[1], [0], [0], [1], [0, 0, 1, 1], [], []>} : vector<16x64xf32>, vector<64x32xf32>, vector<16x32xf32> -> vector<16x32xf32>
    %c0_186 = arith.constant 0 : index
    %c0_187 = arith.constant 0 : index
    %739 = vector.load %arg10[%c0_186, %c0_187] : memref<1x32xf32, #tpu.memory_space<vmem>>, vector<1x32xf32>
    %740 = vector.broadcast %739 : vector<1x32xf32> to vector<16x32xf32>
    %741 = arith.addf %738, %740 : vector<16x32xf32>
    %cst_188 = arith.constant 0.000000e+00 : f32
    %742 = vector.broadcast %cst_188 : f32 to vector<16x32xf32>
    %743 = arith.maximumf %741, %742 : vector<16x32xf32>
    %c0_189 = arith.constant 0 : index
    %c0_190 = arith.constant 0 : index
    %744 = vector.load %arg11[%c0_189, %c0_190] : memref<32x128xf32, #tpu.memory_space<vmem>>, vector<32x128xf32>
    %cst_191 = arith.constant dense<0.000000e+00> : vector<16x128xf32>
    %745 = tpu.matmul %743, %744, %cst_191 {dimension_numbers = #tpu.dot_dimension_numbers<[1], [0], [0], [1], [0, 0, 1, 1], [], []>} : vector<16x32xf32>, vector<32x128xf32>, vector<16x128xf32> -> vector<16x128xf32>
    %c0_192 = arith.constant 0 : index
    %c0_193 = arith.constant 0 : index
    %746 = vector.load %arg12[%c0_192, %c0_193] : memref<1x128xf32, #tpu.memory_space<vmem>>, vector<1x128xf32>
    %747 = vector.broadcast %746 : vector<1x128xf32> to vector<16x128xf32>
    %748 = arith.addf %745, %747 : vector<16x128xf32>
    %c0_194 = arith.constant 0 : index
    %c0_195 = arith.constant 0 : index
    %749 = vector.load %arg13[%c0_194, %c0_195] : memref<16x128xf32, #tpu.memory_space<vmem>>, vector<16x128xf32>
    tpu.vector_store %arg13[%c0_194, %c0_195], %748 {strides = array<i32>} : memref<16x128xf32, #tpu.memory_space<vmem>>, vector<16x128xf32>,
    return
  }
}

</mosaic_0001>

<bundles_post_ra>
// kernel: trajectory_generator_forward.1
= control target key start
LH: loop header
LB: loop body
LE: loop exit
PB: predicated region body
PF: predicated region fallthrough
CT: control target
= control target key end

     0   :  { %21 = vsyncpa [#allocation5], 0  ;;  %s10614_s0 = inlined_call_operand.vmem [shape: f32[16,8], index: 0, kind: input, shape index: {}]   ;;  %s10615_s1 = inlined_call_operand.vmem [shape: f32[8,512], index: 1, kind: input, shape index: {}]   ;;  %s10616_s2 = inlined_call_operand.hbm [shape: f32[128,512], index: 2, kind: input, shape index: {}]   ;;  %s10617_s3 = inlined_call_operand.hbm [shape: f32[2,256,512], index: 3, kind: input, shape index: {}]   ;;  %s10618_s4 = inlined_call_operand.vmem [shape: f32[3,512], index: 4, kind: input, shape index: {}]   ;;  %s10619_s5 = inlined_call_operand.vmem [shape: f32[3,2,128], index: 5, kind: input, shape index: {}, may-alias: {5,6}]   ;;  %s10620_s6 = inlined_call_operand.vmem [shape: f32[3,2,128], index: 6, kind: input, shape index: {}, may-alias: {5,6}]   ;;  %s10621_s7 = inlined_call_operand.vmem [shape: f32[128,64], index: 7, kind: input, shape index: {}]   ;;  %s10622_s8 = inlined_call_operand.vmem [shape: f32[1,64], index: 8, kind: input, shape index: {}]   ;;  %s10623_s9 = inlined_call_operand.vmem [shape: f32[64,32], index: 9, kind: input, shape index: {}]   ;;  %s10624_s10 = inlined_call_operand.vmem [shape: f32[1,32], index: 10, kind: input, shape index: {}]   ;;  %s10625_s11 = inlined_call_operand.vmem [shape: f32[32,128], index: 11, kind: input, shape index: {}]   ;;  %s10626_s12 = inlined_call_operand.vmem [shape: f32[1,128], index: 12, kind: input, shape index: {}]   ;;  %s10627_s13 = inlined_call_operand.vmem [shape: f32[16,128], index: 13, kind: output, shape index: {0}]   ;;  %s10628_s14 = inlined_call_operand.hbm [shape: f32[3,2,128], index: 14, kind: output, shape index: {1}]   ;;  %s10629_s15 = inlined_call_operand.hbm [shape: f32[3,2,128], index: 15, kind: output, shape index: {2}]  }
   0x1   :  { %22 = vsyncpa [#allocation8], 0 }
   0x2   :  { %23 = vsyncpa [#allocation6], 0 }
   0x3   :  { %24 = vsyncpa [#allocation11], 0  ;;  %s8478_s18 = smov [#allocation4]   ;;  %s8382_s22 = scalar_lea.hbm %s10616_s2, 8192 }
   0x4   :  { %s34_s19 = sshll.u32 %s8478_s18, 4  ;;  %p8383_p0 = scmp.ne.s32.totalorder %s10616_s2, %s8382_s22  ;;  %s35_s19 = int_to_ptr.vmem [resolvable:$true] %s34_s19 }
   0x5   :  { %p8386_p1 = scmp.lt.u32.totalorder %s8382_s22, %s10616_s2 }
   0x7   :  { %p8388_p2 = pnand %p8386_p1, %p8383_p0 }
   0x9   :  { %8391 = shalt.err (!%p8388_p2)
}
   0xa   :  { %s8392_s27 = scalar_lea.vmem %s35_s19, 8192  ;;  %p8397_p4 = scmp.lt.s32.totalorder %s35_s19, %s35_s19 }
   0xb   :  { %p8393_p3 = scmp.ne.s32.totalorder %s35_s19, %s8392_s27  ;;  %p8398_p5 = scmp.lt.s32.totalorder %s8392_s27, %s8392_s27 }
   0xd   :  { %p8399_p6 = por %p8398_p5, %p8397_p4 }
   0xf   :  { %p8400_p7 = pnand %p8399_p6, %p8393_p3 }
  0x11   :  { %8403 = shalt.err (!%p8400_p7)
}
  0x12   :  { %s8479_s28 = smov 512   ;;  %s8480_s29 = smov 32  }
  0x13   :  { %40 = dma.hbm_to_vmem [thread:$0]  %s10616_s2, 8192, %s35_s19, [#allocation5], %s8479_s28, %s8479_s28, %s8480_s29  }
  0x14   :  { %s8481_s17 = smov [#allocation7]   ;;  %s8404_s22 = scalar_lea.hbm %s10617_s3, 32768 }
  0x15   :  { %s46_s18 = sshll.u32 %s8481_s17, 4  ;;  %p8405_p8 = scmp.ne.s32.totalorder %s10617_s3, %s8404_s22  ;;  %s47_s18 = int_to_ptr.vmem [resolvable:$true] %s46_s18 }
  0x16   :  { %p8408_p9 = scmp.lt.u32.totalorder %s8404_s22, %s10617_s3 }
  0x18   :  { %p8410_p10 = pnand %p8408_p9, %p8405_p8 }
  0x1a   :  { %8413 = shalt.err (!%p8410_p10)
}
  0x1b   :  { %s8414_s27 = scalar_lea.vmem %s47_s18, 32768  ;;  %p8419_p12 = scmp.lt.s32.totalorder %s47_s18, %s47_s18 }
  0x1c   :  { %p8415_p11 = scmp.ne.s32.totalorder %s47_s18, %s8414_s27  ;;  %p8420_p13 = scmp.lt.s32.totalorder %s8414_s27, %s8414_s27 }
  0x1e   :  { %p8421_p0 = por %p8420_p13, %p8419_p12 }
  0x20   :  { %p8422_p1 = pnand %p8421_p0, %p8415_p11 }
  0x22   :  { %8425 = shalt.err (!%p8422_p1)
}
  0x23   :  { %52 = dma.hbm_to_vmem [thread:$0]  %s10617_s3, 32768, %s47_s18, [#allocation8], %s8479_s28, %s8479_s28, %s8480_s29  }
  0x24   :  { %8470 = dma.done.wait [#allocation5], 8192  }
  0x25   :  { %8471 = vsyncadd [#allocation5], 4294959104 }
  0x26   :  { %8472 = dma.done.wait [#allocation8], 32768  }
  0x27   :  { %8473 = vsyncadd [#allocation8], 4294934528  ;;  %v10630_v0 = vmov 0.0   ;;  %v80_v1 = vld [vmem:[%s10615_s1 + $0x8] sm:$0xff]  ;;  %v82_v2 = vld [vmem:[%s10615_s1 + $0x18] sm:$0xff]  ;;  %vm105_vm0 = vcmask 64512  }
  0x28   :  { %176 = vmatprep.mubr.f32.mxu0 %v10630_v0  ;;  %253 = vmatprep.mubr.f32.mxu1 %v10630_v0  ;;  %v79_v3 = vld [vmem:[%s10615_s1] sm:$0xff]  ;;  %v81_v4 = vld [vmem:[%s10615_s1 + $0x10] sm:$0xff]  ;;  %v275_v6 = vld [vmem:[#allocation4 + $0x8] sm:$0xff]  ;;  %vm4969_vm1 = vcmask 523264   ;;  %vm5064_vm2 = vcmask 261120   ;;  %s8483_s22 = smov [#allocation9]  }
  0x29   :  { %112 = vmatprep.subr.mxu0 %v80_v1  ;;  %189 = vmatprep.subr.mxu1 %v82_v2  ;;  %v77_v5 = vld [vmem:[%s10614_s0] sm:$0xff]  ;;  %v279_v7 = vld [vmem:[#allocation4 + $0x28] sm:$0xff]  ;;  %v277_v8 = vld [vmem:[#allocation4 + $0x18] sm:$0xff]  ;;  %s5155_s3 = sshll.u32 %s8483_s22, 4  ;;  %s8484_s28 = smov [#allocation10]   ;;  %s5156_s3 = int_to_ptr.vmem [resolvable:$true] %s5155_s3 }
  0x2a   :  { %113 = vmatpush1.msra.mxu0 %v79_v3  ;;  %190 = vmatpush1.msra.mxu1 %v81_v4  ;;  %v281_v9 = vld [vmem:[#allocation4 + $0x38] sm:$0xff]  ;;  %v8610_v10 = vpack.c.bf16 %v279_v7, %v275_v6  ;;  %v274_v12 = vld [vmem:[#allocation4] sm:$0xff]  ;;  %v276_v14 = vld [vmem:[#allocation4 + $0x10] sm:$0xff]  ;;  %p8431_p3 = scmp.lt.s32.totalorder %s5156_s3, %s5156_s3 }
  0x2b   :  { %5186 = vmatmul.mubr.msk.f32.vlgmr.msra.gmra.mrb[0].mxu0 %vm105_vm0, %v77_v5  ;;  %v8612_v11 = vpack.c.bf16 %v281_v9, %v277_v8  ;;  %5188 = vmatmul.mubr.msk.f32.vlgmr.msra.gmra.mrb[0].mxu1 %vm105_vm0, %v77_v5  ;;  %v278_v13 = vld [vmem:[#allocation4 + $0x20] sm:$0xff]  ;;  %v280_v16 = vld [vmem:[#allocation4 + $0x30] sm:$0xff]  ;;  %v283_v17 = vld [vmem:[#allocation4 + $0x48] sm:$0xff] }
  0x2c   :  { %10939 = vst [vmem:[#allocation16_spill] sm:$0xff] %v8610_v10  ;;  %v8615_v15 = vpack.c.bf16 %v278_v13, %v274_v12  ;;  %v287_v18 = vld [vmem:[#allocation4 + $0x68] sm:$0xff]  ;;  %182 = vmatprep.mubr.f32.mxu0 %v10630_v0  ;;  %259 = vmatprep.mubr.f32.mxu1 %v10630_v0  ;;  %v8621_v19 = vpack.c.bf16 %v280_v16, %v276_v14  ;;  %v285_v21 = vld [vmem:[#allocation4 + $0x58] sm:$0xff]  ;;  %v282_v23 = vld [vmem:[#allocation4 + $0x40] sm:$0xff] }
  0x2d   :  { %10940 = vst [vmem:[#allocation17_spill] sm:$0xff] %v8612_v11  ;;  %5375 = vmatprep.subr.bf16.mxu0 %v8610_v10  ;;  %5407 = vmatprep.subr.bf16.mxu1 %v8612_v11  ;;  %v8623_v20 = vpack.c.bf16 %v287_v18, %v283_v17  ;;  %v289_v22 = vld [vmem:[#allocation4 + $0x78] sm:$0xff]  ;;  %v286_v25 = vld [vmem:[#allocation4 + $0x60] sm:$0xff]  ;;  %v284_v26 = vld [vmem:[#allocation4 + $0x50] sm:$0xff] }
  0x2e   :  { %5377 = vmatpush1.bf16.msra.mxu0 %v8615_v15  ;;  %v8626_v24 = vpack.c.bf16 %v289_v22, %v285_v21  ;;  %v288_v27 = vld [vmem:[#allocation4 + $0x70] sm:$0xff]  ;;  %5409 = vmatpush1.bf16.msra.mxu1 %v8621_v19  ;;  %v8630_v28 = vpack.c.bf16 %v286_v25, %v282_v23  ;;  %v291_v30 = vld [vmem:[#allocation4 + $0x88] sm:$0xff]  ;;  %v293_v32 = vld [vmem:[#allocation4 + $0x98] sm:$0xff] }
  0x2f   :  { %5379 = vmatprep.subr.bf16.mxu0 %v8623_v20  ;;  %v8632_v29 = vpack.c.bf16 %v288_v27, %v284_v26  ;;  %v295_v31 = vld [vmem:[#allocation4 + $0xa8] sm:$0xff]  ;;  %v297_v34 = vld [vmem:[#allocation4 + $0xb8] sm:$0xff]  ;;  %v290_v35 = vld [vmem:[#allocation4 + $0x80] sm:$0xff] }
  0x30   :  { %5411 = vmatprep.subr.bf16.mxu1 %v8626_v24  ;;  %v8635_v33 = vpack.c.bf16 %v295_v31, %v291_v30  ;;  %v294_v36 = vld [vmem:[#allocation4 + $0xa0] sm:$0xff]  ;;  %v8637_v37 = vpack.c.bf16 %v297_v34, %v293_v32  ;;  %v292_v38 = vld [vmem:[#allocation4 + $0x90] sm:$0xff]  ;;  %v299_v40 = vld [vmem:[#allocation4 + $0xc8] sm:$0xff] }
  0x31   :  { %v296_v39 = vld [vmem:[#allocation4 + $0xb0] sm:$0xff]  ;;  %v8640_v41 = vpack.c.bf16 %v294_v36, %v290_v35  ;;  %v303_v42 = vld [vmem:[#allocation4 + $0xe8] sm:$0xff]  ;;  %v301_v43 = vld [vmem:[#allocation4 + $0xd8] sm:$0xff] }
  0x32   :  { %5381 = vmatpush1.bf16.msra.mxu0 %v8630_v28  ;;  %v305_v44 = vld [vmem:[#allocation4 + $0xf8] sm:$0xff]  ;;  %5413 = vmatpush1.bf16.msra.mxu1 %v8632_v29  ;;  %v8644_v45 = vpack.c.bf16 %v296_v39, %v292_v38  ;;  %v8646_v46 = vpack.c.bf16 %v303_v42, %v299_v40  ;;  %v298_v47 = vld [vmem:[#allocation4 + $0xc0] sm:$0xff]  ;;  %v300_v49 = vld [vmem:[#allocation4 + $0xd0] sm:$0xff] }
  0x33   :  { %5383 = vmatprep.subr.bf16.mxu0 %v8635_v33  ;;  %v302_v48 = vld [vmem:[#allocation4 + $0xe0] sm:$0xff]  ;;  %5415 = vmatprep.subr.bf16.mxu1 %v8637_v37  ;;  %v8649_v50 = vpack.c.bf16 %v305_v44, %v301_v43  ;;  %v304_v51 = vld [vmem:[#allocation4 + $0xf0] sm:$0xff]  ;;  %v307_v52 = vld [vmem:[#allocation4 + $0x108] sm:$0xff] }
  0x34   :  { %10941 = vst [vmem:[#allocation18_spill] sm:$0xff] %v8644_v45  ;;  %10942 = vst [vmem:[#allocation19_spill] sm:$0xff] %v8646_v46  ;;  %v311_v53 = vld [vmem:[#allocation4 + $0x128] sm:$0xff]  ;;  %v309_v54 = vld [vmem:[#allocation4 + $0x118] sm:$0xff]  ;;  %v8652_v56 = vpack.c.bf16 %v302_v48, %v298_v47  ;;  %v8656_v57 = vpack.c.bf16 %v304_v51, %v300_v49 }
  0x35   :  { %10943 = vst [vmem:[#allocation20_spill] sm:$0xff] %v8649_v50  ;;  %v313_v55 = vld [vmem:[#allocation4 + $0x138] sm:$0xff]  ;;  %v8658_v58 = vpack.c.bf16 %v311_v53, %v307_v52  ;;  %v306_v59 = vld [vmem:[#allocation4 + $0x100] sm:$0xff]  ;;  %v308_v61 = vld [vmem:[#allocation4 + $0x110] sm:$0xff] }
  0x36   :  { %5385 = vmatpush1.bf16.msra.mxu0 %v8640_v41  ;;  %10944 = vst [vmem:[#allocation21_spill] sm:$0xff] %v8652_v56  ;;  %5417 = vmatpush1.bf16.msra.mxu1 %v8644_v45  ;;  %10945 = vst [vmem:[#allocation22_spill] sm:$0xff] %v8656_v57  ;;  %v310_v60 = vld [vmem:[#allocation4 + $0x120] sm:$0xff]  ;;  %v8661_v62 = vpack.c.bf16 %v313_v55, %v309_v54  ;;  %v312_v63 = vld [vmem:[#allocation4 + $0x130] sm:$0xff] }
  0x37   :  { %5387 = vmatprep.subr.bf16.mxu0 %v8646_v46  ;;  %10946 = vst [vmem:[#allocation23_spill] sm:$0xff] %v8658_v58  ;;  %5419 = vmatprep.subr.bf16.mxu1 %v8649_v50  ;;  %v315_v1 = vld [vmem:[#allocation4 + $0x148] sm:$0xff]  ;;  %v317_v3 = vld [vmem:[#allocation4 + $0x158] sm:$0xff]  ;;  %v8664_v5 = vpack.c.bf16 %v310_v60, %v306_v59  ;;  %v314_v6 = vld [vmem:[#allocation4 + $0x140] sm:$0xff]  ;;  %v8668_v7 = vpack.c.bf16 %v312_v63, %v308_v61 }
  0x38   :  { %10947 = vst [vmem:[#allocation24_spill] sm:$0xff] %v8661_v62  ;;  %v319_v2 = vld [vmem:[#allocation4 + $0x168] sm:$0xff]  ;;  %v321_v4 = vld [vmem:[#allocation4 + $0x178] sm:$0xff]  ;;  %v318_v9 = vld [vmem:[#allocation4 + $0x160] sm:$0xff] }
  0x39   :  { %10948 = vst [vmem:[#allocation25_spill] sm:$0xff] %v8664_v5  ;;  %10949 = vst [vmem:[#allocation26_spill] sm:$0xff] %v8668_v7  ;;  %v8670_v8 = vpack.c.bf16 %v319_v2, %v315_v1  ;;  %v316_v12 = vld [vmem:[#allocation4 + $0x150] sm:$0xff]  ;;  %v8673_v14 = vpack.c.bf16 %v321_v4, %v317_v3  ;;  %v323_v16 = vld [vmem:[#allocation4 + $0x188] sm:$0xff]  ;;  %v8681_v23 = vpack.c.bf16 %v318_v9, %v314_v6 }
  0x3a   :  { %5389 = vmatpush1.bf16.msra.mxu0 %v8652_v56  ;;  %5421 = vmatpush1.bf16.msra.mxu1 %v8656_v57  ;;  %v320_v13 = vld [vmem:[#allocation4 + $0x170] sm:$0xff]  ;;  %v327_v17 = vld [vmem:[#allocation4 + $0x1a8] sm:$0xff]  ;;  %v78_v18 = vld [vmem:[%s10614_s0 + $0x8] sm:$0xff] }
  0x3b   :  { %5391 = vmatprep.subr.bf16.mxu0 %v8658_v58  ;;  %10950 = vst [vmem:[#allocation27_spill] sm:$0xff] %v8670_v8  ;;  %5423 = vmatprep.subr.bf16.mxu1 %v8661_v62  ;;  %10951 = vst [vmem:[#allocation28_spill] sm:$0xff] %v8673_v14  ;;  %v325_v21 = vld [vmem:[#allocation4 + $0x198] sm:$0xff]  ;;  %v8686_v25 = vpack.c.bf16 %v320_v13, %v316_v12  ;;  %v8688_v26 = vpack.c.bf16 %v327_v17, %v323_v16  ;;  %v322_v27 = vld [vmem:[#allocation4 + $0x180] sm:$0xff] }
  0x3c   :  { %v329_v22 = vld [vmem:[#allocation4 + $0x1b8] sm:$0xff]  ;;  %5187 = vmatmul.mubr.msk.f32.gmra.mrb[2].mxu0 %vm105_vm0, %v78_v18  ;;  %5189 = vmatmul.mubr.msk.f32.gmra.mrb[2].mxu1 %vm105_vm0, %v78_v18  ;;  %10952 = vst [vmem:[#allocation29_spill] sm:$0xff] %v8681_v23  ;;  %v326_v30 = vld [vmem:[#allocation4 + $0x1a0] sm:$0xff]  ;;  %v324_v31 = vld [vmem:[#allocation4 + $0x190] sm:$0xff] }
  0x3d   :  { %719 = vmatprep.mubr.f32.mxu0 %v10630_v0  ;;  %10953 = vst [vmem:[#allocation30_spill] sm:$0xff] %v8686_v25  ;;  %10954 = vst [vmem:[#allocation31_spill] sm:$0xff] %v8688_v26  ;;  %v8691_v32 = vpack.c.bf16 %v329_v22, %v325_v21  ;;  %v328_v34 = vld [vmem:[#allocation4 + $0x1b0] sm:$0xff]  ;;  %v331_v35 = vld [vmem:[#allocation4 + $0x1c8] sm:$0xff]  ;;  %790 = vmatprep.mubr.f32.mxu1 %v10630_v0  ;;  %v8695_v40 = vpack.c.bf16 %v326_v30, %v322_v27 }
  0x3e   :  { %5393 = vmatpush1.bf16.msra.mxu0 %v8664_v5  ;;  %5425 = vmatpush1.bf16.msra.mxu1 %v8668_v7  ;;  %v335_v36 = vld [vmem:[#allocation4 + $0x1e8] sm:$0xff]  ;;  %v333_v38 = vld [vmem:[#allocation4 + $0x1d8] sm:$0xff]  ;;  %v8699_v42 = vpack.c.bf16 %v328_v34, %v324_v31  ;;  %v330_v44 = vld [vmem:[#allocation4 + $0x1c0] sm:$0xff] }
  0x3f   :  { %5395 = vmatprep.subr.bf16.mxu0 %v8670_v8  ;;  %5427 = vmatprep.subr.bf16.mxu1 %v8673_v14  ;;  %10955 = vst [vmem:[#allocation32_spill] sm:$0xff] %v8691_v32  ;;  %v337_v39 = vld [vmem:[#allocation4 + $0x1f8] sm:$0xff]  ;;  %10956 = vst [vmem:[#allocation33_spill] sm:$0xff] %v8695_v40  ;;  %v8701_v43 = vpack.c.bf16 %v335_v36, %v331_v35  ;;  %v334_v47 = vld [vmem:[#allocation4 + $0x1e0] sm:$0xff] }
  0x40   :  { %10957 = vst [vmem:[#allocation34_spill] sm:$0xff] %v8699_v42  ;;  %v8704_v48 = vpack.c.bf16 %v337_v39, %v333_v38  ;;  %v332_v49 = vld [vmem:[#allocation4 + $0x1d0] sm:$0xff]  ;;  %v8707_v52 = vpack.c.bf16 %v334_v47, %v330_v44  ;;  %v339_v55 = vld [vmem:[#allocation7 + $0x8] sm:$0xff]  ;;  %v341_v60 = vld [vmem:[#allocation7 + $0x18] sm:$0xff] }
  0x41   :  { %10958 = vst [vmem:[#allocation35_spill] sm:$0xff] %v8701_v43  ;;  %v336_v51 = vld [vmem:[#allocation4 + $0x1f0] sm:$0xff]  ;;  %v343_v59 = vld [vmem:[#allocation7 + $0x28] sm:$0xff]  ;;  %v345_v63 = vld [vmem:[#allocation7 + $0x38] sm:$0xff] }
  0x42   :  { %5397 = vmatpush1.bf16.msra.mxu0 %v8681_v23  ;;  %5429 = vmatpush1.bf16.msra.mxu1 %v8686_v25  ;;  %10959 = vst [vmem:[#allocation36_spill] sm:$0xff] %v8704_v48  ;;  %10960 = vst [vmem:[#allocation37_spill] sm:$0xff] %v8707_v52  ;;  %v8711_v53 = vpack.c.bf16 %v336_v51, %v332_v49  ;;  %v641_v54 = vld [vmem:[%s10619_s5] sm:$0x3]  ;;  %v8719_v61 = vpack.c.bf16 %v343_v59, %v339_v55  ;;  %v338_v1 = vld [vmem:[#allocation7] sm:$0xff] }
  0x43   :  { %5399 = vmatprep.subr.bf16.mxu0 %v8688_v26  ;;  %5431 = vmatprep.subr.bf16.mxu1 %v8691_v32  ;;  %v342_v2 = vld [vmem:[#allocation7 + $0x20] sm:$0xff]  ;;  %v8721_v3 = vpack.c.bf16 %v345_v63, %v341_v60  ;;  %v340_v6 = vld [vmem:[#allocation7 + $0x10] sm:$0xff]  ;;  %v347_v12 = vld [vmem:[#allocation7 + $0x48] sm:$0xff] }
  0x44   :  { %10961 = vst [vmem:[#allocation38_spill] sm:$0xff] %v8711_v53  ;;  %10962 = vst [vmem:[#allocation39_spill] sm:$0xff] %v8719_v61  ;;  %v8723_v4 = vpack.c.bf16 %v342_v2, %v338_v1  ;;  %v344_v9 = vld [vmem:[#allocation7 + $0x30] sm:$0xff]  ;;  %v351_v13 = vld [vmem:[#allocation7 + $0x68] sm:$0xff] }
  0x45   :  { %10963 = vst [vmem:[#allocation40_spill] sm:$0xff] %v8721_v3  ;;  %v349_v16 = vld [vmem:[#allocation7 + $0x58] sm:$0xff]  ;;  %v8728_v18 = vpack.c.bf16 %v344_v9, %v340_v6  ;;  %v346_v21 = vld [vmem:[#allocation7 + $0x40] sm:$0xff]  ;;  %v348_v27 = vld [vmem:[#allocation7 + $0x50] sm:$0xff]  ;;  %v8730_v30 = vpack.c.bf16 %v351_v13, %v347_v12 }
  0x46   :  { %5401 = vmatpush1.bf16.msra.mxu0 %v8695_v40  ;;  %5433 = vmatpush1.bf16.msra.mxu1 %v8699_v42  ;;  %10964 = vst [vmem:[#allocation41_spill] sm:$0xff] %v8723_v4  ;;  %v353_v17 = vld [vmem:[#allocation7 + $0x78] sm:$0xff]  ;;  %v350_v22 = vld [vmem:[#allocation7 + $0x60] sm:$0xff]  ;;  %v352_v35 = vld [vmem:[#allocation7 + $0x70] sm:$0xff] }
  0x47   :  { %5403 = vmatprep.subr.bf16.mxu0 %v8701_v43  ;;  %5435 = vmatprep.subr.bf16.mxu1 %v8704_v48  ;;  %10965 = vst [vmem:[#allocation42_spill] sm:$0xff] %v8728_v18  ;;  %10966 = vst [vmem:[#allocation43_spill] sm:$0xff] %v8730_v30  ;;  %v8732_v31 = vpack.c.bf16 %v353_v17, %v349_v16  ;;  %v8734_v34 = vpack.c.bf16 %v350_v22, %v346_v21  ;;  %v355_v36 = vld [vmem:[#allocation7 + $0x88] sm:$0xff]  ;;  %v357_v47 = vld [vmem:[#allocation7 + $0x98] sm:$0xff] }
  0x48   :  { %v359_v38 = vld [vmem:[#allocation7 + $0xa8] sm:$0xff]  ;;  %v8737_v39 = vpack.c.bf16 %v352_v35, %v348_v27  ;;  %v361_v49 = vld [vmem:[#allocation7 + $0xb8] sm:$0xff]  ;;  %v354_v51 = vld [vmem:[#allocation7 + $0x80] sm:$0xff] }
  0x49   :  { %10967 = vst [vmem:[#allocation44_spill] sm:$0xff] %v8732_v31  ;;  %10968 = vst [vmem:[#allocation45_spill] sm:$0xff] %v8734_v34  ;;  %v8739_v44 = vpack.c.bf16 %v359_v38, %v355_v36  ;;  %v358_v55 = vld [vmem:[#allocation7 + $0xa0] sm:$0xff]  ;;  %v356_v59 = vld [vmem:[#allocation7 + $0x90] sm:$0xff] }
  0x4a   :  { %5405 = vmatpush1.bf16.msra.mxu0 %v8707_v52  ;;  %5437 = vmatpush1.bf16.msra.mxu1 %v8711_v53  ;;  %10969 = vst [vmem:[#allocation46_spill] sm:$0xff] %v8737_v39  ;;  %v360_v60 = vld [vmem:[#allocation7 + $0xb0] sm:$0xff]  ;;  %v8746_v63 = vpack.c.bf16 %v358_v55, %v354_v51  ;;  %v363_v2 = vld [vmem:[#allocation7 + $0xc8] sm:$0xff]  ;;  %v365_v9 = vld [vmem:[#allocation7 + $0xd8] sm:$0xff] }
  0x4b   :  { %5439 = vmatprep.subr.bf16.mxu0 %v8719_v61  ;;  %5503 = vmatprep.subr.bf16.mxu1 %v8721_v3  ;;  %10970 = vst [vmem:[#allocation47_spill] sm:$0xff] %v8739_v44  ;;  %v8750_v1 = vpack.c.bf16 %v360_v60, %v356_v59  ;;  %v367_v6 = vld [vmem:[#allocation7 + $0xe8] sm:$0xff]  ;;  %v369_v13 = vld [vmem:[#allocation7 + $0xf8] sm:$0xff]  ;;  %v362_v16 = vld [vmem:[#allocation7 + $0xc0] sm:$0xff] }
  0x4c   :  { %10972 = vst [vmem:[#allocation49_spill] sm:$0xff] %v8746_v63  ;;  %v8755_v12 = vpack.c.bf16 %v367_v6, %v363_v2  ;;  %v366_v17 = vld [vmem:[#allocation7 + $0xe0] sm:$0xff]  ;;  %v8757_v21 = vpack.c.bf16 %v369_v13, %v365_v9  ;;  %v364_v27 = vld [vmem:[#allocation7 + $0xd0] sm:$0xff]  ;;  %v371_v36 = vld [vmem:[#allocation7 + $0x108] sm:$0xff] }
  0x4d   :  { %720 = vmatmul.mubr.f32.vlgmr.msra.gmra.mrb[4].mxu0 %v641_v54  ;;  %791 = vmatmul.mubr.f32.vlgmr.msra.gmra.mrb[4].mxu1 %v641_v54  ;;  %v8743_v54 = vpack.c.bf16 %v361_v49, %v357_v47  ;;  %10973 = vst [vmem:[#allocation50_spill] sm:$0xff] %v8750_v1  ;;  %v8759_v22 = vpack.c.bf16 %v366_v17, %v362_v16  ;;  %v368_v35 = vld [vmem:[#allocation7 + $0xf0] sm:$0xff]  ;;  %v375_v47 = vld [vmem:[#allocation7 + $0x128] sm:$0xff]  ;;  %v373_v49 = vld [vmem:[#allocation7 + $0x118] sm:$0xff] }
  0x4e   :  { %5441 = vmatpush1.bf16.msra.mxu0 %v8723_v4  ;;  %5505 = vmatpush1.bf16.msra.mxu1 %v8728_v18  ;;  %10974 = vst [vmem:[#allocation51_spill] sm:$0xff] %v8755_v12  ;;  %10975 = vst [vmem:[#allocation52_spill] sm:$0xff] %v8757_v21  ;;  %v8762_v38 = vpack.c.bf16 %v368_v35, %v364_v27  ;;  %v377_v51 = vld [vmem:[#allocation7 + $0x138] sm:$0xff]  ;;  %v8766_v55 = vpack.c.bf16 %v375_v47, %v371_v36  ;;  %v370_v60 = vld [vmem:[#allocation7 + $0x100] sm:$0xff] }
  0x4f   :  { %5443 = vmatprep.subr.bf16.mxu0 %v8730_v30  ;;  %5507 = vmatprep.subr.bf16.mxu1 %v8732_v31  ;;  %10971 = vst [vmem:[#allocation48_spill] sm:$0xff] %v8743_v54  ;;  %10976 = vst [vmem:[#allocation53_spill] sm:$0xff] %v8759_v22  ;;  %v8768_v59 = vpack.c.bf16 %v377_v51, %v373_v49  ;;  %v374_v2 = vld [vmem:[#allocation7 + $0x120] sm:$0xff]  ;;  %v372_v6 = vld [vmem:[#allocation7 + $0x110] sm:$0xff] }
  0x50   :  { %10977 = vst [vmem:[#allocation54_spill] sm:$0xff] %v8762_v38  ;;  %10978 = vst [vmem:[#allocation55_spill] sm:$0xff] %v8766_v55  ;;  %v8773_v9 = vpack.c.bf16 %v374_v2, %v370_v60  ;;  %v376_v13 = vld [vmem:[#allocation7 + $0x130] sm:$0xff]  ;;  %v379_v17 = vld [vmem:[#allocation7 + $0x148] sm:$0xff] }
  0x51   :  { %10979 = vst [vmem:[#allocation56_spill] sm:$0xff] %v8768_v59  ;;  %v8775_v16 = vpack.c.bf16 %v376_v13, %v372_v6  ;;  %v383_v27 = vld [vmem:[#allocation7 + $0x168] sm:$0xff]  ;;  %v381_v35 = vld [vmem:[#allocation7 + $0x158] sm:$0xff]  ;;  %v378_v49 = vld [vmem:[#allocation7 + $0x140] sm:$0xff] }
  0x52   :  { %5445 = vmatpush1.bf16.msra.mxu0 %v8734_v34  ;;  %5509 = vmatpush1.bf16.msra.mxu1 %v8737_v39  ;;  %10980 = vst [vmem:[#allocation57_spill] sm:$0xff] %v8773_v9  ;;  %v8779_v36 = vpack.c.bf16 %v383_v27, %v379_v17  ;;  %v385_v47 = vld [vmem:[#allocation7 + $0x178] sm:$0xff]  ;;  %v382_v51 = vld [vmem:[#allocation7 + $0x160] sm:$0xff]  ;;  %v380_v60 = vld [vmem:[#allocation7 + $0x150] sm:$0xff] }
  0x53   :  { %5447 = vmatprep.subr.bf16.mxu0 %v8739_v44  ;;  %5511 = vmatprep.subr.bf16.mxu1 %v8743_v54  ;;  %10981 = vst [vmem:[#allocation58_spill] sm:$0xff] %v8775_v16  ;;  %v8781_v0 = vpack.c.bf16 %v385_v47, %v381_v35  ;;  %v384_v2 = vld [vmem:[#allocation7 + $0x170] sm:$0xff]  ;;  %v387_v13 = vld [vmem:[#allocation7 + $0x188] sm:$0xff]  ;;  %v389_v27 = vld [vmem:[#allocation7 + $0x198] sm:$0xff] }
  0x54   :  { %10982 = vst [vmem:[#allocation59_spill] sm:$0xff] %v8779_v36  ;;  %v8786_v6 = vpack.c.bf16 %v384_v2, %v380_v60  ;;  %v391_v17 = vld [vmem:[#allocation7 + $0x1a8] sm:$0xff]  ;;  %v393_v35 = vld [vmem:[#allocation7 + $0x1b8] sm:$0xff]  ;;  %v386_v47 = vld [vmem:[#allocation7 + $0x180] sm:$0xff] }
  0x55   :  { %10983 = vst [vmem:[#allocation60_spill] sm:$0xff] %v8781_v0  ;;  %v388_v60 = vld [vmem:[#allocation7 + $0x190] sm:$0xff]  ;;  %v490_v31 = vld [vmem:[#allocation7 + $0x4b8] sm:$0xff] }
  0x56   :  { %5449 = vmatpush1.bf16.msra.mxu0 %v8746_v63  ;;  %5513 = vmatpush1.bf16.msra.mxu1 %v8750_v1  ;;  %10985 = vst [vmem:[#allocation62_spill] sm:$0xff] %v8786_v6  ;;  %v392_v2 = vld [vmem:[#allocation7 + $0x1b0] sm:$0xff] }
  0x57   :  { %5451 = vmatprep.subr.bf16.mxu0 %v8755_v12  ;;  %5515 = vmatprep.subr.bf16.mxu1 %v8757_v21  ;;  %v460_v21 = vld [vmem:[#allocation7 + $0x3d0] sm:$0xff] }
  0x5a   :  { %5453 = vmatpush1.bf16.msra.mxu0 %v8759_v22  ;;  %5517 = vmatpush1.bf16.msra.mxu1 %v8762_v38  ;;  %v463_v22 = vld [vmem:[#allocation7 + $0x3e8] sm:$0xff] }
  0x5b   :  { %5455 = vmatprep.subr.bf16.mxu0 %v8766_v55  ;;  %5519 = vmatprep.subr.bf16.mxu1 %v8768_v59  ;;  %v8783_v59 = vpack.c.bf16 %v382_v51, %v378_v49  ;;  %v390_v49 = vld [vmem:[#allocation7 + $0x1a0] sm:$0xff]  ;;  %v8793_v51 = vpack.c.bf16 %v393_v35, %v389_v27  ;;  %v401_v27 = vld [vmem:[#allocation7 + $0x1f8] sm:$0xff] }
  0x5c   :  { %v394_v35 = vld [vmem:[#allocation7 + $0x1c0] sm:$0xff]  ;;  %v445_v55 = vld [vmem:[#allocation7 + $0x358] sm:$0xff] }
  0x5d   :  { %10984 = vst [vmem:[#allocation61_spill] sm:$0xff] %v8783_v59  ;;  %10987 = vst [vmem:[#allocation64_spill] sm:$0xff] %v8793_v51 }
  0x5e   :  { %5457 = vmatpush1.bf16.msra.mxu0 %v8773_v9  ;;  %5521 = vmatpush1.bf16.msra.mxu1 %v8775_v16  ;;  %v8791_v16 = vpack.c.bf16 %v391_v17, %v387_v13  ;;  %v8795_v9 = vpack.c.bf16 %v390_v49, %v386_v47  ;;  %v399_v13 = vld [vmem:[#allocation7 + $0x1e8] sm:$0xff]  ;;  %v397_v17 = vld [vmem:[#allocation7 + $0x1d8] sm:$0xff]  ;;  %v398_v47 = vld [vmem:[#allocation7 + $0x1e0] sm:$0xff] }
  0x5f   :  { %5459 = vmatprep.subr.bf16.mxu0 %v8779_v36  ;;  %5523 = vmatprep.subr.bf16.mxu1 %v8781_v0  ;;  %v8798_v0 = vpack.c.bf16 %v392_v2, %v388_v60  ;;  %v8805_v49 = vpack.c.bf16 %v401_v27, %v397_v17  ;;  %v8807_v36 = vpack.c.bf16 %v398_v47, %v394_v35  ;;  %v396_v60 = vld [vmem:[#allocation7 + $0x1d0] sm:$0xff]  ;;  %v409_v17 = vld [vmem:[#allocation7 + $0x238] sm:$0xff]  ;;  %v402_v27 = vld [vmem:[#allocation7 + $0x200] sm:$0xff] }
  0x60   :  { %10986 = vst [vmem:[#allocation63_spill] sm:$0xff] %v8791_v16  ;;  %10988 = vst [vmem:[#allocation65_spill] sm:$0xff] %v8795_v9  ;;  %v400_v2 = vld [vmem:[#allocation7 + $0x1f0] sm:$0xff]  ;;  %v406_v35 = vld [vmem:[#allocation7 + $0x220] sm:$0xff] }
  0x61   :  { %10989 = vst [vmem:[#allocation66_spill] sm:$0xff] %v8798_v0  ;;  %10991 = vst [vmem:[#allocation68_spill] sm:$0xff] %v8805_v49 }
  0x62   :  { %5461 = vmatpush1.bf16.msra.mxu0 %v8783_v59  ;;  %5525 = vmatpush1.bf16.msra.mxu1 %v8786_v6  ;;  %v395_v6 = vld [vmem:[#allocation7 + $0x1c8] sm:$0xff]  ;;  %10992 = vst [vmem:[#allocation69_spill] sm:$0xff] %v8807_v36 }
  0x63   :  { %5463 = vmatprep.subr.bf16.mxu0 %v8791_v16  ;;  %5527 = vmatprep.subr.bf16.mxu1 %v8793_v51  ;;  %v8803_v59 = vpack.c.bf16 %v399_v13, %v395_v6  ;;  %v8810_v51 = vpack.c.bf16 %v400_v2, %v396_v60  ;;  %v407_v6 = vld [vmem:[#allocation7 + $0x228] sm:$0xff]  ;;  %v405_v13 = vld [vmem:[#allocation7 + $0x218] sm:$0xff]  ;;  %v8819_v16 = vpack.c.bf16 %v406_v35, %v402_v27  ;;  %v404_v60 = vld [vmem:[#allocation7 + $0x210] sm:$0xff] }
  0x64   :  { %v8817_v47 = vpack.c.bf16 %v409_v17, %v405_v13  ;;  %v408_v2 = vld [vmem:[#allocation7 + $0x230] sm:$0xff]  ;;  %v417_v13 = vld [vmem:[#allocation7 + $0x278] sm:$0xff]  ;;  %v410_v17 = vld [vmem:[#allocation7 + $0x240] sm:$0xff] }
  0x65   :  { %10990 = vst [vmem:[#allocation67_spill] sm:$0xff] %v8803_v59  ;;  %10993 = vst [vmem:[#allocation70_spill] sm:$0xff] %v8810_v51  ;;  %v414_v27 = vld [vmem:[#allocation7 + $0x260] sm:$0xff] }
  0x66   :  { %5465 = vmatpush1.bf16.msra.mxu0 %v8795_v9  ;;  %5529 = vmatpush1.bf16.msra.mxu1 %v8798_v0  ;;  %v403_v0 = vld [vmem:[#allocation7 + $0x208] sm:$0xff]  ;;  %10995 = vst [vmem:[#allocation72_spill] sm:$0xff] %v8817_v47  ;;  %10996 = vst [vmem:[#allocation73_spill] sm:$0xff] %v8819_v16 }
  0x67   :  { %5467 = vmatprep.subr.bf16.mxu0 %v8803_v59  ;;  %5531 = vmatprep.subr.bf16.mxu1 %v8805_v49  ;;  %v8815_v9 = vpack.c.bf16 %v407_v6, %v403_v0  ;;  %v8822_v49 = vpack.c.bf16 %v408_v2, %v404_v60  ;;  %v415_v0 = vld [vmem:[#allocation7 + $0x268] sm:$0xff]  ;;  %v413_v6 = vld [vmem:[#allocation7 + $0x258] sm:$0xff]  ;;  %v8831_v59 = vpack.c.bf16 %v414_v27, %v410_v17  ;;  %v412_v60 = vld [vmem:[#allocation7 + $0x250] sm:$0xff] }
  0x68   :  { %v8829_v35 = vpack.c.bf16 %v417_v13, %v413_v6  ;;  %v416_v2 = vld [vmem:[#allocation7 + $0x270] sm:$0xff]  ;;  %v425_v6 = vld [vmem:[#allocation7 + $0x2b8] sm:$0xff]  ;;  %v418_v13 = vld [vmem:[#allocation7 + $0x280] sm:$0xff] }
  0x69   :  { %10994 = vst [vmem:[#allocation71_spill] sm:$0xff] %v8815_v9  ;;  %10997 = vst [vmem:[#allocation74_spill] sm:$0xff] %v8822_v49  ;;  %v422_v17 = vld [vmem:[#allocation7 + $0x2a0] sm:$0xff] }
  0x6a   :  { %5469 = vmatpush1.bf16.msra.mxu0 %v8807_v36  ;;  %5533 = vmatpush1.bf16.msra.mxu1 %v8810_v51  ;;  %v411_v51 = vld [vmem:[#allocation7 + $0x248] sm:$0xff]  ;;  %10999 = vst [vmem:[#allocation76_spill] sm:$0xff] %v8829_v35  ;;  %11000 = vst [vmem:[#allocation77_spill] sm:$0xff] %v8831_v59 }
  0x6b   :  { %5471 = vmatprep.subr.bf16.mxu0 %v8815_v9  ;;  %5535 = vmatprep.subr.bf16.mxu1 %v8817_v47  ;;  %v8827_v36 = vpack.c.bf16 %v415_v0, %v411_v51  ;;  %v8834_v47 = vpack.c.bf16 %v416_v2, %v412_v60  ;;  %v423_v51 = vld [vmem:[#allocation7 + $0x2a8] sm:$0xff]  ;;  %v421_v0 = vld [vmem:[#allocation7 + $0x298] sm:$0xff]  ;;  %v8843_v9 = vpack.c.bf16 %v422_v17, %v418_v13  ;;  %v420_v60 = vld [vmem:[#allocation7 + $0x290] sm:$0xff] }
  0x6c   :  { %v8841_v27 = vpack.c.bf16 %v425_v6, %v421_v0  ;;  %v424_v2 = vld [vmem:[#allocation7 + $0x2b0] sm:$0xff]  ;;  %v433_v0 = vld [vmem:[#allocation7 + $0x2f8] sm:$0xff]  ;;  %v426_v6 = vld [vmem:[#allocation7 + $0x2c0] sm:$0xff] }
  0x6d   :  { %10998 = vst [vmem:[#allocation75_spill] sm:$0xff] %v8827_v36  ;;  %11001 = vst [vmem:[#allocation78_spill] sm:$0xff] %v8834_v47  ;;  %v430_v13 = vld [vmem:[#allocation7 + $0x2e0] sm:$0xff] }
  0x6e   :  { %5473 = vmatpush1.bf16.msra.mxu0 %v8819_v16  ;;  %5537 = vmatpush1.bf16.msra.mxu1 %v8822_v49  ;;  %v419_v49 = vld [vmem:[#allocation7 + $0x288] sm:$0xff]  ;;  %11003 = vst [vmem:[#allocation80_spill] sm:$0xff] %v8841_v27  ;;  %11004 = vst [vmem:[#allocation81_spill] sm:$0xff] %v8843_v9 }
  0x6f   :  { %5475 = vmatprep.subr.bf16.mxu0 %v8827_v36  ;;  %5539 = vmatprep.subr.bf16.mxu1 %v8829_v35  ;;  %v8839_v16 = vpack.c.bf16 %v423_v51, %v419_v49  ;;  %v8846_v35 = vpack.c.bf16 %v424_v2, %v420_v60  ;;  %v431_v49 = vld [vmem:[#allocation7 + $0x2e8] sm:$0xff]  ;;  %v429_v51 = vld [vmem:[#allocation7 + $0x2d8] sm:$0xff]  ;;  %v8855_v36 = vpack.c.bf16 %v430_v13, %v426_v6  ;;  %v428_v60 = vld [vmem:[#allocation7 + $0x2d0] sm:$0xff] }
  0x70   :  { %v8853_v17 = vpack.c.bf16 %v433_v0, %v429_v51  ;;  %v432_v2 = vld [vmem:[#allocation7 + $0x2f0] sm:$0xff]  ;;  %v437_v51 = vld [vmem:[#allocation7 + $0x318] sm:$0xff]  ;;  %v434_v6 = vld [vmem:[#allocation7 + $0x300] sm:$0xff] }
  0x71   :  { %11002 = vst [vmem:[#allocation79_spill] sm:$0xff] %v8839_v16  ;;  %11005 = vst [vmem:[#allocation82_spill] sm:$0xff] %v8846_v35  ;;  %v441_v0 = vld [vmem:[#allocation7 + $0x338] sm:$0xff] }
  0x72   :  { %5477 = vmatpush1.bf16.msra.mxu0 %v8831_v59  ;;  %5541 = vmatpush1.bf16.msra.mxu1 %v8834_v47  ;;  %v427_v47 = vld [vmem:[#allocation7 + $0x2c8] sm:$0xff]  ;;  %11007 = vst [vmem:[#allocation84_spill] sm:$0xff] %v8853_v17  ;;  %11008 = vst [vmem:[#allocation85_spill] sm:$0xff] %v8855_v36  ;;  %v8865_v13 = vpack.c.bf16 %v441_v0, %v437_v51  ;;  %v446_v51 = vld [vmem:[#allocation7 + $0x360] sm:$0xff] }
  0x73   :  { %5479 = vmatprep.subr.bf16.mxu0 %v8839_v16  ;;  %5543 = vmatprep.subr.bf16.mxu1 %v8841_v27  ;;  %v8851_v59 = vpack.c.bf16 %v431_v49, %v427_v47  ;;  %v8858_v27 = vpack.c.bf16 %v432_v2, %v428_v60  ;;  %v439_v47 = vld [vmem:[#allocation7 + $0x328] sm:$0xff]  ;;  %v436_v16 = vld [vmem:[#allocation7 + $0x310] sm:$0xff] }
  0x74   :  { %11011 = vst [vmem:[#allocation88_spill] sm:$0xff] %v8865_v13 }
  0x75   :  { %11006 = vst [vmem:[#allocation83_spill] sm:$0xff] %v8851_v59  ;;  %11009 = vst [vmem:[#allocation86_spill] sm:$0xff] %v8858_v27 }
  0x76   :  { %5481 = vmatpush1.bf16.msra.mxu0 %v8843_v9  ;;  %5545 = vmatpush1.bf16.msra.mxu1 %v8846_v35  ;;  %v435_v35 = vld [vmem:[#allocation7 + $0x308] sm:$0xff]  ;;  %v438_v9 = vld [vmem:[#allocation7 + $0x320] sm:$0xff] }
  0x77   :  { %5483 = vmatprep.subr.bf16.mxu0 %v8851_v59  ;;  %5547 = vmatprep.subr.bf16.mxu1 %v8853_v17  ;;  %v8863_v49 = vpack.c.bf16 %v439_v47, %v435_v35  ;;  %v440_v59 = vld [vmem:[#allocation7 + $0x330] sm:$0xff]  ;;  %v8868_v60 = vpack.c.bf16 %v438_v9, %v434_v6  ;;  %v447_v17 = vld [vmem:[#allocation7 + $0x368] sm:$0xff]  ;;  %v449_v47 = vld [vmem:[#allocation7 + $0x378] sm:$0xff] }
  0x78   :  { %v8870_v2 = vpack.c.bf16 %v440_v59, %v436_v16  ;;  %v8877_v0 = vpack.c.bf16 %v449_v47, %v445_v55  ;;  %v444_v59 = vld [vmem:[#allocation7 + $0x350] sm:$0xff]  ;;  %v451_v6 = vld [vmem:[#allocation7 + $0x388] sm:$0xff]  ;;  %v450_v55 = vld [vmem:[#allocation7 + $0x380] sm:$0xff] }
  0x79   :  { %11010 = vst [vmem:[#allocation87_spill] sm:$0xff] %v8863_v49  ;;  %11012 = vst [vmem:[#allocation89_spill] sm:$0xff] %v8868_v60  ;;  %v448_v16 = vld [vmem:[#allocation7 + $0x370] sm:$0xff]  ;;  %v454_v47 = vld [vmem:[#allocation7 + $0x3a0] sm:$0xff] }
  0x7a   :  { %5485 = vmatpush1.bf16.msra.mxu0 %v8855_v36  ;;  %5549 = vmatpush1.bf16.msra.mxu1 %v8858_v27  ;;  %11013 = vst [vmem:[#allocation90_spill] sm:$0xff] %v8870_v2  ;;  %v443_v36 = vld [vmem:[#allocation7 + $0x348] sm:$0xff]  ;;  %v442_v27 = vld [vmem:[#allocation7 + $0x340] sm:$0xff]  ;;  %11015 = vst [vmem:[#allocation92_spill] sm:$0xff] %v8877_v0 }
  0x7b   :  { %5487 = vmatprep.subr.bf16.mxu0 %v8863_v49  ;;  %5551 = vmatprep.subr.bf16.mxu1 %v8865_v13  ;;  %v8873_v35 = vpack.c.bf16 %v447_v17, %v443_v36  ;;  %v8879_v9 = vpack.c.bf16 %v446_v51, %v442_v27  ;;  %v8882_v49 = vpack.c.bf16 %v448_v16, %v444_v59  ;;  %v455_v36 = vld [vmem:[#allocation7 + $0x3a8] sm:$0xff]  ;;  %v453_v17 = vld [vmem:[#allocation7 + $0x398] sm:$0xff]  ;;  %v452_v27 = vld [vmem:[#allocation7 + $0x390] sm:$0xff] }
  0x7c   :  { %v457_v13 = vld [vmem:[#allocation7 + $0x3b8] sm:$0xff]  ;;  %v8885_v38 = vpack.c.bf16 %v455_v36, %v451_v6  ;;  %v456_v51 = vld [vmem:[#allocation7 + $0x3b0] sm:$0xff]  ;;  %v8891_v59 = vpack.c.bf16 %v454_v47, %v450_v55  ;;  %v458_v6 = vld [vmem:[#allocation7 + $0x3c0] sm:$0xff] }
  0x7d   :  { %11014 = vst [vmem:[#allocation91_spill] sm:$0xff] %v8873_v35  ;;  %11016 = vst [vmem:[#allocation93_spill] sm:$0xff] %v8879_v9  ;;  %v8893_v16 = vpack.c.bf16 %v456_v51, %v452_v27  ;;  %v5192_v55 = vld [vmem:[%s10619_s5 + $0x2] sm:$0x3]  ;;  %v474_v51 = vld [vmem:[#allocation7 + $0x438] sm:$0xff] }
  0x7e   :  { %5489 = vmatpush1.bf16.msra.mxu0 %v8868_v60  ;;  %5553 = vmatpush1.bf16.msra.mxu1 %v8870_v2  ;;  %11017 = vst [vmem:[#allocation94_spill] sm:$0xff] %v8882_v49  ;;  %11018 = vst [vmem:[#allocation95_spill] sm:$0xff] %v8885_v38  ;;  %v8887_v60 = vpack.c.bf16 %v457_v13, %v453_v17  ;;  %v459_v2 = vld [vmem:[#allocation7 + $0x3c8] sm:$0xff]  ;;  %v462_v17 = vld [vmem:[#allocation7 + $0x3e0] sm:$0xff] }
  0x7f   :  { %5491 = vmatprep.subr.bf16.mxu0 %v8873_v35  ;;  %5555 = vmatprep.subr.bf16.mxu1 %v8877_v0  ;;  %11020 = vst [vmem:[#allocation97_spill] sm:$0xff] %v8891_v59  ;;  %11021 = vst [vmem:[#allocation98_spill] sm:$0xff] %v8893_v16  ;;  %v461_v35 = vld [vmem:[#allocation7 + $0x3d8] sm:$0xff]  ;;  %v8897_v13 = vpack.c.bf16 %v463_v22, %v459_v2  ;;  %v8906_v47 = vpack.c.bf16 %v462_v17, %v458_v6  ;;  %v468_v22 = vld [vmem:[#allocation7 + $0x408] sm:$0xff] }
  0x80   :  { %11019 = vst [vmem:[#allocation96_spill] sm:$0xff] %v8887_v60  ;;  %v465_v0 = vld [vmem:[#allocation7 + $0x3f8] sm:$0xff]  ;;  %889 = vmatprep.mubr.f32.mxu0 %v5192_v55  ;;  %960 = vmatprep.mubr.f32.mxu1 %v5192_v55  ;;  %v472_v2 = vld [vmem:[#allocation7 + $0x428] sm:$0xff] }
  0x81   :  { %11022 = vst [vmem:[#allocation99_spill] sm:$0xff] %v8897_v13  ;;  %v8899_v36 = vpack.c.bf16 %v465_v0, %v461_v35  ;;  %11024 = vst [vmem:[#allocation101_spill] sm:$0xff] %v8906_v47  ;;  %v470_v35 = vld [vmem:[#allocation7 + $0x418] sm:$0xff]  ;;  %v8914_v0 = vpack.c.bf16 %v472_v2, %v468_v22 }
  0x82   :  { %5493 = vmatpush1.bf16.msra.mxu0 %v8879_v9  ;;  %5557 = vmatpush1.bf16.msra.mxu1 %v8882_v49  ;;  %v464_v9 = vld [vmem:[#allocation7 + $0x3f0] sm:$0xff]  ;;  %v8916_v55 = vpack.c.bf16 %v474_v51, %v470_v35 }
  0x83   :  { %5495 = vmatprep.subr.bf16.mxu0 %v8885_v38  ;;  %5559 = vmatprep.subr.bf16.mxu1 %v8887_v60  ;;  %11023 = vst [vmem:[#allocation100_spill] sm:$0xff] %v8899_v36  ;;  %v8908_v27 = vpack.c.bf16 %v464_v9, %v460_v21  ;;  %11026 = vst [vmem:[#allocation103_spill] sm:$0xff] %v8914_v0  ;;  %v85_v21 = vlaneseq }
  0x84   :  { %11027 = vst [vmem:[#allocation104_spill] sm:$0xff] %v8916_v55 }
  0x85   :  { %11025 = vst [vmem:[#allocation102_spill] sm:$0xff] %v8908_v27  ;;  %v86_v9 = vshrl.u32 %v85_v21, 7 }
  0x86   :  { %5497 = vmatpush1.bf16.msra.mxu0 %v8891_v59  ;;  %5561 = vmatpush1.bf16.msra.mxu1 %v8893_v16 }
  0x87   :  { %5499 = vmatprep.subr.bf16.mxu0 %v8897_v13  ;;  %5563 = vmatprep.subr.bf16.mxu1 %v8899_v36  ;;  %v8920_v6 = vsub.s32 0, %v86_v9  ;;  %v8922_v17 = vsub.s32 2, %v86_v9  ;;  %v8929_v22 = vsub.s32 3, %v86_v9 }
  0x8a   :  { %5501 = vmatpush1.bf16.msra.mxu0 %v8906_v47  ;;  %5565 = vmatpush1.bf16.msra.mxu1 %v8908_v27  ;;  %v83_v27 = vld [vmem:[%s10618_s4] ss:$4 sm:$0xf]  ;;  %v8927_v47 = vsub.s32 1, %v86_v9 }
  0x8b   :  { %5567 = vmatprep.subr.bf16.mxu0 %v8914_v0  ;;  %5631 = vmatprep.subr.bf16.mxu1 %v8916_v55  ;;  %v88_v2 = vrot.slane %v83_v27, %v8920_v6  ;;  %v96_v35 = vrot.slane %v83_v27, %v8922_v17  ;;  %v100_v21 = vrot.slane %v83_v27, %v8929_v22 }
  0x8c   :  { %v92_v51 = vrot.slane %v83_v27, %v8927_v47 }
  0xfe   :  { %v178_v55 = vpop.f32.mrb[0].mxu0  ;;  %v255_v0 = vpop.f32.mrb[0].mxu1 }
  0xff   :  { %v179_v36 = vadd.f32 %v178_v55, %v88_v2  ;;  %v180_v13 = vpop.f32.mrb[1].mxu0  ;;  %v256_v16 = vadd.f32 %v255_v0, %v96_v35  ;;  %v257_v59 = vpop.f32.mrb[1].mxu1 }
 0x100   :  { %v181_v60 = vadd.f32 %v180_v13, %v92_v51  ;;  %v258_v38 = vadd.f32 %v257_v59, %v100_v21 }
 0x101   :  { %266 = vst [vmem:[#allocation2] sm:$0xff] %v179_v36  ;;  %268 = vst [vmem:[#allocation2 + $0x10] sm:$0xff] %v256_v16 }
 0x102   :  { %267 = vst [vmem:[#allocation2 + $0x8] sm:$0xff] %v181_v60  ;;  %269 = vst [vmem:[#allocation2 + $0x18] sm:$0xff] %v258_v38 }
 0x108   :  { %v651_v0 = vld [vmem:[#allocation2] sm:$0x3] }
 0x109   :  { %v652_v36 = vld [vmem:[#allocation2 + $0x8] sm:$0x3] }
 0x10f   :  { %v184_v9 = vpop.f32.mrb[2].mxu0  ;;  %v261_v49 = vpop.f32.mrb[2].mxu1 }
 0x110   :  { %v185_v12 = vadd.f32 %v184_v9, %v88_v2  ;;  %v186_v1 = vpop.f32.mrb[3].mxu0  ;;  %v262_v63 = vadd.f32 %v261_v49, %v96_v35  ;;  %v263_v54 = vpop.f32.mrb[3].mxu1  ;;  %v654_v49 = vld [vmem:[#allocation2 + $0x18] sm:$0x3] }
 0x111   :  { %v187_v44 = vadd.f32 %v186_v1, %v92_v51  ;;  %v264_v27 = vadd.f32 %v263_v54, %v100_v21  ;;  %v653_v1 = vld [vmem:[#allocation2 + $0x10] sm:$0x3] }
 0x112   :  { %270 = vst [vmem:[#allocation2 + $0x20] sm:$0xff] %v185_v12  ;;  %272 = vst [vmem:[#allocation2 + $0x30] sm:$0xff] %v262_v63 }
 0x113   :  { %271 = vst [vmem:[#allocation2 + $0x28] sm:$0xff] %v187_v44  ;;  %273 = vst [vmem:[#allocation2 + $0x38] sm:$0xff] %v264_v27 }
 0x120   :  { %v721_v55 = vpop.f32.mrb[4].mxu0  ;;  %v792_v59 = vpop.f32.mrb[4].mxu1 }
 0x121   :  { %v797_v13 = vadd.f32 %v721_v55, %v651_v0  ;;  %v723_v16 = vpop.f32.mrb[5].mxu0  ;;  %v794_v38 = vpop.f32.mrb[5].mxu1  ;;  %v799_v12 = vadd.f32 %v792_v59, %v653_v1  ;;  %v478_v1 = vld [vmem:[#allocation7 + $0x458] sm:$0xff] }
 0x122   :  { %v798_v60 = vadd.f32 %v723_v16, %v652_v36  ;;  %v800_v2 = vadd.f32 %v794_v38, %v654_v49  ;;  %v467_v36 = vld [vmem:[#allocation7 + $0x400] sm:$0xff]  ;;  %v473_v38 = vld [vmem:[#allocation7 + $0x430] sm:$0xff]  ;;  %v476_v49 = vld [vmem:[#allocation7 + $0x448] sm:$0xff] }
 0x123   :  { %v5196_v39 = vmul.f32 -1.442695, %v797_v13  ;;  %v471_v16 = vld [vmem:[#allocation7 + $0x420] sm:$0xff] }
 0x124   :  { %v5197_v34 = vmul.f32 -1.442695, %v798_v60  ;;  %v5198_v54 = vmul.f32 -1.442695, %v800_v2  ;;  %v469_v60 = vld [vmem:[#allocation7 + $0x410] sm:$0xff]  ;;  %v480_v2 = vld [vmem:[#allocation7 + $0x468] sm:$0xff] }
 0x125   :  { %7998 = vpow2.f32 %v5196_v39  ;;  %v642_v39 = vld [vmem:[%s10620_s6] sm:$0x3] }
 0x126   :  { %8000 = vpow2.f32 %v5197_v34 }
 0x127   :  { %8002 = vpow2.f32 %v5198_v54  ;;  %v482_v54 = vld [vmem:[#allocation7 + $0x478] sm:$0xff] }
 0x128   :  { %8004 = vtanh.f32 %v799_v12 }
 0x12f   :  { %v7999_v63 = vpop.eup %7998 }
 0x130   :  { %v8001_v44 = vpop.eup %8000  ;;  %v804_v35 = vadd.f32 1.0, %v7999_v63 }
 0x131   :  { %v810_v51 = vadd.f32 1.0, %v8001_v44  ;;  %v8003_v21 = vpop.eup %8002  ;;  %v8941_v44 = vpack.c.bf16 %v471_v16, %v467_v36 }
 0x132   :  { %8006 = vrcp.f32 %v804_v35  ;;  %v8005_v9 = vpop.eup %8004  ;;  %v817_v55 = vadd.f32 1.0, %v8003_v21  ;;  %v8943_v35 = vpack.c.bf16 %v473_v38, %v469_v60  ;;  %v479_v21 = vld [vmem:[#allocation7 + $0x460] sm:$0xff] }
 0x133   :  { %8008 = vrcp.f32 %v810_v51  ;;  %11029 = vst [vmem:[#allocation106_spill] sm:$0xff] %v8941_v44  ;;  %v475_v51 = vld [vmem:[#allocation7 + $0x440] sm:$0xff] }
 0x134   :  { %8010 = vrcp.f32 %v817_v55  ;;  %11030 = vst [vmem:[#allocation107_spill] sm:$0xff] %v8943_v35  ;;  %v484_v55 = vld [vmem:[#allocation7 + $0x488] sm:$0xff]  ;;  %v8955_v36 = vpack.c.bf16 %v479_v21, %v475_v51  ;;  %v483_v60 = vld [vmem:[#allocation7 + $0x480] sm:$0xff] }
 0x135   :  { %v487_v38 = vld [vmem:[#allocation7 + $0x4a0] sm:$0xff] }
 0x136   :  { %11033 = vst [vmem:[#allocation110_spill] sm:$0xff] %v8955_v36  ;;  %v8967_v51 = vpack.c.bf16 %v487_v38, %v483_v60 }
 0x13c   :  { %v8007_v34 = vpop.eup %8006 }
 0x13d   :  { %v8009_v27 = vpop.eup %8008  ;;  %v821_v0 = vmul.f32 %v8007_v34, %v8005_v9  ;;  %v8949_v34 = vpack.c.bf16 %v482_v54, %v478_v1  ;;  %v485_v1 = vld [vmem:[#allocation7 + $0x490] sm:$0xff] }
 0x13e   :  { %v820_v13 = vmul.f32 %v8009_v27, %v642_v39  ;;  %v8011_v12 = vpop.eup %8010  ;;  %v8947_v39 = vpack.c.bf16 %v480_v2, %v476_v49  ;;  %v477_v27 = vld [vmem:[#allocation7 + $0x450] sm:$0xff] }
 0x13f   :  { %11032 = vst [vmem:[#allocation109_spill] sm:$0xff] %v8949_v34  ;;  %v489_v54 = vld [vmem:[#allocation7 + $0x4b0] sm:$0xff] }
 0x140   :  { %v8938_v59 = vadd.f32 %v821_v0, %v820_v13  ;;  %11031 = vst [vmem:[#allocation108_spill] sm:$0xff] %v8947_v39  ;;  %v481_v0 = vld [vmem:[#allocation7 + $0x470] sm:$0xff]  ;;  %v488_v13 = vld [vmem:[#allocation7 + $0x4a8] sm:$0xff]  ;;  %v8969_v21 = vpack.c.bf16 %v489_v54, %v485_v1  ;;  %v499_v1 = vld [vmem:[#allocation7 + $0x500] sm:$0xff] }
 0x141   :  { %v8957_v16 = vpack.c.bf16 %v481_v0, %v477_v27  ;;  %v8961_v49 = vpack.c.bf16 %v488_v13, %v484_v55  ;;  %v491_v27 = vld [vmem:[#allocation7 + $0x4c0] sm:$0xff]  ;;  %v493_v55 = vld [vmem:[#allocation7 + $0x4d0] sm:$0xff] }
 0x142   :  { %11028 = vst [vmem:[#allocation105_spill] sm:$0xff] %v8938_v59  ;;  %8012 = vtanh.f32 %v8938_v59  ;;  %v486_v59 = vld [vmem:[#allocation7 + $0x498] sm:$0xff]  ;;  %v495_v0 = vld [vmem:[#allocation7 + $0x4e0] sm:$0xff]  ;;  %v497_v13 = vld [vmem:[#allocation7 + $0x4f0] sm:$0xff] }
 0x143   :  { %11034 = vst [vmem:[#allocation111_spill] sm:$0xff] %v8957_v16  ;;  %v8963_v2 = vpack.c.bf16 %v490_v31, %v486_v59  ;;  %v8979_v60 = vpack.c.bf16 %v495_v0, %v491_v27  ;;  %v8981_v38 = vpack.c.bf16 %v497_v13, %v493_v55  ;;  %v503_v54 = vld [vmem:[#allocation7 + $0x520] sm:$0xff]  ;;  %v514_v55 = vld [vmem:[#allocation7 + $0x578] sm:$0xff] }
 0x144   :  { %v8991_v27 = vpack.c.bf16 %v503_v54, %v499_v1  ;;  %v507_v13 = vld [vmem:[#allocation7 + $0x540] sm:$0xff] }
 0x145   :  { %11037 = vst [vmem:[#allocation114_spill] sm:$0xff] %v8979_v60  ;;  %11038 = vst [vmem:[#allocation115_spill] sm:$0xff] %v8981_v38 }
 0x146   :  { %11041 = vst [vmem:[#allocation118_spill] sm:$0xff] %v8991_v27 }
 0x14c   :  { %v8013_v63 = vpop.eup %8012 }
 0x14d   :  { %v8945_v9 = vmul.f32 %v8013_v63, %v8011_v12  ;;  %v492_v12 = vld [vmem:[#allocation7 + $0x4c8] sm:$0xff] }
 0x14e   :  { %v496_v63 = vld [vmem:[#allocation7 + $0x4e8] sm:$0xff] }
 0x14f   :  { %890 = vmatmul.mubr.f32.vlgmr.msra.gmra.mrb[6].mxu0 %v8945_v9  ;;  %961 = vmatmul.mubr.f32.vlgmr.msra.gmra.mrb[6].mxu1 %v8945_v9  ;;  %v8973_v31 = vpack.c.bf16 %v496_v63, %v492_v12  ;;  %v501_v12 = vld [vmem:[#allocation7 + $0x510] sm:$0xff] }
 0x150   :  { %5569 = vmatpush1.bf16.msra.mxu0 %v8941_v44  ;;  %5633 = vmatpush1.bf16.msra.mxu1 %v8943_v35  ;;  %v494_v44 = vld [vmem:[#allocation7 + $0x4d8] sm:$0xff]  ;;  %v505_v63 = vld [vmem:[#allocation7 + $0x530] sm:$0xff] }
 0x151   :  { %5571 = vmatprep.subr.bf16.mxu0 %v8947_v39  ;;  %5635 = vmatprep.subr.bf16.mxu1 %v8949_v34  ;;  %v498_v35 = vld [vmem:[#allocation7 + $0x4f8] sm:$0xff]  ;;  %11035 = vst [vmem:[#allocation112_spill] sm:$0xff] %v8973_v31  ;;  %v500_v34 = vld [vmem:[#allocation7 + $0x508] sm:$0xff]  ;;  %v8993_v0 = vpack.c.bf16 %v505_v63, %v501_v12  ;;  %v509_v12 = vld [vmem:[#allocation7 + $0x550] sm:$0xff] }
 0x152   :  { %v8975_v59 = vpack.c.bf16 %v498_v35, %v494_v44  ;;  %v502_v39 = vld [vmem:[#allocation7 + $0x518] sm:$0xff]  ;;  %v513_v63 = vld [vmem:[#allocation7 + $0x570] sm:$0xff] }
 0x153   :  { %11042 = vst [vmem:[#allocation119_spill] sm:$0xff] %v8993_v0 }
 0x154   :  { %5573 = vmatpush1.bf16.msra.mxu0 %v8955_v36  ;;  %5637 = vmatpush1.bf16.msra.mxu1 %v8957_v16  ;;  %11036 = vst [vmem:[#allocation113_spill] sm:$0xff] %v8975_v59  ;;  %v504_v36 = vld [vmem:[#allocation7 + $0x528] sm:$0xff]  ;;  %v506_v16 = vld [vmem:[#allocation7 + $0x538] sm:$0xff] }
 0x155   :  { %5575 = vmatprep.subr.bf16.mxu0 %v8961_v49  ;;  %5639 = vmatprep.subr.bf16.mxu1 %v8963_v2  ;;  %v8985_v44 = vpack.c.bf16 %v504_v36, %v500_v34  ;;  %v8987_v35 = vpack.c.bf16 %v506_v16, %v502_v39  ;;  %v508_v39 = vld [vmem:[#allocation7 + $0x548] sm:$0xff]  ;;  %v510_v36 = vld [vmem:[#allocation7 + $0x558] sm:$0xff] }
 0x156   :  { %v512_v34 = vld [vmem:[#allocation7 + $0x568] sm:$0xff]  ;;  %v9001_v1 = vpack.c.bf16 %v514_v55, %v510_v36  ;;  %v522_v36 = vld [vmem:[#allocation7 + $0x5b8] sm:$0xff]  ;;  %v519_v55 = vld [vmem:[#allocation7 + $0x5a0] sm:$0xff] }
 0x157   :  { %11039 = vst [vmem:[#allocation116_spill] sm:$0xff] %v8985_v44  ;;  %11040 = vst [vmem:[#allocation117_spill] sm:$0xff] %v8987_v35  ;;  %v8999_v16 = vpack.c.bf16 %v512_v34, %v508_v39  ;;  %v520_v39 = vld [vmem:[#allocation7 + $0x5a8] sm:$0xff]  ;;  %v518_v34 = vld [vmem:[#allocation7 + $0x598] sm:$0xff] }
 0x158   :  { %5577 = vmatpush1.bf16.msra.mxu0 %v8967_v51  ;;  %5641 = vmatpush1.bf16.msra.mxu1 %v8969_v21  ;;  %11044 = vst [vmem:[#allocation121_spill] sm:$0xff] %v9001_v1 }
 0x159   :  { %5579 = vmatprep.subr.bf16.mxu0 %v8973_v31  ;;  %5643 = vmatprep.subr.bf16.mxu1 %v8975_v59  ;;  %11043 = vst [vmem:[#allocation120_spill] sm:$0xff] %v8999_v16  ;;  %v586_v59 = vld [vmem:[#allocation7 + $0x7b8] sm:$0xff] }
 0x15c   :  { %5581 = vmatpush1.bf16.msra.mxu0 %v8979_v60  ;;  %5645 = vmatpush1.bf16.msra.mxu1 %v8981_v38  ;;  %v511_v38 = vld [vmem:[#allocation7 + $0x560] sm:$0xff] }
 0x15d   :  { %5583 = vmatprep.subr.bf16.mxu0 %v8985_v44  ;;  %5647 = vmatprep.subr.bf16.mxu1 %v8987_v35  ;;  %v9003_v54 = vpack.c.bf16 %v511_v38, %v507_v13  ;;  %v9006_v35 = vpack.c.bf16 %v513_v63, %v509_v12  ;;  %v515_v38 = vld [vmem:[#allocation7 + $0x580] sm:$0xff]  ;;  %v9013_v13 = vpack.c.bf16 %v522_v36, %v518_v34  ;;  %v517_v12 = vld [vmem:[#allocation7 + $0x590] sm:$0xff]  ;;  %v530_v34 = vld [vmem:[#allocation7 + $0x5f8] sm:$0xff] }
 0x15e   :  { %v9015_v44 = vpack.c.bf16 %v519_v55, %v515_v38  ;;  %v521_v63 = vld [vmem:[#allocation7 + $0x5b0] sm:$0xff]  ;;  %v523_v36 = vld [vmem:[#allocation7 + $0x5c0] sm:$0xff] }
 0x15f   :  { %11045 = vst [vmem:[#allocation122_spill] sm:$0xff] %v9003_v54  ;;  %11046 = vst [vmem:[#allocation123_spill] sm:$0xff] %v9006_v35  ;;  %v527_v38 = vld [vmem:[#allocation7 + $0x5e0] sm:$0xff] }
 0x160   :  { %5585 = vmatpush1.bf16.msra.mxu0 %v8991_v27  ;;  %5649 = vmatpush1.bf16.msra.mxu1 %v8993_v0  ;;  %v516_v0 = vld [vmem:[#allocation7 + $0x588] sm:$0xff]  ;;  %11048 = vst [vmem:[#allocation125_spill] sm:$0xff] %v9013_v13  ;;  %11049 = vst [vmem:[#allocation126_spill] sm:$0xff] %v9015_v44 }
 0x161   :  { %5587 = vmatprep.subr.bf16.mxu0 %v8999_v16  ;;  %5651 = vmatprep.subr.bf16.mxu1 %v9001_v1  ;;  %v9011_v27 = vpack.c.bf16 %v520_v39, %v516_v0  ;;  %v9018_v1 = vpack.c.bf16 %v521_v63, %v517_v12  ;;  %v528_v0 = vld [vmem:[#allocation7 + $0x5e8] sm:$0xff]  ;;  %v526_v39 = vld [vmem:[#allocation7 + $0x5d8] sm:$0xff]  ;;  %v9027_v16 = vpack.c.bf16 %v527_v38, %v523_v36  ;;  %v525_v12 = vld [vmem:[#allocation7 + $0x5d0] sm:$0xff] }
 0x162   :  { %v9025_v55 = vpack.c.bf16 %v530_v34, %v526_v39  ;;  %v529_v63 = vld [vmem:[#allocation7 + $0x5f0] sm:$0xff]  ;;  %v538_v39 = vld [vmem:[#allocation7 + $0x638] sm:$0xff]  ;;  %v531_v34 = vld [vmem:[#allocation7 + $0x600] sm:$0xff] }
 0x163   :  { %11047 = vst [vmem:[#allocation124_spill] sm:$0xff] %v9011_v27  ;;  %11050 = vst [vmem:[#allocation127_spill] sm:$0xff] %v9018_v1  ;;  %v535_v36 = vld [vmem:[#allocation7 + $0x620] sm:$0xff] }
 0x164   :  { %5589 = vmatpush1.bf16.msra.mxu0 %v9003_v54  ;;  %5653 = vmatpush1.bf16.msra.mxu1 %v9006_v35  ;;  %v524_v35 = vld [vmem:[#allocation7 + $0x5c8] sm:$0xff]  ;;  %11052 = vst [vmem:[#allocation129_spill] sm:$0xff] %v9025_v55  ;;  %11053 = vst [vmem:[#allocation130_spill] sm:$0xff] %v9027_v16 }
 0x165   :  { %5591 = vmatprep.subr.bf16.mxu0 %v9011_v27  ;;  %5655 = vmatprep.subr.bf16.mxu1 %v9013_v13  ;;  %v9023_v54 = vpack.c.bf16 %v528_v0, %v524_v35  ;;  %v9030_v13 = vpack.c.bf16 %v529_v63, %v525_v12  ;;  %v536_v35 = vld [vmem:[#allocation7 + $0x628] sm:$0xff]  ;;  %v534_v0 = vld [vmem:[#allocation7 + $0x618] sm:$0xff]  ;;  %v9039_v27 = vpack.c.bf16 %v535_v36, %v531_v34  ;;  %v533_v12 = vld [vmem:[#allocation7 + $0x610] sm:$0xff] }
 0x166   :  { %v9037_v38 = vpack.c.bf16 %v538_v39, %v534_v0  ;;  %v537_v63 = vld [vmem:[#allocation7 + $0x630] sm:$0xff]  ;;  %v546_v0 = vld [vmem:[#allocation7 + $0x678] sm:$0xff]  ;;  %v539_v39 = vld [vmem:[#allocation7 + $0x640] sm:$0xff] }
 0x167   :  { %11051 = vst [vmem:[#allocation128_spill] sm:$0xff] %v9023_v54  ;;  %11054 = vst [vmem:[#allocation131_spill] sm:$0xff] %v9030_v13  ;;  %v543_v34 = vld [vmem:[#allocation7 + $0x660] sm:$0xff] }
 0x168   :  { %5593 = vmatpush1.bf16.msra.mxu0 %v9015_v44  ;;  %5657 = vmatpush1.bf16.msra.mxu1 %v9018_v1  ;;  %v532_v1 = vld [vmem:[#allocation7 + $0x608] sm:$0xff]  ;;  %11056 = vst [vmem:[#allocation133_spill] sm:$0xff] %v9037_v38  ;;  %11057 = vst [vmem:[#allocation134_spill] sm:$0xff] %v9039_v27 }
 0x169   :  { %5595 = vmatprep.subr.bf16.mxu0 %v9023_v54  ;;  %5659 = vmatprep.subr.bf16.mxu1 %v9025_v55  ;;  %v9035_v44 = vpack.c.bf16 %v536_v35, %v532_v1  ;;  %v9042_v55 = vpack.c.bf16 %v537_v63, %v533_v12  ;;  %v544_v1 = vld [vmem:[#allocation7 + $0x668] sm:$0xff]  ;;  %v542_v35 = vld [vmem:[#allocation7 + $0x658] sm:$0xff]  ;;  %v9051_v54 = vpack.c.bf16 %v543_v34, %v539_v39  ;;  %v541_v12 = vld [vmem:[#allocation7 + $0x650] sm:$0xff] }
 0x16a   :  { %v9049_v36 = vpack.c.bf16 %v546_v0, %v542_v35  ;;  %v545_v63 = vld [vmem:[#allocation7 + $0x670] sm:$0xff]  ;;  %v554_v35 = vld [vmem:[#allocation7 + $0x6b8] sm:$0xff]  ;;  %v547_v0 = vld [vmem:[#allocation7 + $0x680] sm:$0xff] }
 0x16b   :  { %11055 = vst [vmem:[#allocation132_spill] sm:$0xff] %v9035_v44  ;;  %11058 = vst [vmem:[#allocation135_spill] sm:$0xff] %v9042_v55  ;;  %v551_v39 = vld [vmem:[#allocation7 + $0x6a0] sm:$0xff] }
 0x16c   :  { %5597 = vmatpush1.bf16.msra.mxu0 %v9027_v16  ;;  %5661 = vmatpush1.bf16.msra.mxu1 %v9030_v13  ;;  %v540_v13 = vld [vmem:[#allocation7 + $0x648] sm:$0xff]  ;;  %11060 = vst [vmem:[#allocation137_spill] sm:$0xff] %v9049_v36  ;;  %11061 = vst [vmem:[#allocation138_spill] sm:$0xff] %v9051_v54 }
 0x16d   :  { %5599 = vmatprep.subr.bf16.mxu0 %v9035_v44  ;;  %5663 = vmatprep.subr.bf16.mxu1 %v9037_v38  ;;  %v9047_v16 = vpack.c.bf16 %v544_v1, %v540_v13  ;;  %v9054_v38 = vpack.c.bf16 %v545_v63, %v541_v12  ;;  %v552_v13 = vld [vmem:[#allocation7 + $0x6a8] sm:$0xff]  ;;  %v550_v1 = vld [vmem:[#allocation7 + $0x698] sm:$0xff]  ;;  %v9063_v44 = vpack.c.bf16 %v551_v39, %v547_v0  ;;  %v549_v12 = vld [vmem:[#allocation7 + $0x690] sm:$0xff] }
 0x16e   :  { %v9061_v34 = vpack.c.bf16 %v554_v35, %v550_v1  ;;  %v553_v63 = vld [vmem:[#allocation7 + $0x6b0] sm:$0xff]  ;;  %v562_v1 = vld [vmem:[#allocation7 + $0x6f8] sm:$0xff]  ;;  %v555_v35 = vld [vmem:[#allocation7 + $0x6c0] sm:$0xff] }
 0x16f   :  { %11059 = vst [vmem:[#allocation136_spill] sm:$0xff] %v9047_v16  ;;  %11062 = vst [vmem:[#allocation139_spill] sm:$0xff] %v9054_v38  ;;  %v559_v0 = vld [vmem:[#allocation7 + $0x6e0] sm:$0xff] }
 0x170   :  { %5601 = vmatpush1.bf16.msra.mxu0 %v9039_v27  ;;  %5665 = vmatpush1.bf16.msra.mxu1 %v9042_v55  ;;  %v548_v55 = vld [vmem:[#allocation7 + $0x688] sm:$0xff]  ;;  %11064 = vst [vmem:[#allocation141_spill] sm:$0xff] %v9061_v34  ;;  %11065 = vst [vmem:[#allocation142_spill] sm:$0xff] %v9063_v44 }
 0x171   :  { %5603 = vmatprep.subr.bf16.mxu0 %v9047_v16  ;;  %5667 = vmatprep.subr.bf16.mxu1 %v9049_v36  ;;  %v9059_v27 = vpack.c.bf16 %v552_v13, %v548_v55  ;;  %v9066_v36 = vpack.c.bf16 %v553_v63, %v549_v12  ;;  %v560_v55 = vld [vmem:[#allocation7 + $0x6e8] sm:$0xff]  ;;  %v558_v13 = vld [vmem:[#allocation7 + $0x6d8] sm:$0xff]  ;;  %v9075_v16 = vpack.c.bf16 %v559_v0, %v555_v35  ;;  %v557_v12 = vld [vmem:[#allocation7 + $0x6d0] sm:$0xff] }
 0x172   :  { %v9073_v39 = vpack.c.bf16 %v562_v1, %v558_v13  ;;  %v561_v63 = vld [vmem:[#allocation7 + $0x6f0] sm:$0xff]  ;;  %v570_v13 = vld [vmem:[#allocation7 + $0x738] sm:$0xff]  ;;  %v563_v1 = vld [vmem:[#allocation7 + $0x700] sm:$0xff] }
 0x173   :  { %11063 = vst [vmem:[#allocation140_spill] sm:$0xff] %v9059_v27  ;;  %11066 = vst [vmem:[#allocation143_spill] sm:$0xff] %v9066_v36  ;;  %v567_v0 = vld [vmem:[#allocation7 + $0x720] sm:$0xff] }
 0x174   :  { %5605 = vmatpush1.bf16.msra.mxu0 %v9051_v54  ;;  %5669 = vmatpush1.bf16.msra.mxu1 %v9054_v38  ;;  %v556_v38 = vld [vmem:[#allocation7 + $0x6c8] sm:$0xff]  ;;  %11068 = vst [vmem:[#allocation145_spill] sm:$0xff] %v9073_v39  ;;  %11069 = vst [vmem:[#allocation146_spill] sm:$0xff] %v9075_v16 }
 0x175   :  { %5607 = vmatprep.subr.bf16.mxu0 %v9059_v27  ;;  %5671 = vmatprep.subr.bf16.mxu1 %v9061_v34  ;;  %v9071_v54 = vpack.c.bf16 %v560_v55, %v556_v38  ;;  %v9078_v34 = vpack.c.bf16 %v561_v63, %v557_v12  ;;  %v568_v38 = vld [vmem:[#allocation7 + $0x728] sm:$0xff]  ;;  %v566_v55 = vld [vmem:[#allocation7 + $0x718] sm:$0xff]  ;;  %v565_v27 = vld [vmem:[#allocation7 + $0x710] sm:$0xff]  ;;  %v9088_v12 = vpack.c.bf16 %v567_v0, %v563_v1 }
 0x176   :  { %v9085_v35 = vpack.c.bf16 %v570_v13, %v566_v55  ;;  %v571_v55 = vld [vmem:[#allocation7 + $0x740] sm:$0xff]  ;;  %v580_v0 = vld [vmem:[#allocation7 + $0x788] sm:$0xff] }
 0x177   :  { %11067 = vst [vmem:[#allocation144_spill] sm:$0xff] %v9071_v54  ;;  %11070 = vst [vmem:[#allocation147_spill] sm:$0xff] %v9078_v34  ;;  %v575_v13 = vld [vmem:[#allocation7 + $0x760] sm:$0xff] }
 0x178   :  { %5609 = vmatpush1.bf16.msra.mxu0 %v9063_v44  ;;  %5673 = vmatpush1.bf16.msra.mxu1 %v9066_v36  ;;  %v564_v36 = vld [vmem:[#allocation7 + $0x708] sm:$0xff]  ;;  %11072 = vst [vmem:[#allocation149_spill] sm:$0xff] %v9085_v35  ;;  %11073 = vst [vmem:[#allocation150_spill] sm:$0xff] %v9088_v12  ;;  %v9099_v1 = vpack.c.bf16 %v575_v13, %v571_v55  ;;  %v581_v55 = vld [vmem:[#allocation7 + $0x790] sm:$0xff] }
 0x179   :  { %5611 = vmatprep.subr.bf16.mxu0 %v9071_v54  ;;  %5675 = vmatprep.subr.bf16.mxu1 %v9073_v39  ;;  %v9083_v44 = vpack.c.bf16 %v568_v38, %v564_v36  ;;  %v569_v54 = vld [vmem:[#allocation7 + $0x730] sm:$0xff]  ;;  %v576_v39 = vld [vmem:[#allocation7 + $0x768] sm:$0xff]  ;;  %v578_v38 = vld [vmem:[#allocation7 + $0x778] sm:$0xff] }
 0x17a   :  { %v9090_v63 = vpack.c.bf16 %v569_v54, %v565_v27  ;;  %11077 = vst [vmem:[#allocation154_spill] sm:$0xff] %v9099_v1  ;;  %v573_v27 = vld [vmem:[#allocation7 + $0x750] sm:$0xff] }
 0x17b   :  { %11071 = vst [vmem:[#allocation148_spill] sm:$0xff] %v9083_v44  ;;  %v577_v54 = vld [vmem:[#allocation7 + $0x770] sm:$0xff] }
 0x17c   :  { %5613 = vmatpush1.bf16.msra.mxu0 %v9075_v16  ;;  %5677 = vmatpush1.bf16.msra.mxu1 %v9078_v34  ;;  %11074 = vst [vmem:[#allocation151_spill] sm:$0xff] %v9090_v63  ;;  %v572_v16 = vld [vmem:[#allocation7 + $0x748] sm:$0xff]  ;;  %v574_v34 = vld [vmem:[#allocation7 + $0x758] sm:$0xff] }
 0x17d   :  { %5615 = vmatprep.subr.bf16.mxu0 %v9083_v44  ;;  %5679 = vmatprep.subr.bf16.mxu1 %v9085_v35  ;;  %v9095_v36 = vpack.c.bf16 %v576_v39, %v572_v16  ;;  %v9097_v60 = vpack.c.bf16 %v578_v38, %v574_v34  ;;  %v9102_v35 = vpack.c.bf16 %v577_v54, %v573_v27  ;;  %v584_v44 = vld [vmem:[#allocation7 + $0x7a8] sm:$0xff]  ;;  %v579_v34 = vld [vmem:[#allocation7 + $0x780] sm:$0xff]  ;;  %v585_v27 = vld [vmem:[#allocation7 + $0x7b0] sm:$0xff] }
 0x17e   :  { %v9105_v16 = vpack.c.bf16 %v584_v44, %v580_v0  ;;  %v583_v38 = vld [vmem:[#allocation7 + $0x7a0] sm:$0xff]  ;;  %v588_v54 = vld [vmem:[#allocation7 + $0x7c8] sm:$0xff]  ;;  %v9115_v44 = vpack.c.bf16 %v585_v27, %v581_v55  ;;  %v594_v0 = vld [vmem:[#allocation7 + $0x7f8] sm:$0xff] }
 0x17f   :  { %11075 = vst [vmem:[#allocation152_spill] sm:$0xff] %v9095_v36  ;;  %11076 = vst [vmem:[#allocation153_spill] sm:$0xff] %v9097_v60  ;;  %v9111_v13 = vpack.c.bf16 %v583_v38, %v579_v34  ;;  %v593_v34 = vld [vmem:[#allocation7 + $0x7f0] sm:$0xff] }
 0x180   :  { %5617 = vmatpush1.bf16.msra.mxu0 %v9088_v12  ;;  %5681 = vmatpush1.bf16.msra.mxu1 %v9090_v63  ;;  %11078 = vst [vmem:[#allocation155_spill] sm:$0xff] %v9102_v35  ;;  %v582_v12 = vld [vmem:[#allocation7 + $0x798] sm:$0xff]  ;;  %11079 = vst [vmem:[#allocation156_spill] sm:$0xff] %v9105_v16  ;;  %v5194_v38 = vld [vmem:[%s10619_s5 + $0x4] sm:$0x3] }
 0x181   :  { %5619 = vmatprep.subr.bf16.mxu0 %v9095_v36  ;;  %5683 = vmatprep.subr.bf16.mxu1 %v9097_v60  ;;  %v9107_v39 = vpack.c.bf16 %v586_v59, %v582_v12  ;;  %11081 = vst [vmem:[#allocation158_spill] sm:$0xff] %v9111_v13  ;;  %v592_v36 = vld [vmem:[#allocation7 + $0x7e8] sm:$0xff]  ;;  %11082 = vst [vmem:[#allocation159_spill] sm:$0xff] %v9115_v44  ;;  %v590_v12 = vld [vmem:[#allocation7 + $0x7d8] sm:$0xff] }
 0x182   :  { %v9117_v59 = vpack.c.bf16 %v592_v36, %v588_v54  ;;  %v587_v60 = vld [vmem:[#allocation7 + $0x7c0] sm:$0xff]  ;;  %v9119_v63 = vpack.c.bf16 %v594_v0, %v590_v12  ;;  %1055 = vmatprep.mubr.f32.mxu0 %v5194_v38  ;;  %1126 = vmatprep.mubr.f32.mxu1 %v5194_v38 }
 0x183   :  { %11080 = vst [vmem:[#allocation157_spill] sm:$0xff] %v9107_v39 }
 0x184   :  { %5621 = vmatpush1.bf16.msra.mxu0 %v9099_v1  ;;  %5685 = vmatpush1.bf16.msra.mxu1 %v9102_v35  ;;  %11083 = vst [vmem:[#allocation160_spill] sm:$0xff] %v9117_v59  ;;  %11084 = vst [vmem:[#allocation161_spill] sm:$0xff] %v9119_v63  ;;  %v591_v1 = vld [vmem:[#allocation7 + $0x7e0] sm:$0xff]  ;;  %v589_v35 = vld [vmem:[#allocation7 + $0x7d0] sm:$0xff] }
 0x185   :  { %5623 = vmatprep.subr.bf16.mxu0 %v9105_v16  ;;  %5687 = vmatprep.subr.bf16.mxu1 %v9107_v39  ;;  %v9126_v55 = vpack.c.bf16 %v591_v1, %v587_v60  ;;  %v9128_v36 = vpack.c.bf16 %v593_v34, %v589_v35  ;;  %v5190_v60 = vld [vmem:[%s10618_s4 + $0x1] ss:$4 sm:$0xf] }
 0x186   :  { %v9140_v35 = vrot.slane %v5190_v60, %v8920_v6  ;;  %v9143_v1 = vrot.slane %v5190_v60, %v8927_v47 }
 0x187   :  { %11085 = vst [vmem:[#allocation162_spill] sm:$0xff] %v9126_v55  ;;  %11086 = vst [vmem:[#allocation163_spill] sm:$0xff] %v9128_v36 }
 0x188   :  { %5625 = vmatpush1.bf16.msra.mxu0 %v9111_v13  ;;  %5689 = vmatpush1.bf16.msra.mxu1 %v9115_v44  ;;  %11087 = vst [vmem:[#allocation164_spill] sm:$0xff] %v9140_v35 }
 0x189   :  { %5627 = vmatprep.subr.bf16.mxu0 %v9117_v59  ;;  %5691 = vmatprep.subr.bf16.mxu1 %v9119_v63  ;;  %v9152_v63 = vrot.slane %v5190_v60, %v8922_v17 }
 0x18c   :  { %5629 = vmatpush1.bf16.msra.mxu0 %v9126_v55  ;;  %5693 = vmatpush1.bf16.msra.mxu1 %v9128_v36 }
 0x18d   :  { %5695 = vmatprep.subr.bf16.mxu0 %v8610_v10  ;;  %5727 = vmatprep.subr.bf16.mxu1 %v8612_v11  ;;  %v9148_v11 = vrot.slane %v5190_v60, %v8929_v22 }
 0x18f   :  { %11088 = vst [vmem:[#allocation165_spill] sm:$0xff] %v9148_v11 }
 0x222   :  { %v891_v27 = vpop.f32.mrb[6].mxu0  ;;  %v962_v54 = vpop.f32.mrb[6].mxu1 }
 0x223   :  { %v892_v12 = vadd.f32 %v891_v27, %v9140_v35  ;;  %v893_v0 = vpop.f32.mrb[7].mxu0  ;;  %v964_v34 = vpop.f32.mrb[7].mxu1  ;;  %v963_v44 = vadd.f32 %v962_v54, %v9152_v63 }
 0x224   :  { %v894_v38 = vadd.f32 %v893_v0, %v9143_v1  ;;  %v965_v55 = vadd.f32 %v964_v34, %v9148_v11 }
 0x225   :  { %v5199_v10 = vmul.f32 -1.442695, %v892_v12 }
 0x226   :  { %v5200_v36 = vmul.f32 -1.442695, %v894_v38  ;;  %v5201_v59 = vmul.f32 -1.442695, %v965_v55 }
 0x227   :  { %8014 = vpow2.f32 %v5199_v10  ;;  %v5193_v10 = vld [vmem:[%s10620_s6 + $0x2] sm:$0x3] }
 0x228   :  { %8016 = vpow2.f32 %v5200_v36 }
 0x229   :  { %8018 = vpow2.f32 %v5201_v59 }
 0x22a   :  { %8020 = vtanh.f32 %v963_v44 }
 0x231   :  { %v8015_v27 = vpop.eup %8014 }
 0x232   :  { %v8017_v35 = vpop.eup %8016  ;;  %v970_v13 = vadd.f32 1.0, %v8015_v27 }
 0x233   :  { %v976_v12 = vadd.f32 1.0, %v8017_v35  ;;  %v8019_v0 = vpop.eup %8018  ;;  %v11089_v35 = vmov 0.0  }
 0x234   :  { %8022 = vrcp.f32 %v970_v13  ;;  %v8021_v38 = vpop.eup %8020  ;;  %v983_v55 = vadd.f32 1.0, %v8019_v0  ;;  %v11091_v0 = vld [vmem:[#allocation45_spill] sm:$0xff] }
 0x235   :  { %8024 = vrcp.f32 %v976_v12  ;;  %v11090_v12 = vld [vmem:[#allocation44_spill] sm:$0xff] }
 0x236   :  { %8026 = vrcp.f32 %v983_v55  ;;  %v11098_v55 = vld [vmem:[#allocation52_spill] sm:$0xff] }
 0x23e   :  { %v8023_v36 = vpop.eup %8022 }
 0x23f   :  { %v8025_v60 = vpop.eup %8024  ;;  %v987_v34 = vmul.f32 %v8023_v36, %v8021_v38  ;;  %v11092_v38 = vld [vmem:[#allocation46_spill] sm:$0xff]  ;;  %v11094_v36 = vld [vmem:[#allocation48_spill] sm:$0xff] }
 0x240   :  { %v986_v11 = vmul.f32 %v8025_v60, %v5193_v10  ;;  %v8027_v44 = vpop.eup %8026  ;;  %v11093_v10 = vld [vmem:[#allocation47_spill] sm:$0xff]  ;;  %v11095_v60 = vld [vmem:[#allocation49_spill] sm:$0xff] }
 0x242   :  { %v9158_v54 = vadd.f32 %v987_v34, %v986_v11  ;;  %v11097_v34 = vld [vmem:[#allocation51_spill] sm:$0xff] }
 0x244   :  { %8028 = vtanh.f32 %v9158_v54 }
 0x24e   :  { %v8029_v59 = vpop.eup %8028 }
 0x24f   :  { %v990_v13 = vmul.f32 %v8029_v59, %v8027_v44  ;;  %v11099_v44 = vld [vmem:[#allocation53_spill] sm:$0xff]  ;;  %v11100_v59 = vld [vmem:[#allocation54_spill] sm:$0xff] }
 0x251   :  { %1056 = vmatmul.mubr.f32.vlgmr.msra.gmra.mrb[8].mxu0 %v990_v13  ;;  %1127 = vmatmul.mubr.f32.vlgmr.msra.gmra.mrb[8].mxu1 %v990_v13  ;;  %v1348_v11 = vrot.slane %v990_v13, 6  ;;  %v11101_v13 = vld [vmem:[#allocation55_spill] sm:$0xff] }
 0x252   :  { %5697 = vmatpush1.bf16.msra.mxu0 %v8615_v15  ;;  %5729 = vmatpush1.bf16.msra.mxu1 %v8621_v19 }
 0x253   :  { %5699 = vmatprep.subr.bf16.mxu0 %v8623_v20  ;;  %5731 = vmatprep.subr.bf16.mxu1 %v8626_v24  ;;  %v1351_v27 = vrot.slane %v1348_v11, 2  ;;  %v11102_v11 = vld [vmem:[#allocation56_spill] sm:$0xff] }
 0x254   :  { %1226 = vmatprep.mubr.f32.mxu0 %v11089_v35  ;;  %1297 = vmatprep.mubr.f32.mxu1 %v11089_v35 }
 0x256   :  { %5701 = vmatpush1.bf16.msra.mxu0 %v8630_v28  ;;  %5733 = vmatpush1.bf16.msra.mxu1 %v8632_v29 }
 0x257   :  { %5703 = vmatprep.subr.bf16.mxu0 %v8635_v33  ;;  %5735 = vmatprep.subr.bf16.mxu1 %v8637_v37 }
 0x25a   :  { %5705 = vmatpush1.bf16.msra.mxu0 %v8640_v41  ;;  %5737 = vmatpush1.bf16.msra.mxu1 %v8644_v45 }
 0x25b   :  { %5707 = vmatprep.subr.bf16.mxu0 %v8646_v46  ;;  %5739 = vmatprep.subr.bf16.mxu1 %v8649_v50 }
 0x25e   :  { %5709 = vmatpush1.bf16.msra.mxu0 %v8652_v56  ;;  %5741 = vmatpush1.bf16.msra.mxu1 %v8656_v57 }
 0x25f   :  { %5711 = vmatprep.subr.bf16.mxu0 %v8658_v58  ;;  %5743 = vmatprep.subr.bf16.mxu1 %v8661_v62 }
 0x262   :  { %5713 = vmatpush1.bf16.msra.mxu0 %v8664_v5  ;;  %5745 = vmatpush1.bf16.msra.mxu1 %v8668_v7 }
 0x263   :  { %5715 = vmatprep.subr.bf16.mxu0 %v8670_v8  ;;  %5747 = vmatprep.subr.bf16.mxu1 %v8673_v14 }
 0x266   :  { %5717 = vmatpush1.bf16.msra.mxu0 %v8681_v23  ;;  %5749 = vmatpush1.bf16.msra.mxu1 %v8686_v25 }
 0x267   :  { %5719 = vmatprep.subr.bf16.mxu0 %v8688_v26  ;;  %5751 = vmatprep.subr.bf16.mxu1 %v8691_v32 }
 0x26a   :  { %5721 = vmatpush1.bf16.msra.mxu0 %v8695_v40  ;;  %5753 = vmatpush1.bf16.msra.mxu1 %v8699_v42 }
 0x26b   :  { %5723 = vmatprep.subr.bf16.mxu0 %v8701_v43  ;;  %5755 = vmatprep.subr.bf16.mxu1 %v8704_v48 }
 0x26e   :  { %5725 = vmatpush1.bf16.msra.mxu0 %v8707_v52  ;;  %5757 = vmatpush1.bf16.msra.mxu1 %v8711_v53 }
 0x26f   :  { %5759 = vmatprep.subr.bf16.mxu0 %v8719_v61  ;;  %5823 = vmatprep.subr.bf16.mxu1 %v8721_v3 }
 0x271   :  { %1227 = vmatmul.mubr.f32.vlgmr.msra.gmra.mrb[10].mxu0 %v8945_v9  ;;  %1298 = vmatmul.mubr.f32.vlgmr.msra.gmra.mrb[10].mxu1 %v8945_v9  ;;  %v11096_v9 = vld [vmem:[#allocation50_spill] sm:$0xff] }
 0x272   :  { %1418 = vmatprep.mubr.f32.mxu0 %v1351_v27  ;;  %1489 = vmatprep.mubr.f32.mxu1 %v1351_v27  ;;  %v11103_v27 = vld [vmem:[#allocation57_spill] sm:$0xff] }
 0x273   :  { %5761 = vmatpush1.bf16.msra.mxu0 %v8723_v4  ;;  %5825 = vmatpush1.bf16.msra.mxu1 %v8728_v18 }
 0x274   :  { %5763 = vmatprep.subr.bf16.mxu0 %v8730_v30  ;;  %5827 = vmatprep.subr.bf16.mxu1 %v11090_v12 }
 0x277   :  { %5765 = vmatpush1.bf16.msra.mxu0 %v11091_v0  ;;  %5829 = vmatpush1.bf16.msra.mxu1 %v11092_v38 }
 0x278   :  { %5767 = vmatprep.subr.bf16.mxu0 %v11093_v10  ;;  %5831 = vmatprep.subr.bf16.mxu1 %v11094_v36  ;;  %v11104_v10 = vld [vmem:[#allocation58_spill] sm:$0xff]  ;;  %v11105_v36 = vld [vmem:[#allocation59_spill] sm:$0xff] }
 0x27b   :  { %5769 = vmatpush1.bf16.msra.mxu0 %v11095_v60  ;;  %5833 = vmatpush1.bf16.msra.mxu1 %v11096_v9  ;;  %v11106_v60 = vld [vmem:[#allocation60_spill] sm:$0xff]  ;;  %v11107_v9 = vld [vmem:[#allocation61_spill] sm:$0xff] }
 0x27c   :  { %5771 = vmatprep.subr.bf16.mxu0 %v11097_v34  ;;  %5835 = vmatprep.subr.bf16.mxu1 %v11098_v55  ;;  %v11108_v34 = vld [vmem:[#allocation62_spill] sm:$0xff]  ;;  %v11109_v55 = vld [vmem:[#allocation63_spill] sm:$0xff] }
 0x27f   :  { %5773 = vmatpush1.bf16.msra.mxu0 %v11099_v44  ;;  %5837 = vmatpush1.bf16.msra.mxu1 %v11100_v59  ;;  %v11110_v44 = vld [vmem:[#allocation64_spill] sm:$0xff]  ;;  %v11111_v59 = vld [vmem:[#allocation65_spill] sm:$0xff] }
 0x280   :  { %5775 = vmatprep.subr.bf16.mxu0 %v11101_v13  ;;  %5839 = vmatprep.subr.bf16.mxu1 %v11102_v11  ;;  %v11112_v13 = vld [vmem:[#allocation66_spill] sm:$0xff]  ;;  %v11113_v11 = vld [vmem:[#allocation67_spill] sm:$0xff] }
 0x283   :  { %5777 = vmatpush1.bf16.msra.mxu0 %v11103_v27  ;;  %5841 = vmatpush1.bf16.msra.mxu1 %v11104_v10  ;;  %v11114_v27 = vld [vmem:[#allocation68_spill] sm:$0xff]  ;;  %v11115_v10 = vld [vmem:[#allocation69_spill] sm:$0xff] }
 0x284   :  { %5779 = vmatprep.subr.bf16.mxu0 %v11105_v36  ;;  %5843 = vmatprep.subr.bf16.mxu1 %v11106_v60  ;;  %v11116_v36 = vld [vmem:[#allocation70_spill] sm:$0xff]  ;;  %v11117_v60 = vld [vmem:[#allocation71_spill] sm:$0xff] }
 0x287   :  { %5781 = vmatpush1.bf16.msra.mxu0 %v11107_v9  ;;  %5845 = vmatpush1.bf16.msra.mxu1 %v11108_v34  ;;  %v11118_v9 = vld [vmem:[#allocation72_spill] sm:$0xff]  ;;  %v11119_v34 = vld [vmem:[#allocation73_spill] sm:$0xff] }
 0x288   :  { %5783 = vmatprep.subr.bf16.mxu0 %v11109_v55  ;;  %5847 = vmatprep.subr.bf16.mxu1 %v11110_v44  ;;  %v11120_v55 = vld [vmem:[#allocation74_spill] sm:$0xff]  ;;  %v11121_v44 = vld [vmem:[#allocation75_spill] sm:$0xff] }
 0x28b   :  { %5785 = vmatpush1.bf16.msra.mxu0 %v11111_v59  ;;  %5849 = vmatpush1.bf16.msra.mxu1 %v11112_v13  ;;  %v11122_v59 = vld [vmem:[#allocation76_spill] sm:$0xff]  ;;  %v11123_v13 = vld [vmem:[#allocation77_spill] sm:$0xff] }
 0x28c   :  { %5787 = vmatprep.subr.bf16.mxu0 %v11113_v11  ;;  %5851 = vmatprep.subr.bf16.mxu1 %v11114_v27  ;;  %v11124_v11 = vld [vmem:[#allocation78_spill] sm:$0xff]  ;;  %v11125_v27 = vld [vmem:[#allocation79_spill] sm:$0xff] }
 0x28f   :  { %5789 = vmatpush1.bf16.msra.mxu0 %v11115_v10  ;;  %5853 = vmatpush1.bf16.msra.mxu1 %v11116_v36  ;;  %v11126_v10 = vld [vmem:[#allocation80_spill] sm:$0xff]  ;;  %v11127_v36 = vld [vmem:[#allocation81_spill] sm:$0xff] }
 0x290   :  { %5791 = vmatprep.subr.bf16.mxu0 %v11117_v60  ;;  %5855 = vmatprep.subr.bf16.mxu1 %v11118_v9  ;;  %v11128_v60 = vld [vmem:[#allocation82_spill] sm:$0xff]  ;;  %v11129_v9 = vld [vmem:[#allocation83_spill] sm:$0xff] }
 0x293   :  { %5793 = vmatpush1.bf16.msra.mxu0 %v11119_v34  ;;  %5857 = vmatpush1.bf16.msra.mxu1 %v11120_v55  ;;  %v11130_v34 = vld [vmem:[#allocation84_spill] sm:$0xff]  ;;  %v11131_v55 = vld [vmem:[#allocation85_spill] sm:$0xff] }
 0x294   :  { %5795 = vmatprep.subr.bf16.mxu0 %v11121_v44  ;;  %5859 = vmatprep.subr.bf16.mxu1 %v11122_v59  ;;  %v11132_v44 = vld [vmem:[#allocation86_spill] sm:$0xff]  ;;  %v11133_v59 = vld [vmem:[#allocation87_spill] sm:$0xff] }
 0x297   :  { %5797 = vmatpush1.bf16.msra.mxu0 %v11123_v13  ;;  %5861 = vmatpush1.bf16.msra.mxu1 %v11124_v11  ;;  %v11134_v13 = vld [vmem:[#allocation88_spill] sm:$0xff]  ;;  %v11135_v11 = vld [vmem:[#allocation89_spill] sm:$0xff] }
 0x298   :  { %5799 = vmatprep.subr.bf16.mxu0 %v11125_v27  ;;  %5863 = vmatprep.subr.bf16.mxu1 %v11126_v10  ;;  %v11136_v27 = vld [vmem:[#allocation90_spill] sm:$0xff]  ;;  %v11137_v10 = vld [vmem:[#allocation91_spill] sm:$0xff] }
 0x29b   :  { %5801 = vmatpush1.bf16.msra.mxu0 %v11127_v36  ;;  %5865 = vmatpush1.bf16.msra.mxu1 %v11128_v60  ;;  %v11138_v36 = vld [vmem:[#allocation92_spill] sm:$0xff]  ;;  %v11139_v60 = vld [vmem:[#allocation93_spill] sm:$0xff] }
 0x29c   :  { %5803 = vmatprep.subr.bf16.mxu0 %v11129_v9  ;;  %5867 = vmatprep.subr.bf16.mxu1 %v11130_v34  ;;  %v11140_v9 = vld [vmem:[#allocation94_spill] sm:$0xff]  ;;  %v11141_v34 = vld [vmem:[#allocation95_spill] sm:$0xff] }
 0x29f   :  { %5805 = vmatpush1.bf16.msra.mxu0 %v11131_v55  ;;  %5869 = vmatpush1.bf16.msra.mxu1 %v11132_v44  ;;  %v11142_v55 = vld [vmem:[#allocation96_spill] sm:$0xff]  ;;  %v11143_v44 = vld [vmem:[#allocation97_spill] sm:$0xff] }
 0x2a0   :  { %5807 = vmatprep.subr.bf16.mxu0 %v11133_v59  ;;  %5871 = vmatprep.subr.bf16.mxu1 %v11134_v13  ;;  %v11144_v59 = vld [vmem:[#allocation98_spill] sm:$0xff]  ;;  %v11145_v13 = vld [vmem:[#allocation99_spill] sm:$0xff] }
 0x2a3   :  { %5809 = vmatpush1.bf16.msra.mxu0 %v11135_v11  ;;  %5873 = vmatpush1.bf16.msra.mxu1 %v11136_v27  ;;  %v11146_v11 = vld [vmem:[#allocation100_spill] sm:$0xff]  ;;  %v11147_v27 = vld [vmem:[#allocation101_spill] sm:$0xff] }
 0x2a4   :  { %5811 = vmatprep.subr.bf16.mxu0 %v11137_v10  ;;  %5875 = vmatprep.subr.bf16.mxu1 %v11138_v36  ;;  %v11148_v10 = vld [vmem:[#allocation102_spill] sm:$0xff]  ;;  %v11149_v36 = vld [vmem:[#allocation103_spill] sm:$0xff] }
 0x2a7   :  { %5813 = vmatpush1.bf16.msra.mxu0 %v11139_v60  ;;  %5877 = vmatpush1.bf16.msra.mxu1 %v11140_v9  ;;  %v11150_v60 = vld [vmem:[#allocation104_spill] sm:$0xff] }
 0x2a8   :  { %5815 = vmatprep.subr.bf16.mxu0 %v11141_v34  ;;  %5879 = vmatprep.subr.bf16.mxu1 %v11142_v55  ;;  %v5191_v55 = vld [vmem:[%s10618_s4 + $0x2] ss:$4 sm:$0xf] }
 0x2ab   :  { %5817 = vmatpush1.bf16.msra.mxu0 %v11143_v44  ;;  %5881 = vmatpush1.bf16.msra.mxu1 %v11144_v59  ;;  %v9265_v44 = vrot.slane %v5191_v55, %v8920_v6  ;;  %v9268_v59 = vrot.slane %v5191_v55, %v8927_v47  ;;  %v9277_v47 = vrot.slane %v5191_v55, %v8922_v17 }
 0x2ac   :  { %5819 = vmatprep.subr.bf16.mxu0 %v11145_v13  ;;  %5883 = vmatprep.subr.bf16.mxu1 %v11146_v11 }
 0x2ad   :  { %11151 = vst [vmem:[#allocation166_spill] sm:$0xff] %v9265_v44  ;;  %11152 = vst [vmem:[#allocation167_spill] sm:$0xff] %v9268_v59 }
 0x2ae   :  { %11154 = vst [vmem:[#allocation169_spill] sm:$0xff] %v9277_v47 }
 0x2af   :  { %5821 = vmatpush1.bf16.msra.mxu0 %v11147_v27  ;;  %5885 = vmatpush1.bf16.msra.mxu1 %v11148_v10 }
 0x2b0   :  { %5887 = vmatprep.subr.bf16.mxu0 %v11149_v36  ;;  %5951 = vmatprep.subr.bf16.mxu1 %v11150_v60  ;;  %v9273_v60 = vrot.slane %v5191_v55, %v8929_v22 }
 0x2b2   :  { %11153 = vst [vmem:[#allocation168_spill] sm:$0xff] %v9273_v60 }
 0x324   :  { %v1057_v13 = vpop.f32.mrb[8].mxu0  ;;  %v1128_v11 = vpop.f32.mrb[8].mxu1 }
 0x325   :  { %v1058_v27 = vadd.f32 %v1057_v13, %v9265_v44  ;;  %v1059_v34 = vpop.f32.mrb[9].mxu0  ;;  %v1130_v10 = vpop.f32.mrb[9].mxu1  ;;  %v1129_v12 = vadd.f32 %v1128_v11, %v9277_v47 }
 0x326   :  { %v1060_v36 = vadd.f32 %v1059_v34, %v9268_v59  ;;  %v1131_v6 = vadd.f32 %v1130_v10, %v9273_v60  ;;  %v1159_v60 = vld [vmem:[#allocation2 + $0x8] sm:$0xc] }
 0x327   :  { %v5202_v9 = vmul.f32 -1.442695, %v1058_v27 }
 0x328   :  { %v5203_v38 = vmul.f32 -1.442695, %v1060_v36  ;;  %v5204_v0 = vmul.f32 -1.442695, %v1131_v6 }
 0x329   :  { %8030 = vpow2.f32 %v5202_v9 }
 0x32a   :  { %8032 = vpow2.f32 %v5203_v38  ;;  %v5195_v38 = vld [vmem:[%s10620_s6 + $0x4] sm:$0x3] }
 0x32b   :  { %8034 = vpow2.f32 %v5204_v0 }
 0x32c   :  { %8036 = vtanh.f32 %v1129_v12 }
 0x333   :  { %v8031_v13 = vpop.eup %8030 }
 0x334   :  { %v8033_v44 = vpop.eup %8032  ;;  %v1136_v30 = vadd.f32 1.0, %v8031_v13 }
 0x335   :  { %v1142_v34 = vadd.f32 1.0, %v8033_v44  ;;  %v8035_v22 = vpop.eup %8034  ;;  %v1158_v44 = vld [vmem:[#allocation2] sm:$0xc] }
 0x336   :  { %8038 = vrcp.f32 %v1136_v30  ;;  %v8037_v36 = vpop.eup %8036  ;;  %v1149_v55 = vadd.f32 1.0, %v8035_v22  ;;  %v1161_v22 = vld [vmem:[#allocation2 + $0x18] sm:$0xc] }
 0x337   :  { %8040 = vrcp.f32 %v1142_v34 }
 0x338   :  { %8042 = vrcp.f32 %v1149_v55 }
 0x340   :  { %v8039_v10 = vpop.eup %8038 }
 0x341   :  { %v8041_v17 = vpop.eup %8040  ;;  %v1153_v9 = vmul.f32 %v8039_v10, %v8037_v36 }
 0x342   :  { %v1152_v27 = vmul.f32 %v8041_v17, %v5195_v38  ;;  %v8043_v10 = vpop.eup %8042 }
 0x344   :  { %v1228_v11 = vpop.f32.mrb[10].mxu0  ;;  %v1299_v6 = vpop.f32.mrb[10].mxu1  ;;  %v9283_v47 = vadd.f32 %v1153_v9, %v1152_v27  ;;  %v1160_v27 = vld [vmem:[#allocation2 + $0x10] sm:$0xc] }
 0x345   :  { %v1308_v12 = vrot.slane %v1228_v11, 6  ;;  %v1230_v0 = vpop.f32.mrb[11].mxu0  ;;  %v1301_v30 = vpop.f32.mrb[11].mxu1  ;;  %v1310_v17 = vrot.slane %v1299_v6, 6 }
 0x346   :  { %11155 = vst [vmem:[#allocation170_spill] sm:$0xff] %v9283_v47  ;;  %v1309_v13 = vrot.slane %v1230_v0, 6  ;;  %8044 = vtanh.f32 %v9283_v47  ;;  %v1311_v36 = vrot.slane %v1301_v30, 6  ;;  %v11156_v30 = vld [vmem:[#allocation105_spill] sm:$0xff] }
 0x347   :  { %v1316_v34 = vadd.f32 %v1308_v12, %v1158_v44  ;;  %v1318_v3 = vadd.f32 %v1310_v17, %v1160_v27  ;;  %v1340_v44 = vrot.slane %v11156_v30, 6  ;;  %v11157_v17 = vld [vmem:[#allocation106_spill] sm:$0xff]  ;;  %v11159_v27 = vld [vmem:[#allocation108_spill] sm:$0xff] }
 0x348   :  { %v1317_v59 = vadd.f32 %v1309_v13, %v1159_v60  ;;  %v1319_v38 = vadd.f32 %v1311_v36, %v1161_v22  ;;  %v11168_v30 = vld [vmem:[#allocation118_spill] sm:$0xff] }
 0x349   :  { %v5205_v18 = vmul.f32 -1.442695, %v1316_v34 }
 0x34a   :  { %v5206_v4 = vmul.f32 -1.442695, %v1317_v59  ;;  %v5207_v11 = vmul.f32 -1.442695, %v1319_v38 }
 0x34b   :  { %8046 = vpow2.f32 %v5205_v18 }
 0x34c   :  { %8048 = vpow2.f32 %v5206_v4 }
 0x34d   :  { %8050 = vpow2.f32 %v5207_v11  ;;  %v11160_v11 = vld [vmem:[#allocation109_spill] sm:$0xff] }
 0x34e   :  { %8052 = vtanh.f32 %v1318_v3 }
 0x350   :  { %v8045_v9 = vpop.eup %8044 }
 0x351   :  { %v1156_v55 = vmul.f32 %v8045_v9, %v8043_v10  ;;  %v11158_v9 = vld [vmem:[#allocation107_spill] sm:$0xff] }
 0x353   :  { %1157 = vst [vmem:[#allocation3] sm:$0x3] %v1156_v55 }
 0x355   :  { %v8047_v0 = vpop.eup %8046 }
 0x356   :  { %v8049_v47 = vpop.eup %8048  ;;  %v1323_v12 = vadd.f32 1.0, %v8047_v0  ;;  %v11161_v0 = vld [vmem:[#allocation110_spill] sm:$0xff] }
 0x357   :  { %v1329_v60 = vadd.f32 1.0, %v8049_v47  ;;  %v8051_v18 = vpop.eup %8050 }
 0x358   :  { %8054 = vrcp.f32 %v1323_v12  ;;  %v8053_v4 = vpop.eup %8052  ;;  %v1336_v34 = vadd.f32 1.0, %v8051_v18  ;;  %v11162_v12 = vld [vmem:[#allocation111_spill] sm:$0xff] }
 0x359   :  { %8056 = vrcp.f32 %v1329_v60  ;;  %v11164_v60 = vld [vmem:[#allocation114_spill] sm:$0xff]  ;;  %v11165_v18 = vld [vmem:[#allocation115_spill] sm:$0xff] }
 0x35a   :  { %8058 = vrcp.f32 %v1336_v34  ;;  %v11172_v34 = vld [vmem:[#allocation122_spill] sm:$0xff] }
 0x362   :  { %v8055_v59 = vpop.eup %8054 }
 0x363   :  { %v8057_v6 = vpop.eup %8056  ;;  %v1343_v13 = vmul.f32 %v8055_v59, %v8053_v4  ;;  %v11166_v4 = vld [vmem:[#allocation116_spill] sm:$0xff]  ;;  %v11167_v59 = vld [vmem:[#allocation117_spill] sm:$0xff] }
 0x364   :  { %v1342_v36 = vmul.f32 %v8057_v6, %v1340_v44  ;;  %v8059_v38 = vpop.eup %8058  ;;  %v11169_v44 = vld [vmem:[#allocation119_spill] sm:$0xff]  ;;  %v11170_v6 = vld [vmem:[#allocation120_spill] sm:$0xff] }
 0x366   :  { %v9287_v22 = vadd.f32 %v1343_v13, %v1342_v36  ;;  %v11171_v13 = vld [vmem:[#allocation121_spill] sm:$0xff]  ;;  %v11173_v36 = vld [vmem:[#allocation123_spill] sm:$0xff] }
 0x368   :  { %8060 = vtanh.f32 %v9287_v22 }
 0x372   :  { %v8061_v10 = vpop.eup %8060 }
 0x373   :  { %v1346_v3 = vmul.f32 %v8061_v10, %v8059_v38  ;;  %v11174_v38 = vld [vmem:[#allocation124_spill] sm:$0xff]  ;;  %v11175_v10 = vld [vmem:[#allocation125_spill] sm:$0xff] }
 0x375   :  { %v9290_v47 = vrot.slane %v1346_v3, 2  ;;  %v11176_v3 = vld [vmem:[#allocation126_spill] sm:$0xff] }
 0x377   :  { %1419 = vmatmul.mubr.f32.vlgmr.msra.gmra.mrb[12].mxu0 %v9290_v47  ;;  %1490 = vmatmul.mubr.f32.vlgmr.msra.gmra.mrb[12].mxu1 %v9290_v47 }
 0x378   :  { %1584 = vmatprep.mubr.f32.mxu0 %v1156_v55  ;;  %1655 = vmatprep.mubr.f32.mxu1 %v1156_v55  ;;  %v11163_v55 = vld [vmem:[#allocation113_spill] sm:$0xff] }
 0x379   :  { %5889 = vmatpush1.bf16.msra.mxu0 %v11157_v17  ;;  %5953 = vmatpush1.bf16.msra.mxu1 %v11158_v9 }
 0x37a   :  { %5891 = vmatprep.subr.bf16.mxu0 %v11159_v27  ;;  %5955 = vmatprep.subr.bf16.mxu1 %v11160_v11 }
 0x37d   :  { %5893 = vmatpush1.bf16.msra.mxu0 %v11161_v0  ;;  %5957 = vmatpush1.bf16.msra.mxu1 %v11162_v12 }
 0x37e   :  { %5895 = vmatprep.subr.bf16.mxu0 %v8961_v49  ;;  %5959 = vmatprep.subr.bf16.mxu1 %v8963_v2 }
 0x381   :  { %5897 = vmatpush1.bf16.msra.mxu0 %v8967_v51  ;;  %5961 = vmatpush1.bf16.msra.mxu1 %v8969_v21 }
 0x382   :  { %5899 = vmatprep.subr.bf16.mxu0 %v8973_v31  ;;  %5963 = vmatprep.subr.bf16.mxu1 %v11163_v55 }
 0x385   :  { %5901 = vmatpush1.bf16.msra.mxu0 %v11164_v60  ;;  %5965 = vmatpush1.bf16.msra.mxu1 %v11165_v18 }
 0x386   :  { %5903 = vmatprep.subr.bf16.mxu0 %v11166_v4  ;;  %5967 = vmatprep.subr.bf16.mxu1 %v11167_v59  ;;  %v11177_v4 = vld [vmem:[#allocation127_spill] sm:$0xff]  ;;  %v11178_v59 = vld [vmem:[#allocation128_spill] sm:$0xff] }
 0x389   :  { %5905 = vmatpush1.bf16.msra.mxu0 %v11168_v30  ;;  %5969 = vmatpush1.bf16.msra.mxu1 %v11169_v44  ;;  %v11179_v30 = vld [vmem:[#allocation129_spill] sm:$0xff]  ;;  %v11180_v44 = vld [vmem:[#allocation130_spill] sm:$0xff] }
 0x38a   :  { %5907 = vmatprep.subr.bf16.mxu0 %v11170_v6  ;;  %5971 = vmatprep.subr.bf16.mxu1 %v11171_v13  ;;  %v11181_v6 = vld [vmem:[#allocation131_spill] sm:$0xff]  ;;  %v11182_v13 = vld [vmem:[#allocation132_spill] sm:$0xff] }
 0x38d   :  { %5909 = vmatpush1.bf16.msra.mxu0 %v11172_v34  ;;  %5973 = vmatpush1.bf16.msra.mxu1 %v11173_v36  ;;  %v11183_v34 = vld [vmem:[#allocation133_spill] sm:$0xff]  ;;  %v11184_v36 = vld [vmem:[#allocation134_spill] sm:$0xff] }
 0x38e   :  { %5911 = vmatprep.subr.bf16.mxu0 %v11174_v38  ;;  %5975 = vmatprep.subr.bf16.mxu1 %v11175_v10  ;;  %v11185_v38 = vld [vmem:[#allocation135_spill] sm:$0xff]  ;;  %v11186_v10 = vld [vmem:[#allocation136_spill] sm:$0xff] }
 0x391   :  { %5913 = vmatpush1.bf16.msra.mxu0 %v11176_v3  ;;  %5977 = vmatpush1.bf16.msra.mxu1 %v11177_v4  ;;  %v11187_v3 = vld [vmem:[#allocation137_spill] sm:$0xff]  ;;  %v11188_v4 = vld [vmem:[#allocation138_spill] sm:$0xff] }
 0x392   :  { %5915 = vmatprep.subr.bf16.mxu0 %v11178_v59  ;;  %5979 = vmatprep.subr.bf16.mxu1 %v11179_v30  ;;  %v11189_v59 = vld [vmem:[#allocation139_spill] sm:$0xff]  ;;  %v11190_v30 = vld [vmem:[#allocation140_spill] sm:$0xff] }
 0x395   :  { %5917 = vmatpush1.bf16.msra.mxu0 %v11180_v44  ;;  %5981 = vmatpush1.bf16.msra.mxu1 %v11181_v6  ;;  %v11191_v44 = vld [vmem:[#allocation141_spill] sm:$0xff]  ;;  %v11192_v6 = vld [vmem:[#allocation142_spill] sm:$0xff] }
 0x396   :  { %5919 = vmatprep.subr.bf16.mxu0 %v11182_v13  ;;  %5983 = vmatprep.subr.bf16.mxu1 %v11183_v34  ;;  %v11193_v13 = vld [vmem:[#allocation143_spill] sm:$0xff]  ;;  %v11194_v34 = vld [vmem:[#allocation144_spill] sm:$0xff] }
 0x399   :  { %5921 = vmatpush1.bf16.msra.mxu0 %v11184_v36  ;;  %5985 = vmatpush1.bf16.msra.mxu1 %v11185_v38  ;;  %v11195_v36 = vld [vmem:[#allocation145_spill] sm:$0xff]  ;;  %v11196_v38 = vld [vmem:[#allocation146_spill] sm:$0xff] }
 0x39a   :  { %5923 = vmatprep.subr.bf16.mxu0 %v11186_v10  ;;  %5987 = vmatprep.subr.bf16.mxu1 %v11187_v3  ;;  %v11197_v10 = vld [vmem:[#allocation147_spill] sm:$0xff]  ;;  %v11198_v3 = vld [vmem:[#allocation148_spill] sm:$0xff] }
 0x39d   :  { %5925 = vmatpush1.bf16.msra.mxu0 %v11188_v4  ;;  %5989 = vmatpush1.bf16.msra.mxu1 %v11189_v59  ;;  %v11199_v4 = vld [vmem:[#allocation149_spill] sm:$0xff]  ;;  %v11200_v59 = vld [vmem:[#allocation150_spill] sm:$0xff] }
 0x39e   :  { %5927 = vmatprep.subr.bf16.mxu0 %v11190_v30  ;;  %5991 = vmatprep.subr.bf16.mxu1 %v11191_v44  ;;  %v11201_v30 = vld [vmem:[#allocation151_spill] sm:$0xff]  ;;  %v11202_v44 = vld [vmem:[#allocation152_spill] sm:$0xff] }
 0x3a1   :  { %5929 = vmatpush1.bf16.msra.mxu0 %v11192_v6  ;;  %5993 = vmatpush1.bf16.msra.mxu1 %v11193_v13  ;;  %v11203_v6 = vld [vmem:[#allocation153_spill] sm:$0xff]  ;;  %v11204_v13 = vld [vmem:[#allocation154_spill] sm:$0xff] }
 0x3a2   :  { %5931 = vmatprep.subr.bf16.mxu0 %v11194_v34  ;;  %5995 = vmatprep.subr.bf16.mxu1 %v11195_v36  ;;  %v11205_v34 = vld [vmem:[#allocation155_spill] sm:$0xff] }
 0x3a5   :  { %5933 = vmatpush1.bf16.msra.mxu0 %v11196_v38  ;;  %5997 = vmatpush1.bf16.msra.mxu1 %v11197_v10  ;;  %v11206_v10 = vld [vmem:[#allocation158_spill] sm:$0xff]  ;;  %v11214_v38 = vld [vmem:[#allocation164_spill] sm:$0xff] }
 0x3a6   :  { %5935 = vmatprep.subr.bf16.mxu0 %v11198_v3  ;;  %5999 = vmatprep.subr.bf16.mxu1 %v11199_v4  ;;  %v11207_v3 = vld [vmem:[#allocation159_spill] sm:$0xff]  ;;  %v11208_v4 = vld [vmem:[#allocation160_spill] sm:$0xff] }
 0x3a9   :  { %5937 = vmatpush1.bf16.msra.mxu0 %v11200_v59  ;;  %6001 = vmatpush1.bf16.msra.mxu1 %v11201_v30  ;;  %v11209_v59 = vld [vmem:[#allocation161_spill] sm:$0xff]  ;;  %v11210_v30 = vld [vmem:[#allocation162_spill] sm:$0xff] }
 0x3aa   :  { %5939 = vmatprep.subr.bf16.mxu0 %v11202_v44  ;;  %6003 = vmatprep.subr.bf16.mxu1 %v11203_v6  ;;  %v11211_v44 = vld [vmem:[#allocation163_spill] sm:$0xff]  ;;  %v11212_v6 = vld [vmem:[#allocation16_spill] sm:$0xff] }
 0x3ad   :  { %5941 = vmatpush1.bf16.msra.mxu0 %v11204_v13  ;;  %6005 = vmatpush1.bf16.msra.mxu1 %v11205_v34  ;;  %v11213_v13 = vld [vmem:[#allocation17_spill] sm:$0xff] }
 0x3ae   :  { %5943 = vmatprep.subr.bf16.mxu0 %v9105_v16  ;;  %6007 = vmatprep.subr.bf16.mxu1 %v9107_v39 }
 0x3b1   :  { %5945 = vmatpush1.bf16.msra.mxu0 %v11206_v10  ;;  %6009 = vmatpush1.bf16.msra.mxu1 %v11207_v3 }
 0x3b2   :  { %5947 = vmatprep.subr.bf16.mxu0 %v11208_v4  ;;  %6011 = vmatprep.subr.bf16.mxu1 %v11209_v59  ;;  %v11215_v59 = vld [vmem:[#allocation165_spill] sm:$0xff] }
 0x3b5   :  { %5949 = vmatpush1.bf16.msra.mxu0 %v11210_v30  ;;  %6013 = vmatpush1.bf16.msra.mxu1 %v11211_v44 }
 0x3b6   :  { %6015 = vmatprep.subr.bf16.mxu0 %v11212_v6  ;;  %6047 = vmatprep.subr.bf16.mxu1 %v11213_v13 }
 0x44a   :  { %v1420_v34 = vpop.f32.mrb[12].mxu0  ;;  %v1491_v16 = vpop.f32.mrb[12].mxu1 }
 0x44b   :  { %v1421_v39 = vadd.f32 %v1420_v34, %v11214_v38  ;;  %v1422_v36 = vpop.f32.mrb[13].mxu0  ;;  %v1493_v10 = vpop.f32.mrb[13].mxu1  ;;  %v1492_v44 = vadd.f32 %v1491_v16, %v9152_v63 }
 0x44c   :  { %v1423_v3 = vadd.f32 %v1422_v36, %v9143_v1  ;;  %v1494_v30 = vadd.f32 %v1493_v10, %v11215_v59 }
 0x44d   :  { %v5208_v18 = vmul.f32 -1.442695, %v1421_v39 }
 0x44e   :  { %v5209_v4 = vmul.f32 -1.442695, %v1423_v3  ;;  %v5210_v60 = vmul.f32 -1.442695, %v1494_v30 }
 0x44f   :  { %8062 = vpow2.f32 %v5208_v18 }
 0x450   :  { %8064 = vpow2.f32 %v5209_v4 }
 0x451   :  { %8066 = vpow2.f32 %v5210_v60 }
 0x452   :  { %8068 = vtanh.f32 %v1492_v44  ;;  %v11217_v44 = vld [vmem:[#allocation41_spill] sm:$0xff] }
 0x459   :  { %v8063_v6 = vpop.eup %8062 }
 0x45a   :  { %v8065_v55 = vpop.eup %8064  ;;  %v1499_v13 = vadd.f32 1.0, %v8063_v6  ;;  %v11218_v6 = vld [vmem:[#allocation42_spill] sm:$0xff] }
 0x45b   :  { %v1505_v31 = vadd.f32 1.0, %v8065_v55  ;;  %v8067_v34 = vpop.eup %8066 }
 0x45c   :  { %8070 = vrcp.f32 %v1499_v13  ;;  %v8069_v38 = vpop.eup %8068  ;;  %v1512_v18 = vadd.f32 1.0, %v8067_v34  ;;  %v11219_v13 = vld [vmem:[#allocation43_spill] sm:$0xff]  ;;  %v11221_v34 = vld [vmem:[#allocation45_spill] sm:$0xff] }
 0x45d   :  { %8072 = vrcp.f32 %v1505_v31 }
 0x45e   :  { %8074 = vrcp.f32 %v1512_v18  ;;  %v11225_v18 = vld [vmem:[#allocation49_spill] sm:$0xff] }
 0x466   :  { %v8071_v36 = vpop.eup %8070 }
 0x467   :  { %v8073_v39 = vpop.eup %8072  ;;  %v1516_v3 = vmul.f32 %v8071_v36, %v8069_v38  ;;  %v11220_v38 = vld [vmem:[#allocation44_spill] sm:$0xff]  ;;  %v11222_v36 = vld [vmem:[#allocation46_spill] sm:$0xff] }
 0x468   :  { %v1515_v4 = vmul.f32 %v8073_v39, %v9158_v54  ;;  %v8075_v16 = vpop.eup %8074  ;;  %v11216_v54 = vld [vmem:[#allocation40_spill] sm:$0xff]  ;;  %v11223_v39 = vld [vmem:[#allocation47_spill] sm:$0xff] }
 0x46a   :  { %v9363_v10 = vadd.f32 %v1516_v3, %v1515_v4  ;;  %v11224_v3 = vld [vmem:[#allocation48_spill] sm:$0xff]  ;;  %v11227_v4 = vld [vmem:[#allocation51_spill] sm:$0xff] }
 0x46c   :  { %8076 = vtanh.f32 %v9363_v10 }
 0x476   :  { %v8077_v30 = vpop.eup %8076 }
 0x477   :  { %v1519_v60 = vmul.f32 %v8077_v30, %v8075_v16  ;;  %v11228_v16 = vld [vmem:[#allocation52_spill] sm:$0xff]  ;;  %v11229_v30 = vld [vmem:[#allocation53_spill] sm:$0xff] }
 0x479   :  { %1585 = vmatmul.mubr.f32.vlgmr.msra.gmra.mrb[14].mxu0 %v1519_v60  ;;  %1656 = vmatmul.mubr.f32.vlgmr.msra.gmra.mrb[14].mxu1 %v1519_v60  ;;  %v1877_v31 = vrot.slane %v1519_v60, 4  ;;  %v11230_v60 = vld [vmem:[#allocation54_spill] sm:$0xff] }
 0x47a   :  { %6017 = vmatpush1.bf16.msra.mxu0 %v8615_v15  ;;  %6049 = vmatpush1.bf16.msra.mxu1 %v8621_v19 }
 0x47b   :  { %6019 = vmatprep.subr.bf16.mxu0 %v8623_v20  ;;  %6051 = vmatprep.subr.bf16.mxu1 %v8626_v24  ;;  %v1880_v55 = vrot.slane %v1877_v31, 4  ;;  %v11231_v31 = vld [vmem:[#allocation55_spill] sm:$0xff] }
 0x47c   :  { %1755 = vmatprep.mubr.f32.mxu0 %v11089_v35  ;;  %1826 = vmatprep.mubr.f32.mxu1 %v11089_v35 }
 0x47e   :  { %6021 = vmatpush1.bf16.msra.mxu0 %v8630_v28  ;;  %6053 = vmatpush1.bf16.msra.mxu1 %v8632_v29 }
 0x47f   :  { %6023 = vmatprep.subr.bf16.mxu0 %v8635_v33  ;;  %6055 = vmatprep.subr.bf16.mxu1 %v8637_v37 }
 0x482   :  { %6025 = vmatpush1.bf16.msra.mxu0 %v8640_v41  ;;  %6057 = vmatpush1.bf16.msra.mxu1 %v8644_v45 }
 0x483   :  { %6027 = vmatprep.subr.bf16.mxu0 %v8646_v46  ;;  %6059 = vmatprep.subr.bf16.mxu1 %v8649_v50 }
 0x486   :  { %6029 = vmatpush1.bf16.msra.mxu0 %v8652_v56  ;;  %6061 = vmatpush1.bf16.msra.mxu1 %v8656_v57 }
 0x487   :  { %6031 = vmatprep.subr.bf16.mxu0 %v8658_v58  ;;  %6063 = vmatprep.subr.bf16.mxu1 %v8661_v62 }
 0x48a   :  { %6033 = vmatpush1.bf16.msra.mxu0 %v8664_v5  ;;  %6065 = vmatpush1.bf16.msra.mxu1 %v8668_v7 }
 0x48b   :  { %6035 = vmatprep.subr.bf16.mxu0 %v8670_v8  ;;  %6067 = vmatprep.subr.bf16.mxu1 %v8673_v14 }
 0x48e   :  { %6037 = vmatpush1.bf16.msra.mxu0 %v8681_v23  ;;  %6069 = vmatpush1.bf16.msra.mxu1 %v8686_v25 }
 0x48f   :  { %6039 = vmatprep.subr.bf16.mxu0 %v8688_v26  ;;  %6071 = vmatprep.subr.bf16.mxu1 %v8691_v32 }
 0x492   :  { %6041 = vmatpush1.bf16.msra.mxu0 %v8695_v40  ;;  %6073 = vmatpush1.bf16.msra.mxu1 %v8699_v42 }
 0x493   :  { %6043 = vmatprep.subr.bf16.mxu0 %v8701_v43  ;;  %6075 = vmatprep.subr.bf16.mxu1 %v8704_v48 }
 0x496   :  { %6045 = vmatpush1.bf16.msra.mxu0 %v8707_v52  ;;  %6077 = vmatpush1.bf16.msra.mxu1 %v8711_v53 }
 0x497   :  { %6079 = vmatprep.subr.bf16.mxu0 %v8719_v61  ;;  %6143 = vmatprep.subr.bf16.mxu1 %v11216_v54 }
 0x499   :  { %1756 = vmatmul.mubr.f32.vlgmr.msra.gmra.mrb[16].mxu0 %v9290_v47  ;;  %1827 = vmatmul.mubr.f32.vlgmr.msra.gmra.mrb[16].mxu1 %v9290_v47  ;;  %v11226_v47 = vld [vmem:[#allocation50_spill] sm:$0xff] }
 0x49a   :  { %1947 = vmatprep.mubr.f32.mxu0 %v1880_v55  ;;  %2018 = vmatprep.mubr.f32.mxu1 %v1880_v55  ;;  %v11232_v55 = vld [vmem:[#allocation56_spill] sm:$0xff] }
 0x49b   :  { %6081 = vmatpush1.bf16.msra.mxu0 %v11217_v44  ;;  %6145 = vmatpush1.bf16.msra.mxu1 %v11218_v6 }
 0x49c   :  { %6083 = vmatprep.subr.bf16.mxu0 %v11219_v13  ;;  %6147 = vmatprep.subr.bf16.mxu1 %v11220_v38  ;;  %v11282_v13 = vld [vmem:[#allocation167_spill] sm:$0xff] }
 0x49f   :  { %6085 = vmatpush1.bf16.msra.mxu0 %v11221_v34  ;;  %6149 = vmatpush1.bf16.msra.mxu1 %v11222_v36  ;;  %v11233_v36 = vld [vmem:[#allocation57_spill] sm:$0xff]  ;;  %v11281_v34 = vld [vmem:[#allocation166_spill] sm:$0xff] }
 0x4a0   :  { %6087 = vmatprep.subr.bf16.mxu0 %v11223_v39  ;;  %6151 = vmatprep.subr.bf16.mxu1 %v11224_v3  ;;  %v11234_v39 = vld [vmem:[#allocation58_spill] sm:$0xff]  ;;  %v11235_v3 = vld [vmem:[#allocation59_spill] sm:$0xff] }
 0x4a3   :  { %6089 = vmatpush1.bf16.msra.mxu0 %v11225_v18  ;;  %6153 = vmatpush1.bf16.msra.mxu1 %v11226_v47  ;;  %v11236_v18 = vld [vmem:[#allocation60_spill] sm:$0xff]  ;;  %v11237_v47 = vld [vmem:[#allocation61_spill] sm:$0xff] }
 0x4a4   :  { %6091 = vmatprep.subr.bf16.mxu0 %v11227_v4  ;;  %6155 = vmatprep.subr.bf16.mxu1 %v11228_v16  ;;  %v11238_v4 = vld [vmem:[#allocation62_spill] sm:$0xff]  ;;  %v11239_v16 = vld [vmem:[#allocation63_spill] sm:$0xff] }
 0x4a7   :  { %6093 = vmatpush1.bf16.msra.mxu0 %v11229_v30  ;;  %6157 = vmatpush1.bf16.msra.mxu1 %v11230_v60  ;;  %v11240_v30 = vld [vmem:[#allocation64_spill] sm:$0xff]  ;;  %v11241_v60 = vld [vmem:[#allocation65_spill] sm:$0xff] }
 0x4a8   :  { %6095 = vmatprep.subr.bf16.mxu0 %v11231_v31  ;;  %6159 = vmatprep.subr.bf16.mxu1 %v11232_v55  ;;  %v11242_v31 = vld [vmem:[#allocation66_spill] sm:$0xff]  ;;  %v11243_v55 = vld [vmem:[#allocation67_spill] sm:$0xff] }
 0x4ab   :  { %6097 = vmatpush1.bf16.msra.mxu0 %v11233_v36  ;;  %6161 = vmatpush1.bf16.msra.mxu1 %v11234_v39  ;;  %v11244_v36 = vld [vmem:[#allocation68_spill] sm:$0xff]  ;;  %v11245_v39 = vld [vmem:[#allocation69_spill] sm:$0xff] }
 0x4ac   :  { %6099 = vmatprep.subr.bf16.mxu0 %v11235_v3  ;;  %6163 = vmatprep.subr.bf16.mxu1 %v11236_v18  ;;  %v11246_v3 = vld [vmem:[#allocation70_spill] sm:$0xff]  ;;  %v11247_v18 = vld [vmem:[#allocation71_spill] sm:$0xff] }
 0x4af   :  { %6101 = vmatpush1.bf16.msra.mxu0 %v11237_v47  ;;  %6165 = vmatpush1.bf16.msra.mxu1 %v11238_v4  ;;  %v11248_v47 = vld [vmem:[#allocation72_spill] sm:$0xff]  ;;  %v11249_v4 = vld [vmem:[#allocation73_spill] sm:$0xff] }
 0x4b0   :  { %6103 = vmatprep.subr.bf16.mxu0 %v11239_v16  ;;  %6167 = vmatprep.subr.bf16.mxu1 %v11240_v30  ;;  %v11250_v16 = vld [vmem:[#allocation74_spill] sm:$0xff]  ;;  %v11251_v30 = vld [vmem:[#allocation75_spill] sm:$0xff] }
 0x4b3   :  { %6105 = vmatpush1.bf16.msra.mxu0 %v11241_v60  ;;  %6169 = vmatpush1.bf16.msra.mxu1 %v11242_v31  ;;  %v11252_v60 = vld [vmem:[#allocation76_spill] sm:$0xff]  ;;  %v11253_v31 = vld [vmem:[#allocation77_spill] sm:$0xff] }
 0x4b4   :  { %6107 = vmatprep.subr.bf16.mxu0 %v11243_v55  ;;  %6171 = vmatprep.subr.bf16.mxu1 %v11244_v36  ;;  %v11254_v55 = vld [vmem:[#allocation78_spill] sm:$0xff]  ;;  %v11255_v36 = vld [vmem:[#allocation79_spill] sm:$0xff] }
 0x4b7   :  { %6109 = vmatpush1.bf16.msra.mxu0 %v11245_v39  ;;  %6173 = vmatpush1.bf16.msra.mxu1 %v11246_v3  ;;  %v11256_v39 = vld [vmem:[#allocation80_spill] sm:$0xff]  ;;  %v11257_v3 = vld [vmem:[#allocation81_spill] sm:$0xff] }
 0x4b8   :  { %6111 = vmatprep.subr.bf16.mxu0 %v11247_v18  ;;  %6175 = vmatprep.subr.bf16.mxu1 %v11248_v47  ;;  %v11258_v18 = vld [vmem:[#allocation82_spill] sm:$0xff]  ;;  %v11259_v47 = vld [vmem:[#allocation83_spill] sm:$0xff] }
 0x4bb   :  { %6113 = vmatpush1.bf16.msra.mxu0 %v11249_v4  ;;  %6177 = vmatpush1.bf16.msra.mxu1 %v11250_v16  ;;  %v11260_v4 = vld [vmem:[#allocation84_spill] sm:$0xff]  ;;  %v11261_v16 = vld [vmem:[#allocation85_spill] sm:$0xff] }
 0x4bc   :  { %6115 = vmatprep.subr.bf16.mxu0 %v11251_v30  ;;  %6179 = vmatprep.subr.bf16.mxu1 %v11252_v60  ;;  %v11262_v30 = vld [vmem:[#allocation86_spill] sm:$0xff]  ;;  %v11263_v60 = vld [vmem:[#allocation87_spill] sm:$0xff] }
 0x4bf   :  { %6117 = vmatpush1.bf16.msra.mxu0 %v11253_v31  ;;  %6181 = vmatpush1.bf16.msra.mxu1 %v11254_v55  ;;  %v11264_v31 = vld [vmem:[#allocation88_spill] sm:$0xff]  ;;  %v11265_v55 = vld [vmem:[#allocation89_spill] sm:$0xff] }
 0x4c0   :  { %6119 = vmatprep.subr.bf16.mxu0 %v11255_v36  ;;  %6183 = vmatprep.subr.bf16.mxu1 %v11256_v39  ;;  %v11266_v36 = vld [vmem:[#allocation90_spill] sm:$0xff]  ;;  %v11267_v39 = vld [vmem:[#allocation91_spill] sm:$0xff] }
 0x4c3   :  { %6121 = vmatpush1.bf16.msra.mxu0 %v11257_v3  ;;  %6185 = vmatpush1.bf16.msra.mxu1 %v11258_v18  ;;  %v11268_v3 = vld [vmem:[#allocation92_spill] sm:$0xff]  ;;  %v11269_v18 = vld [vmem:[#allocation93_spill] sm:$0xff] }
 0x4c4   :  { %6123 = vmatprep.subr.bf16.mxu0 %v11259_v47  ;;  %6187 = vmatprep.subr.bf16.mxu1 %v11260_v4  ;;  %v11270_v47 = vld [vmem:[#allocation94_spill] sm:$0xff]  ;;  %v11271_v4 = vld [vmem:[#allocation95_spill] sm:$0xff] }
 0x4c7   :  { %6125 = vmatpush1.bf16.msra.mxu0 %v11261_v16  ;;  %6189 = vmatpush1.bf16.msra.mxu1 %v11262_v30  ;;  %v11272_v16 = vld [vmem:[#allocation96_spill] sm:$0xff]  ;;  %v11273_v30 = vld [vmem:[#allocation97_spill] sm:$0xff] }
 0x4c8   :  { %6127 = vmatprep.subr.bf16.mxu0 %v11263_v60  ;;  %6191 = vmatprep.subr.bf16.mxu1 %v11264_v31  ;;  %v11274_v60 = vld [vmem:[#allocation98_spill] sm:$0xff]  ;;  %v11275_v31 = vld [vmem:[#allocation99_spill] sm:$0xff] }
 0x4cb   :  { %6129 = vmatpush1.bf16.msra.mxu0 %v11265_v55  ;;  %6193 = vmatpush1.bf16.msra.mxu1 %v11266_v36  ;;  %v11276_v55 = vld [vmem:[#allocation100_spill] sm:$0xff]  ;;  %v11277_v36 = vld [vmem:[#allocation101_spill] sm:$0xff] }
 0x4cc   :  { %6131 = vmatprep.subr.bf16.mxu0 %v11267_v39  ;;  %6195 = vmatprep.subr.bf16.mxu1 %v11268_v3  ;;  %v11278_v39 = vld [vmem:[#allocation102_spill] sm:$0xff]  ;;  %v11279_v3 = vld [vmem:[#allocation103_spill] sm:$0xff] }
 0x4cf   :  { %6133 = vmatpush1.bf16.msra.mxu0 %v11269_v18  ;;  %6197 = vmatpush1.bf16.msra.mxu1 %v11270_v47  ;;  %v11280_v18 = vld [vmem:[#allocation104_spill] sm:$0xff] }
 0x4d0   :  { %6135 = vmatprep.subr.bf16.mxu0 %v11271_v4  ;;  %6199 = vmatprep.subr.bf16.mxu1 %v11272_v16 }
 0x4d3   :  { %6137 = vmatpush1.bf16.msra.mxu0 %v11273_v30  ;;  %6201 = vmatpush1.bf16.msra.mxu1 %v11274_v60 }
 0x4d4   :  { %6139 = vmatprep.subr.bf16.mxu0 %v11275_v31  ;;  %6203 = vmatprep.subr.bf16.mxu1 %v11276_v55  ;;  %v11283_v55 = vld [vmem:[#allocation168_spill] sm:$0xff] }
 0x4d7   :  { %6141 = vmatpush1.bf16.msra.mxu0 %v11277_v36  ;;  %6205 = vmatpush1.bf16.msra.mxu1 %v11278_v39  ;;  %v11284_v39 = vld [vmem:[#allocation169_spill] sm:$0xff] }
 0x4d8   :  { %6207 = vmatprep.subr.bf16.mxu0 %v11279_v3  ;;  %6271 = vmatprep.subr.bf16.mxu1 %v11280_v18 }
 0x54c   :  { %v1586_v47 = vpop.f32.mrb[14].mxu0  ;;  %v1657_v4 = vpop.f32.mrb[14].mxu1 }
 0x54d   :  { %v1587_v16 = vadd.f32 %v1586_v47, %v11281_v34  ;;  %v1588_v38 = vpop.f32.mrb[15].mxu0  ;;  %v1659_v30 = vpop.f32.mrb[15].mxu1  ;;  %v1658_v54 = vadd.f32 %v1657_v4, %v11284_v39 }
 0x54e   :  { %v1589_v60 = vadd.f32 %v1588_v38, %v11282_v13  ;;  %v1660_v36 = vadd.f32 %v1659_v30, %v11283_v55 }
 0x54f   :  { %v5211_v6 = vmul.f32 -1.442695, %v1587_v16 }
 0x550   :  { %v5212_v31 = vmul.f32 -1.442695, %v1589_v60  ;;  %v5213_v44 = vmul.f32 -1.442695, %v1660_v36 }
 0x551   :  { %8078 = vpow2.f32 %v5211_v6 }
 0x552   :  { %8080 = vpow2.f32 %v5212_v31  ;;  %v11285_v31 = vld [vmem:[#allocation170_spill] sm:$0xff] }
 0x553   :  { %8082 = vpow2.f32 %v5213_v44 }
 0x554   :  { %8084 = vtanh.f32 %v1658_v54  ;;  %v1687_v54 = vld [vmem:[#allocation2] sm:$0x30] }
 0x55b   :  { %v8079_v3 = vpop.eup %8078 }
 0x55c   :  { %v8081_v61 = vpop.eup %8080  ;;  %v1665_v18 = vadd.f32 1.0, %v8079_v3 }
 0x55d   :  { %v1671_v53 = vadd.f32 1.0, %v8081_v61  ;;  %v8083_v47 = vpop.eup %8082 }
 0x55e   :  { %8086 = vrcp.f32 %v1665_v18  ;;  %v8085_v34 = vpop.eup %8084  ;;  %v1678_v6 = vadd.f32 1.0, %v8083_v47  ;;  %v1688_v18 = vld [vmem:[#allocation2 + $0x8] sm:$0x30] }
 0x55f   :  { %8088 = vrcp.f32 %v1671_v53 }
 0x560   :  { %8090 = vrcp.f32 %v1678_v6 }
 0x568   :  { %v8087_v38 = vpop.eup %8086 }
 0x569   :  { %v8089_v16 = vpop.eup %8088  ;;  %v1682_v60 = vmul.f32 %v8087_v38, %v8085_v34  ;;  %v1690_v38 = vld [vmem:[#allocation2 + $0x18] sm:$0x30] }
 0x56a   :  { %v1681_v13 = vmul.f32 %v8089_v16, %v11285_v31 }
 0x56c   :  { %v1757_v30 = vpop.f32.mrb[16].mxu0  ;;  %v1828_v36 = vpop.f32.mrb[16].mxu1  ;;  %v9471_v55 = vadd.f32 %v1682_v60, %v1681_v13 }
 0x56d   :  { %v1837_v4 = vrot.slane %v1757_v30, 4  ;;  %v1759_v3 = vpop.f32.mrb[17].mxu0  ;;  %v1830_v44 = vpop.f32.mrb[17].mxu1  ;;  %v1839_v60 = vrot.slane %v1828_v36, 4  ;;  %v1689_v30 = vld [vmem:[#allocation2 + $0x10] sm:$0x30] }
 0x56e   :  { %11286 = vst [vmem:[#allocation105_spill] sm:$0xff] %v9471_v55  ;;  %v1838_v61 = vrot.slane %v1759_v3, 4  ;;  %8092 = vtanh.f32 %v9471_v55  ;;  %v1840_v47 = vrot.slane %v1830_v44, 4  ;;  %v8091_v13 = vpop.eup %8090 }
 0x56f   :  { %v1845_v53 = vadd.f32 %v1837_v4, %v1687_v54  ;;  %v1847_v43 = vadd.f32 %v1839_v60, %v1689_v30  ;;  %v11290_v60 = vld [vmem:[#allocation115_spill] sm:$0xff]  ;;  %v11293_v30 = vld [vmem:[#allocation118_spill] sm:$0xff] }
 0x570   :  { %v1846_v39 = vadd.f32 %v1838_v61, %v1688_v18  ;;  %v1848_v16 = vadd.f32 %v1840_v47, %v1690_v38  ;;  %v1869_v61 = vrot.slane %v9287_v22, 6  ;;  %v11287_v22 = vld [vmem:[#allocation112_spill] sm:$0xff] }
 0x571   :  { %v5214_v52 = vmul.f32 -1.442695, %v1845_v53 }
 0x572   :  { %v5215_v34 = vmul.f32 -1.442695, %v1846_v39  ;;  %v5216_v48 = vmul.f32 -1.442695, %v1848_v16  ;;  %v11288_v16 = vld [vmem:[#allocation113_spill] sm:$0xff] }
 0x573   :  { %8094 = vpow2.f32 %v5214_v52 }
 0x574   :  { %8096 = vpow2.f32 %v5215_v34 }
 0x575   :  { %8098 = vpow2.f32 %v5216_v48 }
 0x576   :  { %8100 = vtanh.f32 %v1847_v43 }
 0x578   :  { %v8093_v6 = vpop.eup %8092 }
 0x579   :  { %v1685_v31 = vmul.f32 %v8093_v6, %v8091_v13  ;;  %v11289_v13 = vld [vmem:[#allocation114_spill] sm:$0xff]  ;;  %v11291_v6 = vld [vmem:[#allocation116_spill] sm:$0xff] }
 0x57b   :  { %1686 = vst [vmem:[#allocation3 + $0x2] sm:$0x3] %v1685_v31 }
 0x57d   :  { %v8095_v3 = vpop.eup %8094 }
 0x57e   :  { %v8097_v55 = vpop.eup %8096  ;;  %v1852_v4 = vadd.f32 1.0, %v8095_v3  ;;  %v11294_v3 = vld [vmem:[#allocation119_spill] sm:$0xff] }
 0x57f   :  { %v1858_v54 = vadd.f32 1.0, %v8097_v55  ;;  %v8099_v52 = vpop.eup %8098 }
 0x580   :  { %8102 = vrcp.f32 %v1852_v4  ;;  %v8101_v39 = vpop.eup %8100  ;;  %v1865_v18 = vadd.f32 1.0, %v8099_v52  ;;  %v11295_v4 = vld [vmem:[#allocation120_spill] sm:$0xff]  ;;  %v11297_v52 = vld [vmem:[#allocation122_spill] sm:$0xff] }
 0x581   :  { %8104 = vrcp.f32 %v1858_v54  ;;  %v11296_v54 = vld [vmem:[#allocation121_spill] sm:$0xff] }
 0x582   :  { %8106 = vrcp.f32 %v1865_v18  ;;  %v11303_v18 = vld [vmem:[#allocation128_spill] sm:$0xff] }
 0x58a   :  { %v8103_v44 = vpop.eup %8102 }
 0x58b   :  { %v8105_v36 = vpop.eup %8104  ;;  %v1872_v53 = vmul.f32 %v8103_v44, %v8101_v39  ;;  %v11298_v39 = vld [vmem:[#allocation123_spill] sm:$0xff]  ;;  %v11299_v44 = vld [vmem:[#allocation124_spill] sm:$0xff] }
 0x58c   :  { %v1871_v34 = vmul.f32 %v8105_v36, %v1869_v61  ;;  %v8107_v38 = vpop.eup %8106  ;;  %v11300_v61 = vld [vmem:[#allocation125_spill] sm:$0xff]  ;;  %v11301_v36 = vld [vmem:[#allocation126_spill] sm:$0xff] }
 0x58e   :  { %v9475_v47 = vadd.f32 %v1872_v53, %v1871_v34  ;;  %v11302_v53 = vld [vmem:[#allocation127_spill] sm:$0xff]  ;;  %v11304_v34 = vld [vmem:[#allocation129_spill] sm:$0xff] }
 0x590   :  { %8108 = vtanh.f32 %v9475_v47 }
 0x59a   :  { %v8109_v48 = vpop.eup %8108 }
 0x59b   :  { %v1875_v43 = vmul.f32 %v8109_v48, %v8107_v38  ;;  %v11305_v38 = vld [vmem:[#allocation130_spill] sm:$0xff]  ;;  %v11306_v48 = vld [vmem:[#allocation131_spill] sm:$0xff] }
 0x59d   :  { %v9478_v55 = vrot.slane %v1875_v43, 4  ;;  %v11307_v43 = vld [vmem:[#allocation132_spill] sm:$0xff] }
 0x59f   :  { %1948 = vmatmul.mubr.f32.vlgmr.msra.gmra.mrb[18].mxu0 %v9478_v55  ;;  %2019 = vmatmul.mubr.f32.vlgmr.msra.gmra.mrb[18].mxu1 %v9478_v55 }
 0x5a0   :  { %2113 = vmatprep.mubr.f32.mxu0 %v1685_v31  ;;  %2184 = vmatprep.mubr.f32.mxu1 %v1685_v31  ;;  %v11292_v31 = vld [vmem:[#allocation117_spill] sm:$0xff] }
 0x5a1   :  { %6209 = vmatpush1.bf16.msra.mxu0 %v11157_v17  ;;  %6273 = vmatpush1.bf16.msra.mxu1 %v11158_v9 }
 0x5a2   :  { %6211 = vmatprep.subr.bf16.mxu0 %v11159_v27  ;;  %6275 = vmatprep.subr.bf16.mxu1 %v11160_v11 }
 0x5a5   :  { %6213 = vmatpush1.bf16.msra.mxu0 %v11161_v0  ;;  %6277 = vmatpush1.bf16.msra.mxu1 %v11162_v12 }
 0x5a6   :  { %6215 = vmatprep.subr.bf16.mxu0 %v8961_v49  ;;  %6279 = vmatprep.subr.bf16.mxu1 %v8963_v2 }
 0x5a9   :  { %6217 = vmatpush1.bf16.msra.mxu0 %v8967_v51  ;;  %6281 = vmatpush1.bf16.msra.mxu1 %v8969_v21 }
 0x5aa   :  { %6219 = vmatprep.subr.bf16.mxu0 %v11287_v22  ;;  %6283 = vmatprep.subr.bf16.mxu1 %v11288_v16 }
 0x5ad   :  { %6221 = vmatpush1.bf16.msra.mxu0 %v11289_v13  ;;  %6285 = vmatpush1.bf16.msra.mxu1 %v11290_v60 }
 0x5ae   :  { %6223 = vmatprep.subr.bf16.mxu0 %v11291_v6  ;;  %6287 = vmatprep.subr.bf16.mxu1 %v11292_v31 }
 0x5b1   :  { %6225 = vmatpush1.bf16.msra.mxu0 %v11293_v30  ;;  %6289 = vmatpush1.bf16.msra.mxu1 %v11294_v3 }
 0x5b2   :  { %6227 = vmatprep.subr.bf16.mxu0 %v11295_v4  ;;  %6291 = vmatprep.subr.bf16.mxu1 %v11296_v54  ;;  %v11341_v54 = vld [vmem:[#allocation164_spill] sm:$0xff] }
 0x5b5   :  { %6229 = vmatpush1.bf16.msra.mxu0 %v11297_v52  ;;  %6293 = vmatpush1.bf16.msra.mxu1 %v11298_v39  ;;  %v11308_v52 = vld [vmem:[#allocation133_spill] sm:$0xff]  ;;  %v11309_v39 = vld [vmem:[#allocation134_spill] sm:$0xff] }
 0x5b6   :  { %6231 = vmatprep.subr.bf16.mxu0 %v11299_v44  ;;  %6295 = vmatprep.subr.bf16.mxu1 %v11300_v61  ;;  %v11310_v44 = vld [vmem:[#allocation135_spill] sm:$0xff]  ;;  %v11311_v61 = vld [vmem:[#allocation136_spill] sm:$0xff] }
 0x5b9   :  { %6233 = vmatpush1.bf16.msra.mxu0 %v11301_v36  ;;  %6297 = vmatpush1.bf16.msra.mxu1 %v11302_v53  ;;  %v11312_v36 = vld [vmem:[#allocation137_spill] sm:$0xff]  ;;  %v11313_v53 = vld [vmem:[#allocation138_spill] sm:$0xff] }
 0x5ba   :  { %6235 = vmatprep.subr.bf16.mxu0 %v11303_v18  ;;  %6299 = vmatprep.subr.bf16.mxu1 %v11304_v34  ;;  %v11314_v18 = vld [vmem:[#allocation139_spill] sm:$0xff]  ;;  %v11315_v34 = vld [vmem:[#allocation140_spill] sm:$0xff] }
 0x5bd   :  { %6237 = vmatpush1.bf16.msra.mxu0 %v11305_v38  ;;  %6301 = vmatpush1.bf16.msra.mxu1 %v11306_v48  ;;  %v11316_v38 = vld [vmem:[#allocation141_spill] sm:$0xff]  ;;  %v11317_v48 = vld [vmem:[#allocation142_spill] sm:$0xff] }
 0x5be   :  { %6239 = vmatprep.subr.bf16.mxu0 %v11307_v43  ;;  %6303 = vmatprep.subr.bf16.mxu1 %v11308_v52  ;;  %v11318_v43 = vld [vmem:[#allocation143_spill] sm:$0xff]  ;;  %v11319_v52 = vld [vmem:[#allocation144_spill] sm:$0xff] }
 0x5c1   :  { %6241 = vmatpush1.bf16.msra.mxu0 %v11309_v39  ;;  %6305 = vmatpush1.bf16.msra.mxu1 %v11310_v44  ;;  %v11320_v39 = vld [vmem:[#allocation145_spill] sm:$0xff]  ;;  %v11321_v44 = vld [vmem:[#allocation146_spill] sm:$0xff] }
 0x5c2   :  { %6243 = vmatprep.subr.bf16.mxu0 %v11311_v61  ;;  %6307 = vmatprep.subr.bf16.mxu1 %v11312_v36  ;;  %v11322_v61 = vld [vmem:[#allocation147_spill] sm:$0xff]  ;;  %v11323_v36 = vld [vmem:[#allocation148_spill] sm:$0xff] }
 0x5c5   :  { %6245 = vmatpush1.bf16.msra.mxu0 %v11313_v53  ;;  %6309 = vmatpush1.bf16.msra.mxu1 %v11314_v18  ;;  %v11324_v53 = vld [vmem:[#allocation149_spill] sm:$0xff]  ;;  %v11325_v18 = vld [vmem:[#allocation150_spill] sm:$0xff] }
 0x5c6   :  { %6247 = vmatprep.subr.bf16.mxu0 %v11315_v34  ;;  %6311 = vmatprep.subr.bf16.mxu1 %v11316_v38  ;;  %v11326_v34 = vld [vmem:[#allocation151_spill] sm:$0xff]  ;;  %v11327_v38 = vld [vmem:[#allocation152_spill] sm:$0xff] }
 0x5c9   :  { %6249 = vmatpush1.bf16.msra.mxu0 %v11317_v48  ;;  %6313 = vmatpush1.bf16.msra.mxu1 %v11318_v43  ;;  %v11328_v48 = vld [vmem:[#allocation153_spill] sm:$0xff]  ;;  %v11329_v43 = vld [vmem:[#allocation154_spill] sm:$0xff] }
 0x5ca   :  { %6251 = vmatprep.subr.bf16.mxu0 %v11319_v52  ;;  %6315 = vmatprep.subr.bf16.mxu1 %v11320_v39  ;;  %v11330_v52 = vld [vmem:[#allocation155_spill] sm:$0xff]  ;;  %v11331_v39 = vld [vmem:[#allocation156_spill] sm:$0xff] }
 0x5cd   :  { %6253 = vmatpush1.bf16.msra.mxu0 %v11321_v44  ;;  %6317 = vmatpush1.bf16.msra.mxu1 %v11322_v61  ;;  %v11332_v44 = vld [vmem:[#allocation157_spill] sm:$0xff]  ;;  %v11333_v61 = vld [vmem:[#allocation158_spill] sm:$0xff] }
 0x5ce   :  { %6255 = vmatprep.subr.bf16.mxu0 %v11323_v36  ;;  %6319 = vmatprep.subr.bf16.mxu1 %v11324_v53  ;;  %v11334_v36 = vld [vmem:[#allocation159_spill] sm:$0xff]  ;;  %v11335_v53 = vld [vmem:[#allocation160_spill] sm:$0xff] }
 0x5d1   :  { %6257 = vmatpush1.bf16.msra.mxu0 %v11325_v18  ;;  %6321 = vmatpush1.bf16.msra.mxu1 %v11326_v34  ;;  %v11336_v18 = vld [vmem:[#allocation161_spill] sm:$0xff]  ;;  %v11337_v34 = vld [vmem:[#allocation162_spill] sm:$0xff] }
 0x5d2   :  { %6259 = vmatprep.subr.bf16.mxu0 %v11327_v38  ;;  %6323 = vmatprep.subr.bf16.mxu1 %v11328_v48  ;;  %v11338_v38 = vld [vmem:[#allocation163_spill] sm:$0xff]  ;;  %v11339_v48 = vld [vmem:[#allocation16_spill] sm:$0xff] }
 0x5d5   :  { %6261 = vmatpush1.bf16.msra.mxu0 %v11329_v43  ;;  %6325 = vmatpush1.bf16.msra.mxu1 %v11330_v52  ;;  %v11340_v43 = vld [vmem:[#allocation17_spill] sm:$0xff] }
 0x5d6   :  { %6263 = vmatprep.subr.bf16.mxu0 %v11331_v39  ;;  %6327 = vmatprep.subr.bf16.mxu1 %v11332_v44 }
 0x5d9   :  { %6265 = vmatpush1.bf16.msra.mxu0 %v11333_v61  ;;  %6329 = vmatpush1.bf16.msra.mxu1 %v11334_v36 }
 0x5da   :  { %6267 = vmatprep.subr.bf16.mxu0 %v11335_v53  ;;  %6331 = vmatprep.subr.bf16.mxu1 %v11336_v18 }
 0x5dd   :  { %6269 = vmatpush1.bf16.msra.mxu0 %v11337_v34  ;;  %6333 = vmatpush1.bf16.msra.mxu1 %v11338_v38 }
 0x5de   :  { %6335 = vmatprep.subr.bf16.mxu0 %v11339_v48  ;;  %6367 = vmatprep.subr.bf16.mxu1 %v11340_v43 }
 0x672   :  { %v1949_v52 = vpop.f32.mrb[18].mxu0  ;;  %v2020_v39 = vpop.f32.mrb[18].mxu1 }
 0x673   :  { %v1950_v44 = vadd.f32 %v1949_v52, %v11341_v54  ;;  %v1951_v4 = vpop.f32.mrb[19].mxu0  ;;  %v2022_v61 = vpop.f32.mrb[19].mxu1  ;;  %v2021_v38 = vadd.f32 %v2020_v39, %v9152_v63 }
 0x674   :  { %v1952_v36 = vadd.f32 %v1951_v4, %v9143_v1  ;;  %v2023_v34 = vadd.f32 %v2022_v61, %v11215_v59 }
 0x675   :  { %v5217_v3 = vmul.f32 -1.442695, %v1950_v44 }
 0x676   :  { %v5218_v53 = vmul.f32 -1.442695, %v1952_v36  ;;  %v5219_v18 = vmul.f32 -1.442695, %v2023_v34 }
 0x677   :  { %8110 = vpow2.f32 %v5217_v3 }
 0x678   :  { %8112 = vpow2.f32 %v5218_v53 }
 0x679   :  { %8114 = vpow2.f32 %v5219_v18 }
 0x67a   :  { %8116 = vtanh.f32 %v2021_v38  ;;  %v11345_v38 = vld [vmem:[#allocation38_spill] sm:$0xff] }
 0x681   :  { %v8111_v48 = vpop.eup %8110 }
 0x682   :  { %v8113_v30 = vpop.eup %8112  ;;  %v2028_v43 = vadd.f32 1.0, %v8111_v48  ;;  %v11346_v48 = vld [vmem:[#allocation39_spill] sm:$0xff] }
 0x683   :  { %v2034_v31 = vadd.f32 1.0, %v8113_v30  ;;  %v8115_v52 = vpop.eup %8114 }
 0x684   :  { %8118 = vrcp.f32 %v2028_v43  ;;  %v8117_v54 = vpop.eup %8116  ;;  %v2041_v3 = vadd.f32 1.0, %v8115_v52  ;;  %v11347_v43 = vld [vmem:[#allocation40_spill] sm:$0xff] }
 0x685   :  { %8120 = vrcp.f32 %v2034_v31  ;;  %v11343_v31 = vld [vmem:[#allocation36_spill] sm:$0xff] }
 0x686   :  { %8122 = vrcp.f32 %v2041_v3  ;;  %v11351_v3 = vld [vmem:[#allocation44_spill] sm:$0xff] }
 0x68e   :  { %v8119_v4 = vpop.eup %8118 }
 0x68f   :  { %v8121_v44 = vpop.eup %8120  ;;  %v2045_v36 = vmul.f32 %v8119_v4, %v8117_v54  ;;  %v11344_v54 = vld [vmem:[#allocation37_spill] sm:$0xff] }
 0x690   :  { %v2044_v53 = vmul.f32 %v8121_v44, %v9363_v10  ;;  %v8123_v39 = vpop.eup %8122  ;;  %v11342_v10 = vld [vmem:[#allocation35_spill] sm:$0xff]  ;;  %v11348_v4 = vld [vmem:[#allocation41_spill] sm:$0xff]  ;;  %v11349_v44 = vld [vmem:[#allocation42_spill] sm:$0xff] }
 0x692   :  { %v9551_v61 = vadd.f32 %v2045_v36, %v2044_v53  ;;  %v11350_v36 = vld [vmem:[#allocation43_spill] sm:$0xff]  ;;  %v11352_v53 = vld [vmem:[#allocation45_spill] sm:$0xff] }
 0x694   :  { %8124 = vtanh.f32 %v9551_v61 }
 0x69e   :  { %v8125_v34 = vpop.eup %8124 }
 0x69f   :  { %v2048_v18 = vmul.f32 %v8125_v34, %v8123_v39  ;;  %v11353_v39 = vld [vmem:[#allocation46_spill] sm:$0xff]  ;;  %v11354_v34 = vld [vmem:[#allocation47_spill] sm:$0xff] }
 0x6a1   :  { %2114 = vmatmul.mubr.f32.vlgmr.msra.gmra.mrb[20].mxu0 %v2048_v18  ;;  %2185 = vmatmul.mubr.f32.vlgmr.msra.gmra.mrb[20].mxu1 %v2048_v18  ;;  %v2406_v30 = vrot.slane %v2048_v18, 2  ;;  %v11355_v18 = vld [vmem:[#allocation48_spill] sm:$0xff] }
 0x6a2   :  { %6337 = vmatpush1.bf16.msra.mxu0 %v8615_v15  ;;  %6369 = vmatpush1.bf16.msra.mxu1 %v8621_v19 }
 0x6a3   :  { %6339 = vmatprep.subr.bf16.mxu0 %v8623_v20  ;;  %6371 = vmatprep.subr.bf16.mxu1 %v8626_v24  ;;  %v2409_v52 = vrot.slane %v2406_v30, 6  ;;  %v11356_v30 = vld [vmem:[#allocation49_spill] sm:$0xff] }
 0x6a4   :  { %2284 = vmatprep.mubr.f32.mxu0 %v11089_v35  ;;  %2355 = vmatprep.mubr.f32.mxu1 %v11089_v35 }
 0x6a6   :  { %6341 = vmatpush1.bf16.msra.mxu0 %v8630_v28  ;;  %6373 = vmatpush1.bf16.msra.mxu1 %v8632_v29 }
 0x6a7   :  { %6343 = vmatprep.subr.bf16.mxu0 %v8635_v33  ;;  %6375 = vmatprep.subr.bf16.mxu1 %v8637_v37 }
 0x6aa   :  { %6345 = vmatpush1.bf16.msra.mxu0 %v8640_v41  ;;  %6377 = vmatpush1.bf16.msra.mxu1 %v8644_v45 }
 0x6ab   :  { %6347 = vmatprep.subr.bf16.mxu0 %v8646_v46  ;;  %6379 = vmatprep.subr.bf16.mxu1 %v8649_v50 }
 0x6ae   :  { %6349 = vmatpush1.bf16.msra.mxu0 %v8652_v56  ;;  %6381 = vmatpush1.bf16.msra.mxu1 %v8656_v57 }
 0x6af   :  { %6351 = vmatprep.subr.bf16.mxu0 %v8658_v58  ;;  %6383 = vmatprep.subr.bf16.mxu1 %v8661_v62 }
 0x6b2   :  { %6353 = vmatpush1.bf16.msra.mxu0 %v8664_v5  ;;  %6385 = vmatpush1.bf16.msra.mxu1 %v8668_v7 }
 0x6b3   :  { %6355 = vmatprep.subr.bf16.mxu0 %v8670_v8  ;;  %6387 = vmatprep.subr.bf16.mxu1 %v8673_v14 }
 0x6b6   :  { %6357 = vmatpush1.bf16.msra.mxu0 %v8681_v23  ;;  %6389 = vmatpush1.bf16.msra.mxu1 %v8686_v25 }
 0x6b7   :  { %6359 = vmatprep.subr.bf16.mxu0 %v8688_v26  ;;  %6391 = vmatprep.subr.bf16.mxu1 %v8691_v32 }
 0x6ba   :  { %6361 = vmatpush1.bf16.msra.mxu0 %v8695_v40  ;;  %6393 = vmatpush1.bf16.msra.mxu1 %v8699_v42 }
 0x6bb   :  { %6363 = vmatprep.subr.bf16.mxu0 %v11342_v10  ;;  %6395 = vmatprep.subr.bf16.mxu1 %v11343_v31 }
 0x6be   :  { %6365 = vmatpush1.bf16.msra.mxu0 %v11344_v54  ;;  %6397 = vmatpush1.bf16.msra.mxu1 %v11345_v38  ;;  %v11413_v38 = vld [vmem:[#allocation167_spill] sm:$0xff] }
 0x6bf   :  { %6399 = vmatprep.subr.bf16.mxu0 %v11346_v48  ;;  %6463 = vmatprep.subr.bf16.mxu1 %v11347_v43  ;;  %v11412_v43 = vld [vmem:[#allocation166_spill] sm:$0xff] }
 0x6c1   :  { %2285 = vmatmul.mubr.f32.vlgmr.msra.gmra.mrb[22].mxu0 %v9478_v55  ;;  %2356 = vmatmul.mubr.f32.vlgmr.msra.gmra.mrb[22].mxu1 %v9478_v55  ;;  %v11357_v55 = vld [vmem:[#allocation50_spill] sm:$0xff] }
 0x6c2   :  { %2476 = vmatprep.mubr.f32.mxu0 %v2409_v52  ;;  %2547 = vmatprep.mubr.f32.mxu1 %v2409_v52  ;;  %v11358_v52 = vld [vmem:[#allocation51_spill] sm:$0xff] }
 0x6c3   :  { %6401 = vmatpush1.bf16.msra.mxu0 %v11348_v4  ;;  %6465 = vmatpush1.bf16.msra.mxu1 %v11349_v44  ;;  %v11359_v4 = vld [vmem:[#allocation52_spill] sm:$0xff]  ;;  %v11360_v44 = vld [vmem:[#allocation53_spill] sm:$0xff] }
 0x6c4   :  { %6403 = vmatprep.subr.bf16.mxu0 %v11350_v36  ;;  %6467 = vmatprep.subr.bf16.mxu1 %v11351_v3  ;;  %v11361_v36 = vld [vmem:[#allocation54_spill] sm:$0xff]  ;;  %v11362_v3 = vld [vmem:[#allocation55_spill] sm:$0xff] }
 0x6c7   :  { %6405 = vmatpush1.bf16.msra.mxu0 %v11352_v53  ;;  %6469 = vmatpush1.bf16.msra.mxu1 %v11353_v39  ;;  %v11363_v53 = vld [vmem:[#allocation56_spill] sm:$0xff]  ;;  %v11364_v39 = vld [vmem:[#allocation57_spill] sm:$0xff] }
 0x6c8   :  { %6407 = vmatprep.subr.bf16.mxu0 %v11354_v34  ;;  %6471 = vmatprep.subr.bf16.mxu1 %v11355_v18  ;;  %v11365_v34 = vld [vmem:[#allocation58_spill] sm:$0xff]  ;;  %v11366_v18 = vld [vmem:[#allocation59_spill] sm:$0xff] }
 0x6cb   :  { %6409 = vmatpush1.bf16.msra.mxu0 %v11356_v30  ;;  %6473 = vmatpush1.bf16.msra.mxu1 %v11357_v55  ;;  %v11367_v30 = vld [vmem:[#allocation60_spill] sm:$0xff]  ;;  %v11368_v55 = vld [vmem:[#allocation61_spill] sm:$0xff] }
 0x6cc   :  { %6411 = vmatprep.subr.bf16.mxu0 %v11358_v52  ;;  %6475 = vmatprep.subr.bf16.mxu1 %v11359_v4  ;;  %v11369_v52 = vld [vmem:[#allocation62_spill] sm:$0xff]  ;;  %v11370_v4 = vld [vmem:[#allocation63_spill] sm:$0xff] }
 0x6cf   :  { %6413 = vmatpush1.bf16.msra.mxu0 %v11360_v44  ;;  %6477 = vmatpush1.bf16.msra.mxu1 %v11361_v36  ;;  %v11371_v44 = vld [vmem:[#allocation64_spill] sm:$0xff]  ;;  %v11372_v36 = vld [vmem:[#allocation65_spill] sm:$0xff] }
 0x6d0   :  { %6415 = vmatprep.subr.bf16.mxu0 %v11362_v3  ;;  %6479 = vmatprep.subr.bf16.mxu1 %v11363_v53  ;;  %v11373_v3 = vld [vmem:[#allocation66_spill] sm:$0xff]  ;;  %v11374_v53 = vld [vmem:[#allocation67_spill] sm:$0xff] }
 0x6d3   :  { %6417 = vmatpush1.bf16.msra.mxu0 %v11364_v39  ;;  %6481 = vmatpush1.bf16.msra.mxu1 %v11365_v34  ;;  %v11375_v39 = vld [vmem:[#allocation68_spill] sm:$0xff]  ;;  %v11376_v34 = vld [vmem:[#allocation69_spill] sm:$0xff] }
 0x6d4   :  { %6419 = vmatprep.subr.bf16.mxu0 %v11366_v18  ;;  %6483 = vmatprep.subr.bf16.mxu1 %v11367_v30  ;;  %v11377_v18 = vld [vmem:[#allocation70_spill] sm:$0xff]  ;;  %v11378_v30 = vld [vmem:[#allocation71_spill] sm:$0xff] }
 0x6d7   :  { %6421 = vmatpush1.bf16.msra.mxu0 %v11368_v55  ;;  %6485 = vmatpush1.bf16.msra.mxu1 %v11369_v52  ;;  %v11379_v55 = vld [vmem:[#allocation72_spill] sm:$0xff]  ;;  %v11380_v52 = vld [vmem:[#allocation73_spill] sm:$0xff] }
 0x6d8   :  { %6423 = vmatprep.subr.bf16.mxu0 %v11370_v4  ;;  %6487 = vmatprep.subr.bf16.mxu1 %v11371_v44  ;;  %v11381_v4 = vld [vmem:[#allocation74_spill] sm:$0xff]  ;;  %v11382_v44 = vld [vmem:[#allocation75_spill] sm:$0xff] }
 0x6db   :  { %6425 = vmatpush1.bf16.msra.mxu0 %v11372_v36  ;;  %6489 = vmatpush1.bf16.msra.mxu1 %v11373_v3  ;;  %v11383_v36 = vld [vmem:[#allocation76_spill] sm:$0xff]  ;;  %v11384_v3 = vld [vmem:[#allocation77_spill] sm:$0xff] }
 0x6dc   :  { %6427 = vmatprep.subr.bf16.mxu0 %v11374_v53  ;;  %6491 = vmatprep.subr.bf16.mxu1 %v11375_v39  ;;  %v11385_v53 = vld [vmem:[#allocation78_spill] sm:$0xff]  ;;  %v11386_v39 = vld [vmem:[#allocation79_spill] sm:$0xff] }
 0x6df   :  { %6429 = vmatpush1.bf16.msra.mxu0 %v11376_v34  ;;  %6493 = vmatpush1.bf16.msra.mxu1 %v11377_v18  ;;  %v11387_v34 = vld [vmem:[#allocation80_spill] sm:$0xff]  ;;  %v11388_v18 = vld [vmem:[#allocation81_spill] sm:$0xff] }
 0x6e0   :  { %6431 = vmatprep.subr.bf16.mxu0 %v11378_v30  ;;  %6495 = vmatprep.subr.bf16.mxu1 %v11379_v55  ;;  %v11389_v30 = vld [vmem:[#allocation82_spill] sm:$0xff]  ;;  %v11390_v55 = vld [vmem:[#allocation83_spill] sm:$0xff] }
 0x6e3   :  { %6433 = vmatpush1.bf16.msra.mxu0 %v11380_v52  ;;  %6497 = vmatpush1.bf16.msra.mxu1 %v11381_v4  ;;  %v11391_v52 = vld [vmem:[#allocation84_spill] sm:$0xff]  ;;  %v11392_v4 = vld [vmem:[#allocation85_spill] sm:$0xff] }
 0x6e4   :  { %6435 = vmatprep.subr.bf16.mxu0 %v11382_v44  ;;  %6499 = vmatprep.subr.bf16.mxu1 %v11383_v36  ;;  %v11393_v44 = vld [vmem:[#allocation86_spill] sm:$0xff]  ;;  %v11394_v36 = vld [vmem:[#allocation87_spill] sm:$0xff] }
 0x6e7   :  { %6437 = vmatpush1.bf16.msra.mxu0 %v11384_v3  ;;  %6501 = vmatpush1.bf16.msra.mxu1 %v11385_v53  ;;  %v11395_v3 = vld [vmem:[#allocation88_spill] sm:$0xff]  ;;  %v11396_v53 = vld [vmem:[#allocation89_spill] sm:$0xff] }
 0x6e8   :  { %6439 = vmatprep.subr.bf16.mxu0 %v11386_v39  ;;  %6503 = vmatprep.subr.bf16.mxu1 %v11387_v34  ;;  %v11397_v39 = vld [vmem:[#allocation90_spill] sm:$0xff]  ;;  %v11398_v34 = vld [vmem:[#allocation91_spill] sm:$0xff] }
 0x6eb   :  { %6441 = vmatpush1.bf16.msra.mxu0 %v11388_v18  ;;  %6505 = vmatpush1.bf16.msra.mxu1 %v11389_v30  ;;  %v11399_v18 = vld [vmem:[#allocation92_spill] sm:$0xff]  ;;  %v11400_v30 = vld [vmem:[#allocation93_spill] sm:$0xff] }
 0x6ec   :  { %6443 = vmatprep.subr.bf16.mxu0 %v11390_v55  ;;  %6507 = vmatprep.subr.bf16.mxu1 %v11391_v52  ;;  %v11401_v55 = vld [vmem:[#allocation94_spill] sm:$0xff]  ;;  %v11402_v52 = vld [vmem:[#allocation95_spill] sm:$0xff] }
 0x6ef   :  { %6445 = vmatpush1.bf16.msra.mxu0 %v11392_v4  ;;  %6509 = vmatpush1.bf16.msra.mxu1 %v11393_v44  ;;  %v11403_v4 = vld [vmem:[#allocation96_spill] sm:$0xff]  ;;  %v11404_v44 = vld [vmem:[#allocation97_spill] sm:$0xff] }
 0x6f0   :  { %6447 = vmatprep.subr.bf16.mxu0 %v11394_v36  ;;  %6511 = vmatprep.subr.bf16.mxu1 %v11395_v3  ;;  %v11405_v36 = vld [vmem:[#allocation98_spill] sm:$0xff]  ;;  %v11406_v3 = vld [vmem:[#allocation99_spill] sm:$0xff] }
 0x6f3   :  { %6449 = vmatpush1.bf16.msra.mxu0 %v11396_v53  ;;  %6513 = vmatpush1.bf16.msra.mxu1 %v11397_v39  ;;  %v11407_v53 = vld [vmem:[#allocation100_spill] sm:$0xff]  ;;  %v11408_v39 = vld [vmem:[#allocation101_spill] sm:$0xff] }
 0x6f4   :  { %6451 = vmatprep.subr.bf16.mxu0 %v11398_v34  ;;  %6515 = vmatprep.subr.bf16.mxu1 %v11399_v18  ;;  %v11409_v34 = vld [vmem:[#allocation102_spill] sm:$0xff]  ;;  %v11410_v18 = vld [vmem:[#allocation103_spill] sm:$0xff] }
 0x6f7   :  { %6453 = vmatpush1.bf16.msra.mxu0 %v11400_v30  ;;  %6517 = vmatpush1.bf16.msra.mxu1 %v11401_v55  ;;  %v11411_v30 = vld [vmem:[#allocation104_spill] sm:$0xff] }
 0x6f8   :  { %6455 = vmatprep.subr.bf16.mxu0 %v11402_v52  ;;  %6519 = vmatprep.subr.bf16.mxu1 %v11403_v4 }
 0x6fb   :  { %6457 = vmatpush1.bf16.msra.mxu0 %v11404_v44  ;;  %6521 = vmatpush1.bf16.msra.mxu1 %v11405_v36 }
 0x6fc   :  { %6459 = vmatprep.subr.bf16.mxu0 %v11406_v3  ;;  %6523 = vmatprep.subr.bf16.mxu1 %v11407_v53  ;;  %v11414_v53 = vld [vmem:[#allocation168_spill] sm:$0xff] }
 0x6ff   :  { %6461 = vmatpush1.bf16.msra.mxu0 %v11408_v39  ;;  %6525 = vmatpush1.bf16.msra.mxu1 %v11409_v34  ;;  %v11415_v34 = vld [vmem:[#allocation169_spill] sm:$0xff] }
 0x700   :  { %6527 = vmatprep.subr.bf16.mxu0 %v11410_v18  ;;  %6591 = vmatprep.subr.bf16.mxu1 %v11411_v30 }
 0x774   :  { %v2115_v55 = vpop.f32.mrb[20].mxu0  ;;  %v2186_v52 = vpop.f32.mrb[20].mxu1 }
 0x775   :  { %v2116_v4 = vadd.f32 %v2115_v55, %v11412_v43  ;;  %v2117_v48 = vpop.f32.mrb[21].mxu0  ;;  %v2188_v44 = vpop.f32.mrb[21].mxu1  ;;  %v2187_v10 = vadd.f32 %v2186_v52, %v11415_v34 }
 0x776   :  { %v2118_v36 = vadd.f32 %v2117_v48, %v11413_v38  ;;  %v2189_v39 = vadd.f32 %v2188_v44, %v11414_v53 }
 0x777   :  { %v5220_v54 = vmul.f32 -1.442695, %v2116_v4 }
 0x778   :  { %v5221_v3 = vmul.f32 -1.442695, %v2118_v36  ;;  %v5222_v31 = vmul.f32 -1.442695, %v2189_v39 }
 0x779   :  { %8126 = vpow2.f32 %v5220_v54 }
 0x77a   :  { %8128 = vpow2.f32 %v5221_v3  ;;  %v11416_v3 = vld [vmem:[#allocation105_spill] sm:$0xff] }
 0x77b   :  { %8130 = vpow2.f32 %v5222_v31 }
 0x77c   :  { %8132 = vtanh.f32 %v2187_v10  ;;  %v2216_v10 = vld [vmem:[#allocation2] sm:$0xc0] }
 0x783   :  { %v8127_v18 = vpop.eup %8126 }
 0x784   :  { %v8129_v42 = vpop.eup %8128  ;;  %v2194_v30 = vadd.f32 1.0, %v8127_v18 }
 0x785   :  { %v2200_v40 = vadd.f32 1.0, %v8129_v42  ;;  %v8131_v55 = vpop.eup %8130 }
 0x786   :  { %8134 = vrcp.f32 %v2194_v30  ;;  %v8133_v43 = vpop.eup %8132  ;;  %v2207_v54 = vadd.f32 1.0, %v8131_v55  ;;  %v2217_v30 = vld [vmem:[#allocation2 + $0x8] sm:$0xc0] }
 0x787   :  { %8136 = vrcp.f32 %v2200_v40 }
 0x788   :  { %8138 = vrcp.f32 %v2207_v54 }
 0x790   :  { %v8135_v48 = vpop.eup %8134 }
 0x791   :  { %v8137_v4 = vpop.eup %8136  ;;  %v2211_v36 = vmul.f32 %v8135_v48, %v8133_v43  ;;  %v2219_v48 = vld [vmem:[#allocation2 + $0x18] sm:$0xc0] }
 0x792   :  { %v2210_v38 = vmul.f32 %v8137_v4, %v11416_v3 }
 0x794   :  { %v2286_v44 = vpop.f32.mrb[22].mxu0  ;;  %v2357_v39 = vpop.f32.mrb[22].mxu1  ;;  %v9659_v53 = vadd.f32 %v2211_v36, %v2210_v38 }
 0x795   :  { %v2366_v52 = vrot.slane %v2286_v44, 2  ;;  %v2288_v18 = vpop.f32.mrb[23].mxu0  ;;  %v2359_v31 = vpop.f32.mrb[23].mxu1  ;;  %v2368_v36 = vrot.slane %v2357_v39, 2  ;;  %v2218_v44 = vld [vmem:[#allocation2 + $0x10] sm:$0xc0] }
 0x796   :  { %11417 = vst [vmem:[#allocation106_spill] sm:$0xff] %v9659_v53  ;;  %v2367_v42 = vrot.slane %v2288_v18, 2  ;;  %8140 = vtanh.f32 %v9659_v53  ;;  %v2369_v55 = vrot.slane %v2359_v31, 2  ;;  %v8139_v38 = vpop.eup %8138 }
 0x797   :  { %v2374_v40 = vadd.f32 %v2366_v52, %v2216_v10  ;;  %v2376_v25 = vadd.f32 %v2368_v36, %v2218_v44  ;;  %v11421_v36 = vld [vmem:[#allocation120_spill] sm:$0xff]  ;;  %v11424_v44 = vld [vmem:[#allocation123_spill] sm:$0xff] }
 0x798   :  { %v2375_v34 = vadd.f32 %v2367_v42, %v2217_v30  ;;  %v2377_v4 = vadd.f32 %v2369_v55, %v2219_v48  ;;  %v2398_v42 = vrot.slane %v9475_v47, 6  ;;  %v11418_v47 = vld [vmem:[#allocation117_spill] sm:$0xff] }
 0x799   :  { %v5223_v32 = vmul.f32 -1.442695, %v2374_v40 }
 0x79a   :  { %v5224_v43 = vmul.f32 -1.442695, %v2375_v34  ;;  %v5225_v26 = vmul.f32 -1.442695, %v2377_v4  ;;  %v11419_v4 = vld [vmem:[#allocation118_spill] sm:$0xff] }
 0x79b   :  { %8142 = vpow2.f32 %v5223_v32 }
 0x79c   :  { %8144 = vpow2.f32 %v5224_v43 }
 0x79d   :  { %8146 = vpow2.f32 %v5225_v26 }
 0x79e   :  { %8148 = vtanh.f32 %v2376_v25 }
 0x7a0   :  { %v8141_v54 = vpop.eup %8140 }
 0x7a1   :  { %v2214_v3 = vmul.f32 %v8141_v54, %v8139_v38  ;;  %v11420_v38 = vld [vmem:[#allocation119_spill] sm:$0xff]  ;;  %v11422_v54 = vld [vmem:[#allocation121_spill] sm:$0xff] }
 0x7a3   :  { %2215 = vst [vmem:[#allocation3 + $0x4] sm:$0x3] %v2214_v3 }
 0x7a5   :  { %v8143_v18 = vpop.eup %8142 }
 0x7a6   :  { %v8145_v53 = vpop.eup %8144  ;;  %v2381_v52 = vadd.f32 1.0, %v8143_v18  ;;  %v11425_v18 = vld [vmem:[#allocation124_spill] sm:$0xff] }
 0x7a7   :  { %v2387_v10 = vadd.f32 1.0, %v8145_v53  ;;  %v8147_v32 = vpop.eup %8146 }
 0x7a8   :  { %8150 = vrcp.f32 %v2381_v52  ;;  %v8149_v34 = vpop.eup %8148  ;;  %v2394_v30 = vadd.f32 1.0, %v8147_v32  ;;  %v11426_v52 = vld [vmem:[#allocation125_spill] sm:$0xff]  ;;  %v11428_v32 = vld [vmem:[#allocation127_spill] sm:$0xff] }
 0x7a9   :  { %8152 = vrcp.f32 %v2387_v10  ;;  %v11427_v10 = vld [vmem:[#allocation126_spill] sm:$0xff] }
 0x7aa   :  { %8154 = vrcp.f32 %v2394_v30  ;;  %v11434_v30 = vld [vmem:[#allocation133_spill] sm:$0xff] }
 0x7b2   :  { %v8151_v31 = vpop.eup %8150 }
 0x7b3   :  { %v8153_v39 = vpop.eup %8152  ;;  %v2401_v40 = vmul.f32 %v8151_v31, %v8149_v34  ;;  %v11429_v34 = vld [vmem:[#allocation128_spill] sm:$0xff]  ;;  %v11430_v31 = vld [vmem:[#allocation129_spill] sm:$0xff] }
 0x7b4   :  { %v2400_v43 = vmul.f32 %v8153_v39, %v2398_v42  ;;  %v8155_v48 = vpop.eup %8154  ;;  %v11431_v42 = vld [vmem:[#allocation130_spill] sm:$0xff]  ;;  %v11432_v39 = vld [vmem:[#allocation131_spill] sm:$0xff] }
 0x7b6   :  { %v9663_v55 = vadd.f32 %v2401_v40, %v2400_v43  ;;  %v11433_v40 = vld [vmem:[#allocation132_spill] sm:$0xff]  ;;  %v11435_v43 = vld [vmem:[#allocation134_spill] sm:$0xff] }
 0x7b8   :  { %8156 = vtanh.f32 %v9663_v55 }
 0x7c2   :  { %v8157_v26 = vpop.eup %8156 }
 0x7c3   :  { %v2404_v25 = vmul.f32 %v8157_v26, %v8155_v48  ;;  %v11436_v48 = vld [vmem:[#allocation135_spill] sm:$0xff]  ;;  %v11437_v26 = vld [vmem:[#allocation136_spill] sm:$0xff] }
 0x7c5   :  { %v9666_v53 = vrot.slane %v2404_v25, 6  ;;  %v11438_v25 = vld [vmem:[#allocation137_spill] sm:$0xff] }
 0x7c7   :  { %2477 = vmatmul.mubr.f32.vlgmr.msra.gmra.mrb[24].mxu0 %v9666_v53  ;;  %2548 = vmatmul.mubr.f32.vlgmr.msra.gmra.mrb[24].mxu1 %v9666_v53 }
 0x7c8   :  { %2642 = vmatprep.mubr.f32.mxu0 %v2214_v3  ;;  %2713 = vmatprep.mubr.f32.mxu1 %v2214_v3  ;;  %v11423_v3 = vld [vmem:[#allocation122_spill] sm:$0xff] }
 0x7c9   :  { %6529 = vmatpush1.bf16.msra.mxu0 %v11157_v17  ;;  %6593 = vmatpush1.bf16.msra.mxu1 %v11158_v9 }
 0x7ca   :  { %6531 = vmatprep.subr.bf16.mxu0 %v11159_v27  ;;  %6595 = vmatprep.subr.bf16.mxu1 %v11160_v11 }
 0x7cd   :  { %6533 = vmatpush1.bf16.msra.mxu0 %v11161_v0  ;;  %6597 = vmatpush1.bf16.msra.mxu1 %v11162_v12 }
 0x7ce   :  { %6535 = vmatprep.subr.bf16.mxu0 %v8961_v49  ;;  %6599 = vmatprep.subr.bf16.mxu1 %v8963_v2 }
 0x7d1   :  { %6537 = vmatpush1.bf16.msra.mxu0 %v8967_v51  ;;  %6601 = vmatpush1.bf16.msra.mxu1 %v8969_v21 }
 0x7d2   :  { %6539 = vmatprep.subr.bf16.mxu0 %v11287_v22  ;;  %6603 = vmatprep.subr.bf16.mxu1 %v11288_v16 }
 0x7d5   :  { %6541 = vmatpush1.bf16.msra.mxu0 %v11289_v13  ;;  %6605 = vmatpush1.bf16.msra.mxu1 %v11290_v60 }
 0x7d6   :  { %6543 = vmatprep.subr.bf16.mxu0 %v11291_v6  ;;  %6607 = vmatprep.subr.bf16.mxu1 %v11418_v47 }
 0x7d9   :  { %6545 = vmatpush1.bf16.msra.mxu0 %v11419_v4  ;;  %6609 = vmatpush1.bf16.msra.mxu1 %v11420_v38 }
 0x7da   :  { %6547 = vmatprep.subr.bf16.mxu0 %v11421_v36  ;;  %6611 = vmatprep.subr.bf16.mxu1 %v11422_v54 }
 0x7dd   :  { %6549 = vmatpush1.bf16.msra.mxu0 %v11423_v3  ;;  %6613 = vmatpush1.bf16.msra.mxu1 %v11424_v44 }
 0x7de   :  { %6551 = vmatprep.subr.bf16.mxu0 %v11425_v18  ;;  %6615 = vmatprep.subr.bf16.mxu1 %v11426_v52 }
 0x7e1   :  { %6553 = vmatpush1.bf16.msra.mxu0 %v11427_v10  ;;  %6617 = vmatpush1.bf16.msra.mxu1 %v11428_v32  ;;  %v11439_v32 = vld [vmem:[#allocation138_spill] sm:$0xff]  ;;  %v11467_v10 = vld [vmem:[#allocation164_spill] sm:$0xff] }
 0x7e2   :  { %6555 = vmatprep.subr.bf16.mxu0 %v11429_v34  ;;  %6619 = vmatprep.subr.bf16.mxu1 %v11430_v31  ;;  %v11440_v34 = vld [vmem:[#allocation139_spill] sm:$0xff]  ;;  %v11441_v31 = vld [vmem:[#allocation140_spill] sm:$0xff] }
 0x7e5   :  { %6557 = vmatpush1.bf16.msra.mxu0 %v11431_v42  ;;  %6621 = vmatpush1.bf16.msra.mxu1 %v11432_v39  ;;  %v11442_v42 = vld [vmem:[#allocation141_spill] sm:$0xff]  ;;  %v11443_v39 = vld [vmem:[#allocation142_spill] sm:$0xff] }
 0x7e6   :  { %6559 = vmatprep.subr.bf16.mxu0 %v11433_v40  ;;  %6623 = vmatprep.subr.bf16.mxu1 %v11434_v30  ;;  %v11444_v40 = vld [vmem:[#allocation143_spill] sm:$0xff]  ;;  %v11445_v30 = vld [vmem:[#allocation144_spill] sm:$0xff] }
 0x7e9   :  { %6561 = vmatpush1.bf16.msra.mxu0 %v11435_v43  ;;  %6625 = vmatpush1.bf16.msra.mxu1 %v11436_v48  ;;  %v11446_v43 = vld [vmem:[#allocation145_spill] sm:$0xff]  ;;  %v11447_v48 = vld [vmem:[#allocation146_spill] sm:$0xff] }
 0x7ea   :  { %6563 = vmatprep.subr.bf16.mxu0 %v11437_v26  ;;  %6627 = vmatprep.subr.bf16.mxu1 %v11438_v25  ;;  %v11448_v26 = vld [vmem:[#allocation147_spill] sm:$0xff]  ;;  %v11449_v25 = vld [vmem:[#allocation148_spill] sm:$0xff] }
 0x7ed   :  { %6565 = vmatpush1.bf16.msra.mxu0 %v11439_v32  ;;  %6629 = vmatpush1.bf16.msra.mxu1 %v11440_v34  ;;  %v11450_v32 = vld [vmem:[#allocation149_spill] sm:$0xff]  ;;  %v11451_v34 = vld [vmem:[#allocation150_spill] sm:$0xff] }
 0x7ee   :  { %6567 = vmatprep.subr.bf16.mxu0 %v11441_v31  ;;  %6631 = vmatprep.subr.bf16.mxu1 %v11442_v42  ;;  %v11452_v31 = vld [vmem:[#allocation151_spill] sm:$0xff]  ;;  %v11453_v42 = vld [vmem:[#allocation152_spill] sm:$0xff] }
 0x7f1   :  { %6569 = vmatpush1.bf16.msra.mxu0 %v11443_v39  ;;  %6633 = vmatpush1.bf16.msra.mxu1 %v11444_v40  ;;  %v11454_v39 = vld [vmem:[#allocation153_spill] sm:$0xff]  ;;  %v11455_v40 = vld [vmem:[#allocation154_spill] sm:$0xff] }
 0x7f2   :  { %6571 = vmatprep.subr.bf16.mxu0 %v11445_v30  ;;  %6635 = vmatprep.subr.bf16.mxu1 %v11446_v43  ;;  %v11456_v30 = vld [vmem:[#allocation155_spill] sm:$0xff]  ;;  %v11457_v43 = vld [vmem:[#allocation156_spill] sm:$0xff] }
 0x7f5   :  { %6573 = vmatpush1.bf16.msra.mxu0 %v11447_v48  ;;  %6637 = vmatpush1.bf16.msra.mxu1 %v11448_v26  ;;  %v11458_v48 = vld [vmem:[#allocation157_spill] sm:$0xff]  ;;  %v11459_v26 = vld [vmem:[#allocation158_spill] sm:$0xff] }
 0x7f6   :  { %6575 = vmatprep.subr.bf16.mxu0 %v11449_v25  ;;  %6639 = vmatprep.subr.bf16.mxu1 %v11450_v32  ;;  %v11460_v25 = vld [vmem:[#allocation159_spill] sm:$0xff]  ;;  %v11461_v32 = vld [vmem:[#allocation160_spill] sm:$0xff] }
 0x7f9   :  { %6577 = vmatpush1.bf16.msra.mxu0 %v11451_v34  ;;  %6641 = vmatpush1.bf16.msra.mxu1 %v11452_v31  ;;  %v11462_v34 = vld [vmem:[#allocation161_spill] sm:$0xff]  ;;  %v11463_v31 = vld [vmem:[#allocation162_spill] sm:$0xff] }
 0x7fa   :  { %6579 = vmatprep.subr.bf16.mxu0 %v11453_v42  ;;  %6643 = vmatprep.subr.bf16.mxu1 %v11454_v39  ;;  %v11464_v42 = vld [vmem:[#allocation163_spill] sm:$0xff]  ;;  %v11465_v39 = vld [vmem:[#allocation16_spill] sm:$0xff] }
 0x7fd   :  { %6581 = vmatpush1.bf16.msra.mxu0 %v11455_v40  ;;  %6645 = vmatpush1.bf16.msra.mxu1 %v11456_v30  ;;  %v11466_v40 = vld [vmem:[#allocation17_spill] sm:$0xff] }
 0x7fe   :  { %6583 = vmatprep.subr.bf16.mxu0 %v11457_v43  ;;  %6647 = vmatprep.subr.bf16.mxu1 %v11458_v48 }
 0x801   :  { %6585 = vmatpush1.bf16.msra.mxu0 %v11459_v26  ;;  %6649 = vmatpush1.bf16.msra.mxu1 %v11460_v25 }
 0x802   :  { %6587 = vmatprep.subr.bf16.mxu0 %v11461_v32  ;;  %6651 = vmatprep.subr.bf16.mxu1 %v11462_v34 }
 0x805   :  { %6589 = vmatpush1.bf16.msra.mxu0 %v11463_v31  ;;  %6653 = vmatpush1.bf16.msra.mxu1 %v11464_v42 }
 0x806   :  { %6655 = vmatprep.subr.bf16.mxu0 %v11465_v39  ;;  %6687 = vmatprep.subr.bf16.mxu1 %v11466_v40 }
 0x89a   :  { %v2478_v30 = vpop.f32.mrb[24].mxu0  ;;  %v2549_v43 = vpop.f32.mrb[24].mxu1 }
 0x89b   :  { %v2479_v48 = vadd.f32 %v2478_v30, %v11467_v10  ;;  %v2480_v52 = vpop.f32.mrb[25].mxu0  ;;  %v2551_v26 = vpop.f32.mrb[25].mxu1  ;;  %v2550_v42 = vadd.f32 %v2549_v43, %v9152_v63  ;;  %v11474_v43 = vld [vmem:[#allocation36_spill] sm:$0xff] }
 0x89c   :  { %v2481_v25 = vadd.f32 %v2480_v52, %v9143_v1  ;;  %v2552_v31 = vadd.f32 %v2551_v26, %v11215_v59 }
 0x89d   :  { %v5226_v18 = vmul.f32 -1.442695, %v2479_v48 }
 0x89e   :  { %v5227_v32 = vmul.f32 -1.442695, %v2481_v25  ;;  %v5228_v34 = vmul.f32 -1.442695, %v2552_v31 }
 0x89f   :  { %8158 = vpow2.f32 %v5226_v18 }
 0x8a0   :  { %8160 = vpow2.f32 %v5227_v32 }
 0x8a1   :  { %8162 = vpow2.f32 %v5228_v34 }
 0x8a2   :  { %8164 = vtanh.f32 %v2550_v42  ;;  %v11472_v42 = vld [vmem:[#allocation34_spill] sm:$0xff] }
 0x8a9   :  { %v8159_v39 = vpop.eup %8158 }
 0x8aa   :  { %v8161_v44 = vpop.eup %8160  ;;  %v2557_v40 = vadd.f32 1.0, %v8159_v39 }
 0x8ab   :  { %v2563_v3 = vadd.f32 1.0, %v8161_v44  ;;  %v8163_v30 = vpop.eup %8162  ;;  %v11470_v44 = vld [vmem:[#allocation32_spill] sm:$0xff] }
 0x8ac   :  { %8166 = vrcp.f32 %v2557_v40  ;;  %v8165_v10 = vpop.eup %8164  ;;  %v2570_v18 = vadd.f32 1.0, %v8163_v30  ;;  %v11473_v40 = vld [vmem:[#allocation35_spill] sm:$0xff]  ;;  %v11475_v30 = vld [vmem:[#allocation37_spill] sm:$0xff] }
 0x8ad   :  { %8168 = vrcp.f32 %v2563_v3  ;;  %v11469_v3 = vld [vmem:[#allocation31_spill] sm:$0xff] }
 0x8ae   :  { %8170 = vrcp.f32 %v2570_v18  ;;  %v11479_v18 = vld [vmem:[#allocation41_spill] sm:$0xff] }
 0x8b6   :  { %v8167_v52 = vpop.eup %8166 }
 0x8b7   :  { %v8169_v48 = vpop.eup %8168  ;;  %v2574_v25 = vmul.f32 %v8167_v52, %v8165_v10  ;;  %v11471_v10 = vld [vmem:[#allocation33_spill] sm:$0xff]  ;;  %v11476_v52 = vld [vmem:[#allocation38_spill] sm:$0xff] }
 0x8b8   :  { %v2573_v32 = vmul.f32 %v8169_v48, %v9551_v61  ;;  %v8171_v31 = vpop.eup %8170  ;;  %v11468_v61 = vld [vmem:[#allocation30_spill] sm:$0xff]  ;;  %v11477_v48 = vld [vmem:[#allocation39_spill] sm:$0xff] }
 0x8ba   :  { %v9739_v26 = vadd.f32 %v2574_v25, %v2573_v32  ;;  %v11478_v25 = vld [vmem:[#allocation40_spill] sm:$0xff]  ;;  %v11480_v32 = vld [vmem:[#allocation42_spill] sm:$0xff] }
 0x8bc   :  { %8172 = vtanh.f32 %v9739_v26 }
 0x8c6   :  { %v8173_v39 = vpop.eup %8172 }
 0x8c7   :  { %v2577_v34 = vmul.f32 %v8173_v39, %v8171_v31  ;;  %v11481_v31 = vld [vmem:[#allocation43_spill] sm:$0xff]  ;;  %v11482_v39 = vld [vmem:[#allocation44_spill] sm:$0xff] }
 0x8c9   :  { %2643 = vmatmul.mubr.f32.vlgmr.msra.gmra.mrb[26].mxu0 %v2577_v34  ;;  %2714 = vmatmul.mubr.f32.vlgmr.msra.gmra.mrb[26].mxu1 %v2577_v34 }
 0x8ca   :  { %6657 = vmatpush1.bf16.msra.mxu0 %v8615_v15  ;;  %6689 = vmatpush1.bf16.msra.mxu1 %v8621_v19 }
 0x8cb   :  { %6659 = vmatprep.subr.bf16.mxu0 %v8623_v20  ;;  %6691 = vmatprep.subr.bf16.mxu1 %v8626_v24 }
 0x8cc   :  { %2813 = vmatprep.mubr.f32.mxu0 %v11089_v35  ;;  %2884 = vmatprep.mubr.f32.mxu1 %v11089_v35 }
 0x8ce   :  { %6661 = vmatpush1.bf16.msra.mxu0 %v8630_v28  ;;  %6693 = vmatpush1.bf16.msra.mxu1 %v8632_v29 }
 0x8cf   :  { %6663 = vmatprep.subr.bf16.mxu0 %v8635_v33  ;;  %6695 = vmatprep.subr.bf16.mxu1 %v8637_v37 }
 0x8d2   :  { %6665 = vmatpush1.bf16.msra.mxu0 %v8640_v41  ;;  %6697 = vmatpush1.bf16.msra.mxu1 %v8644_v45 }
 0x8d3   :  { %6667 = vmatprep.subr.bf16.mxu0 %v8646_v46  ;;  %6699 = vmatprep.subr.bf16.mxu1 %v8649_v50 }
 0x8d6   :  { %6669 = vmatpush1.bf16.msra.mxu0 %v8652_v56  ;;  %6701 = vmatpush1.bf16.msra.mxu1 %v8656_v57 }
 0x8d7   :  { %6671 = vmatprep.subr.bf16.mxu0 %v8658_v58  ;;  %6703 = vmatprep.subr.bf16.mxu1 %v8661_v62 }
 0x8da   :  { %6673 = vmatpush1.bf16.msra.mxu0 %v8664_v5  ;;  %6705 = vmatpush1.bf16.msra.mxu1 %v8668_v7 }
 0x8db   :  { %6675 = vmatprep.subr.bf16.mxu0 %v8670_v8  ;;  %6707 = vmatprep.subr.bf16.mxu1 %v8673_v14 }
 0x8de   :  { %6677 = vmatpush1.bf16.msra.mxu0 %v8681_v23  ;;  %6709 = vmatpush1.bf16.msra.mxu1 %v11468_v61 }
 0x8df   :  { %6679 = vmatprep.subr.bf16.mxu0 %v11469_v3  ;;  %6711 = vmatprep.subr.bf16.mxu1 %v11470_v44 }
 0x8e2   :  { %6681 = vmatpush1.bf16.msra.mxu0 %v11471_v10  ;;  %6713 = vmatpush1.bf16.msra.mxu1 %v11472_v42  ;;  %v11544_v10 = vld [vmem:[#allocation167_spill] sm:$0xff] }
 0x8e3   :  { %6683 = vmatprep.subr.bf16.mxu0 %v11473_v40  ;;  %6715 = vmatprep.subr.bf16.mxu1 %v11474_v43  ;;  %v11487_v43 = vld [vmem:[#allocation49_spill] sm:$0xff]  ;;  %v11543_v40 = vld [vmem:[#allocation166_spill] sm:$0xff] }
 0x8e6   :  { %6685 = vmatpush1.bf16.msra.mxu0 %v11475_v30  ;;  %6717 = vmatpush1.bf16.msra.mxu1 %v11476_v52  ;;  %v11483_v30 = vld [vmem:[#allocation45_spill] sm:$0xff]  ;;  %v11484_v52 = vld [vmem:[#allocation46_spill] sm:$0xff] }
 0x8e7   :  { %6719 = vmatprep.subr.bf16.mxu0 %v11477_v48  ;;  %6783 = vmatprep.subr.bf16.mxu1 %v11478_v25  ;;  %v11485_v48 = vld [vmem:[#allocation47_spill] sm:$0xff]  ;;  %v11486_v25 = vld [vmem:[#allocation48_spill] sm:$0xff] }
 0x8e9   :  { %2814 = vmatmul.mubr.f32.vlgmr.msra.gmra.mrb[28].mxu0 %v9666_v53  ;;  %2885 = vmatmul.mubr.f32.vlgmr.msra.gmra.mrb[28].mxu1 %v9666_v53  ;;  %v11488_v53 = vld [vmem:[#allocation50_spill] sm:$0xff] }
 0x8ea   :  { %2986 = vmatprep.mubr.f32.mxu0 %v2577_v34  ;;  %3057 = vmatprep.mubr.f32.mxu1 %v2577_v34  ;;  %v11489_v34 = vld [vmem:[#allocation51_spill] sm:$0xff] }
 0x8eb   :  { %6721 = vmatpush1.bf16.msra.mxu0 %v11479_v18  ;;  %6785 = vmatpush1.bf16.msra.mxu1 %v11480_v32  ;;  %v11490_v18 = vld [vmem:[#allocation52_spill] sm:$0xff]  ;;  %v11491_v32 = vld [vmem:[#allocation53_spill] sm:$0xff] }
 0x8ec   :  { %6723 = vmatprep.subr.bf16.mxu0 %v11481_v31  ;;  %6787 = vmatprep.subr.bf16.mxu1 %v11482_v39  ;;  %v11492_v31 = vld [vmem:[#allocation54_spill] sm:$0xff]  ;;  %v11493_v39 = vld [vmem:[#allocation55_spill] sm:$0xff] }
 0x8ef   :  { %6725 = vmatpush1.bf16.msra.mxu0 %v11483_v30  ;;  %6789 = vmatpush1.bf16.msra.mxu1 %v11484_v52  ;;  %v11494_v30 = vld [vmem:[#allocation56_spill] sm:$0xff]  ;;  %v11495_v52 = vld [vmem:[#allocation57_spill] sm:$0xff] }
 0x8f0   :  { %6727 = vmatprep.subr.bf16.mxu0 %v11485_v48  ;;  %6791 = vmatprep.subr.bf16.mxu1 %v11486_v25  ;;  %v11496_v48 = vld [vmem:[#allocation58_spill] sm:$0xff]  ;;  %v11497_v25 = vld [vmem:[#allocation59_spill] sm:$0xff] }
 0x8f3   :  { %6729 = vmatpush1.bf16.msra.mxu0 %v11487_v43  ;;  %6793 = vmatpush1.bf16.msra.mxu1 %v11488_v53  ;;  %v11498_v43 = vld [vmem:[#allocation60_spill] sm:$0xff]  ;;  %v11499_v53 = vld [vmem:[#allocation61_spill] sm:$0xff] }
 0x8f4   :  { %6731 = vmatprep.subr.bf16.mxu0 %v11489_v34  ;;  %6795 = vmatprep.subr.bf16.mxu1 %v11490_v18  ;;  %v11500_v34 = vld [vmem:[#allocation62_spill] sm:$0xff]  ;;  %v11501_v18 = vld [vmem:[#allocation63_spill] sm:$0xff] }
 0x8f7   :  { %6733 = vmatpush1.bf16.msra.mxu0 %v11491_v32  ;;  %6797 = vmatpush1.bf16.msra.mxu1 %v11492_v31  ;;  %v11502_v32 = vld [vmem:[#allocation64_spill] sm:$0xff]  ;;  %v11503_v31 = vld [vmem:[#allocation65_spill] sm:$0xff] }
 0x8f8   :  { %6735 = vmatprep.subr.bf16.mxu0 %v11493_v39  ;;  %6799 = vmatprep.subr.bf16.mxu1 %v11494_v30  ;;  %v11504_v39 = vld [vmem:[#allocation66_spill] sm:$0xff]  ;;  %v11505_v30 = vld [vmem:[#allocation67_spill] sm:$0xff] }
 0x8fb   :  { %6737 = vmatpush1.bf16.msra.mxu0 %v11495_v52  ;;  %6801 = vmatpush1.bf16.msra.mxu1 %v11496_v48  ;;  %v11506_v52 = vld [vmem:[#allocation68_spill] sm:$0xff]  ;;  %v11507_v48 = vld [vmem:[#allocation69_spill] sm:$0xff] }
 0x8fc   :  { %6739 = vmatprep.subr.bf16.mxu0 %v11497_v25  ;;  %6803 = vmatprep.subr.bf16.mxu1 %v11498_v43  ;;  %v11508_v25 = vld [vmem:[#allocation70_spill] sm:$0xff]  ;;  %v11509_v43 = vld [vmem:[#allocation71_spill] sm:$0xff] }
 0x8ff   :  { %6741 = vmatpush1.bf16.msra.mxu0 %v11499_v53  ;;  %6805 = vmatpush1.bf16.msra.mxu1 %v11500_v34  ;;  %v11510_v53 = vld [vmem:[#allocation72_spill] sm:$0xff]  ;;  %v11511_v34 = vld [vmem:[#allocation73_spill] sm:$0xff] }
 0x900   :  { %6743 = vmatprep.subr.bf16.mxu0 %v11501_v18  ;;  %6807 = vmatprep.subr.bf16.mxu1 %v11502_v32  ;;  %v11512_v18 = vld [vmem:[#allocation74_spill] sm:$0xff]  ;;  %v11513_v32 = vld [vmem:[#allocation75_spill] sm:$0xff] }
 0x903   :  { %6745 = vmatpush1.bf16.msra.mxu0 %v11503_v31  ;;  %6809 = vmatpush1.bf16.msra.mxu1 %v11504_v39  ;;  %v11514_v31 = vld [vmem:[#allocation76_spill] sm:$0xff]  ;;  %v11515_v39 = vld [vmem:[#allocation77_spill] sm:$0xff] }
 0x904   :  { %6747 = vmatprep.subr.bf16.mxu0 %v11505_v30  ;;  %6811 = vmatprep.subr.bf16.mxu1 %v11506_v52  ;;  %v11516_v30 = vld [vmem:[#allocation78_spill] sm:$0xff]  ;;  %v11517_v52 = vld [vmem:[#allocation79_spill] sm:$0xff] }
 0x907   :  { %6749 = vmatpush1.bf16.msra.mxu0 %v11507_v48  ;;  %6813 = vmatpush1.bf16.msra.mxu1 %v11508_v25  ;;  %v11518_v48 = vld [vmem:[#allocation80_spill] sm:$0xff]  ;;  %v11519_v25 = vld [vmem:[#allocation81_spill] sm:$0xff] }
 0x908   :  { %6751 = vmatprep.subr.bf16.mxu0 %v11509_v43  ;;  %6815 = vmatprep.subr.bf16.mxu1 %v11510_v53  ;;  %v11520_v43 = vld [vmem:[#allocation82_spill] sm:$0xff]  ;;  %v11521_v53 = vld [vmem:[#allocation83_spill] sm:$0xff] }
 0x90b   :  { %6753 = vmatpush1.bf16.msra.mxu0 %v11511_v34  ;;  %6817 = vmatpush1.bf16.msra.mxu1 %v11512_v18  ;;  %v11522_v34 = vld [vmem:[#allocation84_spill] sm:$0xff]  ;;  %v11523_v18 = vld [vmem:[#allocation85_spill] sm:$0xff] }
 0x90c   :  { %6755 = vmatprep.subr.bf16.mxu0 %v11513_v32  ;;  %6819 = vmatprep.subr.bf16.mxu1 %v11514_v31  ;;  %v11524_v32 = vld [vmem:[#allocation86_spill] sm:$0xff]  ;;  %v11525_v31 = vld [vmem:[#allocation87_spill] sm:$0xff] }
 0x90f   :  { %6757 = vmatpush1.bf16.msra.mxu0 %v11515_v39  ;;  %6821 = vmatpush1.bf16.msra.mxu1 %v11516_v30  ;;  %v11526_v39 = vld [vmem:[#allocation88_spill] sm:$0xff]  ;;  %v11527_v30 = vld [vmem:[#allocation89_spill] sm:$0xff] }
 0x910   :  { %6759 = vmatprep.subr.bf16.mxu0 %v11517_v52  ;;  %6823 = vmatprep.subr.bf16.mxu1 %v11518_v48  ;;  %v11528_v52 = vld [vmem:[#allocation90_spill] sm:$0xff]  ;;  %v11529_v48 = vld [vmem:[#allocation91_spill] sm:$0xff] }
 0x913   :  { %6761 = vmatpush1.bf16.msra.mxu0 %v11519_v25  ;;  %6825 = vmatpush1.bf16.msra.mxu1 %v11520_v43  ;;  %v11530_v25 = vld [vmem:[#allocation92_spill] sm:$0xff]  ;;  %v11531_v43 = vld [vmem:[#allocation93_spill] sm:$0xff] }
 0x914   :  { %6763 = vmatprep.subr.bf16.mxu0 %v11521_v53  ;;  %6827 = vmatprep.subr.bf16.mxu1 %v11522_v34  ;;  %v11532_v53 = vld [vmem:[#allocation94_spill] sm:$0xff]  ;;  %v11533_v34 = vld [vmem:[#allocation95_spill] sm:$0xff] }
 0x917   :  { %6765 = vmatpush1.bf16.msra.mxu0 %v11523_v18  ;;  %6829 = vmatpush1.bf16.msra.mxu1 %v11524_v32  ;;  %v11534_v18 = vld [vmem:[#allocation96_spill] sm:$0xff]  ;;  %v11535_v32 = vld [vmem:[#allocation97_spill] sm:$0xff] }
 0x918   :  { %6767 = vmatprep.subr.bf16.mxu0 %v11525_v31  ;;  %6831 = vmatprep.subr.bf16.mxu1 %v11526_v39  ;;  %v11536_v31 = vld [vmem:[#allocation98_spill] sm:$0xff]  ;;  %v11537_v39 = vld [vmem:[#allocation99_spill] sm:$0xff] }
 0x91b   :  { %6769 = vmatpush1.bf16.msra.mxu0 %v11527_v30  ;;  %6833 = vmatpush1.bf16.msra.mxu1 %v11528_v52  ;;  %v11538_v30 = vld [vmem:[#allocation100_spill] sm:$0xff]  ;;  %v11539_v52 = vld [vmem:[#allocation101_spill] sm:$0xff] }
 0x91c   :  { %6771 = vmatprep.subr.bf16.mxu0 %v11529_v48  ;;  %6835 = vmatprep.subr.bf16.mxu1 %v11530_v25  ;;  %v11540_v48 = vld [vmem:[#allocation102_spill] sm:$0xff]  ;;  %v11541_v25 = vld [vmem:[#allocation103_spill] sm:$0xff] }
 0x91f   :  { %6773 = vmatpush1.bf16.msra.mxu0 %v11531_v43  ;;  %6837 = vmatpush1.bf16.msra.mxu1 %v11532_v53  ;;  %v11542_v43 = vld [vmem:[#allocation104_spill] sm:$0xff] }
 0x920   :  { %6775 = vmatprep.subr.bf16.mxu0 %v11533_v34  ;;  %6839 = vmatprep.subr.bf16.mxu1 %v11534_v18 }
 0x923   :  { %6777 = vmatpush1.bf16.msra.mxu0 %v11535_v32  ;;  %6841 = vmatpush1.bf16.msra.mxu1 %v11536_v31 }
 0x924   :  { %6779 = vmatprep.subr.bf16.mxu0 %v11537_v39  ;;  %6843 = vmatprep.subr.bf16.mxu1 %v11538_v30  ;;  %v11545_v30 = vld [vmem:[#allocation168_spill] sm:$0xff] }
 0x927   :  { %6781 = vmatpush1.bf16.msra.mxu0 %v11539_v52  ;;  %6845 = vmatpush1.bf16.msra.mxu1 %v11540_v48  ;;  %v11546_v48 = vld [vmem:[#allocation169_spill] sm:$0xff] }
 0x928   :  { %6847 = vmatprep.subr.bf16.mxu0 %v11541_v25  ;;  %6911 = vmatprep.subr.bf16.mxu1 %v11542_v43 }
 0x99c   :  { %v2644_v53 = vpop.f32.mrb[26].mxu0  ;;  %v2715_v34 = vpop.f32.mrb[26].mxu1 }
 0x99d   :  { %v2645_v18 = vadd.f32 %v2644_v53, %v11543_v40  ;;  %v2646_v42 = vpop.f32.mrb[27].mxu0  ;;  %v2717_v32 = vpop.f32.mrb[27].mxu1  ;;  %v2716_v61 = vadd.f32 %v2715_v34, %v11546_v48 }
 0x99e   :  { %v2647_v31 = vadd.f32 %v2646_v42, %v11544_v10  ;;  %v2718_v52 = vadd.f32 %v2717_v32, %v11545_v30  ;;  %v2745_v32 = vld [vmem:[#allocation2 + $0x20] sm:$0x3] }
 0x99f   :  { %v5229_v44 = vmul.f32 -1.442695, %v2645_v18 }
 0x9a0   :  { %v5230_v39 = vmul.f32 -1.442695, %v2647_v31  ;;  %v5231_v3 = vmul.f32 -1.442695, %v2718_v52 }
 0x9a1   :  { %8174 = vpow2.f32 %v5229_v44 }
 0x9a2   :  { %8176 = vpow2.f32 %v5230_v39  ;;  %v11547_v39 = vld [vmem:[#allocation106_spill] sm:$0xff] }
 0x9a3   :  { %8178 = vpow2.f32 %v5231_v3  ;;  %v2746_v3 = vld [vmem:[#allocation2 + $0x28] sm:$0x3] }
 0x9a4   :  { %8180 = vtanh.f32 %v2716_v61 }
 0x9ab   :  { %v8175_v25 = vpop.eup %8174 }
 0x9ac   :  { %v8177_v23 = vpop.eup %8176  ;;  %v2723_v43 = vadd.f32 1.0, %v8175_v25 }
 0x9ad   :  { %v2729_v14 = vadd.f32 1.0, %v8177_v23  ;;  %v8179_v53 = vpop.eup %8178 }
 0x9ae   :  { %8182 = vrcp.f32 %v2723_v43  ;;  %v8181_v40 = vpop.eup %8180  ;;  %v2736_v44 = vadd.f32 1.0, %v8179_v53 }
 0x9af   :  { %8184 = vrcp.f32 %v2729_v14 }
 0x9b0   :  { %8186 = vrcp.f32 %v2736_v44 }
 0x9b8   :  { %v8183_v42 = vpop.eup %8182 }
 0x9b9   :  { %v8185_v18 = vpop.eup %8184  ;;  %v2740_v31 = vmul.f32 %v8183_v42, %v8181_v40  ;;  %v2748_v40 = vld [vmem:[#allocation2 + $0x38] sm:$0x3] }
 0x9ba   :  { %v2739_v10 = vmul.f32 %v8185_v18, %v11547_v39  ;;  %v8187_v42 = vpop.eup %8186  ;;  %v2747_v39 = vld [vmem:[#allocation2 + $0x30] sm:$0x3] }
 0x9bc   :  { %v2815_v52 = vpop.f32.mrb[28].mxu0  ;;  %v2886_v30 = vpop.f32.mrb[28].mxu1  ;;  %v9847_v34 = vadd.f32 %v2740_v31, %v2739_v10 }
 0x9bd   :  { %v2891_v25 = vadd.f32 %v2815_v52, %v2745_v32  ;;  %v2817_v61 = vpop.f32.mrb[29].mxu0  ;;  %v2888_v23 = vpop.f32.mrb[29].mxu1  ;;  %v2893_v10 = vadd.f32 %v2886_v30, %v2747_v39  ;;  %v11549_v39 = vld [vmem:[#allocation123_spill] sm:$0xff] }
 0x9be   :  { %v2892_v43 = vadd.f32 %v2817_v61, %v2746_v3  ;;  %8188 = vtanh.f32 %v9847_v34  ;;  %v2894_v53 = vadd.f32 %v2888_v23, %v2748_v40  ;;  %v2915_v23 = vrot.slane %v9663_v55, 6  ;;  %v11548_v55 = vld [vmem:[#allocation122_spill] sm:$0xff] }
 0x9bf   :  { %v5232_v14 = vmul.f32 -1.442695, %v2891_v25 }
 0x9c0   :  { %v5233_v48 = vmul.f32 -1.442695, %v2892_v43  ;;  %v5234_v8 = vmul.f32 -1.442695, %v2894_v53 }
 0x9c1   :  { %8190 = vpow2.f32 %v5232_v14 }
 0x9c2   :  { %8192 = vpow2.f32 %v5233_v48 }
 0x9c3   :  { %8194 = vpow2.f32 %v5234_v8 }
 0x9c4   :  { %8196 = vtanh.f32 %v2893_v10  ;;  %v11550_v10 = vld [vmem:[#allocation124_spill] sm:$0xff] }
 0x9c8   :  { %v8189_v18 = vpop.eup %8188 }
 0x9c9   :  { %v2743_v31 = vmul.f32 %v8189_v18, %v8187_v42 }
 0x9cb   :  { %v8191_v44 = vpop.eup %8190  ;;  %2744 = vst [vmem:[#allocation3 + $0x6] sm:$0x3] %v2743_v31 }
 0x9cc   :  { %v8193_v32 = vpop.eup %8192  ;;  %v2898_v52 = vadd.f32 1.0, %v8191_v44  ;;  %v11552_v44 = vld [vmem:[#allocation126_spill] sm:$0xff] }
 0x9cd   :  { %v2904_v3 = vadd.f32 1.0, %v8193_v32  ;;  %v8195_v25 = vpop.eup %8194  ;;  %v11553_v32 = vld [vmem:[#allocation127_spill] sm:$0xff] }
 0x9ce   :  { %8198 = vrcp.f32 %v2898_v52  ;;  %v8197_v61 = vpop.eup %8196  ;;  %v2911_v40 = vadd.f32 1.0, %v8195_v25  ;;  %v11554_v52 = vld [vmem:[#allocation128_spill] sm:$0xff]  ;;  %v11556_v25 = vld [vmem:[#allocation130_spill] sm:$0xff] }
 0x9cf   :  { %8200 = vrcp.f32 %v2904_v3  ;;  %v11555_v3 = vld [vmem:[#allocation129_spill] sm:$0xff] }
 0x9d0   :  { %8202 = vrcp.f32 %v2911_v40  ;;  %v11562_v40 = vld [vmem:[#allocation136_spill] sm:$0xff] }
 0x9d8   :  { %v8199_v48 = vpop.eup %8198 }
 0x9d9   :  { %v8201_v43 = vpop.eup %8200  ;;  %v2918_v14 = vmul.f32 %v8199_v48, %v8197_v61  ;;  %v11557_v61 = vld [vmem:[#allocation131_spill] sm:$0xff]  ;;  %v11558_v48 = vld [vmem:[#allocation132_spill] sm:$0xff] }
 0x9da   :  { %v2917_v53 = vmul.f32 %v8201_v43, %v2915_v23  ;;  %v8203_v42 = vpop.eup %8202  ;;  %v11559_v23 = vld [vmem:[#allocation133_spill] sm:$0xff]  ;;  %v11560_v43 = vld [vmem:[#allocation134_spill] sm:$0xff] }
 0x9dc   :  { %v9851_v30 = vadd.f32 %v2918_v14, %v2917_v53  ;;  %v11561_v14 = vld [vmem:[#allocation135_spill] sm:$0xff]  ;;  %v11563_v53 = vld [vmem:[#allocation137_spill] sm:$0xff] }
 0x9de   :  { %8204 = vtanh.f32 %v9851_v30 }
 0x9e8   :  { %v8205_v8 = vpop.eup %8204 }
 0x9e9   :  { %v9854_v18 = vmul.f32 %v8205_v8, %v8203_v42  ;;  %v11564_v42 = vld [vmem:[#allocation138_spill] sm:$0xff]  ;;  %v11565_v8 = vld [vmem:[#allocation139_spill] sm:$0xff] }
 0x9eb   :  { %2987 = vmatmul.mubr.f32.vlgmr.msra.gmra.mrb[30].mxu0 %v9854_v18  ;;  %3058 = vmatmul.mubr.f32.vlgmr.msra.gmra.mrb[30].mxu1 %v9854_v18 }
 0x9ec   :  { %3152 = vmatprep.mubr.f32.mxu0 %v2743_v31  ;;  %3223 = vmatprep.mubr.f32.mxu1 %v2743_v31  ;;  %v11551_v31 = vld [vmem:[#allocation125_spill] sm:$0xff] }
 0x9ed   :  { %6849 = vmatpush1.bf16.msra.mxu0 %v11157_v17  ;;  %6913 = vmatpush1.bf16.msra.mxu1 %v11158_v9 }
 0x9ee   :  { %6851 = vmatprep.subr.bf16.mxu0 %v11159_v27  ;;  %6915 = vmatprep.subr.bf16.mxu1 %v11160_v11 }
 0x9f1   :  { %6853 = vmatpush1.bf16.msra.mxu0 %v11161_v0  ;;  %6917 = vmatpush1.bf16.msra.mxu1 %v11162_v12 }
 0x9f2   :  { %6855 = vmatprep.subr.bf16.mxu0 %v8961_v49  ;;  %6919 = vmatprep.subr.bf16.mxu1 %v8963_v2 }
 0x9f5   :  { %6857 = vmatpush1.bf16.msra.mxu0 %v8967_v51  ;;  %6921 = vmatpush1.bf16.msra.mxu1 %v8969_v21 }
 0x9f6   :  { %6859 = vmatprep.subr.bf16.mxu0 %v11287_v22  ;;  %6923 = vmatprep.subr.bf16.mxu1 %v11288_v16 }
 0x9f9   :  { %6861 = vmatpush1.bf16.msra.mxu0 %v11289_v13  ;;  %6925 = vmatpush1.bf16.msra.mxu1 %v11290_v60 }
 0x9fa   :  { %6863 = vmatprep.subr.bf16.mxu0 %v11291_v6  ;;  %6927 = vmatprep.subr.bf16.mxu1 %v11418_v47 }
 0x9fd   :  { %6865 = vmatpush1.bf16.msra.mxu0 %v11419_v4  ;;  %6929 = vmatpush1.bf16.msra.mxu1 %v11420_v38 }
 0x9fe   :  { %6867 = vmatprep.subr.bf16.mxu0 %v11421_v36  ;;  %6931 = vmatprep.subr.bf16.mxu1 %v11422_v54 }
 0xa01   :  { %6869 = vmatpush1.bf16.msra.mxu0 %v11548_v55  ;;  %6933 = vmatpush1.bf16.msra.mxu1 %v11549_v39 }
 0xa02   :  { %6871 = vmatprep.subr.bf16.mxu0 %v11550_v10  ;;  %6935 = vmatprep.subr.bf16.mxu1 %v11551_v31 }
 0xa05   :  { %6873 = vmatpush1.bf16.msra.mxu0 %v11552_v44  ;;  %6937 = vmatpush1.bf16.msra.mxu1 %v11553_v32 }
 0xa06   :  { %6875 = vmatprep.subr.bf16.mxu0 %v11554_v52  ;;  %6939 = vmatprep.subr.bf16.mxu1 %v11555_v3  ;;  %v11566_v3 = vld [vmem:[#allocation140_spill] sm:$0xff] }
 0xa07   :  { %v11592_v52 = vld [vmem:[#allocation164_spill] sm:$0xff] }
 0xa09   :  { %6877 = vmatpush1.bf16.msra.mxu0 %v11556_v25  ;;  %6941 = vmatpush1.bf16.msra.mxu1 %v11557_v61  ;;  %v11567_v25 = vld [vmem:[#allocation141_spill] sm:$0xff]  ;;  %v11568_v61 = vld [vmem:[#allocation142_spill] sm:$0xff] }
 0xa0a   :  { %6879 = vmatprep.subr.bf16.mxu0 %v11558_v48  ;;  %6943 = vmatprep.subr.bf16.mxu1 %v11559_v23  ;;  %v11569_v48 = vld [vmem:[#allocation143_spill] sm:$0xff]  ;;  %v11570_v23 = vld [vmem:[#allocation144_spill] sm:$0xff] }
 0xa0d   :  { %6881 = vmatpush1.bf16.msra.mxu0 %v11560_v43  ;;  %6945 = vmatpush1.bf16.msra.mxu1 %v11561_v14  ;;  %v11571_v43 = vld [vmem:[#allocation145_spill] sm:$0xff]  ;;  %v11572_v14 = vld [vmem:[#allocation146_spill] sm:$0xff] }
 0xa0e   :  { %6883 = vmatprep.subr.bf16.mxu0 %v11562_v40  ;;  %6947 = vmatprep.subr.bf16.mxu1 %v11563_v53  ;;  %v11573_v40 = vld [vmem:[#allocation147_spill] sm:$0xff]  ;;  %v11574_v53 = vld [vmem:[#allocation148_spill] sm:$0xff] }
 0xa11   :  { %6885 = vmatpush1.bf16.msra.mxu0 %v11564_v42  ;;  %6949 = vmatpush1.bf16.msra.mxu1 %v11565_v8  ;;  %v11575_v42 = vld [vmem:[#allocation149_spill] sm:$0xff]  ;;  %v11576_v8 = vld [vmem:[#allocation150_spill] sm:$0xff] }
 0xa12   :  { %6887 = vmatprep.subr.bf16.mxu0 %v11566_v3  ;;  %6951 = vmatprep.subr.bf16.mxu1 %v11567_v25  ;;  %v11577_v3 = vld [vmem:[#allocation151_spill] sm:$0xff]  ;;  %v11578_v25 = vld [vmem:[#allocation152_spill] sm:$0xff] }
 0xa15   :  { %6889 = vmatpush1.bf16.msra.mxu0 %v11568_v61  ;;  %6953 = vmatpush1.bf16.msra.mxu1 %v11569_v48  ;;  %v11579_v61 = vld [vmem:[#allocation153_spill] sm:$0xff]  ;;  %v11580_v48 = vld [vmem:[#allocation154_spill] sm:$0xff] }
 0xa16   :  { %6891 = vmatprep.subr.bf16.mxu0 %v11570_v23  ;;  %6955 = vmatprep.subr.bf16.mxu1 %v11571_v43  ;;  %v11581_v23 = vld [vmem:[#allocation155_spill] sm:$0xff]  ;;  %v11582_v43 = vld [vmem:[#allocation156_spill] sm:$0xff] }
 0xa19   :  { %6893 = vmatpush1.bf16.msra.mxu0 %v11572_v14  ;;  %6957 = vmatpush1.bf16.msra.mxu1 %v11573_v40  ;;  %v11583_v14 = vld [vmem:[#allocation157_spill] sm:$0xff]  ;;  %v11584_v40 = vld [vmem:[#allocation158_spill] sm:$0xff] }
 0xa1a   :  { %6895 = vmatprep.subr.bf16.mxu0 %v11574_v53  ;;  %6959 = vmatprep.subr.bf16.mxu1 %v11575_v42  ;;  %v11585_v53 = vld [vmem:[#allocation159_spill] sm:$0xff]  ;;  %v11586_v42 = vld [vmem:[#allocation160_spill] sm:$0xff] }
 0xa1d   :  { %6897 = vmatpush1.bf16.msra.mxu0 %v11576_v8  ;;  %6961 = vmatpush1.bf16.msra.mxu1 %v11577_v3  ;;  %v11587_v8 = vld [vmem:[#allocation161_spill] sm:$0xff]  ;;  %v11588_v3 = vld [vmem:[#allocation162_spill] sm:$0xff] }
 0xa1e   :  { %6899 = vmatprep.subr.bf16.mxu0 %v11578_v25  ;;  %6963 = vmatprep.subr.bf16.mxu1 %v11579_v61  ;;  %v11589_v25 = vld [vmem:[#allocation163_spill] sm:$0xff]  ;;  %v11590_v61 = vld [vmem:[#allocation16_spill] sm:$0xff] }
 0xa21   :  { %6901 = vmatpush1.bf16.msra.mxu0 %v11580_v48  ;;  %6965 = vmatpush1.bf16.msra.mxu1 %v11581_v23  ;;  %v11591_v48 = vld [vmem:[#allocation17_spill] sm:$0xff] }
 0xa22   :  { %6903 = vmatprep.subr.bf16.mxu0 %v11582_v43  ;;  %6967 = vmatprep.subr.bf16.mxu1 %v11583_v14 }
 0xa25   :  { %6905 = vmatpush1.bf16.msra.mxu0 %v11584_v40  ;;  %6969 = vmatpush1.bf16.msra.mxu1 %v11585_v53 }
 0xa26   :  { %6907 = vmatprep.subr.bf16.mxu0 %v11586_v42  ;;  %6971 = vmatprep.subr.bf16.mxu1 %v11587_v8 }
 0xa29   :  { %6909 = vmatpush1.bf16.msra.mxu0 %v11588_v3  ;;  %6973 = vmatpush1.bf16.msra.mxu1 %v11589_v25 }
 0xa2a   :  { %6975 = vmatprep.subr.bf16.mxu0 %v11590_v61  ;;  %7007 = vmatprep.subr.bf16.mxu1 %v11591_v48 }
 0xabe   :  { %v2988_v23 = vpop.f32.mrb[30].mxu0  ;;  %v3059_v43 = vpop.f32.mrb[30].mxu1 }
 0xabf   :  { %v2989_v14 = vadd.f32 %v2988_v23, %v11592_v52  ;;  %v2990_v32 = vpop.f32.mrb[31].mxu0  ;;  %v3061_v40 = vpop.f32.mrb[31].mxu1  ;;  %v3060_v25 = vadd.f32 %v3059_v43, %v9152_v63 }
 0xac0   :  { %v2991_v53 = vadd.f32 %v2990_v32, %v9143_v1  ;;  %v3062_v3 = vadd.f32 %v3061_v40, %v11215_v59 }
 0xac1   :  { %v5235_v44 = vmul.f32 -1.442695, %v2989_v14 }
 0xac2   :  { %v5236_v42 = vmul.f32 -1.442695, %v2991_v53  ;;  %v5237_v8 = vmul.f32 -1.442695, %v3062_v3 }
 0xac3   :  { %8206 = vpow2.f32 %v5235_v44 }
 0xac4   :  { %8208 = vpow2.f32 %v5236_v42 }
 0xac5   :  { %8210 = vpow2.f32 %v5237_v8  ;;  %v11599_v8 = vld [vmem:[#allocation33_spill] sm:$0xff] }
 0xac6   :  { %8212 = vtanh.f32 %v3060_v25  ;;  %v11597_v25 = vld [vmem:[#allocation31_spill] sm:$0xff] }
 0xacd   :  { %v8207_v61 = vpop.eup %8206 }
 0xace   :  { %v8209_v31 = vpop.eup %8208  ;;  %v3067_v48 = vadd.f32 1.0, %v8207_v61 }
 0xacf   :  { %v3073_v10 = vadd.f32 1.0, %v8209_v31  ;;  %v8211_v23 = vpop.eup %8210  ;;  %v11595_v31 = vld [vmem:[#allocation29_spill] sm:$0xff] }
 0xad0   :  { %8214 = vrcp.f32 %v3067_v48  ;;  %v8213_v52 = vpop.eup %8212  ;;  %v3080_v44 = vadd.f32 1.0, %v8211_v23  ;;  %v11598_v48 = vld [vmem:[#allocation32_spill] sm:$0xff]  ;;  %v11600_v23 = vld [vmem:[#allocation34_spill] sm:$0xff] }
 0xad1   :  { %8216 = vrcp.f32 %v3073_v10  ;;  %v11594_v10 = vld [vmem:[#allocation28_spill] sm:$0xff] }
 0xad2   :  { %8218 = vrcp.f32 %v3080_v44  ;;  %v11603_v44 = vld [vmem:[#allocation37_spill] sm:$0xff] }
 0xada   :  { %v8215_v32 = vpop.eup %8214 }
 0xadb   :  { %v8217_v14 = vpop.eup %8216  ;;  %v3084_v53 = vmul.f32 %v8215_v32, %v8213_v52  ;;  %v11596_v52 = vld [vmem:[#allocation30_spill] sm:$0xff]  ;;  %v11601_v32 = vld [vmem:[#allocation35_spill] sm:$0xff] }
 0xadc   :  { %v3083_v42 = vmul.f32 %v8217_v14, %v9739_v26  ;;  %v8219_v3 = vpop.eup %8218  ;;  %v11593_v26 = vld [vmem:[#allocation27_spill] sm:$0xff]  ;;  %v11602_v14 = vld [vmem:[#allocation36_spill] sm:$0xff] }
 0xade   :  { %v9927_v40 = vadd.f32 %v3084_v53, %v3083_v42  ;;  %v11604_v42 = vld [vmem:[#allocation38_spill] sm:$0xff] }
 0xae0   :  { %8220 = vtanh.f32 %v9927_v40 }
 0xaea   :  { %v8221_v61 = vpop.eup %8220 }
 0xaeb   :  { %v3087_v43 = vmul.f32 %v8221_v61, %v8219_v3  ;;  %v11605_v3 = vld [vmem:[#allocation39_spill] sm:$0xff]  ;;  %v11606_v61 = vld [vmem:[#allocation40_spill] sm:$0xff] }
 0xaed   :  { %3153 = vmatmul.mubr.f32.vlgmr.msra.gmra.mrb[32].mxu0 %v3087_v43  ;;  %3224 = vmatmul.mubr.f32.vlgmr.msra.gmra.mrb[32].mxu1 %v3087_v43  ;;  %v3445_v53 = vrot.slane %v3087_v43, 6  ;;  %v11609_v43 = vld [vmem:[#allocation43_spill] sm:$0xff] }
 0xaee   :  { %6977 = vmatpush1.bf16.msra.mxu0 %v8615_v15  ;;  %7009 = vmatpush1.bf16.msra.mxu1 %v8621_v19 }
 0xaef   :  { %6979 = vmatprep.subr.bf16.mxu0 %v8623_v20  ;;  %7011 = vmatprep.subr.bf16.mxu1 %v8626_v24 }
 0xaf0   :  { %3323 = vmatprep.mubr.f32.mxu0 %v11089_v35  ;;  %3394 = vmatprep.mubr.f32.mxu1 %v11089_v35 }
 0xaf2   :  { %6981 = vmatpush1.bf16.msra.mxu0 %v8630_v28  ;;  %7013 = vmatpush1.bf16.msra.mxu1 %v8632_v29 }
 0xaf3   :  { %6983 = vmatprep.subr.bf16.mxu0 %v8635_v33  ;;  %7015 = vmatprep.subr.bf16.mxu1 %v8637_v37 }
 0xaf6   :  { %6985 = vmatpush1.bf16.msra.mxu0 %v8640_v41  ;;  %7017 = vmatpush1.bf16.msra.mxu1 %v8644_v45 }
 0xaf7   :  { %6987 = vmatprep.subr.bf16.mxu0 %v8646_v46  ;;  %7019 = vmatprep.subr.bf16.mxu1 %v8649_v50 }
 0xafa   :  { %6989 = vmatpush1.bf16.msra.mxu0 %v8652_v56  ;;  %7021 = vmatpush1.bf16.msra.mxu1 %v8656_v57 }
 0xafb   :  { %6991 = vmatprep.subr.bf16.mxu0 %v8658_v58  ;;  %7023 = vmatprep.subr.bf16.mxu1 %v8661_v62 }
 0xafe   :  { %6993 = vmatpush1.bf16.msra.mxu0 %v8664_v5  ;;  %7025 = vmatpush1.bf16.msra.mxu1 %v8668_v7 }
 0xaff   :  { %6995 = vmatprep.subr.bf16.mxu0 %v11593_v26  ;;  %7027 = vmatprep.subr.bf16.mxu1 %v11594_v10 }
 0xb02   :  { %6997 = vmatpush1.bf16.msra.mxu0 %v11595_v31  ;;  %7029 = vmatpush1.bf16.msra.mxu1 %v11596_v52  ;;  %v11672_v52 = vld [vmem:[#allocation167_spill] sm:$0xff] }
 0xb03   :  { %6999 = vmatprep.subr.bf16.mxu0 %v11597_v25  ;;  %7031 = vmatprep.subr.bf16.mxu1 %v11598_v48  ;;  %v3448_v25 = vrot.slane %v3445_v53, 2  ;;  %v11614_v53 = vld [vmem:[#allocation48_spill] sm:$0xff] }
 0xb06   :  { %7001 = vmatpush1.bf16.msra.mxu0 %v11599_v8  ;;  %7033 = vmatpush1.bf16.msra.mxu1 %v11600_v23  ;;  %v11607_v23 = vld [vmem:[#allocation41_spill] sm:$0xff]  ;;  %v11671_v8 = vld [vmem:[#allocation166_spill] sm:$0xff] }
 0xb07   :  { %7003 = vmatprep.subr.bf16.mxu0 %v11601_v32  ;;  %7035 = vmatprep.subr.bf16.mxu1 %v11602_v14  ;;  %v11608_v32 = vld [vmem:[#allocation42_spill] sm:$0xff]  ;;  %v11615_v14 = vld [vmem:[#allocation49_spill] sm:$0xff] }
 0xb0a   :  { %7005 = vmatpush1.bf16.msra.mxu0 %v11603_v44  ;;  %7037 = vmatpush1.bf16.msra.mxu1 %v11604_v42  ;;  %v11610_v44 = vld [vmem:[#allocation44_spill] sm:$0xff]  ;;  %v11611_v42 = vld [vmem:[#allocation45_spill] sm:$0xff] }
 0xb0b   :  { %7039 = vmatprep.subr.bf16.mxu0 %v11605_v3  ;;  %7103 = vmatprep.subr.bf16.mxu1 %v11606_v61  ;;  %v11612_v3 = vld [vmem:[#allocation46_spill] sm:$0xff]  ;;  %v11613_v61 = vld [vmem:[#allocation47_spill] sm:$0xff] }
 0xb0d   :  { %3324 = vmatmul.mubr.f32.vlgmr.msra.gmra.mrb[34].mxu0 %v9854_v18  ;;  %3395 = vmatmul.mubr.f32.vlgmr.msra.gmra.mrb[34].mxu1 %v9854_v18  ;;  %v11616_v18 = vld [vmem:[#allocation50_spill] sm:$0xff] }
 0xb0e   :  { %3515 = vmatprep.mubr.f32.mxu0 %v3448_v25  ;;  %3586 = vmatprep.mubr.f32.mxu1 %v3448_v25  ;;  %v11617_v25 = vld [vmem:[#allocation51_spill] sm:$0xff] }
 0xb0f   :  { %7041 = vmatpush1.bf16.msra.mxu0 %v11607_v23  ;;  %7105 = vmatpush1.bf16.msra.mxu1 %v11608_v32  ;;  %v11618_v23 = vld [vmem:[#allocation52_spill] sm:$0xff]  ;;  %v11619_v32 = vld [vmem:[#allocation53_spill] sm:$0xff] }
 0xb10   :  { %7043 = vmatprep.subr.bf16.mxu0 %v11609_v43  ;;  %7107 = vmatprep.subr.bf16.mxu1 %v11610_v44  ;;  %v11620_v43 = vld [vmem:[#allocation54_spill] sm:$0xff]  ;;  %v11621_v44 = vld [vmem:[#allocation55_spill] sm:$0xff] }
 0xb13   :  { %7045 = vmatpush1.bf16.msra.mxu0 %v11611_v42  ;;  %7109 = vmatpush1.bf16.msra.mxu1 %v11612_v3  ;;  %v11622_v42 = vld [vmem:[#allocation56_spill] sm:$0xff]  ;;  %v11623_v3 = vld [vmem:[#allocation57_spill] sm:$0xff] }
 0xb14   :  { %7047 = vmatprep.subr.bf16.mxu0 %v11613_v61  ;;  %7111 = vmatprep.subr.bf16.mxu1 %v11614_v53  ;;  %v11624_v61 = vld [vmem:[#allocation58_spill] sm:$0xff]  ;;  %v11625_v53 = vld [vmem:[#allocation59_spill] sm:$0xff] }
 0xb17   :  { %7049 = vmatpush1.bf16.msra.mxu0 %v11615_v14  ;;  %7113 = vmatpush1.bf16.msra.mxu1 %v11616_v18  ;;  %v11626_v14 = vld [vmem:[#allocation60_spill] sm:$0xff]  ;;  %v11627_v18 = vld [vmem:[#allocation61_spill] sm:$0xff] }
 0xb18   :  { %7051 = vmatprep.subr.bf16.mxu0 %v11617_v25  ;;  %7115 = vmatprep.subr.bf16.mxu1 %v11618_v23  ;;  %v11628_v25 = vld [vmem:[#allocation62_spill] sm:$0xff]  ;;  %v11629_v23 = vld [vmem:[#allocation63_spill] sm:$0xff] }
 0xb1b   :  { %7053 = vmatpush1.bf16.msra.mxu0 %v11619_v32  ;;  %7117 = vmatpush1.bf16.msra.mxu1 %v11620_v43  ;;  %v11630_v32 = vld [vmem:[#allocation64_spill] sm:$0xff]  ;;  %v11631_v43 = vld [vmem:[#allocation65_spill] sm:$0xff] }
 0xb1c   :  { %7055 = vmatprep.subr.bf16.mxu0 %v11621_v44  ;;  %7119 = vmatprep.subr.bf16.mxu1 %v11622_v42  ;;  %v11632_v44 = vld [vmem:[#allocation66_spill] sm:$0xff]  ;;  %v11633_v42 = vld [vmem:[#allocation67_spill] sm:$0xff] }
 0xb1f   :  { %7057 = vmatpush1.bf16.msra.mxu0 %v11623_v3  ;;  %7121 = vmatpush1.bf16.msra.mxu1 %v11624_v61  ;;  %v11634_v3 = vld [vmem:[#allocation68_spill] sm:$0xff]  ;;  %v11635_v61 = vld [vmem:[#allocation69_spill] sm:$0xff] }
 0xb20   :  { %7059 = vmatprep.subr.bf16.mxu0 %v11625_v53  ;;  %7123 = vmatprep.subr.bf16.mxu1 %v11626_v14  ;;  %v11636_v53 = vld [vmem:[#allocation70_spill] sm:$0xff]  ;;  %v11637_v14 = vld [vmem:[#allocation71_spill] sm:$0xff] }
 0xb23   :  { %7061 = vmatpush1.bf16.msra.mxu0 %v11627_v18  ;;  %7125 = vmatpush1.bf16.msra.mxu1 %v11628_v25  ;;  %v11638_v18 = vld [vmem:[#allocation72_spill] sm:$0xff]  ;;  %v11639_v25 = vld [vmem:[#allocation73_spill] sm:$0xff] }
 0xb24   :  { %7063 = vmatprep.subr.bf16.mxu0 %v11629_v23  ;;  %7127 = vmatprep.subr.bf16.mxu1 %v11630_v32  ;;  %v11640_v23 = vld [vmem:[#allocation74_spill] sm:$0xff]  ;;  %v11641_v32 = vld [vmem:[#allocation75_spill] sm:$0xff] }
 0xb27   :  { %7065 = vmatpush1.bf16.msra.mxu0 %v11631_v43  ;;  %7129 = vmatpush1.bf16.msra.mxu1 %v11632_v44  ;;  %v11642_v43 = vld [vmem:[#allocation76_spill] sm:$0xff]  ;;  %v11643_v44 = vld [vmem:[#allocation77_spill] sm:$0xff] }
 0xb28   :  { %7067 = vmatprep.subr.bf16.mxu0 %v11633_v42  ;;  %7131 = vmatprep.subr.bf16.mxu1 %v11634_v3  ;;  %v11644_v42 = vld [vmem:[#allocation78_spill] sm:$0xff]  ;;  %v11645_v3 = vld [vmem:[#allocation79_spill] sm:$0xff] }
 0xb2b   :  { %7069 = vmatpush1.bf16.msra.mxu0 %v11635_v61  ;;  %7133 = vmatpush1.bf16.msra.mxu1 %v11636_v53  ;;  %v11646_v61 = vld [vmem:[#allocation80_spill] sm:$0xff]  ;;  %v11647_v53 = vld [vmem:[#allocation81_spill] sm:$0xff] }
 0xb2c   :  { %7071 = vmatprep.subr.bf16.mxu0 %v11637_v14  ;;  %7135 = vmatprep.subr.bf16.mxu1 %v11638_v18  ;;  %v11648_v14 = vld [vmem:[#allocation82_spill] sm:$0xff]  ;;  %v11649_v18 = vld [vmem:[#allocation83_spill] sm:$0xff] }
 0xb2f   :  { %7073 = vmatpush1.bf16.msra.mxu0 %v11639_v25  ;;  %7137 = vmatpush1.bf16.msra.mxu1 %v11640_v23  ;;  %v11650_v25 = vld [vmem:[#allocation84_spill] sm:$0xff]  ;;  %v11651_v23 = vld [vmem:[#allocation85_spill] sm:$0xff] }
 0xb30   :  { %7075 = vmatprep.subr.bf16.mxu0 %v11641_v32  ;;  %7139 = vmatprep.subr.bf16.mxu1 %v11642_v43  ;;  %v11652_v32 = vld [vmem:[#allocation86_spill] sm:$0xff]  ;;  %v11653_v43 = vld [vmem:[#allocation87_spill] sm:$0xff] }
 0xb33   :  { %7077 = vmatpush1.bf16.msra.mxu0 %v11643_v44  ;;  %7141 = vmatpush1.bf16.msra.mxu1 %v11644_v42  ;;  %v11654_v44 = vld [vmem:[#allocation88_spill] sm:$0xff]  ;;  %v11655_v42 = vld [vmem:[#allocation89_spill] sm:$0xff] }
 0xb34   :  { %7079 = vmatprep.subr.bf16.mxu0 %v11645_v3  ;;  %7143 = vmatprep.subr.bf16.mxu1 %v11646_v61  ;;  %v11656_v3 = vld [vmem:[#allocation90_spill] sm:$0xff]  ;;  %v11657_v61 = vld [vmem:[#allocation91_spill] sm:$0xff] }
 0xb37   :  { %7081 = vmatpush1.bf16.msra.mxu0 %v11647_v53  ;;  %7145 = vmatpush1.bf16.msra.mxu1 %v11648_v14  ;;  %v11658_v53 = vld [vmem:[#allocation92_spill] sm:$0xff]  ;;  %v11659_v14 = vld [vmem:[#allocation93_spill] sm:$0xff] }
 0xb38   :  { %7083 = vmatprep.subr.bf16.mxu0 %v11649_v18  ;;  %7147 = vmatprep.subr.bf16.mxu1 %v11650_v25  ;;  %v11660_v18 = vld [vmem:[#allocation94_spill] sm:$0xff]  ;;  %v11661_v25 = vld [vmem:[#allocation95_spill] sm:$0xff] }
 0xb3b   :  { %7085 = vmatpush1.bf16.msra.mxu0 %v11651_v23  ;;  %7149 = vmatpush1.bf16.msra.mxu1 %v11652_v32  ;;  %v11662_v23 = vld [vmem:[#allocation96_spill] sm:$0xff]  ;;  %v11663_v32 = vld [vmem:[#allocation97_spill] sm:$0xff] }
 0xb3c   :  { %7087 = vmatprep.subr.bf16.mxu0 %v11653_v43  ;;  %7151 = vmatprep.subr.bf16.mxu1 %v11654_v44  ;;  %v11664_v43 = vld [vmem:[#allocation98_spill] sm:$0xff]  ;;  %v11665_v44 = vld [vmem:[#allocation99_spill] sm:$0xff] }
 0xb3f   :  { %7089 = vmatpush1.bf16.msra.mxu0 %v11655_v42  ;;  %7153 = vmatpush1.bf16.msra.mxu1 %v11656_v3  ;;  %v11666_v42 = vld [vmem:[#allocation100_spill] sm:$0xff]  ;;  %v11667_v3 = vld [vmem:[#allocation101_spill] sm:$0xff] }
 0xb40   :  { %7091 = vmatprep.subr.bf16.mxu0 %v11657_v61  ;;  %7155 = vmatprep.subr.bf16.mxu1 %v11658_v53  ;;  %v11668_v61 = vld [vmem:[#allocation102_spill] sm:$0xff]  ;;  %v11669_v53 = vld [vmem:[#allocation103_spill] sm:$0xff] }
 0xb43   :  { %7093 = vmatpush1.bf16.msra.mxu0 %v11659_v14  ;;  %7157 = vmatpush1.bf16.msra.mxu1 %v11660_v18  ;;  %v11670_v14 = vld [vmem:[#allocation104_spill] sm:$0xff] }
 0xb44   :  { %7095 = vmatprep.subr.bf16.mxu0 %v11661_v25  ;;  %7159 = vmatprep.subr.bf16.mxu1 %v11662_v23 }
 0xb47   :  { %7097 = vmatpush1.bf16.msra.mxu0 %v11663_v32  ;;  %7161 = vmatpush1.bf16.msra.mxu1 %v11664_v43 }
 0xb48   :  { %7099 = vmatprep.subr.bf16.mxu0 %v11665_v44  ;;  %7163 = vmatprep.subr.bf16.mxu1 %v11666_v42  ;;  %v11673_v42 = vld [vmem:[#allocation168_spill] sm:$0xff] }
 0xb4b   :  { %7101 = vmatpush1.bf16.msra.mxu0 %v11667_v3  ;;  %7165 = vmatpush1.bf16.msra.mxu1 %v11668_v61  ;;  %v11674_v61 = vld [vmem:[#allocation169_spill] sm:$0xff] }
 0xb4c   :  { %7167 = vmatprep.subr.bf16.mxu0 %v11669_v53  ;;  %7231 = vmatprep.subr.bf16.mxu1 %v11670_v14 }
 0xbc0   :  { %v3154_v18 = vpop.f32.mrb[32].mxu0  ;;  %v3225_v25 = vpop.f32.mrb[32].mxu1 }
 0xbc1   :  { %v3155_v23 = vadd.f32 %v3154_v18, %v11671_v8  ;;  %v3156_v48 = vpop.f32.mrb[33].mxu0  ;;  %v3227_v32 = vpop.f32.mrb[33].mxu1  ;;  %v3226_v26 = vadd.f32 %v3225_v25, %v11674_v61 }
 0xbc2   :  { %v3157_v43 = vadd.f32 %v3156_v48, %v11672_v52  ;;  %v3228_v3 = vadd.f32 %v3227_v32, %v11673_v42 }
 0xbc3   :  { %v5238_v31 = vmul.f32 -1.442695, %v3155_v23 }
 0xbc4   :  { %v5239_v44 = vmul.f32 -1.442695, %v3157_v43  ;;  %v5240_v10 = vmul.f32 -1.442695, %v3228_v3 }
 0xbc5   :  { %8222 = vpow2.f32 %v5238_v31 }
 0xbc6   :  { %8224 = vpow2.f32 %v5239_v44 }
 0xbc7   :  { %8226 = vpow2.f32 %v5240_v10 }
 0xbc8   :  { %8228 = vtanh.f32 %v3226_v26  ;;  %v3255_v26 = vld [vmem:[#allocation2 + $0x20] sm:$0xc] }
 0xbcf   :  { %v8223_v53 = vpop.eup %8222 }
 0xbd0   :  { %v8225_v7 = vpop.eup %8224  ;;  %v3233_v14 = vadd.f32 1.0, %v8223_v53 }
 0xbd1   :  { %v3239_v5 = vadd.f32 1.0, %v8225_v7  ;;  %v8227_v18 = vpop.eup %8226 }
 0xbd2   :  { %8230 = vrcp.f32 %v3233_v14  ;;  %v8229_v8 = vpop.eup %8228  ;;  %v3246_v31 = vadd.f32 1.0, %v8227_v18  ;;  %v3256_v14 = vld [vmem:[#allocation2 + $0x28] sm:$0xc] }
 0xbd3   :  { %8232 = vrcp.f32 %v3239_v5 }
 0xbd4   :  { %8234 = vrcp.f32 %v3246_v31 }
 0xbdc   :  { %v8231_v48 = vpop.eup %8230 }
 0xbdd   :  { %v8233_v23 = vpop.eup %8232  ;;  %v3250_v43 = vmul.f32 %v8231_v48, %v8229_v8 }
 0xbde   :  { %v3249_v44 = vmul.f32 %v8233_v23, %v9847_v34  ;;  %v3258_v34 = vld [vmem:[#allocation2 + $0x38] sm:$0xc]  ;;  %v8235_v23 = vpop.eup %8234 }
 0xbe0   :  { %v3325_v32 = vpop.f32.mrb[34].mxu0  ;;  %v3396_v3 = vpop.f32.mrb[34].mxu1  ;;  %v10035_v42 = vadd.f32 %v3250_v43, %v3249_v44 }
 0xbe1   :  { %v3405_v25 = vrot.slane %v3325_v32, 6  ;;  %v3327_v53 = vpop.f32.mrb[35].mxu0  ;;  %v3398_v10 = vpop.f32.mrb[35].mxu1  ;;  %v3407_v43 = vrot.slane %v3396_v3, 6  ;;  %v3257_v32 = vld [vmem:[#allocation2 + $0x30] sm:$0xc] }
 0xbe2   :  { %11675 = vst [vmem:[#allocation107_spill] sm:$0xff] %v10035_v42  ;;  %v3406_v7 = vrot.slane %v3327_v53, 6  ;;  %8236 = vtanh.f32 %v10035_v42  ;;  %v3408_v18 = vrot.slane %v3398_v10, 6 }
 0xbe3   :  { %v3413_v5 = vadd.f32 %v3405_v25, %v3255_v26  ;;  %v3415_v58 = vadd.f32 %v3407_v43, %v3257_v32  ;;  %v11679_v43 = vld [vmem:[#allocation127_spill] sm:$0xff]  ;;  %v11682_v32 = vld [vmem:[#allocation130_spill] sm:$0xff] }
 0xbe4   :  { %v3414_v61 = vadd.f32 %v3406_v7, %v3256_v14  ;;  %v3416_v48 = vadd.f32 %v3408_v18, %v3258_v34  ;;  %v3437_v7 = vrot.slane %v9851_v30, 6  ;;  %v11676_v30 = vld [vmem:[#allocation124_spill] sm:$0xff] }
 0xbe5   :  { %v5241_v52 = vmul.f32 -1.442695, %v3413_v5 }
 0xbe6   :  { %v5242_v8 = vmul.f32 -1.442695, %v3414_v61  ;;  %v5243_v62 = vmul.f32 -1.442695, %v3416_v48  ;;  %v11677_v48 = vld [vmem:[#allocation125_spill] sm:$0xff] }
 0xbe7   :  { %8238 = vpow2.f32 %v5241_v52 }
 0xbe8   :  { %8240 = vpow2.f32 %v5242_v8 }
 0xbe9   :  { %8242 = vpow2.f32 %v5243_v62 }
 0xbea   :  { %8244 = vtanh.f32 %v3415_v58 }
 0xbec   :  { %v8237_v31 = vpop.eup %8236 }
 0xbed   :  { %v3253_v44 = vmul.f32 %v8237_v31, %v8235_v23  ;;  %v11678_v23 = vld [vmem:[#allocation126_spill] sm:$0xff]  ;;  %v11680_v31 = vld [vmem:[#allocation128_spill] sm:$0xff] }
 0xbef   :  { %3254 = vst [vmem:[#allocation3 + $0x8] sm:$0x3] %v3253_v44 }
 0xbf1   :  { %v8239_v53 = vpop.eup %8238 }
 0xbf2   :  { %v8241_v42 = vpop.eup %8240  ;;  %v3420_v25 = vadd.f32 1.0, %v8239_v53  ;;  %v11683_v53 = vld [vmem:[#allocation131_spill] sm:$0xff] }
 0xbf3   :  { %v3426_v26 = vadd.f32 1.0, %v8241_v42  ;;  %v8243_v52 = vpop.eup %8242 }
 0xbf4   :  { %8246 = vrcp.f32 %v3420_v25  ;;  %v8245_v61 = vpop.eup %8244  ;;  %v3433_v14 = vadd.f32 1.0, %v8243_v52  ;;  %v11684_v25 = vld [vmem:[#allocation132_spill] sm:$0xff]  ;;  %v11686_v52 = vld [vmem:[#allocation134_spill] sm:$0xff] }
 0xbf5   :  { %8248 = vrcp.f32 %v3426_v26  ;;  %v11685_v26 = vld [vmem:[#allocation133_spill] sm:$0xff] }
 0xbf6   :  { %8250 = vrcp.f32 %v3433_v14  ;;  %v11692_v14 = vld [vmem:[#allocation140_spill] sm:$0xff] }
 0xbfe   :  { %v8247_v10 = vpop.eup %8246 }
 0xbff   :  { %v8249_v3 = vpop.eup %8248  ;;  %v3440_v5 = vmul.f32 %v8247_v10, %v8245_v61  ;;  %v11687_v61 = vld [vmem:[#allocation135_spill] sm:$0xff]  ;;  %v11688_v10 = vld [vmem:[#allocation136_spill] sm:$0xff] }
 0xc00   :  { %v3439_v8 = vmul.f32 %v8249_v3, %v3437_v7  ;;  %v8251_v34 = vpop.eup %8250  ;;  %v11689_v7 = vld [vmem:[#allocation137_spill] sm:$0xff]  ;;  %v11690_v3 = vld [vmem:[#allocation138_spill] sm:$0xff] }
 0xc02   :  { %v10039_v18 = vadd.f32 %v3440_v5, %v3439_v8  ;;  %v11691_v5 = vld [vmem:[#allocation139_spill] sm:$0xff]  ;;  %v11693_v8 = vld [vmem:[#allocation141_spill] sm:$0xff] }
 0xc04   :  { %8252 = vtanh.f32 %v10039_v18 }
 0xc0e   :  { %v8253_v62 = vpop.eup %8252 }
 0xc0f   :  { %v3443_v58 = vmul.f32 %v8253_v62, %v8251_v34  ;;  %v11694_v34 = vld [vmem:[#allocation142_spill] sm:$0xff]  ;;  %v11695_v62 = vld [vmem:[#allocation143_spill] sm:$0xff] }
 0xc11   :  { %v10042_v42 = vrot.slane %v3443_v58, 2  ;;  %v11696_v58 = vld [vmem:[#allocation144_spill] sm:$0xff] }
 0xc13   :  { %3516 = vmatmul.mubr.f32.vlgmr.msra.gmra.mrb[36].mxu0 %v10042_v42  ;;  %3587 = vmatmul.mubr.f32.vlgmr.msra.gmra.mrb[36].mxu1 %v10042_v42 }
 0xc14   :  { %3681 = vmatprep.mubr.f32.mxu0 %v3253_v44  ;;  %3752 = vmatprep.mubr.f32.mxu1 %v3253_v44  ;;  %v11681_v44 = vld [vmem:[#allocation129_spill] sm:$0xff] }
 0xc15   :  { %7169 = vmatpush1.bf16.msra.mxu0 %v11157_v17  ;;  %7233 = vmatpush1.bf16.msra.mxu1 %v11158_v9 }
 0xc16   :  { %7171 = vmatprep.subr.bf16.mxu0 %v11159_v27  ;;  %7235 = vmatprep.subr.bf16.mxu1 %v11160_v11 }
 0xc19   :  { %7173 = vmatpush1.bf16.msra.mxu0 %v11161_v0  ;;  %7237 = vmatpush1.bf16.msra.mxu1 %v11162_v12 }
 0xc1a   :  { %7175 = vmatprep.subr.bf16.mxu0 %v8961_v49  ;;  %7239 = vmatprep.subr.bf16.mxu1 %v8963_v2 }
 0xc1d   :  { %7177 = vmatpush1.bf16.msra.mxu0 %v8967_v51  ;;  %7241 = vmatpush1.bf16.msra.mxu1 %v8969_v21 }
 0xc1e   :  { %7179 = vmatprep.subr.bf16.mxu0 %v11287_v22  ;;  %7243 = vmatprep.subr.bf16.mxu1 %v11288_v16 }
 0xc21   :  { %7181 = vmatpush1.bf16.msra.mxu0 %v11289_v13  ;;  %7245 = vmatpush1.bf16.msra.mxu1 %v11290_v60 }
 0xc22   :  { %7183 = vmatprep.subr.bf16.mxu0 %v11291_v6  ;;  %7247 = vmatprep.subr.bf16.mxu1 %v11418_v47 }
 0xc25   :  { %7185 = vmatpush1.bf16.msra.mxu0 %v11419_v4  ;;  %7249 = vmatpush1.bf16.msra.mxu1 %v11420_v38 }
 0xc26   :  { %7187 = vmatprep.subr.bf16.mxu0 %v11421_v36  ;;  %7251 = vmatprep.subr.bf16.mxu1 %v11422_v54 }
 0xc29   :  { %7189 = vmatpush1.bf16.msra.mxu0 %v11548_v55  ;;  %7253 = vmatpush1.bf16.msra.mxu1 %v11549_v39 }
 0xc2a   :  { %7191 = vmatprep.subr.bf16.mxu0 %v11676_v30  ;;  %7255 = vmatprep.subr.bf16.mxu1 %v11677_v48 }
 0xc2d   :  { %7193 = vmatpush1.bf16.msra.mxu0 %v11678_v23  ;;  %7257 = vmatpush1.bf16.msra.mxu1 %v11679_v43 }
 0xc2e   :  { %7195 = vmatprep.subr.bf16.mxu0 %v11680_v31  ;;  %7259 = vmatprep.subr.bf16.mxu1 %v11681_v44 }
 0xc31   :  { %7197 = vmatpush1.bf16.msra.mxu0 %v11682_v32  ;;  %7261 = vmatpush1.bf16.msra.mxu1 %v11683_v53 }
 0xc32   :  { %7199 = vmatprep.subr.bf16.mxu0 %v11684_v25  ;;  %7263 = vmatprep.subr.bf16.mxu1 %v11685_v26  ;;  %v11718_v26 = vld [vmem:[#allocation164_spill] sm:$0xff] }
 0xc35   :  { %7201 = vmatpush1.bf16.msra.mxu0 %v11686_v52  ;;  %7265 = vmatpush1.bf16.msra.mxu1 %v11687_v61  ;;  %v11697_v52 = vld [vmem:[#allocation145_spill] sm:$0xff]  ;;  %v11698_v61 = vld [vmem:[#allocation146_spill] sm:$0xff] }
 0xc36   :  { %7203 = vmatprep.subr.bf16.mxu0 %v11688_v10  ;;  %7267 = vmatprep.subr.bf16.mxu1 %v11689_v7  ;;  %v11699_v10 = vld [vmem:[#allocation147_spill] sm:$0xff]  ;;  %v11700_v7 = vld [vmem:[#allocation148_spill] sm:$0xff] }
 0xc39   :  { %7205 = vmatpush1.bf16.msra.mxu0 %v11690_v3  ;;  %7269 = vmatpush1.bf16.msra.mxu1 %v11691_v5  ;;  %v11701_v3 = vld [vmem:[#allocation149_spill] sm:$0xff]  ;;  %v11702_v5 = vld [vmem:[#allocation150_spill] sm:$0xff] }
 0xc3a   :  { %7207 = vmatprep.subr.bf16.mxu0 %v11692_v14  ;;  %7271 = vmatprep.subr.bf16.mxu1 %v11693_v8  ;;  %v11703_v14 = vld [vmem:[#allocation151_spill] sm:$0xff]  ;;  %v11704_v8 = vld [vmem:[#allocation152_spill] sm:$0xff] }
 0xc3d   :  { %7209 = vmatpush1.bf16.msra.mxu0 %v11694_v34  ;;  %7273 = vmatpush1.bf16.msra.mxu1 %v11695_v62  ;;  %v11705_v34 = vld [vmem:[#allocation153_spill] sm:$0xff]  ;;  %v11706_v62 = vld [vmem:[#allocation154_spill] sm:$0xff] }
 0xc3e   :  { %7211 = vmatprep.subr.bf16.mxu0 %v11696_v58  ;;  %7275 = vmatprep.subr.bf16.mxu1 %v11697_v52  ;;  %v11707_v58 = vld [vmem:[#allocation155_spill] sm:$0xff]  ;;  %v11708_v52 = vld [vmem:[#allocation156_spill] sm:$0xff] }
 0xc41   :  { %7213 = vmatpush1.bf16.msra.mxu0 %v11698_v61  ;;  %7277 = vmatpush1.bf16.msra.mxu1 %v11699_v10  ;;  %v11709_v61 = vld [vmem:[#allocation157_spill] sm:$0xff]  ;;  %v11710_v10 = vld [vmem:[#allocation158_spill] sm:$0xff] }
 0xc42   :  { %7215 = vmatprep.subr.bf16.mxu0 %v11700_v7  ;;  %7279 = vmatprep.subr.bf16.mxu1 %v11701_v3  ;;  %v11711_v7 = vld [vmem:[#allocation159_spill] sm:$0xff]  ;;  %v11712_v3 = vld [vmem:[#allocation160_spill] sm:$0xff] }
 0xc45   :  { %7217 = vmatpush1.bf16.msra.mxu0 %v11702_v5  ;;  %7281 = vmatpush1.bf16.msra.mxu1 %v11703_v14  ;;  %v11713_v5 = vld [vmem:[#allocation161_spill] sm:$0xff]  ;;  %v11714_v14 = vld [vmem:[#allocation162_spill] sm:$0xff] }
 0xc46   :  { %7219 = vmatprep.subr.bf16.mxu0 %v11704_v8  ;;  %7283 = vmatprep.subr.bf16.mxu1 %v11705_v34  ;;  %v11715_v8 = vld [vmem:[#allocation163_spill] sm:$0xff]  ;;  %v11716_v34 = vld [vmem:[#allocation16_spill] sm:$0xff] }
 0xc49   :  { %7221 = vmatpush1.bf16.msra.mxu0 %v11706_v62  ;;  %7285 = vmatpush1.bf16.msra.mxu1 %v11707_v58  ;;  %v11717_v62 = vld [vmem:[#allocation17_spill] sm:$0xff] }
 0xc4a   :  { %7223 = vmatprep.subr.bf16.mxu0 %v11708_v52  ;;  %7287 = vmatprep.subr.bf16.mxu1 %v11709_v61 }
 0xc4d   :  { %7225 = vmatpush1.bf16.msra.mxu0 %v11710_v10  ;;  %7289 = vmatpush1.bf16.msra.mxu1 %v11711_v7 }
 0xc4e   :  { %7227 = vmatprep.subr.bf16.mxu0 %v11712_v3  ;;  %7291 = vmatprep.subr.bf16.mxu1 %v11713_v5 }
 0xc51   :  { %7229 = vmatpush1.bf16.msra.mxu0 %v11714_v14  ;;  %7293 = vmatpush1.bf16.msra.mxu1 %v11715_v8 }
 0xc52   :  { %7295 = vmatprep.subr.bf16.mxu0 %v11716_v34  ;;  %7327 = vmatprep.subr.bf16.mxu1 %v11717_v62 }
 0xce6   :  { %v3517_v58 = vpop.f32.mrb[36].mxu0  ;;  %v3588_v52 = vpop.f32.mrb[36].mxu1 }
 0xce7   :  { %v3518_v61 = vadd.f32 %v3517_v58, %v11718_v26  ;;  %v3519_v25 = vpop.f32.mrb[37].mxu0  ;;  %v3590_v10 = vpop.f32.mrb[37].mxu1  ;;  %v3589_v8 = vadd.f32 %v3588_v52, %v9152_v63 }
 0xce8   :  { %v3520_v7 = vadd.f32 %v3519_v25, %v9143_v1  ;;  %v3591_v14 = vadd.f32 %v3590_v10, %v11215_v59 }
 0xce9   :  { %v5244_v53 = vmul.f32 -1.442695, %v3518_v61 }
 0xcea   :  { %v5245_v3 = vmul.f32 -1.442695, %v3520_v7  ;;  %v5246_v5 = vmul.f32 -1.442695, %v3591_v14 }
 0xceb   :  { %8254 = vpow2.f32 %v5244_v53 }
 0xcec   :  { %8256 = vpow2.f32 %v5245_v3 }
 0xced   :  { %8258 = vpow2.f32 %v5246_v5 }
 0xcee   :  { %8260 = vtanh.f32 %v3589_v8  ;;  %v11723_v8 = vld [vmem:[#allocation27_spill] sm:$0xff] }
 0xcf5   :  { %v8255_v34 = vpop.eup %8254 }
 0xcf6   :  { %v8257_v32 = vpop.eup %8256  ;;  %v3596_v62 = vadd.f32 1.0, %v8255_v34  ;;  %v11724_v34 = vld [vmem:[#allocation28_spill] sm:$0xff] }
 0xcf7   :  { %v3602_v44 = vadd.f32 1.0, %v8257_v32  ;;  %v8259_v58 = vpop.eup %8258  ;;  %v11721_v32 = vld [vmem:[#allocation25_spill] sm:$0xff] }
 0xcf8   :  { %8262 = vrcp.f32 %v3596_v62  ;;  %v8261_v26 = vpop.eup %8260  ;;  %v3609_v53 = vadd.f32 1.0, %v8259_v58  ;;  %v11725_v62 = vld [vmem:[#allocation29_spill] sm:$0xff]  ;;  %v11726_v58 = vld [vmem:[#allocation30_spill] sm:$0xff] }
 0xcf9   :  { %8264 = vrcp.f32 %v3602_v44  ;;  %v11720_v44 = vld [vmem:[#allocation24_spill] sm:$0xff] }
 0xcfa   :  { %8266 = vrcp.f32 %v3609_v53  ;;  %v11730_v53 = vld [vmem:[#allocation34_spill] sm:$0xff] }
 0xd02   :  { %v8263_v25 = vpop.eup %8262 }
 0xd03   :  { %v8265_v61 = vpop.eup %8264  ;;  %v3613_v7 = vmul.f32 %v8263_v25, %v8261_v26  ;;  %v11722_v26 = vld [vmem:[#allocation26_spill] sm:$0xff]  ;;  %v11727_v25 = vld [vmem:[#allocation31_spill] sm:$0xff] }
 0xd04   :  { %v3612_v3 = vmul.f32 %v8265_v61, %v9927_v40  ;;  %v8267_v52 = vpop.eup %8266  ;;  %v11719_v40 = vld [vmem:[#allocation23_spill] sm:$0xff]  ;;  %v11728_v61 = vld [vmem:[#allocation32_spill] sm:$0xff] }
 0xd06   :  { %v10115_v10 = vadd.f32 %v3613_v7, %v3612_v3  ;;  %v11729_v7 = vld [vmem:[#allocation33_spill] sm:$0xff]  ;;  %v11731_v3 = vld [vmem:[#allocation35_spill] sm:$0xff] }
 0xd08   :  { %8268 = vtanh.f32 %v10115_v10 }
 0xd12   :  { %v8269_v14 = vpop.eup %8268 }
 0xd13   :  { %v3616_v5 = vmul.f32 %v8269_v14, %v8267_v52  ;;  %v11732_v52 = vld [vmem:[#allocation36_spill] sm:$0xff] }
 0xd15   :  { %3682 = vmatmul.mubr.f32.vlgmr.msra.gmra.mrb[38].mxu0 %v3616_v5  ;;  %3753 = vmatmul.mubr.f32.vlgmr.msra.gmra.mrb[38].mxu1 %v3616_v5  ;;  %v3974_v14 = vrot.slane %v3616_v5, 4  ;;  %v11739_v5 = vld [vmem:[#allocation43_spill] sm:$0xff] }
 0xd16   :  { %7297 = vmatpush1.bf16.msra.mxu0 %v8615_v15  ;;  %7329 = vmatpush1.bf16.msra.mxu1 %v8621_v19 }
 0xd17   :  { %7299 = vmatprep.subr.bf16.mxu0 %v8623_v20  ;;  %7331 = vmatprep.subr.bf16.mxu1 %v8626_v24 }
 0xd18   :  { %3852 = vmatprep.mubr.f32.mxu0 %v11089_v35  ;;  %3923 = vmatprep.mubr.f32.mxu1 %v11089_v35 }
 0xd1a   :  { %7301 = vmatpush1.bf16.msra.mxu0 %v8630_v28  ;;  %7333 = vmatpush1.bf16.msra.mxu1 %v8632_v29 }
 0xd1b   :  { %7303 = vmatprep.subr.bf16.mxu0 %v8635_v33  ;;  %7335 = vmatprep.subr.bf16.mxu1 %v8637_v37 }
 0xd1e   :  { %7305 = vmatpush1.bf16.msra.mxu0 %v8640_v41  ;;  %7337 = vmatpush1.bf16.msra.mxu1 %v8644_v45 }
 0xd1f   :  { %7307 = vmatprep.subr.bf16.mxu0 %v8646_v46  ;;  %7339 = vmatprep.subr.bf16.mxu1 %v8649_v50 }
 0xd22   :  { %7309 = vmatpush1.bf16.msra.mxu0 %v8652_v56  ;;  %7341 = vmatpush1.bf16.msra.mxu1 %v8656_v57 }
 0xd23   :  { %7311 = vmatprep.subr.bf16.mxu0 %v11719_v40  ;;  %7343 = vmatprep.subr.bf16.mxu1 %v11720_v44 }
 0xd26   :  { %7313 = vmatpush1.bf16.msra.mxu0 %v11721_v32  ;;  %7345 = vmatpush1.bf16.msra.mxu1 %v11722_v26  ;;  %v11802_v26 = vld [vmem:[#allocation167_spill] sm:$0xff] }
 0xd27   :  { %7315 = vmatprep.subr.bf16.mxu0 %v11723_v8  ;;  %7347 = vmatprep.subr.bf16.mxu1 %v11724_v34  ;;  %v11733_v8 = vld [vmem:[#allocation37_spill] sm:$0xff]  ;;  %v11734_v34 = vld [vmem:[#allocation38_spill] sm:$0xff] }
 0xd2a   :  { %7317 = vmatpush1.bf16.msra.mxu0 %v11725_v62  ;;  %7349 = vmatpush1.bf16.msra.mxu1 %v11726_v58  ;;  %v11735_v62 = vld [vmem:[#allocation39_spill] sm:$0xff]  ;;  %v11736_v58 = vld [vmem:[#allocation40_spill] sm:$0xff] }
 0xd2b   :  { %7319 = vmatprep.subr.bf16.mxu0 %v11727_v25  ;;  %7351 = vmatprep.subr.bf16.mxu1 %v11728_v61  ;;  %v3977_v25 = vrot.slane %v3974_v14, 4  ;;  %v11744_v14 = vld [vmem:[#allocation48_spill] sm:$0xff] }
 0xd2e   :  { %7321 = vmatpush1.bf16.msra.mxu0 %v11729_v7  ;;  %7353 = vmatpush1.bf16.msra.mxu1 %v11730_v53  ;;  %v11737_v53 = vld [vmem:[#allocation41_spill] sm:$0xff]  ;;  %v11801_v7 = vld [vmem:[#allocation166_spill] sm:$0xff] }
 0xd2f   :  { %7323 = vmatprep.subr.bf16.mxu0 %v11731_v3  ;;  %7355 = vmatprep.subr.bf16.mxu1 %v11732_v52  ;;  %v11738_v3 = vld [vmem:[#allocation42_spill] sm:$0xff]  ;;  %v11745_v52 = vld [vmem:[#allocation49_spill] sm:$0xff] }
 0xd32   :  { %7325 = vmatpush1.bf16.msra.mxu0 %v11733_v8  ;;  %7357 = vmatpush1.bf16.msra.mxu1 %v11734_v34  ;;  %v11740_v8 = vld [vmem:[#allocation44_spill] sm:$0xff]  ;;  %v11741_v34 = vld [vmem:[#allocation45_spill] sm:$0xff] }
 0xd33   :  { %7359 = vmatprep.subr.bf16.mxu0 %v11735_v62  ;;  %7423 = vmatprep.subr.bf16.mxu1 %v11736_v58  ;;  %v11742_v62 = vld [vmem:[#allocation46_spill] sm:$0xff]  ;;  %v11743_v58 = vld [vmem:[#allocation47_spill] sm:$0xff] }
 0xd35   :  { %3853 = vmatmul.mubr.f32.vlgmr.msra.gmra.mrb[40].mxu0 %v10042_v42  ;;  %3924 = vmatmul.mubr.f32.vlgmr.msra.gmra.mrb[40].mxu1 %v10042_v42  ;;  %v11746_v42 = vld [vmem:[#allocation50_spill] sm:$0xff] }
 0xd36   :  { %4044 = vmatprep.mubr.f32.mxu0 %v3977_v25  ;;  %4115 = vmatprep.mubr.f32.mxu1 %v3977_v25  ;;  %v11747_v25 = vld [vmem:[#allocation51_spill] sm:$0xff] }
 0xd37   :  { %7361 = vmatpush1.bf16.msra.mxu0 %v11737_v53  ;;  %7425 = vmatpush1.bf16.msra.mxu1 %v11738_v3  ;;  %v11748_v53 = vld [vmem:[#allocation52_spill] sm:$0xff]  ;;  %v11749_v3 = vld [vmem:[#allocation53_spill] sm:$0xff] }
 0xd38   :  { %7363 = vmatprep.subr.bf16.mxu0 %v11739_v5  ;;  %7427 = vmatprep.subr.bf16.mxu1 %v11740_v8  ;;  %v11750_v5 = vld [vmem:[#allocation54_spill] sm:$0xff]  ;;  %v11751_v8 = vld [vmem:[#allocation55_spill] sm:$0xff] }
 0xd3b   :  { %7365 = vmatpush1.bf16.msra.mxu0 %v11741_v34  ;;  %7429 = vmatpush1.bf16.msra.mxu1 %v11742_v62  ;;  %v11752_v34 = vld [vmem:[#allocation56_spill] sm:$0xff]  ;;  %v11753_v62 = vld [vmem:[#allocation57_spill] sm:$0xff] }
 0xd3c   :  { %7367 = vmatprep.subr.bf16.mxu0 %v11743_v58  ;;  %7431 = vmatprep.subr.bf16.mxu1 %v11744_v14  ;;  %v11754_v58 = vld [vmem:[#allocation58_spill] sm:$0xff]  ;;  %v11755_v14 = vld [vmem:[#allocation59_spill] sm:$0xff] }
 0xd3f   :  { %7369 = vmatpush1.bf16.msra.mxu0 %v11745_v52  ;;  %7433 = vmatpush1.bf16.msra.mxu1 %v11746_v42  ;;  %v11756_v52 = vld [vmem:[#allocation60_spill] sm:$0xff]  ;;  %v11757_v42 = vld [vmem:[#allocation61_spill] sm:$0xff] }
 0xd40   :  { %7371 = vmatprep.subr.bf16.mxu0 %v11747_v25  ;;  %7435 = vmatprep.subr.bf16.mxu1 %v11748_v53  ;;  %v11758_v25 = vld [vmem:[#allocation62_spill] sm:$0xff]  ;;  %v11759_v53 = vld [vmem:[#allocation63_spill] sm:$0xff] }
 0xd43   :  { %7373 = vmatpush1.bf16.msra.mxu0 %v11749_v3  ;;  %7437 = vmatpush1.bf16.msra.mxu1 %v11750_v5  ;;  %v11760_v3 = vld [vmem:[#allocation64_spill] sm:$0xff]  ;;  %v11761_v5 = vld [vmem:[#allocation65_spill] sm:$0xff] }
 0xd44   :  { %7375 = vmatprep.subr.bf16.mxu0 %v11751_v8  ;;  %7439 = vmatprep.subr.bf16.mxu1 %v11752_v34  ;;  %v11762_v8 = vld [vmem:[#allocation66_spill] sm:$0xff]  ;;  %v11763_v34 = vld [vmem:[#allocation67_spill] sm:$0xff] }
 0xd47   :  { %7377 = vmatpush1.bf16.msra.mxu0 %v11753_v62  ;;  %7441 = vmatpush1.bf16.msra.mxu1 %v11754_v58  ;;  %v11764_v62 = vld [vmem:[#allocation68_spill] sm:$0xff]  ;;  %v11765_v58 = vld [vmem:[#allocation69_spill] sm:$0xff] }
 0xd48   :  { %7379 = vmatprep.subr.bf16.mxu0 %v11755_v14  ;;  %7443 = vmatprep.subr.bf16.mxu1 %v11756_v52  ;;  %v11766_v14 = vld [vmem:[#allocation70_spill] sm:$0xff]  ;;  %v11767_v52 = vld [vmem:[#allocation71_spill] sm:$0xff] }
 0xd4b   :  { %7381 = vmatpush1.bf16.msra.mxu0 %v11757_v42  ;;  %7445 = vmatpush1.bf16.msra.mxu1 %v11758_v25  ;;  %v11768_v42 = vld [vmem:[#allocation72_spill] sm:$0xff]  ;;  %v11769_v25 = vld [vmem:[#allocation73_spill] sm:$0xff] }
 0xd4c   :  { %7383 = vmatprep.subr.bf16.mxu0 %v11759_v53  ;;  %7447 = vmatprep.subr.bf16.mxu1 %v11760_v3  ;;  %v11770_v53 = vld [vmem:[#allocation74_spill] sm:$0xff]  ;;  %v11771_v3 = vld [vmem:[#allocation75_spill] sm:$0xff] }
 0xd4f   :  { %7385 = vmatpush1.bf16.msra.mxu0 %v11761_v5  ;;  %7449 = vmatpush1.bf16.msra.mxu1 %v11762_v8  ;;  %v11772_v5 = vld [vmem:[#allocation76_spill] sm:$0xff]  ;;  %v11773_v8 = vld [vmem:[#allocation77_spill] sm:$0xff] }
 0xd50   :  { %7387 = vmatprep.subr.bf16.mxu0 %v11763_v34  ;;  %7451 = vmatprep.subr.bf16.mxu1 %v11764_v62  ;;  %v11774_v34 = vld [vmem:[#allocation78_spill] sm:$0xff]  ;;  %v11775_v62 = vld [vmem:[#allocation79_spill] sm:$0xff] }
 0xd53   :  { %7389 = vmatpush1.bf16.msra.mxu0 %v11765_v58  ;;  %7453 = vmatpush1.bf16.msra.mxu1 %v11766_v14  ;;  %v11776_v58 = vld [vmem:[#allocation80_spill] sm:$0xff]  ;;  %v11777_v14 = vld [vmem:[#allocation81_spill] sm:$0xff] }
 0xd54   :  { %7391 = vmatprep.subr.bf16.mxu0 %v11767_v52  ;;  %7455 = vmatprep.subr.bf16.mxu1 %v11768_v42  ;;  %v11778_v52 = vld [vmem:[#allocation82_spill] sm:$0xff]  ;;  %v11779_v42 = vld [vmem:[#allocation83_spill] sm:$0xff] }
 0xd57   :  { %7393 = vmatpush1.bf16.msra.mxu0 %v11769_v25  ;;  %7457 = vmatpush1.bf16.msra.mxu1 %v11770_v53  ;;  %v11780_v25 = vld [vmem:[#allocation84_spill] sm:$0xff]  ;;  %v11781_v53 = vld [vmem:[#allocation85_spill] sm:$0xff] }
 0xd58   :  { %7395 = vmatprep.subr.bf16.mxu0 %v11771_v3  ;;  %7459 = vmatprep.subr.bf16.mxu1 %v11772_v5  ;;  %v11782_v3 = vld [vmem:[#allocation86_spill] sm:$0xff]  ;;  %v11783_v5 = vld [vmem:[#allocation87_spill] sm:$0xff] }
 0xd5b   :  { %7397 = vmatpush1.bf16.msra.mxu0 %v11773_v8  ;;  %7461 = vmatpush1.bf16.msra.mxu1 %v11774_v34  ;;  %v11784_v8 = vld [vmem:[#allocation88_spill] sm:$0xff]  ;;  %v11785_v34 = vld [vmem:[#allocation89_spill] sm:$0xff] }
 0xd5c   :  { %7399 = vmatprep.subr.bf16.mxu0 %v11775_v62  ;;  %7463 = vmatprep.subr.bf16.mxu1 %v11776_v58  ;;  %v11786_v62 = vld [vmem:[#allocation90_spill] sm:$0xff]  ;;  %v11787_v58 = vld [vmem:[#allocation91_spill] sm:$0xff] }
 0xd5f   :  { %7401 = vmatpush1.bf16.msra.mxu0 %v11777_v14  ;;  %7465 = vmatpush1.bf16.msra.mxu1 %v11778_v52  ;;  %v11788_v14 = vld [vmem:[#allocation92_spill] sm:$0xff]  ;;  %v11789_v52 = vld [vmem:[#allocation93_spill] sm:$0xff] }
 0xd60   :  { %7403 = vmatprep.subr.bf16.mxu0 %v11779_v42  ;;  %7467 = vmatprep.subr.bf16.mxu1 %v11780_v25  ;;  %v11790_v42 = vld [vmem:[#allocation94_spill] sm:$0xff]  ;;  %v11791_v25 = vld [vmem:[#allocation95_spill] sm:$0xff] }
 0xd63   :  { %7405 = vmatpush1.bf16.msra.mxu0 %v11781_v53  ;;  %7469 = vmatpush1.bf16.msra.mxu1 %v11782_v3  ;;  %v11792_v53 = vld [vmem:[#allocation96_spill] sm:$0xff]  ;;  %v11793_v3 = vld [vmem:[#allocation97_spill] sm:$0xff] }
 0xd64   :  { %7407 = vmatprep.subr.bf16.mxu0 %v11783_v5  ;;  %7471 = vmatprep.subr.bf16.mxu1 %v11784_v8  ;;  %v11794_v5 = vld [vmem:[#allocation98_spill] sm:$0xff]  ;;  %v11795_v8 = vld [vmem:[#allocation99_spill] sm:$0xff] }
 0xd67   :  { %7409 = vmatpush1.bf16.msra.mxu0 %v11785_v34  ;;  %7473 = vmatpush1.bf16.msra.mxu1 %v11786_v62  ;;  %v11796_v34 = vld [vmem:[#allocation100_spill] sm:$0xff]  ;;  %v11797_v62 = vld [vmem:[#allocation101_spill] sm:$0xff] }
 0xd68   :  { %7411 = vmatprep.subr.bf16.mxu0 %v11787_v58  ;;  %7475 = vmatprep.subr.bf16.mxu1 %v11788_v14  ;;  %v11798_v58 = vld [vmem:[#allocation102_spill] sm:$0xff]  ;;  %v11799_v14 = vld [vmem:[#allocation103_spill] sm:$0xff] }
 0xd6b   :  { %7413 = vmatpush1.bf16.msra.mxu0 %v11789_v52  ;;  %7477 = vmatpush1.bf16.msra.mxu1 %v11790_v42  ;;  %v11800_v52 = vld [vmem:[#allocation104_spill] sm:$0xff] }
 0xd6c   :  { %7415 = vmatprep.subr.bf16.mxu0 %v11791_v25  ;;  %7479 = vmatprep.subr.bf16.mxu1 %v11792_v53 }
 0xd6f   :  { %7417 = vmatpush1.bf16.msra.mxu0 %v11793_v3  ;;  %7481 = vmatpush1.bf16.msra.mxu1 %v11794_v5 }
 0xd70   :  { %7419 = vmatprep.subr.bf16.mxu0 %v11795_v8  ;;  %7483 = vmatprep.subr.bf16.mxu1 %v11796_v34  ;;  %v11803_v34 = vld [vmem:[#allocation168_spill] sm:$0xff] }
 0xd73   :  { %7421 = vmatpush1.bf16.msra.mxu0 %v11797_v62  ;;  %7485 = vmatpush1.bf16.msra.mxu1 %v11798_v58  ;;  %v11804_v58 = vld [vmem:[#allocation169_spill] sm:$0xff] }
 0xd74   :  { %7487 = vmatprep.subr.bf16.mxu0 %v11799_v14  ;;  %7551 = vmatprep.subr.bf16.mxu1 %v11800_v52 }
 0xde8   :  { %v3683_v42 = vpop.f32.mrb[38].mxu0  ;;  %v3754_v25 = vpop.f32.mrb[38].mxu1 }
 0xde9   :  { %v3684_v53 = vadd.f32 %v3683_v42, %v11801_v7  ;;  %v3685_v61 = vpop.f32.mrb[39].mxu0  ;;  %v3756_v3 = vpop.f32.mrb[39].mxu1  ;;  %v3755_v40 = vadd.f32 %v3754_v25, %v11804_v58 }
 0xdea   :  { %v3686_v5 = vadd.f32 %v3685_v61, %v11802_v26  ;;  %v3757_v62 = vadd.f32 %v3756_v3, %v11803_v34 }
 0xdeb   :  { %v5247_v32 = vmul.f32 -1.442695, %v3684_v53 }
 0xdec   :  { %v5248_v8 = vmul.f32 -1.442695, %v3686_v5  ;;  %v5249_v44 = vmul.f32 -1.442695, %v3757_v62 }
 0xded   :  { %8270 = vpow2.f32 %v5247_v32 }
 0xdee   :  { %8272 = vpow2.f32 %v5248_v8  ;;  %v11805_v8 = vld [vmem:[#allocation107_spill] sm:$0xff] }
 0xdef   :  { %8274 = vpow2.f32 %v5249_v44 }
 0xdf0   :  { %8276 = vtanh.f32 %v3755_v40  ;;  %v3784_v40 = vld [vmem:[#allocation2 + $0x20] sm:$0x30] }
 0xdf7   :  { %v8271_v14 = vpop.eup %8270 }
 0xdf8   :  { %v8273_v57 = vpop.eup %8272  ;;  %v3762_v52 = vadd.f32 1.0, %v8271_v14 }
 0xdf9   :  { %v3768_v56 = vadd.f32 1.0, %v8273_v57  ;;  %v8275_v42 = vpop.eup %8274 }
 0xdfa   :  { %8278 = vrcp.f32 %v3762_v52  ;;  %v8277_v7 = vpop.eup %8276  ;;  %v3775_v32 = vadd.f32 1.0, %v8275_v42  ;;  %v3785_v52 = vld [vmem:[#allocation2 + $0x28] sm:$0x30] }
 0xdfb   :  { %8280 = vrcp.f32 %v3768_v56 }
 0xdfc   :  { %8282 = vrcp.f32 %v3775_v32 }
 0xe04   :  { %v8279_v61 = vpop.eup %8278 }
 0xe05   :  { %v8281_v53 = vpop.eup %8280  ;;  %v3779_v5 = vmul.f32 %v8279_v61, %v8277_v7  ;;  %v3787_v61 = vld [vmem:[#allocation2 + $0x38] sm:$0x30] }
 0xe06   :  { %v3778_v26 = vmul.f32 %v8281_v53, %v11805_v8 }
 0xe08   :  { %v3854_v3 = vpop.f32.mrb[40].mxu0  ;;  %v3925_v62 = vpop.f32.mrb[40].mxu1  ;;  %v10223_v34 = vadd.f32 %v3779_v5, %v3778_v26 }
 0xe09   :  { %v3934_v25 = vrot.slane %v3854_v3, 4  ;;  %v3856_v14 = vpop.f32.mrb[41].mxu0  ;;  %v3927_v44 = vpop.f32.mrb[41].mxu1  ;;  %v3936_v5 = vrot.slane %v3925_v62, 4  ;;  %v3786_v3 = vld [vmem:[#allocation2 + $0x30] sm:$0x30] }
 0xe0a   :  { %11806 = vst [vmem:[#allocation108_spill] sm:$0xff] %v10223_v34  ;;  %v3935_v57 = vrot.slane %v3856_v14, 4  ;;  %8284 = vtanh.f32 %v10223_v34  ;;  %v3937_v42 = vrot.slane %v3927_v44, 4  ;;  %v8283_v26 = vpop.eup %8282 }
 0xe0b   :  { %v3942_v56 = vadd.f32 %v3934_v25, %v3784_v40  ;;  %v3944_v45 = vadd.f32 %v3936_v5, %v3786_v3  ;;  %v11810_v5 = vld [vmem:[#allocation132_spill] sm:$0xff]  ;;  %v11813_v3 = vld [vmem:[#allocation135_spill] sm:$0xff] }
 0xe0c   :  { %v3943_v58 = vadd.f32 %v3935_v57, %v3785_v52  ;;  %v3945_v53 = vadd.f32 %v3937_v42, %v3787_v61  ;;  %v3966_v57 = vrot.slane %v10039_v18, 6  ;;  %v11807_v18 = vld [vmem:[#allocation129_spill] sm:$0xff] }
 0xe0d   :  { %v5250_v50 = vmul.f32 -1.442695, %v3942_v56 }
 0xe0e   :  { %v5251_v7 = vmul.f32 -1.442695, %v3943_v58  ;;  %v5252_v46 = vmul.f32 -1.442695, %v3945_v53  ;;  %v11808_v53 = vld [vmem:[#allocation130_spill] sm:$0xff] }
 0xe0f   :  { %8286 = vpow2.f32 %v5250_v50 }
 0xe10   :  { %8288 = vpow2.f32 %v5251_v7 }
 0xe11   :  { %8290 = vpow2.f32 %v5252_v46 }
 0xe12   :  { %8292 = vtanh.f32 %v3944_v45 }
 0xe14   :  { %v8285_v32 = vpop.eup %8284 }
 0xe15   :  { %v3782_v8 = vmul.f32 %v8285_v32, %v8283_v26  ;;  %v11809_v26 = vld [vmem:[#allocation131_spill] sm:$0xff]  ;;  %v11811_v32 = vld [vmem:[#allocation133_spill] sm:$0xff] }
 0xe17   :  { %3783 = vst [vmem:[#allocation3 + $0xa] sm:$0x3] %v3782_v8 }
 0xe19   :  { %v8287_v14 = vpop.eup %8286 }
 0xe1a   :  { %v8289_v34 = vpop.eup %8288  ;;  %v3949_v25 = vadd.f32 1.0, %v8287_v14  ;;  %v11814_v14 = vld [vmem:[#allocation136_spill] sm:$0xff] }
 0xe1b   :  { %v3955_v40 = vadd.f32 1.0, %v8289_v34  ;;  %v8291_v50 = vpop.eup %8290 }
 0xe1c   :  { %8294 = vrcp.f32 %v3949_v25  ;;  %v8293_v58 = vpop.eup %8292  ;;  %v3962_v52 = vadd.f32 1.0, %v8291_v50  ;;  %v11815_v25 = vld [vmem:[#allocation137_spill] sm:$0xff]  ;;  %v11817_v50 = vld [vmem:[#allocation139_spill] sm:$0xff] }
 0xe1d   :  { %8296 = vrcp.f32 %v3955_v40  ;;  %v11816_v40 = vld [vmem:[#allocation138_spill] sm:$0xff] }
 0xe1e   :  { %8298 = vrcp.f32 %v3962_v52  ;;  %v11823_v52 = vld [vmem:[#allocation145_spill] sm:$0xff] }
 0xe26   :  { %v8295_v44 = vpop.eup %8294 }
 0xe27   :  { %v8297_v62 = vpop.eup %8296  ;;  %v3969_v56 = vmul.f32 %v8295_v44, %v8293_v58  ;;  %v11818_v58 = vld [vmem:[#allocation140_spill] sm:$0xff]  ;;  %v11819_v44 = vld [vmem:[#allocation141_spill] sm:$0xff] }
 0xe28   :  { %v3968_v7 = vmul.f32 %v8297_v62, %v3966_v57  ;;  %v8299_v61 = vpop.eup %8298  ;;  %v11820_v57 = vld [vmem:[#allocation142_spill] sm:$0xff]  ;;  %v11821_v62 = vld [vmem:[#allocation143_spill] sm:$0xff] }
 0xe2a   :  { %v10227_v42 = vadd.f32 %v3969_v56, %v3968_v7  ;;  %v11822_v56 = vld [vmem:[#allocation144_spill] sm:$0xff]  ;;  %v11824_v7 = vld [vmem:[#allocation146_spill] sm:$0xff] }
 0xe2c   :  { %8300 = vtanh.f32 %v10227_v42 }
 0xe36   :  { %v8301_v46 = vpop.eup %8300 }
 0xe37   :  { %v3972_v45 = vmul.f32 %v8301_v46, %v8299_v61  ;;  %v11825_v61 = vld [vmem:[#allocation147_spill] sm:$0xff]  ;;  %v11826_v46 = vld [vmem:[#allocation148_spill] sm:$0xff] }
 0xe39   :  { %v10230_v34 = vrot.slane %v3972_v45, 4  ;;  %v11827_v45 = vld [vmem:[#allocation149_spill] sm:$0xff] }
 0xe3b   :  { %4045 = vmatmul.mubr.f32.vlgmr.msra.gmra.mrb[42].mxu0 %v10230_v34  ;;  %4116 = vmatmul.mubr.f32.vlgmr.msra.gmra.mrb[42].mxu1 %v10230_v34 }
 0xe3c   :  { %4210 = vmatprep.mubr.f32.mxu0 %v3782_v8  ;;  %4281 = vmatprep.mubr.f32.mxu1 %v3782_v8  ;;  %v11812_v8 = vld [vmem:[#allocation134_spill] sm:$0xff] }
 0xe3d   :  { %7489 = vmatpush1.bf16.msra.mxu0 %v11157_v17  ;;  %7553 = vmatpush1.bf16.msra.mxu1 %v11158_v9 }
 0xe3e   :  { %7491 = vmatprep.subr.bf16.mxu0 %v11159_v27  ;;  %7555 = vmatprep.subr.bf16.mxu1 %v11160_v11 }
 0xe41   :  { %7493 = vmatpush1.bf16.msra.mxu0 %v11161_v0  ;;  %7557 = vmatpush1.bf16.msra.mxu1 %v11162_v12 }
 0xe42   :  { %7495 = vmatprep.subr.bf16.mxu0 %v8961_v49  ;;  %7559 = vmatprep.subr.bf16.mxu1 %v8963_v2 }
 0xe45   :  { %7497 = vmatpush1.bf16.msra.mxu0 %v8967_v51  ;;  %7561 = vmatpush1.bf16.msra.mxu1 %v8969_v21 }
 0xe46   :  { %7499 = vmatprep.subr.bf16.mxu0 %v11287_v22  ;;  %7563 = vmatprep.subr.bf16.mxu1 %v11288_v16 }
 0xe49   :  { %7501 = vmatpush1.bf16.msra.mxu0 %v11289_v13  ;;  %7565 = vmatpush1.bf16.msra.mxu1 %v11290_v60 }
 0xe4a   :  { %7503 = vmatprep.subr.bf16.mxu0 %v11291_v6  ;;  %7567 = vmatprep.subr.bf16.mxu1 %v11418_v47 }
 0xe4d   :  { %7505 = vmatpush1.bf16.msra.mxu0 %v11419_v4  ;;  %7569 = vmatpush1.bf16.msra.mxu1 %v11420_v38 }
 0xe4e   :  { %7507 = vmatprep.subr.bf16.mxu0 %v11421_v36  ;;  %7571 = vmatprep.subr.bf16.mxu1 %v11422_v54 }
 0xe51   :  { %7509 = vmatpush1.bf16.msra.mxu0 %v11548_v55  ;;  %7573 = vmatpush1.bf16.msra.mxu1 %v11549_v39 }
 0xe52   :  { %7511 = vmatprep.subr.bf16.mxu0 %v11676_v30  ;;  %7575 = vmatprep.subr.bf16.mxu1 %v11677_v48 }
 0xe55   :  { %7513 = vmatpush1.bf16.msra.mxu0 %v11678_v23  ;;  %7577 = vmatpush1.bf16.msra.mxu1 %v11679_v43 }
 0xe56   :  { %7515 = vmatprep.subr.bf16.mxu0 %v11680_v31  ;;  %7579 = vmatprep.subr.bf16.mxu1 %v11807_v18 }
 0xe59   :  { %7517 = vmatpush1.bf16.msra.mxu0 %v11808_v53  ;;  %7581 = vmatpush1.bf16.msra.mxu1 %v11809_v26 }
 0xe5a   :  { %7519 = vmatprep.subr.bf16.mxu0 %v11810_v5  ;;  %7583 = vmatprep.subr.bf16.mxu1 %v11811_v32 }
 0xe5d   :  { %7521 = vmatpush1.bf16.msra.mxu0 %v11812_v8  ;;  %7585 = vmatpush1.bf16.msra.mxu1 %v11813_v3 }
 0xe5e   :  { %7523 = vmatprep.subr.bf16.mxu0 %v11814_v14  ;;  %7587 = vmatprep.subr.bf16.mxu1 %v11815_v25 }
 0xe61   :  { %7525 = vmatpush1.bf16.msra.mxu0 %v11816_v40  ;;  %7589 = vmatpush1.bf16.msra.mxu1 %v11817_v50  ;;  %v11828_v50 = vld [vmem:[#allocation150_spill] sm:$0xff]  ;;  %v11844_v40 = vld [vmem:[#allocation164_spill] sm:$0xff] }
 0xe62   :  { %7527 = vmatprep.subr.bf16.mxu0 %v11818_v58  ;;  %7591 = vmatprep.subr.bf16.mxu1 %v11819_v44  ;;  %v11829_v58 = vld [vmem:[#allocation151_spill] sm:$0xff]  ;;  %v11830_v44 = vld [vmem:[#allocation152_spill] sm:$0xff] }
 0xe65   :  { %7529 = vmatpush1.bf16.msra.mxu0 %v11820_v57  ;;  %7593 = vmatpush1.bf16.msra.mxu1 %v11821_v62  ;;  %v11831_v57 = vld [vmem:[#allocation153_spill] sm:$0xff]  ;;  %v11832_v62 = vld [vmem:[#allocation154_spill] sm:$0xff] }
 0xe66   :  { %7531 = vmatprep.subr.bf16.mxu0 %v11822_v56  ;;  %7595 = vmatprep.subr.bf16.mxu1 %v11823_v52  ;;  %v11833_v56 = vld [vmem:[#allocation155_spill] sm:$0xff]  ;;  %v11834_v52 = vld [vmem:[#allocation156_spill] sm:$0xff] }
 0xe69   :  { %7533 = vmatpush1.bf16.msra.mxu0 %v11824_v7  ;;  %7597 = vmatpush1.bf16.msra.mxu1 %v11825_v61  ;;  %v11835_v7 = vld [vmem:[#allocation157_spill] sm:$0xff]  ;;  %v11836_v61 = vld [vmem:[#allocation158_spill] sm:$0xff] }
 0xe6a   :  { %7535 = vmatprep.subr.bf16.mxu0 %v11826_v46  ;;  %7599 = vmatprep.subr.bf16.mxu1 %v11827_v45  ;;  %v11837_v46 = vld [vmem:[#allocation159_spill] sm:$0xff]  ;;  %v11838_v45 = vld [vmem:[#allocation160_spill] sm:$0xff] }
 0xe6d   :  { %7537 = vmatpush1.bf16.msra.mxu0 %v11828_v50  ;;  %7601 = vmatpush1.bf16.msra.mxu1 %v11829_v58  ;;  %v11839_v50 = vld [vmem:[#allocation161_spill] sm:$0xff]  ;;  %v11840_v58 = vld [vmem:[#allocation162_spill] sm:$0xff] }
 0xe6e   :  { %7539 = vmatprep.subr.bf16.mxu0 %v11830_v44  ;;  %7603 = vmatprep.subr.bf16.mxu1 %v11831_v57  ;;  %v11841_v44 = vld [vmem:[#allocation163_spill] sm:$0xff]  ;;  %v11842_v57 = vld [vmem:[#allocation16_spill] sm:$0xff] }
 0xe71   :  { %7541 = vmatpush1.bf16.msra.mxu0 %v11832_v62  ;;  %7605 = vmatpush1.bf16.msra.mxu1 %v11833_v56  ;;  %v11843_v62 = vld [vmem:[#allocation17_spill] sm:$0xff] }
 0xe72   :  { %7543 = vmatprep.subr.bf16.mxu0 %v11834_v52  ;;  %7607 = vmatprep.subr.bf16.mxu1 %v11835_v7 }
 0xe75   :  { %7545 = vmatpush1.bf16.msra.mxu0 %v11836_v61  ;;  %7609 = vmatpush1.bf16.msra.mxu1 %v11837_v46 }
 0xe76   :  { %7547 = vmatprep.subr.bf16.mxu0 %v11838_v45  ;;  %7611 = vmatprep.subr.bf16.mxu1 %v11839_v50 }
 0xe79   :  { %7549 = vmatpush1.bf16.msra.mxu0 %v11840_v58  ;;  %7613 = vmatpush1.bf16.msra.mxu1 %v11841_v44 }
 0xe7a   :  { %7615 = vmatprep.subr.bf16.mxu0 %v11842_v57  ;;  %7647 = vmatprep.subr.bf16.mxu1 %v11843_v62 }
 0xf0e   :  { %v4046_v56 = vpop.f32.mrb[42].mxu0  ;;  %v4117_v52 = vpop.f32.mrb[42].mxu1 }
 0xf0f   :  { %v4047_v7 = vadd.f32 %v4046_v56, %v11844_v40  ;;  %v4048_v25 = vpop.f32.mrb[43].mxu0  ;;  %v4119_v61 = vpop.f32.mrb[43].mxu1  ;;  %v4118_v44 = vadd.f32 %v4117_v52, %v9152_v63 }
 0xf10   :  { %v4049_v46 = vadd.f32 %v4048_v25, %v9143_v1  ;;  %v4120_v58 = vadd.f32 %v4119_v61, %v11215_v59 }
 0xf11   :  { %v5253_v14 = vmul.f32 -1.442695, %v4047_v7 }
 0xf12   :  { %v5254_v45 = vmul.f32 -1.442695, %v4049_v46  ;;  %v5255_v50 = vmul.f32 -1.442695, %v4120_v58 }
 0xf13   :  { %8302 = vpow2.f32 %v5253_v14 }
 0xf14   :  { %8304 = vpow2.f32 %v5254_v45 }
 0xf15   :  { %8306 = vpow2.f32 %v5255_v50 }
 0xf16   :  { %8308 = vtanh.f32 %v4118_v44  ;;  %v11859_v44 = vld [vmem:[#allocation32_spill] sm:$0xff] }
 0xf1d   :  { %v8303_v57 = vpop.eup %8302 }
 0xf1e   :  { %v8305_v3 = vpop.eup %8304  ;;  %v4125_v62 = vadd.f32 1.0, %v8303_v57  ;;  %v11860_v57 = vld [vmem:[#allocation33_spill] sm:$0xff] }
 0xf1f   :  { %v4131_v8 = vadd.f32 1.0, %v8305_v3  ;;  %v8307_v56 = vpop.eup %8306  ;;  %v11857_v3 = vld [vmem:[#allocation30_spill] sm:$0xff] }
 0xf20   :  { %8310 = vrcp.f32 %v4125_v62  ;;  %v8309_v40 = vpop.eup %8308  ;;  %v4138_v14 = vadd.f32 1.0, %v8307_v56  ;;  %v11861_v62 = vld [vmem:[#allocation34_spill] sm:$0xff]  ;;  %v11862_v56 = vld [vmem:[#allocation35_spill] sm:$0xff] }
 0xf21   :  { %8312 = vrcp.f32 %v4131_v8  ;;  %v11856_v8 = vld [vmem:[#allocation29_spill] sm:$0xff] }
 0xf22   :  { %8314 = vrcp.f32 %v4138_v14  ;;  %v11865_v14 = vld [vmem:[#allocation38_spill] sm:$0xff] }
 0xf2a   :  { %v8311_v25 = vpop.eup %8310 }
 0xf2b   :  { %v8313_v7 = vpop.eup %8312  ;;  %v4142_v46 = vmul.f32 %v8311_v25, %v8309_v40  ;;  %v11858_v40 = vld [vmem:[#allocation31_spill] sm:$0xff]  ;;  %v11863_v25 = vld [vmem:[#allocation36_spill] sm:$0xff] }
 0xf2c   :  { %v4141_v45 = vmul.f32 %v8313_v7, %v10115_v10  ;;  %v8315_v58 = vpop.eup %8314  ;;  %v11849_v10 = vld [vmem:[#allocation22_spill] sm:$0xff] }
 0xf2e   :  { %v10303_v61 = vadd.f32 %v4142_v46, %v4141_v45  ;;  %v11864_v46 = vld [vmem:[#allocation37_spill] sm:$0xff]  ;;  %v11866_v45 = vld [vmem:[#allocation39_spill] sm:$0xff] }
 0xf30   :  { %8316 = vtanh.f32 %v10303_v61 }
 0xf3a   :  { %v8317_v52 = vpop.eup %8316 }
 0xf3b   :  { %v4145_v50 = vmul.f32 %v8317_v52, %v8315_v58  ;;  %v11867_v58 = vld [vmem:[#allocation40_spill] sm:$0xff] }
 0xf3d   :  { %4211 = vmatmul.mubr.f32.vlgmr.msra.gmra.mrb[44].mxu0 %v4145_v50  ;;  %4282 = vmatmul.mubr.f32.vlgmr.msra.gmra.mrb[44].mxu1 %v4145_v50  ;;  %v4503_v7 = vrot.slane %v4145_v50, 2  ;;  %v11870_v50 = vld [vmem:[#allocation43_spill] sm:$0xff] }
 0xf3e   :  { %7617 = vmatpush1.bf16.msra.mxu0 %v8615_v15  ;;  %7649 = vmatpush1.bf16.msra.mxu1 %v8621_v19  ;;  %v11845_v15 = vld [vmem:[#allocation18_spill] sm:$0xff]  ;;  %v11846_v19 = vld [vmem:[#allocation19_spill] sm:$0xff] }
 0xf3f   :  { %7619 = vmatprep.subr.bf16.mxu0 %v8623_v20  ;;  %7651 = vmatprep.subr.bf16.mxu1 %v8626_v24  ;;  %v11847_v20 = vld [vmem:[#allocation20_spill] sm:$0xff]  ;;  %v11848_v24 = vld [vmem:[#allocation21_spill] sm:$0xff]  ;;  %v4506_v52 = vrot.slane %v4503_v7, 6  ;;  %v11889_v7 = vld [vmem:[#allocation62_spill] sm:$0xff] }
 0xf40   :  { %4381 = vmatprep.mubr.f32.mxu0 %v11089_v35  ;;  %4452 = vmatprep.mubr.f32.mxu1 %v11089_v35  ;;  %v11850_v35 = vld [vmem:[#allocation23_spill] sm:$0xff] }
 0xf42   :  { %7621 = vmatpush1.bf16.msra.mxu0 %v8630_v28  ;;  %7653 = vmatpush1.bf16.msra.mxu1 %v8632_v29  ;;  %v11851_v28 = vld [vmem:[#allocation24_spill] sm:$0xff]  ;;  %v11852_v29 = vld [vmem:[#allocation25_spill] sm:$0xff] }
 0xf43   :  { %7623 = vmatprep.subr.bf16.mxu0 %v8635_v33  ;;  %7655 = vmatprep.subr.bf16.mxu1 %v8637_v37  ;;  %v11853_v33 = vld [vmem:[#allocation26_spill] sm:$0xff]  ;;  %v11854_v37 = vld [vmem:[#allocation27_spill] sm:$0xff] }
 0xf46   :  { %7625 = vmatpush1.bf16.msra.mxu0 %v8640_v41  ;;  %7657 = vmatpush1.bf16.msra.mxu1 %v11845_v15  ;;  %v11855_v41 = vld [vmem:[#allocation28_spill] sm:$0xff]  ;;  %v11868_v15 = vld [vmem:[#allocation41_spill] sm:$0xff] }
 0xf47   :  { %7627 = vmatprep.subr.bf16.mxu0 %v11846_v19  ;;  %7659 = vmatprep.subr.bf16.mxu1 %v11847_v20  ;;  %v11869_v19 = vld [vmem:[#allocation42_spill] sm:$0xff]  ;;  %v11871_v20 = vld [vmem:[#allocation44_spill] sm:$0xff] }
 0xf4a   :  { %7629 = vmatpush1.bf16.msra.mxu0 %v11848_v24  ;;  %7661 = vmatpush1.bf16.msra.mxu1 %v11849_v10  ;;  %v11872_v24 = vld [vmem:[#allocation45_spill] sm:$0xff]  ;;  %v11873_v10 = vld [vmem:[#allocation46_spill] sm:$0xff] }
 0xf4b   :  { %7631 = vmatprep.subr.bf16.mxu0 %v11850_v35  ;;  %7663 = vmatprep.subr.bf16.mxu1 %v11851_v28  ;;  %v11874_v35 = vld [vmem:[#allocation47_spill] sm:$0xff]  ;;  %v11875_v28 = vld [vmem:[#allocation48_spill] sm:$0xff] }
 0xf4e   :  { %7633 = vmatpush1.bf16.msra.mxu0 %v11852_v29  ;;  %7665 = vmatpush1.bf16.msra.mxu1 %v11853_v33  ;;  %v11876_v29 = vld [vmem:[#allocation49_spill] sm:$0xff]  ;;  %v11878_v33 = vld [vmem:[#allocation51_spill] sm:$0xff] }
 0xf4f   :  { %7635 = vmatprep.subr.bf16.mxu0 %v11854_v37  ;;  %7667 = vmatprep.subr.bf16.mxu1 %v11855_v41  ;;  %v11879_v37 = vld [vmem:[#allocation52_spill] sm:$0xff]  ;;  %v11880_v41 = vld [vmem:[#allocation53_spill] sm:$0xff] }
 0xf52   :  { %7637 = vmatpush1.bf16.msra.mxu0 %v11856_v8  ;;  %7669 = vmatpush1.bf16.msra.mxu1 %v11857_v3  ;;  %v11881_v8 = vld [vmem:[#allocation54_spill] sm:$0xff]  ;;  %v11882_v3 = vld [vmem:[#allocation55_spill] sm:$0xff] }
 0xf53   :  { %7639 = vmatprep.subr.bf16.mxu0 %v11858_v40  ;;  %7671 = vmatprep.subr.bf16.mxu1 %v11859_v44  ;;  %v11883_v40 = vld [vmem:[#allocation56_spill] sm:$0xff]  ;;  %v11884_v44 = vld [vmem:[#allocation57_spill] sm:$0xff] }
 0xf56   :  { %7641 = vmatpush1.bf16.msra.mxu0 %v11860_v57  ;;  %7673 = vmatpush1.bf16.msra.mxu1 %v11861_v62  ;;  %v11885_v57 = vld [vmem:[#allocation58_spill] sm:$0xff]  ;;  %v11886_v62 = vld [vmem:[#allocation59_spill] sm:$0xff] }
 0xf57   :  { %7643 = vmatprep.subr.bf16.mxu0 %v11862_v56  ;;  %7675 = vmatprep.subr.bf16.mxu1 %v11863_v25  ;;  %v11887_v56 = vld [vmem:[#allocation60_spill] sm:$0xff]  ;;  %v11888_v25 = vld [vmem:[#allocation61_spill] sm:$0xff] }
 0xf5a   :  { %7645 = vmatpush1.bf16.msra.mxu0 %v11864_v46  ;;  %7677 = vmatpush1.bf16.msra.mxu1 %v11865_v14  ;;  %v11890_v46 = vld [vmem:[#allocation63_spill] sm:$0xff]  ;;  %v11891_v14 = vld [vmem:[#allocation64_spill] sm:$0xff] }
 0xf5b   :  { %7679 = vmatprep.subr.bf16.mxu0 %v11866_v45  ;;  %7743 = vmatprep.subr.bf16.mxu1 %v11867_v58  ;;  %v11892_v45 = vld [vmem:[#allocation65_spill] sm:$0xff]  ;;  %v11893_v58 = vld [vmem:[#allocation66_spill] sm:$0xff] }
 0xf5d   :  { %4382 = vmatmul.mubr.f32.vlgmr.msra.gmra.mrb[46].mxu0 %v10230_v34  ;;  %4453 = vmatmul.mubr.f32.vlgmr.msra.gmra.mrb[46].mxu1 %v10230_v34  ;;  %v11877_v34 = vld [vmem:[#allocation50_spill] sm:$0xff] }
 0xf5e   :  { %4573 = vmatprep.mubr.f32.mxu0 %v4506_v52  ;;  %4644 = vmatprep.mubr.f32.mxu1 %v4506_v52  ;;  %v11894_v52 = vld [vmem:[#allocation67_spill] sm:$0xff] }
 0xf5f   :  { %7681 = vmatpush1.bf16.msra.mxu0 %v11868_v15  ;;  %7745 = vmatpush1.bf16.msra.mxu1 %v11869_v19  ;;  %v11895_v15 = vld [vmem:[#allocation68_spill] sm:$0xff]  ;;  %v11896_v19 = vld [vmem:[#allocation69_spill] sm:$0xff] }
 0xf60   :  { %7683 = vmatprep.subr.bf16.mxu0 %v11870_v50  ;;  %7747 = vmatprep.subr.bf16.mxu1 %v11871_v20  ;;  %v11897_v50 = vld [vmem:[#allocation70_spill] sm:$0xff]  ;;  %v11898_v20 = vld [vmem:[#allocation71_spill] sm:$0xff] }
 0xf63   :  { %7685 = vmatpush1.bf16.msra.mxu0 %v11872_v24  ;;  %7749 = vmatpush1.bf16.msra.mxu1 %v11873_v10  ;;  %v11899_v24 = vld [vmem:[#allocation72_spill] sm:$0xff]  ;;  %v11900_v10 = vld [vmem:[#allocation73_spill] sm:$0xff] }
 0xf64   :  { %7687 = vmatprep.subr.bf16.mxu0 %v11874_v35  ;;  %7751 = vmatprep.subr.bf16.mxu1 %v11875_v28  ;;  %v11901_v35 = vld [vmem:[#allocation74_spill] sm:$0xff]  ;;  %v11902_v28 = vld [vmem:[#allocation75_spill] sm:$0xff] }
 0xf67   :  { %7689 = vmatpush1.bf16.msra.mxu0 %v11876_v29  ;;  %7753 = vmatpush1.bf16.msra.mxu1 %v11877_v34  ;;  %v11903_v29 = vld [vmem:[#allocation76_spill] sm:$0xff]  ;;  %v11904_v34 = vld [vmem:[#allocation77_spill] sm:$0xff] }
 0xf68   :  { %7691 = vmatprep.subr.bf16.mxu0 %v11878_v33  ;;  %7755 = vmatprep.subr.bf16.mxu1 %v11879_v37  ;;  %v11905_v33 = vld [vmem:[#allocation78_spill] sm:$0xff]  ;;  %v11906_v37 = vld [vmem:[#allocation79_spill] sm:$0xff] }
 0xf6b   :  { %7693 = vmatpush1.bf16.msra.mxu0 %v11880_v41  ;;  %7757 = vmatpush1.bf16.msra.mxu1 %v11881_v8  ;;  %v11907_v41 = vld [vmem:[#allocation80_spill] sm:$0xff]  ;;  %v11908_v8 = vld [vmem:[#allocation81_spill] sm:$0xff] }
 0xf6c   :  { %7695 = vmatprep.subr.bf16.mxu0 %v11882_v3  ;;  %7759 = vmatprep.subr.bf16.mxu1 %v11883_v40  ;;  %v11909_v3 = vld [vmem:[#allocation82_spill] sm:$0xff]  ;;  %v11910_v40 = vld [vmem:[#allocation83_spill] sm:$0xff] }
 0xf6f   :  { %7697 = vmatpush1.bf16.msra.mxu0 %v11884_v44  ;;  %7761 = vmatpush1.bf16.msra.mxu1 %v11885_v57  ;;  %v11911_v44 = vld [vmem:[#allocation84_spill] sm:$0xff]  ;;  %v11912_v57 = vld [vmem:[#allocation85_spill] sm:$0xff] }
 0xf70   :  { %7699 = vmatprep.subr.bf16.mxu0 %v11886_v62  ;;  %7763 = vmatprep.subr.bf16.mxu1 %v11887_v56  ;;  %v11913_v62 = vld [vmem:[#allocation86_spill] sm:$0xff]  ;;  %v11914_v56 = vld [vmem:[#allocation87_spill] sm:$0xff] }
 0xf73   :  { %7701 = vmatpush1.bf16.msra.mxu0 %v11888_v25  ;;  %7765 = vmatpush1.bf16.msra.mxu1 %v11889_v7  ;;  %v11915_v25 = vld [vmem:[#allocation88_spill] sm:$0xff]  ;;  %v11916_v7 = vld [vmem:[#allocation89_spill] sm:$0xff] }
 0xf74   :  { %7703 = vmatprep.subr.bf16.mxu0 %v11890_v46  ;;  %7767 = vmatprep.subr.bf16.mxu1 %v11891_v14  ;;  %v11917_v46 = vld [vmem:[#allocation90_spill] sm:$0xff]  ;;  %v11918_v14 = vld [vmem:[#allocation91_spill] sm:$0xff] }
 0xf77   :  { %7705 = vmatpush1.bf16.msra.mxu0 %v11892_v45  ;;  %7769 = vmatpush1.bf16.msra.mxu1 %v11893_v58  ;;  %v11919_v45 = vld [vmem:[#allocation92_spill] sm:$0xff]  ;;  %v11920_v58 = vld [vmem:[#allocation93_spill] sm:$0xff] }
 0xf78   :  { %7707 = vmatprep.subr.bf16.mxu0 %v11894_v52  ;;  %7771 = vmatprep.subr.bf16.mxu1 %v11895_v15  ;;  %v11921_v52 = vld [vmem:[#allocation94_spill] sm:$0xff]  ;;  %v11922_v15 = vld [vmem:[#allocation95_spill] sm:$0xff] }
 0xf7b   :  { %7709 = vmatpush1.bf16.msra.mxu0 %v11896_v19  ;;  %7773 = vmatpush1.bf16.msra.mxu1 %v11897_v50  ;;  %v11923_v19 = vld [vmem:[#allocation96_spill] sm:$0xff]  ;;  %v11924_v50 = vld [vmem:[#allocation97_spill] sm:$0xff] }
 0xf7c   :  { %7711 = vmatprep.subr.bf16.mxu0 %v11898_v20  ;;  %7775 = vmatprep.subr.bf16.mxu1 %v11899_v24  ;;  %v11925_v20 = vld [vmem:[#allocation98_spill] sm:$0xff]  ;;  %v11926_v24 = vld [vmem:[#allocation99_spill] sm:$0xff] }
 0xf7f   :  { %7713 = vmatpush1.bf16.msra.mxu0 %v11900_v10  ;;  %7777 = vmatpush1.bf16.msra.mxu1 %v11901_v35  ;;  %v11927_v10 = vld [vmem:[#allocation100_spill] sm:$0xff]  ;;  %v11928_v35 = vld [vmem:[#allocation101_spill] sm:$0xff] }
 0xf80   :  { %7715 = vmatprep.subr.bf16.mxu0 %v11902_v28  ;;  %7779 = vmatprep.subr.bf16.mxu1 %v11903_v29  ;;  %v11929_v28 = vld [vmem:[#allocation102_spill] sm:$0xff]  ;;  %v11930_v29 = vld [vmem:[#allocation103_spill] sm:$0xff] }
 0xf83   :  { %7717 = vmatpush1.bf16.msra.mxu0 %v11904_v34  ;;  %7781 = vmatpush1.bf16.msra.mxu1 %v11905_v33  ;;  %v11931_v34 = vld [vmem:[#allocation104_spill] sm:$0xff] }
 0xf84   :  { %7719 = vmatprep.subr.bf16.mxu0 %v11906_v37  ;;  %7783 = vmatprep.subr.bf16.mxu1 %v11907_v41  ;;  %v11932_v41 = vld [vmem:[#allocation166_spill] sm:$0xff] }
 0xf87   :  { %7721 = vmatpush1.bf16.msra.mxu0 %v11908_v8  ;;  %7785 = vmatpush1.bf16.msra.mxu1 %v11909_v3 }
 0xf88   :  { %7723 = vmatprep.subr.bf16.mxu0 %v11910_v40  ;;  %7787 = vmatprep.subr.bf16.mxu1 %v11911_v44  ;;  %v11933_v44 = vld [vmem:[#allocation167_spill] sm:$0xff] }
 0xf8b   :  { %7725 = vmatpush1.bf16.msra.mxu0 %v11912_v57  ;;  %7789 = vmatpush1.bf16.msra.mxu1 %v11913_v62 }
 0xf8c   :  { %7727 = vmatprep.subr.bf16.mxu0 %v11914_v56  ;;  %7791 = vmatprep.subr.bf16.mxu1 %v11915_v25  ;;  %v11934_v25 = vld [vmem:[#allocation168_spill] sm:$0xff] }
 0xf8f   :  { %7729 = vmatpush1.bf16.msra.mxu0 %v11916_v7  ;;  %7793 = vmatpush1.bf16.msra.mxu1 %v11917_v46 }
 0xf90   :  { %7731 = vmatprep.subr.bf16.mxu0 %v11918_v14  ;;  %7795 = vmatprep.subr.bf16.mxu1 %v11919_v45  ;;  %v11935_v14 = vld [vmem:[#allocation169_spill] sm:$0xff] }
 0xf93   :  { %7733 = vmatpush1.bf16.msra.mxu0 %v11920_v58  ;;  %7797 = vmatpush1.bf16.msra.mxu1 %v11921_v52 }
 0xf94   :  { %7735 = vmatprep.subr.bf16.mxu0 %v11922_v15  ;;  %7799 = vmatprep.subr.bf16.mxu1 %v11923_v19 }
 0xf97   :  { %7737 = vmatpush1.bf16.msra.mxu0 %v11924_v50  ;;  %7801 = vmatpush1.bf16.msra.mxu1 %v11925_v20 }
 0xf98   :  { %7739 = vmatprep.subr.bf16.mxu0 %v11926_v24  ;;  %7803 = vmatprep.subr.bf16.mxu1 %v11927_v10 }
 0xf9b   :  { %7741 = vmatpush1.bf16.msra.mxu0 %v11928_v35  ;;  %7805 = vmatpush1.bf16.msra.mxu1 %v11929_v28 }
 0xf9c   :  { %7807 = vmatprep.subr.bf16.mxu0 %v11930_v29  ;;  %7871 = vmatprep.subr.bf16.mxu1 %v11931_v34  ;;  %v11936_v29 = vld [vmem:[#allocation108_spill] sm:$0xff] }
0x1010   :  { %v4212_v33 = vpop.f32.mrb[44].mxu0  ;;  %v4283_v37 = vpop.f32.mrb[44].mxu1 }
0x1011   :  { %v4213_v8 = vadd.f32 %v4212_v33, %v11932_v41  ;;  %v4214_v3 = vpop.f32.mrb[45].mxu0  ;;  %v4285_v40 = vpop.f32.mrb[45].mxu1  ;;  %v4284_v45 = vadd.f32 %v4283_v37, %v11935_v14 }
0x1012   :  { %v4215_v57 = vadd.f32 %v4214_v3, %v11933_v44  ;;  %v4286_v7 = vadd.f32 %v4285_v40, %v11934_v25 }
0x1013   :  { %v5256_v62 = vmul.f32 -1.442695, %v4213_v8 }
0x1014   :  { %v5257_v56 = vmul.f32 -1.442695, %v4215_v57  ;;  %v5258_v46 = vmul.f32 -1.442695, %v4286_v7 }
0x1015   :  { %8318 = vpow2.f32 %v5256_v62  ;;  %v4313_v62 = vld [vmem:[#allocation2 + $0x20] sm:$0xc0] }
0x1016   :  { %8320 = vpow2.f32 %v5257_v56 }
0x1017   :  { %8322 = vpow2.f32 %v5258_v46  ;;  %v4314_v46 = vld [vmem:[#allocation2 + $0x28] sm:$0xc0] }
0x1018   :  { %8324 = vtanh.f32 %v4284_v45 }
0x101f   :  { %v8319_v58 = vpop.eup %8318 }
0x1020   :  { %v8321_v52 = vpop.eup %8320  ;;  %v4291_v15 = vadd.f32 1.0, %v8319_v58 }
0x1021   :  { %v4297_v19 = vadd.f32 1.0, %v8321_v52  ;;  %v8323_v50 = vpop.eup %8322 }
0x1022   :  { %8326 = vrcp.f32 %v4291_v15  ;;  %v8325_v20 = vpop.eup %8324  ;;  %v4304_v28 = vadd.f32 1.0, %v8323_v50 }
0x1023   :  { %8328 = vrcp.f32 %v4297_v19  ;;  %v4316_v19 = vld [vmem:[#allocation2 + $0x38] sm:$0xc0] }
0x1024   :  { %8330 = vrcp.f32 %v4304_v28  ;;  %v4315_v28 = vld [vmem:[#allocation2 + $0x30] sm:$0xc0] }
0x102c   :  { %v8327_v24 = vpop.eup %8326 }
0x102d   :  { %v8329_v10 = vpop.eup %8328  ;;  %v4308_v35 = vmul.f32 %v8327_v24, %v8325_v20 }
0x102e   :  { %v4307_v34 = vmul.f32 %v8329_v10, %v11936_v29  ;;  %v8331_v20 = vpop.eup %8330 }
0x1030   :  { %v4383_v33 = vpop.f32.mrb[46].mxu0  ;;  %v4454_v8 = vpop.f32.mrb[46].mxu1  ;;  %v10411_v3 = vadd.f32 %v4308_v35, %v4307_v34 }
0x1031   :  { %v4463_v37 = vrot.slane %v4383_v33, 2  ;;  %v4385_v40 = vpop.f32.mrb[47].mxu0  ;;  %v4456_v57 = vpop.f32.mrb[47].mxu1  ;;  %v4465_v24 = vrot.slane %v4454_v8, 2 }
0x1032   :  { %v4464_v56 = vrot.slane %v4385_v40, 2  ;;  %8332 = vtanh.f32 %v10411_v3  ;;  %v4466_v15 = vrot.slane %v4456_v57, 2 }
0x1033   :  { %v4471_v7 = vadd.f32 %v4463_v37, %v4313_v62  ;;  %v4473_v34 = vadd.f32 %v4465_v24, %v4315_v28 }
0x1034   :  { %v4472_v45 = vadd.f32 %v4464_v56, %v4314_v46  ;;  %v4474_v50 = vadd.f32 %v4466_v15, %v4316_v19  ;;  %v4495_v46 = vrot.slane %v10227_v42, 6  ;;  %v11964_v42 = vld [vmem:[#allocation161_spill] sm:$0xff] }
0x1035   :  { %v5259_v58 = vmul.f32 -1.442695, %v4471_v7 }
0x1036   :  { %v5260_v52 = vmul.f32 -1.442695, %v4472_v45  ;;  %v5261_v29 = vmul.f32 -1.442695, %v4474_v50 }
0x1037   :  { %8334 = vpow2.f32 %v5259_v58 }
0x1038   :  { %8336 = vpow2.f32 %v5260_v52 }
0x1039   :  { %8338 = vpow2.f32 %v5261_v29 }
0x103a   :  { %8340 = vtanh.f32 %v4473_v34 }
0x103c   :  { %v8333_v10 = vpop.eup %8332 }
0x103d   :  { %v4311_v35 = vmul.f32 %v8333_v10, %v8331_v20 }
0x103f   :  { %4312 = vst [vmem:[#allocation3 + $0xc] sm:$0x3] %v4311_v35 }
0x1041   :  { %v8335_v33 = vpop.eup %8334 }
0x1042   :  { %v8337_v40 = vpop.eup %8336  ;;  %v4478_v37 = vadd.f32 1.0, %v8335_v33 }
0x1043   :  { %v4484_v62 = vadd.f32 1.0, %v8337_v40  ;;  %v8339_v57 = vpop.eup %8338 }
0x1044   :  { %8342 = vrcp.f32 %v4478_v37  ;;  %v8341_v56 = vpop.eup %8340  ;;  %v4491_v58 = vadd.f32 1.0, %v8339_v57 }
0x1045   :  { %8344 = vrcp.f32 %v4484_v62 }
0x1046   :  { %8346 = vrcp.f32 %v4491_v58 }
0x104e   :  { %v8343_v7 = vpop.eup %8342 }
0x104f   :  { %v8345_v8 = vpop.eup %8344  ;;  %v4498_v45 = vmul.f32 %v8343_v7, %v8341_v56 }
0x1050   :  { %v4497_v52 = vmul.f32 %v8345_v8, %v4495_v46  ;;  %v8347_v19 = vpop.eup %8346 }
0x1052   :  { %v4499_v15 = vadd.f32 %v4498_v45, %v4497_v52 }
0x1054   :  { %4847 = vst [vmem:[#allocation10 - $0x6] sm:$0xc0] %v4499_v15  ;;  %8348 = vtanh.f32 %v4499_v15 }
0x105e   :  { %v8349_v50 = vpop.eup %8348 }
0x105f   :  { %v4501_v20 = vmul.f32 %v8349_v50, %v8347_v19 }
0x1061   :  { %v4505_v24 = vrot.slane %v4501_v20, 6  ;;  %4842 = vst [vmem:[#allocation9 - $0x6] sm:$0xc0] %v4501_v20 }
0x1063   :  { %4574 = vmatmul.mubr.f32.vlgmr.msra.gmra.mrb[48].mxu0 %v4505_v24  ;;  %4645 = vmatmul.mubr.f32.vlgmr.msra.gmra.mrb[48].mxu1 %v4505_v24  ;;  %v4852_v24 = vld [vmem:[#allocation3] sm:$0xff] }
0x1064   :  { %4739 = vmatprep.mubr.f32.mxu0 %v4311_v35  ;;  %4810 = vmatprep.mubr.f32.mxu1 %v4311_v35 }
0x1065   :  { %7809 = vmatpush1.bf16.msra.mxu0 %v11157_v17  ;;  %7873 = vmatpush1.bf16.msra.mxu1 %v11158_v9  ;;  %v11941_v17 = vld [vmem:[#allocation138_spill] sm:$0xff]  ;;  %v11942_v9 = vld [vmem:[#allocation139_spill] sm:$0xff] }
0x1066   :  { %7811 = vmatprep.subr.bf16.mxu0 %v11159_v27  ;;  %7875 = vmatprep.subr.bf16.mxu1 %v11160_v11  ;;  %v11943_v27 = vld [vmem:[#allocation140_spill] sm:$0xff]  ;;  %v11944_v11 = vld [vmem:[#allocation141_spill] sm:$0xff] }
0x1069   :  { %7813 = vmatpush1.bf16.msra.mxu0 %v11161_v0  ;;  %7877 = vmatpush1.bf16.msra.mxu1 %v11162_v12  ;;  %v11945_v0 = vld [vmem:[#allocation142_spill] sm:$0xff]  ;;  %v11946_v12 = vld [vmem:[#allocation143_spill] sm:$0xff] }
0x106a   :  { %7815 = vmatprep.subr.bf16.mxu0 %v8961_v49  ;;  %7879 = vmatprep.subr.bf16.mxu1 %v8963_v2  ;;  %v11937_v49 = vld [vmem:[#allocation134_spill] sm:$0xff]  ;;  %v11938_v2 = vld [vmem:[#allocation135_spill] sm:$0xff] }
0x106d   :  { %7817 = vmatpush1.bf16.msra.mxu0 %v8967_v51  ;;  %7881 = vmatpush1.bf16.msra.mxu1 %v8969_v21  ;;  %v11939_v51 = vld [vmem:[#allocation136_spill] sm:$0xff]  ;;  %v11940_v21 = vld [vmem:[#allocation137_spill] sm:$0xff] }
0x106e   :  { %7819 = vmatprep.subr.bf16.mxu0 %v11287_v22  ;;  %7883 = vmatprep.subr.bf16.mxu1 %v11288_v16  ;;  %v11947_v22 = vld [vmem:[#allocation144_spill] sm:$0xff]  ;;  %v11948_v16 = vld [vmem:[#allocation145_spill] sm:$0xff] }
0x1071   :  { %7821 = vmatpush1.bf16.msra.mxu0 %v11289_v13  ;;  %7885 = vmatpush1.bf16.msra.mxu1 %v11290_v60  ;;  %v11949_v13 = vld [vmem:[#allocation146_spill] sm:$0xff]  ;;  %v11950_v60 = vld [vmem:[#allocation147_spill] sm:$0xff] }
0x1072   :  { %7823 = vmatprep.subr.bf16.mxu0 %v11291_v6  ;;  %7887 = vmatprep.subr.bf16.mxu1 %v11418_v47  ;;  %v11951_v6 = vld [vmem:[#allocation148_spill] sm:$0xff]  ;;  %v11952_v47 = vld [vmem:[#allocation149_spill] sm:$0xff] }
0x1075   :  { %7825 = vmatpush1.bf16.msra.mxu0 %v11419_v4  ;;  %7889 = vmatpush1.bf16.msra.mxu1 %v11420_v38  ;;  %v11953_v4 = vld [vmem:[#allocation150_spill] sm:$0xff]  ;;  %v11954_v38 = vld [vmem:[#allocation151_spill] sm:$0xff] }
0x1076   :  { %7827 = vmatprep.subr.bf16.mxu0 %v11421_v36  ;;  %7891 = vmatprep.subr.bf16.mxu1 %v11422_v54  ;;  %v11955_v36 = vld [vmem:[#allocation152_spill] sm:$0xff]  ;;  %v11956_v54 = vld [vmem:[#allocation153_spill] sm:$0xff] }
0x1079   :  { %7829 = vmatpush1.bf16.msra.mxu0 %v11548_v55  ;;  %7893 = vmatpush1.bf16.msra.mxu1 %v11549_v39  ;;  %v11957_v55 = vld [vmem:[#allocation154_spill] sm:$0xff]  ;;  %v11958_v39 = vld [vmem:[#allocation155_spill] sm:$0xff] }
0x107a   :  { %7831 = vmatprep.subr.bf16.mxu0 %v11676_v30  ;;  %7895 = vmatprep.subr.bf16.mxu1 %v11677_v48  ;;  %v11959_v30 = vld [vmem:[#allocation156_spill] sm:$0xff]  ;;  %v11960_v48 = vld [vmem:[#allocation157_spill] sm:$0xff] }
0x107d   :  { %7833 = vmatpush1.bf16.msra.mxu0 %v11678_v23  ;;  %7897 = vmatpush1.bf16.msra.mxu1 %v11679_v43  ;;  %v11961_v23 = vld [vmem:[#allocation158_spill] sm:$0xff]  ;;  %v11962_v43 = vld [vmem:[#allocation159_spill] sm:$0xff] }
0x107e   :  { %7835 = vmatprep.subr.bf16.mxu0 %v11680_v31  ;;  %7899 = vmatprep.subr.bf16.mxu1 %v11807_v18  ;;  %v11963_v31 = vld [vmem:[#allocation160_spill] sm:$0xff]  ;;  %v11965_v18 = vld [vmem:[#allocation162_spill] sm:$0xff] }
0x1081   :  { %7837 = vmatpush1.bf16.msra.mxu0 %v11808_v53  ;;  %7901 = vmatpush1.bf16.msra.mxu1 %v11809_v26  ;;  %v11966_v53 = vld [vmem:[#allocation163_spill] sm:$0xff] }
0x1082   :  { %7839 = vmatprep.subr.bf16.mxu0 %v11810_v5  ;;  %7903 = vmatprep.subr.bf16.mxu1 %v11811_v32  ;;  %v11967_v32 = vld [vmem:[#allocation164_spill] sm:$0xff] }
0x1085   :  { %7841 = vmatpush1.bf16.msra.mxu0 %v11937_v49  ;;  %7905 = vmatpush1.bf16.msra.mxu1 %v11938_v2  ;;  %v4854_v49 = vld [vmem:[%s10621_s7] sm:$0xff] }
0x1086   :  { %7843 = vmatprep.subr.bf16.mxu0 %v11939_v51  ;;  %7907 = vmatprep.subr.bf16.mxu1 %v11940_v21  ;;  %v4856_v51 = vld [vmem:[%s10621_s7 + $0x10] sm:$0xff]  ;;  %v4857_v21 = vld [vmem:[%s10621_s7 + $0x18] sm:$0xff] }
0x1089   :  { %7845 = vmatpush1.bf16.msra.mxu0 %v11941_v17  ;;  %7909 = vmatpush1.bf16.msra.mxu1 %v11942_v9  ;;  %v7938_v17 = vpack.c.bf16 %v4857_v21, %v4856_v51  ;;  %v4858_v9 = vld [vmem:[%s10621_s7 + $0x20] sm:$0xff] }
0x108a   :  { %7847 = vmatprep.subr.bf16.mxu0 %v11943_v27  ;;  %7911 = vmatprep.subr.bf16.mxu1 %v11944_v11  ;;  %v4859_v27 = vld [vmem:[%s10621_s7 + $0x28] sm:$0xff] }
0x108b   :  { %v7942_v11 = vpack.c.bf16 %v4859_v27, %v4858_v9 }
0x108d   :  { %7849 = vmatpush1.bf16.msra.mxu0 %v11945_v0  ;;  %7913 = vmatpush1.bf16.msra.mxu1 %v11946_v12  ;;  %v4860_v0 = vld [vmem:[%s10621_s7 + $0x30] sm:$0xff]  ;;  %v4861_v12 = vld [vmem:[%s10621_s7 + $0x38] sm:$0xff] }
0x108e   :  { %7851 = vmatprep.subr.bf16.mxu0 %v11947_v22  ;;  %7915 = vmatprep.subr.bf16.mxu1 %v11948_v16  ;;  %v7946_v22 = vpack.c.bf16 %v4861_v12, %v4860_v0  ;;  %v4862_v16 = vld [vmem:[%s10621_s7 + $0x40] sm:$0xff]  ;;  %v5055_v0 = vld [vmem:[%s10625_s11 + $0x10] sm:$0xff]  ;;  %v5056_v12 = vld [vmem:[%s10625_s11 + $0x18] sm:$0xff] }
0x1091   :  { %7853 = vmatpush1.bf16.msra.mxu0 %v11949_v13  ;;  %7917 = vmatpush1.bf16.msra.mxu1 %v11950_v60  ;;  %v4863_v13 = vld [vmem:[%s10621_s7 + $0x48] sm:$0xff] }
0x1092   :  { %7855 = vmatprep.subr.bf16.mxu0 %v11951_v6  ;;  %7919 = vmatprep.subr.bf16.mxu1 %v11952_v47  ;;  %v7950_v60 = vpack.c.bf16 %v4863_v13, %v4862_v16  ;;  %v4864_v6 = vld [vmem:[%s10621_s7 + $0x50] sm:$0xff]  ;;  %v4865_v47 = vld [vmem:[%s10621_s7 + $0x58] sm:$0xff]  ;;  %v5269_v16 = vld [vmem:[%s10624_s10] ss:$0 sm:$0xff] }
0x1095   :  { %7857 = vmatpush1.bf16.msra.mxu0 %v11953_v4  ;;  %7921 = vmatpush1.bf16.msra.mxu1 %v11954_v38  ;;  %v7954_v4 = vpack.c.bf16 %v4865_v47, %v4864_v6  ;;  %v4866_v38 = vld [vmem:[%s10621_s7 + $0x60] sm:$0xff] }
0x1096   :  { %7859 = vmatprep.subr.bf16.mxu0 %v11955_v36  ;;  %7923 = vmatprep.subr.bf16.mxu1 %v11956_v54  ;;  %v4867_v36 = vld [vmem:[%s10621_s7 + $0x68] sm:$0xff] }
0x1097   :  { %v7958_v54 = vpack.c.bf16 %v4867_v36, %v4866_v38 }
0x1099   :  { %7861 = vmatpush1.bf16.msra.mxu0 %v11957_v55  ;;  %7925 = vmatpush1.bf16.msra.mxu1 %v11958_v39  ;;  %v4868_v55 = vld [vmem:[%s10621_s7 + $0x70] sm:$0xff]  ;;  %v4869_v39 = vld [vmem:[%s10621_s7 + $0x78] sm:$0xff] }
0x109a   :  { %7863 = vmatprep.subr.bf16.mxu0 %v11959_v30  ;;  %7927 = vmatprep.subr.bf16.mxu1 %v11960_v48  ;;  %v7962_v30 = vpack.c.bf16 %v4869_v39, %v4868_v55  ;;  %v4954_v48 = vld [vmem:[%s10623_s9] sm:$0xff] }
0x109d   :  { %7865 = vmatpush1.bf16.msra.mxu0 %v11961_v23  ;;  %7929 = vmatpush1.bf16.msra.mxu1 %v11962_v43  ;;  %v4955_v23 = vld [vmem:[%s10623_s9 + $0x8] sm:$0xff]  ;;  %v4956_v43 = vld [vmem:[%s10623_s9 + $0x10] sm:$0xff] }
0x109e   :  { %7867 = vmatprep.subr.bf16.mxu0 %v11963_v31  ;;  %7931 = vmatprep.subr.bf16.mxu1 %v11964_v42  ;;  %v7966_v31 = vpack.c.bf16 %v4955_v23, %v4954_v48  ;;  %v4957_v42 = vld [vmem:[%s10623_s9 + $0x18] sm:$0xff] }
0x10a1   :  { %7869 = vmatpush1.bf16.msra.mxu0 %v11965_v18  ;;  %7933 = vmatpush1.bf16.msra.mxu1 %v11966_v53  ;;  %v7970_v18 = vpack.c.bf16 %v4957_v42, %v4956_v43  ;;  %v4958_v53 = vld [vmem:[%s10623_s9 + $0x20] sm:$0xff] }
0x10a2   :  { %7967 = vmatprep.subr.bf16.mxu1 %v7966_v31 }
0x1136   :  { %v4575_v26 = vpop.f32.mrb[48].mxu0  ;;  %v4646_v5 = vpop.f32.mrb[48].mxu1 }
0x1137   :  { %v4576_v10 = vadd.f32 %v4575_v26, %v11967_v32  ;;  %v4577_v35 = vpop.f32.mrb[49].mxu0  ;;  %v4648_v28 = vpop.f32.mrb[49].mxu1  ;;  %v4647_v62 = vadd.f32 %v4646_v5, %v9152_v63  ;;  %v4959_v26 = vld [vmem:[%s10623_s9 + $0x28] sm:$0xff] }
0x1138   :  { %v4578_v29 = vadd.f32 %v4577_v35, %v9143_v1  ;;  %v4649_v40 = vadd.f32 %v4648_v28, %v11215_v59  ;;  %v7974_v5 = vpack.c.bf16 %v4959_v26, %v4958_v53 }
0x1139   :  { %v5262_v34 = vmul.f32 -1.442695, %v4576_v10 }
0x113a   :  { %v5263_v33 = vmul.f32 -1.442695, %v4578_v29  ;;  %v5264_v37 = vmul.f32 -1.442695, %v4649_v40 }
0x113b   :  { %8350 = vpow2.f32 %v5262_v34 }
0x113c   :  { %8352 = vpow2.f32 %v5263_v33 }
0x113d   :  { %8354 = vpow2.f32 %v5264_v37 }
0x113e   :  { %8356 = vtanh.f32 %v4647_v62 }
0x1145   :  { %v8351_v57 = vpop.eup %8350 }
0x1146   :  { %v8353_v56 = vpop.eup %8352  ;;  %v4654_v7 = vadd.f32 1.0, %v8351_v57 }
0x1147   :  { %v4660_v46 = vadd.f32 1.0, %v8353_v56  ;;  %v8355_v8 = vpop.eup %8354 }
0x1148   :  { %8358 = vrcp.f32 %v4654_v7  ;;  %v8357_v45 = vpop.eup %8356  ;;  %v4667_v15 = vadd.f32 1.0, %v8355_v8 }
0x1149   :  { %8360 = vrcp.f32 %v4660_v46 }
0x114a   :  { %8362 = vrcp.f32 %v4667_v15 }
0x1152   :  { %v8359_v1 = vpop.eup %8358 }
0x1153   :  { %v8361_v58 = vpop.eup %8360  ;;  %v4671_v52 = vmul.f32 %v8359_v1, %v8357_v45 }
0x1154   :  { %v4670_v19 = vmul.f32 %v8361_v58, %v10303_v61  ;;  %v8363_v63 = vpop.eup %8362  ;;  %v4855_v61 = vld [vmem:[%s10621_s7 + $0x8] sm:$0xff]  ;;  %s8426_s7 = scalar_lea.vmem %s5156_s3, 96 }
0x1155   :  { %v7934_v2 = vpack.c.bf16 %v4855_v61, %v4854_v49  ;;  %v5054_v49 = vld [vmem:[%s10625_s11 + $0x8] sm:$0xff]  ;;  %p8427_p2 = scmp.ne.s32.totalorder %s5156_s3, %s8426_s7  ;;  %p8432_p4 = scmp.lt.s32.totalorder %s8426_s7, %s8426_s7 }
0x1156   :  { %v4672_v59 = vadd.f32 %v4671_v52, %v4670_v19 }
0x1157   :  { %7935 = vmatprep.subr.bf16.mxu0 %v7934_v2  ;;  %p8433_p5 = por %p8432_p4, %p8431_p3 }
0x1158   :  { %4849 = vst [vmem:[#allocation10 + $0x2] sm:$0x3] %v4672_v59  ;;  %8364 = vtanh.f32 %v4672_v59 }
0x1159   :  { %p8434_p6 = pnand %p8433_p5, %p8427_p2 }
0x1162   :  { %v8365_v50 = vpop.eup %8364 }
0x1163   :  { %v4674_v20 = vmul.f32 %v8365_v50, %v8363_v63  ;;  %v4960_v50 = vld [vmem:[%s10623_s9 + $0x30] sm:$0xff] }
0x1165   :  { %4740 = vmatmul.mubr.f32.vlgmr.msra.gmra.mrb[50].mxu0 %v4674_v20  ;;  %4844 = vst [vmem:[#allocation9 + $0x2] sm:$0x3] %v4674_v20  ;;  %4811 = vmatmul.mubr.f32.vlgmr.msra.gmra.mrb[50].mxu1 %v4674_v20  ;;  %v4961_v20 = vld [vmem:[%s10623_s9 + $0x38] sm:$0xff] }
0x1166   :  { %5341 = vmatprep.mubr.f32.mxu0 %v4852_v24  ;;  %7937 = vmatpush3.bf16.msra.mxu0 %v7934_v2  ;;  %v5053_v24 = vld [vmem:[%s10625_s11] sm:$0xff]  ;;  %s5167_s11 = sshll.u32 %s8484_s28, 4  ;;  %s5168_s11 = int_to_ptr.vmem [resolvable:$true] %s5167_s11 }
0x1167   :  { %7939 = vmatprep.subr.bf16.mxu0 %v7938_v17  ;;  %7969 = vmatpush3.bf16.msra.mxu1 %v7966_v31  ;;  %v7982_v61 = vpack.c.bf16 %v5054_v49, %v5053_v24  ;;  %v5268_v2 = vld [vmem:[%s10622_s8] ss:$0 sm:$0xff] }
0x1168   :  { %7971 = vmatprep.subr.bf16.mxu1 %v7970_v18 }
0x116a   :  { %7941 = vmatpush3.bf16.msra.mxu0 %v7938_v17 }
0x116b   :  { %7943 = vmatprep.subr.bf16.mxu0 %v7942_v11  ;;  %7973 = vmatpush3.bf16.msra.mxu1 %v7970_v18 }
0x116c   :  { %7975 = vmatprep.subr.bf16.mxu1 %v7974_v5 }
0x116e   :  { %7945 = vmatpush3.bf16.msra.mxu0 %v7942_v11 }
0x116f   :  { %7947 = vmatprep.subr.bf16.mxu0 %v7946_v22  ;;  %7977 = vmatpush3.bf16.msra.mxu1 %v7974_v5 }
0x1172   :  { %7949 = vmatpush3.bf16.msra.mxu0 %v7946_v22  ;;  %v7986_v22 = vpack.c.bf16 %v5056_v12, %v5055_v0 }
0x1173   :  { %7951 = vmatprep.subr.bf16.mxu0 %v7950_v60 }
0x1176   :  { %7953 = vmatpush3.bf16.msra.mxu0 %v7950_v60 }
0x1177   :  { %7955 = vmatprep.subr.bf16.mxu0 %v7954_v4 }
0x117a   :  { %7957 = vmatpush3.bf16.msra.mxu0 %v7954_v4 }
0x117b   :  { %7959 = vmatprep.subr.bf16.mxu0 %v7958_v54 }
0x117e   :  { %7961 = vmatpush3.bf16.msra.mxu0 %v7958_v54 }
0x117f   :  { %7963 = vmatprep.subr.bf16.mxu0 %v7962_v30 }
0x1182   :  { %7965 = vmatpush3.bf16.msra.mxu0 %v7962_v30 }
0x1238   :  { %v4741_v32 = vpop.f32.mrb[50].mxu0  ;;  %v4812_v10 = vpop.f32.mrb[50].mxu1 }
0x1239   :  { %v4742_v35 = vadd.f32 %v4741_v32, %v11932_v41  ;;  %v4743_v28 = vpop.f32.mrb[51].mxu0  ;;  %v4814_v29 = vpop.f32.mrb[51].mxu1  ;;  %v4813_v57 = vadd.f32 %v4812_v10, %v11935_v14 }
0x123a   :  { %v4744_v34 = vadd.f32 %v4743_v28, %v11933_v44  ;;  %v4815_v37 = vadd.f32 %v4814_v29, %v11934_v25 }
0x123b   :  { %v5265_v33 = vmul.f32 -1.442695, %v4742_v35 }
0x123c   :  { %v5266_v40 = vmul.f32 -1.442695, %v4744_v34  ;;  %v5267_v62 = vmul.f32 -1.442695, %v4815_v37 }
0x123d   :  { %8366 = vpow2.f32 %v5265_v33 }
0x123e   :  { %8368 = vpow2.f32 %v5266_v40 }
0x123f   :  { %8370 = vpow2.f32 %v5267_v62 }
0x1240   :  { %8372 = vtanh.f32 %v4813_v57 }
0x1247   :  { %v8367_v56 = vpop.eup %8366 }
0x1248   :  { %v8369_v7 = vpop.eup %8368  ;;  %v4820_v46 = vadd.f32 1.0, %v8367_v56 }
0x1249   :  { %v4826_v8 = vadd.f32 1.0, %v8369_v7  ;;  %v8371_v41 = vpop.eup %8370 }
0x124a   :  { %8374 = vrcp.f32 %v4820_v46  ;;  %v8373_v45 = vpop.eup %8372  ;;  %v4833_v52 = vadd.f32 1.0, %v8371_v41 }
0x124b   :  { %8376 = vrcp.f32 %v4826_v8 }
0x124c   :  { %8378 = vrcp.f32 %v4833_v52 }
0x1254   :  { %v8375_v44 = vpop.eup %8374 }
0x1255   :  { %v8377_v1 = vpop.eup %8376  ;;  %v4837_v58 = vmul.f32 %v8375_v44, %v8373_v45 }
0x1256   :  { %v4836_v15 = vmul.f32 %v8377_v1, %v10411_v3  ;;  %v8379_v14 = vpop.eup %8378  ;;  %v7978_v3 = vpack.c.bf16 %v4961_v20, %v4960_v50 }
0x1258   :  { %v4838_v25 = vadd.f32 %v4837_v58, %v4836_v15  ;;  %7979 = vmatprep.subr.bf16.mxu1 %v7978_v3 }
0x1259   :  { %7981 = vmatpush3.bf16.msra.mxu1 %v7978_v3 }
0x125a   :  { %8380 = vtanh.f32 %v4838_v25  ;;  %4851 = vst [vmem:[#allocation10 + $0x4] sm:$0x3] %v4838_v25  ;;  %7983 = vmatprep.subr.bf16.mxu1 %v7982_v61 }
0x1264   :  { %v8381_v19 = vpop.eup %8380 }
0x1265   :  { %v4840_v59 = vmul.f32 %v8381_v19, %v8379_v14 }
0x1267   :  { %4841 = vst [vmem:[#allocation3 + $0xe] sm:$0x3] %v4840_v59  ;;  %4846 = vst [vmem:[#allocation9 + $0x4] sm:$0x3] %v4840_v59 }
0x126e   :  { %v4853_v63 = vld [vmem:[#allocation3 + $0x8] sm:$0xff] }
0x126f   :  { %5342 = vmatmul.mubr.f32.vlgmr.msra.gmra.mrb[52].mxu0 %v4853_v63 }
0x1342   :  { %v5343_v51 = vpop.f32.mrb[52].mxu0 }
0x1343   :  { %v4949_v21 = vadd.f32 %v5343_v51, %v5268_v2  ;;  %v4943_v17 = vpop.f32.mrb[53].mxu0 }
0x1344   :  { %v4944_v9 = vadd.f32 %v5268_v2, %v4943_v17 }
0x1345   :  { %v4953_v11 = vmax.f32 %v4949_v21, 0.0 }
0x1346   :  { %v4952_v27 = vmax.f32 %v4944_v9, 0.0 }
0x1348   :  { %5360 = vmatprep.mubr.msk.f32.mxu1 %vm4969_vm1, %v4952_v27 }
0x1349   :  { %5361 = vmatmul.mubr.msk.f32.vlgmr.msra.gmra.mrb[52].mxu1 %vm4969_vm1, %v4953_v11 }
0x134a   :  { %7985 = vmatpush3.bf16.msra.mxu1 %v7982_v61 }
0x134b   :  { %7987 = vmatprep.subr.bf16.mxu1 %v7986_v22 }
0x134e   :  { %7989 = vmatpush3.bf16.msra.mxu1 %v7986_v22 }
0x141c   :  { %v5362_v13 = vpop.f32.mrb[52].mxu1 }
0x141d   :  { %v5048_v60 = vadd.f32 %v5362_v13, %v5269_v16  ;;  %v5042_v6 = vpop.f32.mrb[53].mxu1 }
0x141e   :  { %v5043_v47 = vadd.f32 %v5269_v16, %v5042_v6 }
0x141f   :  { %v5052_v38 = vmax.f32 %v5048_v60, 0.0 }
0x1420   :  { %v5051_v4 = vmax.f32 %v5043_v47, 0.0 }
0x1422   :  { %5371 = vmatprep.mubr.msk.f32.mxu1 %vm5064_vm2, %v5051_v4 }
0x1423   :  { %5372 = vmatmul.mubr.msk.f32.vlgmr.msra.gmra.mrb[54].mxu1 %vm5064_vm2, %v5052_v38 }
0x1424   :  { %8437 = shalt.err (!%p8434_p6)
}
0x1425   :  { %s8438_s4 = scalar_lea.hbm %s10628_s14, 96 }
0x1426   :  { %p8439_p7 = scmp.ne.s32.totalorder %s10628_s14, %s8438_s4  ;;  %p8442_p8 = scmp.lt.u32.totalorder %s8438_s4, %s10628_s14 }
0x1428   :  { %p8444_p9 = pnand %p8442_p8, %p8439_p7 }
0x142a   :  { %8447 = shalt.err (!%p8444_p9)
}
0x142b   :  { %s8485_s0 = smov 2   ;;  %s8448_s27 = scalar_lea.vmem %s5168_s11, 96 }
0x142c   :  { %5161 = dma.vmem_to_hbm [thread:$0]  %s5156_s3, 96, %s10628_s14, [#allocation6], %s8480_s29, %s8480_s29, %s8485_s0  }
0x142d   :  { %p8449_p10 = scmp.ne.s32.totalorder %s5168_s11, %s8448_s27  ;;  %p8453_p11 = scmp.lt.s32.totalorder %s5168_s11, %s5168_s11 }
0x142e   :  { %p8454_p12 = scmp.lt.s32.totalorder %s8448_s27, %s8448_s27 }
0x1430   :  { %p8455_p13 = por %p8454_p12, %p8453_p11 }
0x1432   :  { %p8456_p0 = pnand %p8455_p13, %p8449_p10 }
0x1434   :  { %8459 = shalt.err (!%p8456_p0)
}
0x1435   :  { %s8460_s30 = scalar_lea.hbm %s10629_s15, 96 }
0x1436   :  { %p8461_p1 = scmp.ne.s32.totalorder %s10629_s15, %s8460_s30  ;;  %p8464_p2 = scmp.lt.u32.totalorder %s8460_s30, %s10629_s15 }
0x1438   :  { %p8466_p3 = pnand %p8464_p2, %p8461_p1 }
0x143a   :  { %8469 = shalt.err (!%p8466_p3)
}
0x143b   :  { %5173 = dma.vmem_to_hbm [thread:$0]  %s5168_s11, 96, %s10629_s15, [#allocation11], %s8480_s29, %s8480_s29, %s8485_s0  }
0x143c   :  { %v5272_v36 = vld [vmem:[%s10626_s12] ss:$0 sm:$0xff] }
0x14f6   :  { %v5373_v54 = vpop.f32.mrb[54].mxu1 }
0x14f7   :  { %v5143_v55 = vadd.f32 %v5373_v54, %v5272_v36  ;;  %v5137_v39 = vpop.f32.mrb[55].mxu1 }
0x14f8   :  { %v5138_v30 = vadd.f32 %v5272_v36, %v5137_v39 }
0x14f9   :  { %5147 = vst [vmem:[%s10627_s13 + $0x8] sm:$0xff] %v5143_v55 }
0x14fa   :  { %5146 = vst [vmem:[%s10627_s13] sm:$0xff] %v5138_v30 }
0x14fb   :  { %8474 = dma.done.wait [#allocation6], 96  }
0x14fc   :  { %8475 = vsyncadd [#allocation6], 4294967200 }
0x14fd   :  { %8476 = dma.done.wait [#allocation11], 96  }
0x14fe   :  { %8477 = vsyncadd [#allocation11], 4294967200 }
0x14ff   :  { %5182 = vsyncpa [#allocation5], 1 }
0x1500   :  { %5183 = vsyncpa [#allocation8], 1 }
0x1501   :  { %5184 = vsyncpa [#allocation6], 1 }
0x1502   :  { %5185 = vsyncpa [#allocation11], 1 }

</bundles_post_ra>
